<compile_context>
chip_gen: v7x
topology: tpu7x:2x2x1
jax: 0.10.0
libtpu: 0.0.40
codegen_flags: <defaults>
</compile_context>

<pallas_src>
import functools

import numpy as np
import jax
import jax.numpy as jnp
from jax.experimental import pallas as pl
from jax.experimental.pallas import tpu as pltpu


# ------------------------------ kernel helpers ------------------------------

def _layer_norm(x, g, b, eps=1e-5):
    mu = jnp.mean(x, axis=-1, keepdims=True)
    var = jnp.mean(jnp.square(x - mu), axis=-1, keepdims=True)
    return (x - mu) * jax.lax.rsqrt(var + eps) * g + b


def _gelu(x):
    # exact-erf GELU (matches torch.nn.GELU default)
    return 0.5 * x * (1.0 + jax.lax.erf(x * 0.7071067811865476))


def _swin_block(x, g1, b1, wq, wk, wv, wp, bp, bias, g2, b2, w1, bm1, w2, bm2):
    """One Swin block on an (L, C) fp32 token matrix.

    Window attention is expressed as block-diagonal full-sequence attention:
    `bias` = rel-pos bias (+0) within the (shifted) window, -1e9 across windows.
    TODO(synk): nn.Dropout layers are identity (eval-mode semantics).
    """
    nh = wq.shape[0]
    xn = _layer_norm(x, g1, b1)
    xb = xn.astype(jnp.bfloat16)
    y = jnp.zeros_like(x)
    for h in range(nh):                                        # static, nh == 2
        q = jnp.dot(xb, wq[h], preferred_element_type=jnp.float32)   # scale folded into wq
        k = jnp.dot(xb, wk[h], preferred_element_type=jnp.float32)
        v = jnp.dot(xb, wv[h], preferred_element_type=jnp.float32)
        s = jnp.einsum('nd,md->nm', q.astype(jnp.bfloat16), k.astype(jnp.bfloat16),
                       preferred_element_type=jnp.float32)
        s = s + bias[h]                                        # rel-pos bias + window mask
        s = s - jnp.max(s, axis=-1, keepdims=True)
        p = jnp.exp(s)
        p = p * pl.reciprocal(jnp.sum(p, axis=-1, keepdims=True), approx=True)
        o = jnp.dot(p.astype(jnp.bfloat16), v.astype(jnp.bfloat16),
                    preferred_element_type=jnp.float32)        # (L, d)
        y = y + jnp.dot(o.astype(jnp.bfloat16), wp[h],
                        preferred_element_type=jnp.float32)    # head -> (L, C), accumulated
    x = x + y + bp                                             # attention residual (+ proj bias)

    xn2 = _layer_norm(x, g2, b2)
    h1 = jnp.dot(xn2.astype(jnp.bfloat16), w1, preferred_element_type=jnp.float32) + bm1
    h1 = _gelu(h1)
    m = jnp.dot(h1.astype(jnp.bfloat16), w2, preferred_element_type=jnp.float32) + bm2
    return x + m


# ------------------------------ fused kernel --------------------------------

def _swin_forward_kernel(
        patches_ref,
        pw_ref, pb_ref,
        s1_g1, s1_b1, s1_wq, s1_wk, s1_wv, s1_wp, s1_bp, s1_bias,
        s1_g2, s1_b2, s1_w1, s1_bm1, s1_w2, s1_bm2,
        msel_ref, mw_ref, mb_ref,
        s2_g1, s2_b1, s2_wq, s2_wk, s2_wv, s2_wp, s2_bp, s2_bias,
        s2_g2, s2_b2, s2_w1, s2_bm1, s2_w2, s2_bm2,
        hg_ref, hb_ref, hw_ref, hbias_ref,
        o_ref):
    # ---- patch embed (Conv2d 3->C1, k=s=patch) as matmul ----
    x = jnp.dot(patches_ref[0].astype(jnp.bfloat16), pw_ref[...],
                preferred_element_type=jnp.float32) + pb_ref[...]        # (L1, C1)

    # ---- stage 1 ----
    for i in range(s1_wq.shape[0]):
        x = _swin_block(x, s1_g1[i], s1_b1[i], s1_wq[i], s1_wk[i], s1_wv[i],
                        s1_wp[i], s1_bp[i], s1_bias[i], s1_g2[i], s1_b2[i],
                        s1_w1[i], s1_bm1[i], s1_w2[i], s1_bm2[i])

    # ---- PatchMerging (Conv2d C1->C2, k=s=2) in token order ----
    xb = x.astype(jnp.bfloat16)
    L2, C2 = msel_ref.shape[1], mw_ref.shape[2]
    x2 = jnp.zeros((L2, C2), jnp.float32)
    for k in range(msel_ref.shape[0]):                                   # 4 conv taps
        g = jnp.dot(msel_ref[k], xb, preferred_element_type=jnp.float32)  # (L2, C1)
        x2 = x2 + jnp.dot(g.astype(jnp.bfloat16), mw_ref[k],
                          preferred_element_type=jnp.float32)             # (L2, C2)
    x = x2 + mb_ref[...]

    # ---- stage 2 ----
    for i in range(s2_wq.shape[0]):
        x = _swin_block(x, s2_g1[i], s2_b1[i], s2_wq[i], s2_wk[i], s2_wv[i],
                        s2_wp[i], s2_bp[i], s2_bias[i], s2_g2[i], s2_b2[i],
                        s2_w1[i], s2_bm1[i], s2_w2[i], s2_bm2[i])

    # ---- mean pool -> LayerNorm -> head (reference order: norm(x.mean(dim=1))) ----
    pooled = jnp.mean(x, axis=0, keepdims=True)                          # (1, C2)
    pn = _layer_norm(pooled, hg_ref[...], hb_ref[...])
    logits = jnp.dot(pn.astype(jnp.bfloat16), hw_ref[...],
                     preferred_element_type=jnp.float32) + hbias_ref[...]
    o_ref[0] = logits.astype(o_ref.dtype)


# ------------------------------- wrapper -------------------------------------

_PARAM_ORDER = (
    'patch_w', 'patch_b',
    's1_g1', 's1_b1', 's1_wq', 's1_wk', 's1_wv', 's1_wp', 's1_bp', 's1_bias',
    's1_g2', 's1_b2', 's1_w1', 's1_bm1', 's1_w2', 's1_bm2',
    'merge_sel', 'merge_w', 'merge_b',
    's2_g1', 's2_b1', 's2_wq', 's2_wk', 's2_wv', 's2_wp', 's2_bp', 's2_bias',
    's2_g2', 's2_b2', 's2_w1', 's2_bm1', 's2_w2', 's2_bm2',
    'norm_g', 'norm_b', 'head_w', 'head_b',
)


def _rep_spec(a):
    nd = a.ndim
    return pl.BlockSpec(a.shape, lambda b, _nd=nd: (0,) * _nd)


def swin_student_forward(params, x, *, patch_size):
    """x: (B, 3, H, W) NCHW images -> (B, num_classes) logits."""
    B, cin, H, W = x.shape
    p = patch_size
    Hp, Wp = H // p, W // p
    # Non-overlapping patch extraction (pure layout; matches Conv2d k=s=p).
    patches = (x.reshape(B, cin, Hp, p, Wp, p)
                 .transpose(0, 2, 4, 1, 3, 5)
                 .reshape(B, Hp * Wp, cin * p * p))
    weights = [params[name] for name in _PARAM_ORDER]
    ncls = params['head_w'].shape[1]
    out = pl.pallas_call(
        _swin_forward_kernel,
        out_shape=jax.ShapeDtypeStruct((B, 1, ncls), jnp.float32),
        grid=(B,),
        in_specs=[pl.BlockSpec((1, Hp * Wp, cin * p * p), lambda b: (b, 0, 0))]
                 + [_rep_spec(w) for w in weights],
        out_specs=pl.BlockSpec((1, 1, ncls), lambda b: (b, 0, 0)),
        compiler_params=pltpu.CompilerParams(
            dimension_semantics=("parallel",)),    # B=2 -> two TensorCores on v7x
    )(patches, *weights)
    return out[:, 0, :]


# ------------------------------ param building -------------------------------

def _relative_bias_full(table, H, W, win_size, shift):
    """(nh, L, L) additive matrix folding roll + window partition/reverse:
    relative-position bias where q/k share a (shifted) window, -1e9 elsewhere."""
    hh, ww = np.meshgrid(np.arange(H), np.arange(W), indexing='ij')
    hs = (hh - shift) % H                      # position in the cyclically rolled grid
    wsft = (ww - shift) % W
    win = ((hs // win_size) * (W // win_size) + (wsft // win_size)).reshape(-1)
    ih = (hs % win_size).reshape(-1)
    iw = (wsft % win_size).reshape(-1)
    idx = ((ih[:, None] - ih[None, :] + win_size - 1) * (2 * win_size - 1)
           + (iw[:, None] - iw[None, :] + win_size - 1))                 # (L, L)
    bias = table[jnp.asarray(idx.reshape(-1))]                           # (L*L, nh)
    bias = bias.reshape(H * W, H * W, -1).transpose(2, 0, 1)             # (nh, L, L)
    mask = np.where(win[:, None] == win[None, :], 0.0, -1e9).astype(np.float32)
    return (bias + jnp.asarray(mask)[None]).astype(jnp.float32)


def _merge_selection(H1, W1):
    """4 x (L2, L1) 0/1 matrices gathering the 2x2 conv taps in token order."""
    H2, W2 = H1 // 2, W1 // 2
    sel = np.zeros((4, H2 * W2, H1 * W1), np.float32)
    for kh in range(2):
        for kw in range(2):
            k = kh * 2 + kw
            for ho in range(H2):
                for wo in range(W2):
                    sel[k, ho * W2 + wo, (2 * ho + kh) * W1 + (2 * wo + kw)] = 1.0
    return sel


def init_params(key, img_size, patch_size, num_classes, embed_dim, depth,
                num_heads, window_size):
    c1, c2 = embed_dim // 2, embed_dim
    nh = num_heads // 2
    ws = window_size
    p = patch_size
    H1 = img_size // patch_size
    H2 = H1 // 2
    nblk = depth // 2
    nbias = (2 * ws - 1) ** 2
    keys = iter(jax.random.split(key, 1024))

    def nrm(shape, std=0.02):
        return jax.random.normal(next(keys), shape, jnp.float32) * std

    def stage(dim, Hs, prefix):
        d = dim // nh
        scale = float(d) ** -0.5
        acc = {k: [] for k in ('g1', 'b1', 'wq', 'wk', 'wv', 'wp', 'bp', 'bias',
                               'g2', 'b2', 'w1', 'bm1', 'w2', 'bm2')}
        for i in range(nblk):
            shift = ws // 2 if i % 2 == 1 else 0
            wqkv = nrm((dim, 3 * dim))                       # x @ W (qkv, bias=False)
            acc['wq'].append(jnp.stack(                      # scale folded into Wq
                [wqkv[:, h * d:(h + 1) * d] * scale for h in range(nh)]))
            acc['wk'].append(jnp.stack(
                [wqkv[:, dim + h * d:dim + (h + 1) * d] for h in range(nh)]))
            acc['wv'].append(jnp.stack(
                [wqkv[:, 2 * dim + h * d:2 * dim + (h + 1) * d] for h in range(nh)]))
            wproj = nrm((dim, dim))                          # x @ W (attn proj)
            acc['wp'].append(jnp.stack(                      # head-major row split
                [wproj[h * d:(h + 1) * d, :] for h in range(nh)]))
            acc['bp'].append(jnp.zeros((1, dim), jnp.float32))
            table = nrm((nbias, nh))                         # rel-pos bias table
            acc['bias'].append(_relative_bias_full(table, Hs, Hs, ws, shift))
            acc['g1'].append(jnp.ones((1, dim), jnp.float32))
            acc['b1'].append(jnp.zeros((1, dim), jnp.float32))
            acc['g2'].append(jnp.ones((1, dim), jnp.float32))
            acc['b2'].append(jnp.zeros((1, dim), jnp.float32))
            acc['w1'].append(nrm((dim, 4 * dim)))
            acc['bm1'].append(jnp.zeros((1, 4 * dim), jnp.float32))
            acc['w2'].append(nrm((4 * dim, dim)))
            acc['bm2'].append(jnp.zeros((1, dim), jnp.float32))
        stacked = {f'{prefix}_{k}': jnp.stack(v) for k, v in acc.items()}
        for k in ('wq', 'wk', 'wv', 'wp', 'w1', 'w2'):       # pre-cast matmul weights
            stacked[f'{prefix}_{k}'] = stacked[f'{prefix}_{k}'].astype(jnp.bfloat16)
        return stacked

    pw = nrm((c1, 3, p, p))                                  # Conv2d(3, c1, k=s=p)
    mw = nrm((c2, c1, 2, 2))                                 # Conv2d(c1, c2, k=s=2)
    params = {
        'patch_w': pw.reshape(c1, -1).T.astype(jnp.bfloat16),   # (3*p*p, c1)
        'patch_b': nrm((1, c1)),
        'merge_sel': jnp.asarray(_merge_selection(H1, H1), jnp.bfloat16),   # (4, L2, L1)
        'merge_w': jnp.stack([mw[:, :, kh, kw].T
                              for kh in range(2) for kw in range(2)]).astype(jnp.bfloat16),
        'merge_b': nrm((1, c2)),
        'norm_g': jnp.ones((1, c2), jnp.float32),
        'norm_b': jnp.zeros((1, c2), jnp.float32),
        'head_w': nrm((c2, num_classes)).astype(jnp.bfloat16),
        'head_b': jnp.zeros((1, num_classes), jnp.float32),
    }
    params.update(stage(c1, H1, 's1'))
    params.update(stage(c2, H2, 's2'))
    return params


# ---------------------------------- main --------------------------------------

if __name__ == "__main__":
    img_size = 16
    patch_size = 2
    num_classes = 10
    embed_dim = 32
    depth = 4
    num_heads = 4
    window_size = 4
    batch = 2

    key = jax.random.PRNGKey(0)
    kp, kx = jax.random.split(key)
    params = init_params(kp, img_size, patch_size, num_classes, embed_dim, depth,
                         num_heads, window_size)
    x = jax.random.normal(kx, (batch, 3, img_size, img_size), jnp.float32)  # NCHW

    fwd = jax.jit(functools.partial(swin_student_forward, patch_size=patch_size))
    out = fwd(params, x)
    jax.block_until_ready(out)
    assert out.shape == (batch, num_classes), out.shape
    assert bool(jnp.all(jnp.isfinite(out)))
    print("KERNEL_OK")
</pallas_src>

<mosaic_0001>
module attributes {stable_mosaic.version = 11 : i64} {
  func.func @_swin_forward_kernel(%arg0: i32, %arg1: memref<1x64x12xf32, #tpu.memory_space<vmem>>, %arg2: memref<12x16xbf16, #tpu.memory_space<vmem>>, %arg3: memref<1x16xf32, #tpu.memory_space<vmem>>, %arg4: memref<2x1x16xf32, #tpu.memory_space<vmem>>, %arg5: memref<2x1x16xf32, #tpu.memory_space<vmem>>, %arg6: memref<2x2x16x8xbf16, #tpu.memory_space<vmem>>, %arg7: memref<2x2x16x8xbf16, #tpu.memory_space<vmem>>, %arg8: memref<2x2x16x8xbf16, #tpu.memory_space<vmem>>, %arg9: memref<2x2x8x16xbf16, #tpu.memory_space<vmem>>, %arg10: memref<2x1x16xf32, #tpu.memory_space<vmem>>, %arg11: memref<2x2x64x64xf32, #tpu.memory_space<vmem>>, %arg12: memref<2x1x16xf32, #tpu.memory_space<vmem>>, %arg13: memref<2x1x16xf32, #tpu.memory_space<vmem>>, %arg14: memref<2x16x64xbf16, #tpu.memory_space<vmem>>, %arg15: memref<2x1x64xf32, #tpu.memory_space<vmem>>, %arg16: memref<2x64x16xbf16, #tpu.memory_space<vmem>>, %arg17: memref<2x1x16xf32, #tpu.memory_space<vmem>>, %arg18: memref<4x16x64xbf16, #tpu.memory_space<vmem>>, %arg19: memref<4x16x32xbf16, #tpu.memory_space<vmem>>, %arg20: memref<1x32xf32, #tpu.memory_space<vmem>>, %arg21: memref<2x1x32xf32, #tpu.memory_space<vmem>>, %arg22: memref<2x1x32xf32, #tpu.memory_space<vmem>>, %arg23: memref<2x2x32x16xbf16, #tpu.memory_space<vmem>>, %arg24: memref<2x2x32x16xbf16, #tpu.memory_space<vmem>>, %arg25: memref<2x2x32x16xbf16, #tpu.memory_space<vmem>>, %arg26: memref<2x2x16x32xbf16, #tpu.memory_space<vmem>>, %arg27: memref<2x1x32xf32, #tpu.memory_space<vmem>>, %arg28: memref<2x2x16x16xf32, #tpu.memory_space<vmem>>, %arg29: memref<2x1x32xf32, #tpu.memory_space<vmem>>, %arg30: memref<2x1x32xf32, #tpu.memory_space<vmem>>, %arg31: memref<2x32x128xbf16, #tpu.memory_space<vmem>>, %arg32: memref<2x1x128xf32, #tpu.memory_space<vmem>>, %arg33: memref<2x128x32xbf16, #tpu.memory_space<vmem>>, %arg34: memref<2x1x32xf32, #tpu.memory_space<vmem>>, %arg35: memref<1x32xf32, #tpu.memory_space<vmem>>, %arg36: memref<1x32xf32, #tpu.memory_space<vmem>>, %arg37: memref<32x10xbf16, #tpu.memory_space<vmem>>, %arg38: memref<1x10xf32, #tpu.memory_space<vmem>>, %arg39: memref<1x1x10xf32, #tpu.memory_space<vmem>>) attributes {dimension_semantics = [#tpu.dimension_semantics<parallel>], iteration_bounds = array<i64: 2>, scalar_prefetch = 0 : i64, scratch_operands = 0 : i64, tpu.core_type = #tpu.core_type<tc>, window_params = [{transform_indices = @transform_0, window_bounds = array<i64: 1, 64, 12>}, {pipeline_mode = #tpu.pipeline_mode<synchronous>, transform_indices = @transform_1, window_bounds = array<i64: 12, 16>}, {pipeline_mode = #tpu.pipeline_mode<synchronous>, transform_indices = @transform_2, window_bounds = array<i64: 1, 16>}, {pipeline_mode = #tpu.pipeline_mode<synchronous>, transform_indices = @transform_3, window_bounds = array<i64: 2, 1, 16>}, {pipeline_mode = #tpu.pipeline_mode<synchronous>, transform_indices = @transform_4, window_bounds = array<i64: 2, 1, 16>}, {pipeline_mode = #tpu.pipeline_mode<synchronous>, transform_indices = @transform_5, window_bounds = array<i64: 2, 2, 16, 8>}, {pipeline_mode = #tpu.pipeline_mode<synchronous>, transform_indices = @transform_6, window_bounds = array<i64: 2, 2, 16, 8>}, {pipeline_mode = #tpu.pipeline_mode<synchronous>, transform_indices = @transform_7, window_bounds = array<i64: 2, 2, 16, 8>}, {pipeline_mode = #tpu.pipeline_mode<synchronous>, transform_indices = @transform_8, window_bounds = array<i64: 2, 2, 8, 16>}, {pipeline_mode = #tpu.pipeline_mode<synchronous>, transform_indices = @transform_9, window_bounds = array<i64: 2, 1, 16>}, {pipeline_mode = #tpu.pipeline_mode<synchronous>, transform_indices = @transform_10, window_bounds = array<i64: 2, 2, 64, 64>}, {pipeline_mode = #tpu.pipeline_mode<synchronous>, transform_indices = @transform_11, window_bounds = array<i64: 2, 1, 16>}, {pipeline_mode = #tpu.pipeline_mode<synchronous>, transform_indices = @transform_12, window_bounds = array<i64: 2, 1, 16>}, {pipeline_mode = #tpu.pipeline_mode<synchronous>, transform_indices = @transform_13, window_bounds = array<i64: 2, 16, 64>}, {pipeline_mode = #tpu.pipeline_mode<synchronous>, transform_indices = @transform_14, window_bounds = array<i64: 2, 1, 64>}, {pipeline_mode = #tpu.pipeline_mode<synchronous>, transform_indices = @transform_15, window_bounds = array<i64: 2, 64, 16>}, {pipeline_mode = #tpu.pipeline_mode<synchronous>, transform_indices = @transform_16, window_bounds = array<i64: 2, 1, 16>}, {pipeline_mode = #tpu.pipeline_mode<synchronous>, transform_indices = @transform_17, window_bounds = array<i64: 4, 16, 64>}, {pipeline_mode = #tpu.pipeline_mode<synchronous>, transform_indices = @transform_18, window_bounds = array<i64: 4, 16, 32>}, {pipeline_mode = #tpu.pipeline_mode<synchronous>, transform_indices = @transform_19, window_bounds = array<i64: 1, 32>}, {pipeline_mode = #tpu.pipeline_mode<synchronous>, transform_indices = @transform_20, window_bounds = array<i64: 2, 1, 32>}, {pipeline_mode = #tpu.pipeline_mode<synchronous>, transform_indices = @transform_21, window_bounds = array<i64: 2, 1, 32>}, {pipeline_mode = #tpu.pipeline_mode<synchronous>, transform_indices = @transform_22, window_bounds = array<i64: 2, 2, 32, 16>}, {pipeline_mode = #tpu.pipeline_mode<synchronous>, transform_indices = @transform_23, window_bounds = array<i64: 2, 2, 32, 16>}, {pipeline_mode = #tpu.pipeline_mode<synchronous>, transform_indices = @transform_24, window_bounds = array<i64: 2, 2, 32, 16>}, {pipeline_mode = #tpu.pipeline_mode<synchronous>, transform_indices = @transform_25, window_bounds = array<i64: 2, 2, 16, 32>}, {pipeline_mode = #tpu.pipeline_mode<synchronous>, transform_indices = @transform_26, window_bounds = array<i64: 2, 1, 32>}, {pipeline_mode = #tpu.pipeline_mode<synchronous>, transform_indices = @transform_27, window_bounds = array<i64: 2, 2, 16, 16>}, {pipeline_mode = #tpu.pipeline_mode<synchronous>, transform_indices = @transform_28, window_bounds = array<i64: 2, 1, 32>}, {pipeline_mode = #tpu.pipeline_mode<synchronous>, transform_indices = @transform_29, window_bounds = array<i64: 2, 1, 32>}, {pipeline_mode = #tpu.pipeline_mode<synchronous>, transform_indices = @transform_30, window_bounds = array<i64: 2, 32, 128>}, {pipeline_mode = #tpu.pipeline_mode<synchronous>, transform_indices = @transform_31, window_bounds = array<i64: 2, 1, 128>}, {pipeline_mode = #tpu.pipeline_mode<synchronous>, transform_indices = @transform_32, window_bounds = array<i64: 2, 128, 32>}, {pipeline_mode = #tpu.pipeline_mode<synchronous>, transform_indices = @transform_33, window_bounds = array<i64: 2, 1, 32>}, {pipeline_mode = #tpu.pipeline_mode<synchronous>, transform_indices = @transform_34, window_bounds = array<i64: 1, 32>}, {pipeline_mode = #tpu.pipeline_mode<synchronous>, transform_indices = @transform_35, window_bounds = array<i64: 1, 32>}, {pipeline_mode = #tpu.pipeline_mode<synchronous>, transform_indices = @transform_36, window_bounds = array<i64: 32, 10>}, {pipeline_mode = #tpu.pipeline_mode<synchronous>, transform_indices = @transform_37, window_bounds = array<i64: 1, 10>}, {transform_indices = @transform_38, window_bounds = array<i64: 1, 1, 10>}]} {
    %c0 = arith.constant 0 : index
    %c0_0 = arith.constant 0 : index
    %c0_1 = arith.constant 0 : index
    %0 = vector.load %arg1[%c0, %c0_0, %c0_1] : memref<1x64x12xf32, #tpu.memory_space<vmem>>, vector<1x64x12xf32>
    %1 = vector.shape_cast %0 : vector<1x64x12xf32> to vector<64x12xf32>
    %2 = arith.truncf %1 : vector<64x12xf32> to vector<64x12xbf16>
    %c0_2 = arith.constant 0 : index
    %c0_3 = arith.constant 0 : index
    %3 = vector.load %arg2[%c0_2, %c0_3] : memref<12x16xbf16, #tpu.memory_space<vmem>>, vector<12x16xbf16>
    %cst = arith.constant dense<0.000000e+00> : vector<64x16xf32>
    %4 = tpu.matmul %2, %3, %cst {dimension_numbers = #tpu.dot_dimension_numbers<[1], [0], [0], [1], [0, 0, 1, 1], [], []>} : vector<64x12xbf16>, vector<12x16xbf16>, vector<64x16xf32> -> vector<64x16xf32>
    %c0_4 = arith.constant 0 : index
    %c0_5 = arith.constant 0 : index
    %5 = vector.load %arg3[%c0_4, %c0_5] : memref<1x16xf32, #tpu.memory_space<vmem>>, vector<1x16xf32>
    %6 = vector.broadcast %5 : vector<1x16xf32> to vector<64x16xf32>
    %7 = arith.addf %4, %6 : vector<64x16xf32>
    %c0_6 = arith.constant 0 : index
    %c0_7 = arith.constant 0 : index
    %c0_8 = arith.constant 0 : index
    %8 = vector.load %arg4[%c0_6, %c0_7, %c0_8] : memref<2x1x16xf32, #tpu.memory_space<vmem>>, vector<1x1x16xf32>
    %9 = vector.shape_cast %8 : vector<1x1x16xf32> to vector<1x16xf32>
    %c0_9 = arith.constant 0 : index
    %c0_10 = arith.constant 0 : index
    %c0_11 = arith.constant 0 : index
    %10 = vector.load %arg5[%c0_9, %c0_10, %c0_11] : memref<2x1x16xf32, #tpu.memory_space<vmem>>, vector<1x1x16xf32>
    %11 = vector.shape_cast %10 : vector<1x1x16xf32> to vector<1x16xf32>
    %c0_12 = arith.constant 0 : index
    %c0_13 = arith.constant 0 : index
    %c0_14 = arith.constant 0 : index
    %c0_15 = arith.constant 0 : index
    %12 = vector.load %arg6[%c0_12, %c0_13, %c0_14, %c0_15] : memref<2x2x16x8xbf16, #tpu.memory_space<vmem>>, vector<1x2x16x8xbf16>
    %13 = vector.shape_cast %12 : vector<1x2x16x8xbf16> to vector<2x16x8xbf16>
    %c0_16 = arith.constant 0 : index
    %c0_17 = arith.constant 0 : index
    %c0_18 = arith.constant 0 : index
    %c0_19 = arith.constant 0 : index
    %14 = vector.load %arg7[%c0_16, %c0_17, %c0_18, %c0_19] : memref<2x2x16x8xbf16, #tpu.memory_space<vmem>>, vector<1x2x16x8xbf16>
    %15 = vector.shape_cast %14 : vector<1x2x16x8xbf16> to vector<2x16x8xbf16>
    %c0_20 = arith.constant 0 : index
    %c0_21 = arith.constant 0 : index
    %c0_22 = arith.constant 0 : index
    %c0_23 = arith.constant 0 : index
    %16 = vector.load %arg8[%c0_20, %c0_21, %c0_22, %c0_23] : memref<2x2x16x8xbf16, #tpu.memory_space<vmem>>, vector<1x2x16x8xbf16>
    %17 = vector.shape_cast %16 : vector<1x2x16x8xbf16> to vector<2x16x8xbf16>
    %c0_24 = arith.constant 0 : index
    %c0_25 = arith.constant 0 : index
    %c0_26 = arith.constant 0 : index
    %c0_27 = arith.constant 0 : index
    %18 = vector.load %arg9[%c0_24, %c0_25, %c0_26, %c0_27] : memref<2x2x8x16xbf16, #tpu.memory_space<vmem>>, vector<1x2x8x16xbf16>
    %19 = vector.shape_cast %18 : vector<1x2x8x16xbf16> to vector<2x8x16xbf16>
    %c0_28 = arith.constant 0 : index
    %c0_29 = arith.constant 0 : index
    %c0_30 = arith.constant 0 : index
    %20 = vector.load %arg10[%c0_28, %c0_29, %c0_30] : memref<2x1x16xf32, #tpu.memory_space<vmem>>, vector<1x1x16xf32>
    %21 = vector.shape_cast %20 : vector<1x1x16xf32> to vector<1x16xf32>
    %c0_31 = arith.constant 0 : index
    %c0_32 = arith.constant 0 : index
    %c0_33 = arith.constant 0 : index
    %c0_34 = arith.constant 0 : index
    %22 = vector.load %arg11[%c0_31, %c0_32, %c0_33, %c0_34] : memref<2x2x64x64xf32, #tpu.memory_space<vmem>>, vector<1x2x64x64xf32>
    %23 = vector.shape_cast %22 : vector<1x2x64x64xf32> to vector<2x64x64xf32>
    %c0_35 = arith.constant 0 : index
    %c0_36 = arith.constant 0 : index
    %c0_37 = arith.constant 0 : index
    %24 = vector.load %arg12[%c0_35, %c0_36, %c0_37] : memref<2x1x16xf32, #tpu.memory_space<vmem>>, vector<1x1x16xf32>
    %25 = vector.shape_cast %24 : vector<1x1x16xf32> to vector<1x16xf32>
    %c0_38 = arith.constant 0 : index
    %c0_39 = arith.constant 0 : index
    %c0_40 = arith.constant 0 : index
    %26 = vector.load %arg13[%c0_38, %c0_39, %c0_40] : memref<2x1x16xf32, #tpu.memory_space<vmem>>, vector<1x1x16xf32>
    %27 = vector.shape_cast %26 : vector<1x1x16xf32> to vector<1x16xf32>
    %c0_41 = arith.constant 0 : index
    %c0_42 = arith.constant 0 : index
    %c0_43 = arith.constant 0 : index
    %28 = vector.load %arg14[%c0_41, %c0_42, %c0_43] : memref<2x16x64xbf16, #tpu.memory_space<vmem>>, vector<1x16x64xbf16>
    %29 = vector.shape_cast %28 : vector<1x16x64xbf16> to vector<16x64xbf16>
    %c0_44 = arith.constant 0 : index
    %c0_45 = arith.constant 0 : index
    %c0_46 = arith.constant 0 : index
    %30 = vector.load %arg15[%c0_44, %c0_45, %c0_46] : memref<2x1x64xf32, #tpu.memory_space<vmem>>, vector<1x1x64xf32>
    %31 = vector.shape_cast %30 : vector<1x1x64xf32> to vector<1x64xf32>
    %c0_47 = arith.constant 0 : index
    %c0_48 = arith.constant 0 : index
    %c0_49 = arith.constant 0 : index
    %32 = vector.load %arg16[%c0_47, %c0_48, %c0_49] : memref<2x64x16xbf16, #tpu.memory_space<vmem>>, vector<1x64x16xbf16>
    %33 = vector.shape_cast %32 : vector<1x64x16xbf16> to vector<64x16xbf16>
    %c0_50 = arith.constant 0 : index
    %c0_51 = arith.constant 0 : index
    %c0_52 = arith.constant 0 : index
    %34 = vector.load %arg17[%c0_50, %c0_51, %c0_52] : memref<2x1x16xf32, #tpu.memory_space<vmem>>, vector<1x1x16xf32>
    %35 = vector.shape_cast %34 : vector<1x1x16xf32> to vector<1x16xf32>
    %cst_53 = arith.constant dense<0.000000e+00> : vector<64xf32>
    %36 = vector.multi_reduction <add>, %7, %cst_53 [1] : vector<64x16xf32> to vector<64xf32>
    %37 = vector.shape_cast %36 : vector<64xf32> to vector<64x1xf32>
    %cst_54 = arith.constant 1.600000e+01 : f32
    %38 = vector.broadcast %cst_54 : f32 to vector<64x1xf32>
    %39 = arith.divf %37, %38 : vector<64x1xf32>
    %40 = vector.broadcast %39 : vector<64x1xf32> to vector<64x16xf32>
    %41 = arith.subf %7, %40 : vector<64x16xf32>
    %42 = arith.mulf %41, %41 : vector<64x16xf32>
    %cst_55 = arith.constant dense<0.000000e+00> : vector<64xf32>
    %43 = vector.multi_reduction <add>, %42, %cst_55 [1] : vector<64x16xf32> to vector<64xf32>
    %44 = vector.shape_cast %43 : vector<64xf32> to vector<64x1xf32>
    %cst_56 = arith.constant 1.600000e+01 : f32
    %45 = vector.broadcast %cst_56 : f32 to vector<64x1xf32>
    %46 = arith.divf %44, %45 : vector<64x1xf32>
    %47 = vector.broadcast %39 : vector<64x1xf32> to vector<64x16xf32>
    %48 = arith.subf %7, %47 : vector<64x16xf32>
    %cst_57 = arith.constant 9.99999974E-6 : f32
    %49 = vector.broadcast %cst_57 : f32 to vector<64x1xf32>
    %50 = arith.addf %46, %49 : vector<64x1xf32>
    %51 = math.rsqrt %50 : vector<64x1xf32>
    %52 = vector.broadcast %51 : vector<64x1xf32> to vector<64x16xf32>
    %53 = arith.mulf %48, %52 : vector<64x16xf32>
    %54 = vector.broadcast %9 : vector<1x16xf32> to vector<64x16xf32>
    %55 = arith.mulf %53, %54 : vector<64x16xf32>
    %56 = vector.broadcast %11 : vector<1x16xf32> to vector<64x16xf32>
    %57 = arith.addf %55, %56 : vector<64x16xf32>
    %58 = arith.truncf %57 : vector<64x16xf32> to vector<64x16xbf16>
    %cst_58 = arith.constant 0.000000e+00 : f32
    %59 = vector.broadcast %cst_58 : f32 to vector<64x16xf32>
    %60 = vector.extract_strided_slice %13 {offsets = [0, 0, 0], sizes = [1, 16, 8], strides = [1, 1, 1]} : vector<2x16x8xbf16> to vector<1x16x8xbf16>
    %61 = vector.shape_cast %60 : vector<1x16x8xbf16> to vector<16x8xbf16>
    %cst_59 = arith.constant dense<0.000000e+00> : vector<64x8xf32>
    %62 = tpu.matmul %58, %61, %cst_59 {dimension_numbers = #tpu.dot_dimension_numbers<[1], [0], [0], [1], [0, 0, 1, 1], [], []>} : vector<64x16xbf16>, vector<16x8xbf16>, vector<64x8xf32> -> vector<64x8xf32>
    %63 = vector.extract_strided_slice %15 {offsets = [0, 0, 0], sizes = [1, 16, 8], strides = [1, 1, 1]} : vector<2x16x8xbf16> to vector<1x16x8xbf16>
    %64 = vector.shape_cast %63 : vector<1x16x8xbf16> to vector<16x8xbf16>
    %cst_60 = arith.constant dense<0.000000e+00> : vector<64x8xf32>
    %65 = tpu.matmul %58, %64, %cst_60 {dimension_numbers = #tpu.dot_dimension_numbers<[1], [0], [0], [1], [0, 0, 1, 1], [], []>} : vector<64x16xbf16>, vector<16x8xbf16>, vector<64x8xf32> -> vector<64x8xf32>
    %66 = vector.extract_strided_slice %17 {offsets = [0, 0, 0], sizes = [1, 16, 8], strides = [1, 1, 1]} : vector<2x16x8xbf16> to vector<1x16x8xbf16>
    %67 = vector.shape_cast %66 : vector<1x16x8xbf16> to vector<16x8xbf16>
    %cst_61 = arith.constant dense<0.000000e+00> : vector<64x8xf32>
    %68 = tpu.matmul %58, %67, %cst_61 {dimension_numbers = #tpu.dot_dimension_numbers<[1], [0], [0], [1], [0, 0, 1, 1], [], []>} : vector<64x16xbf16>, vector<16x8xbf16>, vector<64x8xf32> -> vector<64x8xf32>
    %69 = arith.truncf %62 : vector<64x8xf32> to vector<64x8xbf16>
    %70 = arith.truncf %65 : vector<64x8xf32> to vector<64x8xbf16>
    "tpu.trace_start"() <{level = 10 : i32, message = "nd,md->nm"}> : () -> ()
    %cst_62 = arith.constant dense<0.000000e+00> : vector<64x64xf32>
    %71 = tpu.matmul %69, %70, %cst_62 {dimension_numbers = #tpu.dot_dimension_numbers<[1], [1], [0], [0], [0, 0, 1, 0], [], []>} : vector<64x8xbf16>, vector<64x8xbf16>, vector<64x64xf32> -> vector<64x64xf32>
    "tpu.trace_stop"() : () -> ()
    %72 = vector.extract_strided_slice %23 {offsets = [0, 0, 0], sizes = [1, 64, 64], strides = [1, 1, 1]} : vector<2x64x64xf32> to vector<1x64x64xf32>
    %73 = vector.shape_cast %72 : vector<1x64x64xf32> to vector<64x64xf32>
    %74 = arith.addf %71, %73 : vector<64x64xf32>
    %cst_63 = arith.constant dense<0xFF800000> : vector<64xf32>
    %75 = vector.multi_reduction <maximumf>, %74, %cst_63 [1] : vector<64x64xf32> to vector<64xf32>
    %76 = vector.shape_cast %75 : vector<64xf32> to vector<64x1xf32>
    %77 = vector.broadcast %76 : vector<64x1xf32> to vector<64x64xf32>
    %78 = arith.subf %74, %77 : vector<64x64xf32>
    %79 = math.exp %78 : vector<64x64xf32>
    %cst_64 = arith.constant dense<0.000000e+00> : vector<64xf32>
    %80 = vector.multi_reduction <add>, %79, %cst_64 [1] : vector<64x64xf32> to vector<64xf32>
    %81 = vector.shape_cast %80 : vector<64xf32> to vector<64x1xf32>
    %82 = tpu.reciprocal %81 {approx = true} : vector<64x1xf32> -> vector<64x1xf32>
    %83 = vector.broadcast %82 : vector<64x1xf32> to vector<64x64xf32>
    %84 = arith.mulf %79, %83 : vector<64x64xf32>
    %85 = arith.truncf %84 : vector<64x64xf32> to vector<64x64xbf16>
    %86 = arith.truncf %68 : vector<64x8xf32> to vector<64x8xbf16>
    %cst_65 = arith.constant dense<0.000000e+00> : vector<64x8xf32>
    %87 = tpu.matmul %85, %86, %cst_65 {dimension_numbers = #tpu.dot_dimension_numbers<[1], [0], [0], [1], [0, 0, 1, 1], [], []>} : vector<64x64xbf16>, vector<64x8xbf16>, vector<64x8xf32> -> vector<64x8xf32>
    %88 = arith.truncf %87 : vector<64x8xf32> to vector<64x8xbf16>
    %89 = vector.extract_strided_slice %19 {offsets = [0, 0, 0], sizes = [1, 8, 16], strides = [1, 1, 1]} : vector<2x8x16xbf16> to vector<1x8x16xbf16>
    %90 = vector.shape_cast %89 : vector<1x8x16xbf16> to vector<8x16xbf16>
    %cst_66 = arith.constant dense<0.000000e+00> : vector<64x16xf32>
    %91 = tpu.matmul %88, %90, %cst_66 {dimension_numbers = #tpu.dot_dimension_numbers<[1], [0], [0], [1], [0, 0, 1, 1], [], []>} : vector<64x8xbf16>, vector<8x16xbf16>, vector<64x16xf32> -> vector<64x16xf32>
    %92 = arith.addf %59, %91 : vector<64x16xf32>
    %93 = vector.extract_strided_slice %13 {offsets = [1, 0, 0], sizes = [1, 16, 8], strides = [1, 1, 1]} : vector<2x16x8xbf16> to vector<1x16x8xbf16>
    %94 = vector.shape_cast %93 : vector<1x16x8xbf16> to vector<16x8xbf16>
    %cst_67 = arith.constant dense<0.000000e+00> : vector<64x8xf32>
    %95 = tpu.matmul %58, %94, %cst_67 {dimension_numbers = #tpu.dot_dimension_numbers<[1], [0], [0], [1], [0, 0, 1, 1], [], []>} : vector<64x16xbf16>, vector<16x8xbf16>, vector<64x8xf32> -> vector<64x8xf32>
    %96 = vector.extract_strided_slice %15 {offsets = [1, 0, 0], sizes = [1, 16, 8], strides = [1, 1, 1]} : vector<2x16x8xbf16> to vector<1x16x8xbf16>
    %97 = vector.shape_cast %96 : vector<1x16x8xbf16> to vector<16x8xbf16>
    %cst_68 = arith.constant dense<0.000000e+00> : vector<64x8xf32>
    %98 = tpu.matmul %58, %97, %cst_68 {dimension_numbers = #tpu.dot_dimension_numbers<[1], [0], [0], [1], [0, 0, 1, 1], [], []>} : vector<64x16xbf16>, vector<16x8xbf16>, vector<64x8xf32> -> vector<64x8xf32>
    %99 = vector.extract_strided_slice %17 {offsets = [1, 0, 0], sizes = [1, 16, 8], strides = [1, 1, 1]} : vector<2x16x8xbf16> to vector<1x16x8xbf16>
    %100 = vector.shape_cast %99 : vector<1x16x8xbf16> to vector<16x8xbf16>
    %cst_69 = arith.constant dense<0.000000e+00> : vector<64x8xf32>
    %101 = tpu.matmul %58, %100, %cst_69 {dimension_numbers = #tpu.dot_dimension_numbers<[1], [0], [0], [1], [0, 0, 1, 1], [], []>} : vector<64x16xbf16>, vector<16x8xbf16>, vector<64x8xf32> -> vector<64x8xf32>
    %102 = arith.truncf %95 : vector<64x8xf32> to vector<64x8xbf16>
    %103 = arith.truncf %98 : vector<64x8xf32> to vector<64x8xbf16>
    "tpu.trace_start"() <{level = 10 : i32, message = "nd,md->nm"}> : () -> ()
    %cst_70 = arith.constant dense<0.000000e+00> : vector<64x64xf32>
    %104 = tpu.matmul %102, %103, %cst_70 {dimension_numbers = #tpu.dot_dimension_numbers<[1], [1], [0], [0], [0, 0, 1, 0], [], []>} : vector<64x8xbf16>, vector<64x8xbf16>, vector<64x64xf32> -> vector<64x64xf32>
    "tpu.trace_stop"() : () -> ()
    %105 = vector.extract_strided_slice %23 {offsets = [1, 0, 0], sizes = [1, 64, 64], strides = [1, 1, 1]} : vector<2x64x64xf32> to vector<1x64x64xf32>
    %106 = vector.shape_cast %105 : vector<1x64x64xf32> to vector<64x64xf32>
    %107 = arith.addf %104, %106 : vector<64x64xf32>
    %cst_71 = arith.constant dense<0xFF800000> : vector<64xf32>
    %108 = vector.multi_reduction <maximumf>, %107, %cst_71 [1] : vector<64x64xf32> to vector<64xf32>
    %109 = vector.shape_cast %108 : vector<64xf32> to vector<64x1xf32>
    %110 = vector.broadcast %109 : vector<64x1xf32> to vector<64x64xf32>
    %111 = arith.subf %107, %110 : vector<64x64xf32>
    %112 = math.exp %111 : vector<64x64xf32>
    %cst_72 = arith.constant dense<0.000000e+00> : vector<64xf32>
    %113 = vector.multi_reduction <add>, %112, %cst_72 [1] : vector<64x64xf32> to vector<64xf32>
    %114 = vector.shape_cast %113 : vector<64xf32> to vector<64x1xf32>
    %115 = tpu.reciprocal %114 {approx = true} : vector<64x1xf32> -> vector<64x1xf32>
    %116 = vector.broadcast %115 : vector<64x1xf32> to vector<64x64xf32>
    %117 = arith.mulf %112, %116 : vector<64x64xf32>
    %118 = arith.truncf %117 : vector<64x64xf32> to vector<64x64xbf16>
    %119 = arith.truncf %101 : vector<64x8xf32> to vector<64x8xbf16>
    %cst_73 = arith.constant dense<0.000000e+00> : vector<64x8xf32>
    %120 = tpu.matmul %118, %119, %cst_73 {dimension_numbers = #tpu.dot_dimension_numbers<[1], [0], [0], [1], [0, 0, 1, 1], [], []>} : vector<64x64xbf16>, vector<64x8xbf16>, vector<64x8xf32> -> vector<64x8xf32>
    %121 = arith.truncf %120 : vector<64x8xf32> to vector<64x8xbf16>
    %122 = vector.extract_strided_slice %19 {offsets = [1, 0, 0], sizes = [1, 8, 16], strides = [1, 1, 1]} : vector<2x8x16xbf16> to vector<1x8x16xbf16>
    %123 = vector.shape_cast %122 : vector<1x8x16xbf16> to vector<8x16xbf16>
    %cst_74 = arith.constant dense<0.000000e+00> : vector<64x16xf32>
    %124 = tpu.matmul %121, %123, %cst_74 {dimension_numbers = #tpu.dot_dimension_numbers<[1], [0], [0], [1], [0, 0, 1, 1], [], []>} : vector<64x8xbf16>, vector<8x16xbf16>, vector<64x16xf32> -> vector<64x16xf32>
    %125 = arith.addf %92, %124 : vector<64x16xf32>
    %126 = arith.addf %7, %125 : vector<64x16xf32>
    %127 = vector.broadcast %21 : vector<1x16xf32> to vector<64x16xf32>
    %128 = arith.addf %126, %127 : vector<64x16xf32>
    %cst_75 = arith.constant dense<0.000000e+00> : vector<64xf32>
    %129 = vector.multi_reduction <add>, %128, %cst_75 [1] : vector<64x16xf32> to vector<64xf32>
    %130 = vector.shape_cast %129 : vector<64xf32> to vector<64x1xf32>
    %cst_76 = arith.constant 1.600000e+01 : f32
    %131 = vector.broadcast %cst_76 : f32 to vector<64x1xf32>
    %132 = arith.divf %130, %131 : vector<64x1xf32>
    %133 = vector.broadcast %132 : vector<64x1xf32> to vector<64x16xf32>
    %134 = arith.subf %128, %133 : vector<64x16xf32>
    %135 = arith.mulf %134, %134 : vector<64x16xf32>
    %cst_77 = arith.constant dense<0.000000e+00> : vector<64xf32>
    %136 = vector.multi_reduction <add>, %135, %cst_77 [1] : vector<64x16xf32> to vector<64xf32>
    %137 = vector.shape_cast %136 : vector<64xf32> to vector<64x1xf32>
    %cst_78 = arith.constant 1.600000e+01 : f32
    %138 = vector.broadcast %cst_78 : f32 to vector<64x1xf32>
    %139 = arith.divf %137, %138 : vector<64x1xf32>
    %140 = vector.broadcast %132 : vector<64x1xf32> to vector<64x16xf32>
    %141 = arith.subf %128, %140 : vector<64x16xf32>
    %cst_79 = arith.constant 9.99999974E-6 : f32
    %142 = vector.broadcast %cst_79 : f32 to vector<64x1xf32>
    %143 = arith.addf %139, %142 : vector<64x1xf32>
    %144 = math.rsqrt %143 : vector<64x1xf32>
    %145 = vector.broadcast %144 : vector<64x1xf32> to vector<64x16xf32>
    %146 = arith.mulf %141, %145 : vector<64x16xf32>
    %147 = vector.broadcast %25 : vector<1x16xf32> to vector<64x16xf32>
    %148 = arith.mulf %146, %147 : vector<64x16xf32>
    %149 = vector.broadcast %27 : vector<1x16xf32> to vector<64x16xf32>
    %150 = arith.addf %148, %149 : vector<64x16xf32>
    %151 = arith.truncf %150 : vector<64x16xf32> to vector<64x16xbf16>
    %cst_80 = arith.constant dense<0.000000e+00> : vector<64x64xf32>
    %152 = tpu.matmul %151, %29, %cst_80 {dimension_numbers = #tpu.dot_dimension_numbers<[1], [0], [0], [1], [0, 0, 1, 1], [], []>} : vector<64x16xbf16>, vector<16x64xbf16>, vector<64x64xf32> -> vector<64x64xf32>
    %153 = vector.broadcast %31 : vector<1x64xf32> to vector<64x64xf32>
    %154 = arith.addf %152, %153 : vector<64x64xf32>
    %cst_81 = arith.constant 5.000000e-01 : f32
    %155 = vector.broadcast %cst_81 : f32 to vector<64x64xf32>
    %156 = arith.mulf %155, %154 : vector<64x64xf32>
    %cst_82 = arith.constant 0.707106769 : f32
    %157 = vector.broadcast %cst_82 : f32 to vector<64x64xf32>
    %158 = arith.mulf %154, %157 : vector<64x64xf32>
    %159 = math.erf %158 : vector<64x64xf32>
    %cst_83 = arith.constant 1.000000e+00 : f32
    %160 = vector.broadcast %cst_83 : f32 to vector<64x64xf32>
    %161 = arith.addf %160, %159 : vector<64x64xf32>
    %162 = arith.mulf %156, %161 : vector<64x64xf32>
    %163 = arith.truncf %162 : vector<64x64xf32> to vector<64x64xbf16>
    %cst_84 = arith.constant dense<0.000000e+00> : vector<64x16xf32>
    %164 = tpu.matmul %163, %33, %cst_84 {dimension_numbers = #tpu.dot_dimension_numbers<[1], [0], [0], [1], [0, 0, 1, 1], [], []>} : vector<64x64xbf16>, vector<64x16xbf16>, vector<64x16xf32> -> vector<64x16xf32>
    %165 = vector.broadcast %35 : vector<1x16xf32> to vector<64x16xf32>
    %166 = arith.addf %164, %165 : vector<64x16xf32>
    %167 = arith.addf %128, %166 : vector<64x16xf32>
    %c1 = arith.constant 1 : index
    %c0_85 = arith.constant 0 : index
    %c0_86 = arith.constant 0 : index
    %168 = vector.load %arg4[%c1, %c0_85, %c0_86] : memref<2x1x16xf32, #tpu.memory_space<vmem>>, vector<1x1x16xf32>
    %169 = vector.shape_cast %168 : vector<1x1x16xf32> to vector<1x16xf32>
    %c1_87 = arith.constant 1 : index
    %c0_88 = arith.constant 0 : index
    %c0_89 = arith.constant 0 : index
    %170 = vector.load %arg5[%c1_87, %c0_88, %c0_89] : memref<2x1x16xf32, #tpu.memory_space<vmem>>, vector<1x1x16xf32>
    %171 = vector.shape_cast %170 : vector<1x1x16xf32> to vector<1x16xf32>
    %c1_90 = arith.constant 1 : index
    %c0_91 = arith.constant 0 : index
    %c0_92 = arith.constant 0 : index
    %c0_93 = arith.constant 0 : index
    %172 = vector.load %arg6[%c1_90, %c0_91, %c0_92, %c0_93] : memref<2x2x16x8xbf16, #tpu.memory_space<vmem>>, vector<1x2x16x8xbf16>
    %173 = vector.shape_cast %172 : vector<1x2x16x8xbf16> to vector<2x16x8xbf16>
    %c1_94 = arith.constant 1 : index
    %c0_95 = arith.constant 0 : index
    %c0_96 = arith.constant 0 : index
    %c0_97 = arith.constant 0 : index
    %174 = vector.load %arg7[%c1_94, %c0_95, %c0_96, %c0_97] : memref<2x2x16x8xbf16, #tpu.memory_space<vmem>>, vector<1x2x16x8xbf16>
    %175 = vector.shape_cast %174 : vector<1x2x16x8xbf16> to vector<2x16x8xbf16>
    %c1_98 = arith.constant 1 : index
    %c0_99 = arith.constant 0 : index
    %c0_100 = arith.constant 0 : index
    %c0_101 = arith.constant 0 : index
    %176 = vector.load %arg8[%c1_98, %c0_99, %c0_100, %c0_101] : memref<2x2x16x8xbf16, #tpu.memory_space<vmem>>, vector<1x2x16x8xbf16>
    %177 = vector.shape_cast %176 : vector<1x2x16x8xbf16> to vector<2x16x8xbf16>
    %c1_102 = arith.constant 1 : index
    %c0_103 = arith.constant 0 : index
    %c0_104 = arith.constant 0 : index
    %c0_105 = arith.constant 0 : index
    %178 = vector.load %arg9[%c1_102, %c0_103, %c0_104, %c0_105] : memref<2x2x8x16xbf16, #tpu.memory_space<vmem>>, vector<1x2x8x16xbf16>
    %179 = vector.shape_cast %178 : vector<1x2x8x16xbf16> to vector<2x8x16xbf16>
    %c1_106 = arith.constant 1 : index
    %c0_107 = arith.constant 0 : index
    %c0_108 = arith.constant 0 : index
    %180 = vector.load %arg10[%c1_106, %c0_107, %c0_108] : memref<2x1x16xf32, #tpu.memory_space<vmem>>, vector<1x1x16xf32>
    %181 = vector.shape_cast %180 : vector<1x1x16xf32> to vector<1x16xf32>
    %c1_109 = arith.constant 1 : index
    %c0_110 = arith.constant 0 : index
    %c0_111 = arith.constant 0 : index
    %c0_112 = arith.constant 0 : index
    %182 = vector.load %arg11[%c1_109, %c0_110, %c0_111, %c0_112] : memref<2x2x64x64xf32, #tpu.memory_space<vmem>>, vector<1x2x64x64xf32>
    %183 = vector.shape_cast %182 : vector<1x2x64x64xf32> to vector<2x64x64xf32>
    %c1_113 = arith.constant 1 : index
    %c0_114 = arith.constant 0 : index
    %c0_115 = arith.constant 0 : index
    %184 = vector.load %arg12[%c1_113, %c0_114, %c0_115] : memref<2x1x16xf32, #tpu.memory_space<vmem>>, vector<1x1x16xf32>
    %185 = vector.shape_cast %184 : vector<1x1x16xf32> to vector<1x16xf32>
    %c1_116 = arith.constant 1 : index
    %c0_117 = arith.constant 0 : index
    %c0_118 = arith.constant 0 : index
    %186 = vector.load %arg13[%c1_116, %c0_117, %c0_118] : memref<2x1x16xf32, #tpu.memory_space<vmem>>, vector<1x1x16xf32>
    %187 = vector.shape_cast %186 : vector<1x1x16xf32> to vector<1x16xf32>
    %c1_119 = arith.constant 1 : index
    %c0_120 = arith.constant 0 : index
    %c0_121 = arith.constant 0 : index
    %188 = vector.load %arg14[%c1_119, %c0_120, %c0_121] : memref<2x16x64xbf16, #tpu.memory_space<vmem>>, vector<1x16x64xbf16>
    %189 = vector.shape_cast %188 : vector<1x16x64xbf16> to vector<16x64xbf16>
    %c1_122 = arith.constant 1 : index
    %c0_123 = arith.constant 0 : index
    %c0_124 = arith.constant 0 : index
    %190 = vector.load %arg15[%c1_122, %c0_123, %c0_124] : memref<2x1x64xf32, #tpu.memory_space<vmem>>, vector<1x1x64xf32>
    %191 = vector.shape_cast %190 : vector<1x1x64xf32> to vector<1x64xf32>
    %c1_125 = arith.constant 1 : index
    %c0_126 = arith.constant 0 : index
    %c0_127 = arith.constant 0 : index
    %192 = vector.load %arg16[%c1_125, %c0_126, %c0_127] : memref<2x64x16xbf16, #tpu.memory_space<vmem>>, vector<1x64x16xbf16>
    %193 = vector.shape_cast %192 : vector<1x64x16xbf16> to vector<64x16xbf16>
    %c1_128 = arith.constant 1 : index
    %c0_129 = arith.constant 0 : index
    %c0_130 = arith.constant 0 : index
    %194 = vector.load %arg17[%c1_128, %c0_129, %c0_130] : memref<2x1x16xf32, #tpu.memory_space<vmem>>, vector<1x1x16xf32>
    %195 = vector.shape_cast %194 : vector<1x1x16xf32> to vector<1x16xf32>
    %cst_131 = arith.constant dense<0.000000e+00> : vector<64xf32>
    %196 = vector.multi_reduction <add>, %167, %cst_131 [1] : vector<64x16xf32> to vector<64xf32>
    %197 = vector.shape_cast %196 : vector<64xf32> to vector<64x1xf32>
    %cst_132 = arith.constant 1.600000e+01 : f32
    %198 = vector.broadcast %cst_132 : f32 to vector<64x1xf32>
    %199 = arith.divf %197, %198 : vector<64x1xf32>
    %200 = vector.broadcast %199 : vector<64x1xf32> to vector<64x16xf32>
    %201 = arith.subf %167, %200 : vector<64x16xf32>
    %202 = arith.mulf %201, %201 : vector<64x16xf32>
    %cst_133 = arith.constant dense<0.000000e+00> : vector<64xf32>
    %203 = vector.multi_reduction <add>, %202, %cst_133 [1] : vector<64x16xf32> to vector<64xf32>
    %204 = vector.shape_cast %203 : vector<64xf32> to vector<64x1xf32>
    %cst_134 = arith.constant 1.600000e+01 : f32
    %205 = vector.broadcast %cst_134 : f32 to vector<64x1xf32>
    %206 = arith.divf %204, %205 : vector<64x1xf32>
    %207 = vector.broadcast %199 : vector<64x1xf32> to vector<64x16xf32>
    %208 = arith.subf %167, %207 : vector<64x16xf32>
    %cst_135 = arith.constant 9.99999974E-6 : f32
    %209 = vector.broadcast %cst_135 : f32 to vector<64x1xf32>
    %210 = arith.addf %206, %209 : vector<64x1xf32>
    %211 = math.rsqrt %210 : vector<64x1xf32>
    %212 = vector.broadcast %211 : vector<64x1xf32> to vector<64x16xf32>
    %213 = arith.mulf %208, %212 : vector<64x16xf32>
    %214 = vector.broadcast %169 : vector<1x16xf32> to vector<64x16xf32>
    %215 = arith.mulf %213, %214 : vector<64x16xf32>
    %216 = vector.broadcast %171 : vector<1x16xf32> to vector<64x16xf32>
    %217 = arith.addf %215, %216 : vector<64x16xf32>
    %218 = arith.truncf %217 : vector<64x16xf32> to vector<64x16xbf16>
    %cst_136 = arith.constant 0.000000e+00 : f32
    %219 = vector.broadcast %cst_136 : f32 to vector<64x16xf32>
    %220 = vector.extract_strided_slice %173 {offsets = [0, 0, 0], sizes = [1, 16, 8], strides = [1, 1, 1]} : vector<2x16x8xbf16> to vector<1x16x8xbf16>
    %221 = vector.shape_cast %220 : vector<1x16x8xbf16> to vector<16x8xbf16>
    %cst_137 = arith.constant dense<0.000000e+00> : vector<64x8xf32>
    %222 = tpu.matmul %218, %221, %cst_137 {dimension_numbers = #tpu.dot_dimension_numbers<[1], [0], [0], [1], [0, 0, 1, 1], [], []>} : vector<64x16xbf16>, vector<16x8xbf16>, vector<64x8xf32> -> vector<64x8xf32>
    %223 = vector.extract_strided_slice %175 {offsets = [0, 0, 0], sizes = [1, 16, 8], strides = [1, 1, 1]} : vector<2x16x8xbf16> to vector<1x16x8xbf16>
    %224 = vector.shape_cast %223 : vector<1x16x8xbf16> to vector<16x8xbf16>
    %cst_138 = arith.constant dense<0.000000e+00> : vector<64x8xf32>
    %225 = tpu.matmul %218, %224, %cst_138 {dimension_numbers = #tpu.dot_dimension_numbers<[1], [0], [0], [1], [0, 0, 1, 1], [], []>} : vector<64x16xbf16>, vector<16x8xbf16>, vector<64x8xf32> -> vector<64x8xf32>
    %226 = vector.extract_strided_slice %177 {offsets = [0, 0, 0], sizes = [1, 16, 8], strides = [1, 1, 1]} : vector<2x16x8xbf16> to vector<1x16x8xbf16>
    %227 = vector.shape_cast %226 : vector<1x16x8xbf16> to vector<16x8xbf16>
    %cst_139 = arith.constant dense<0.000000e+00> : vector<64x8xf32>
    %228 = tpu.matmul %218, %227, %cst_139 {dimension_numbers = #tpu.dot_dimension_numbers<[1], [0], [0], [1], [0, 0, 1, 1], [], []>} : vector<64x16xbf16>, vector<16x8xbf16>, vector<64x8xf32> -> vector<64x8xf32>
    %229 = arith.truncf %222 : vector<64x8xf32> to vector<64x8xbf16>
    %230 = arith.truncf %225 : vector<64x8xf32> to vector<64x8xbf16>
    "tpu.trace_start"() <{level = 10 : i32, message = "nd,md->nm"}> : () -> ()
    %cst_140 = arith.constant dense<0.000000e+00> : vector<64x64xf32>
    %231 = tpu.matmul %229, %230, %cst_140 {dimension_numbers = #tpu.dot_dimension_numbers<[1], [1], [0], [0], [0, 0, 1, 0], [], []>} : vector<64x8xbf16>, vector<64x8xbf16>, vector<64x64xf32> -> vector<64x64xf32>
    "tpu.trace_stop"() : () -> ()
    %232 = vector.extract_strided_slice %183 {offsets = [0, 0, 0], sizes = [1, 64, 64], strides = [1, 1, 1]} : vector<2x64x64xf32> to vector<1x64x64xf32>
    %233 = vector.shape_cast %232 : vector<1x64x64xf32> to vector<64x64xf32>
    %234 = arith.addf %231, %233 : vector<64x64xf32>
    %cst_141 = arith.constant dense<0xFF800000> : vector<64xf32>
    %235 = vector.multi_reduction <maximumf>, %234, %cst_141 [1] : vector<64x64xf32> to vector<64xf32>
    %236 = vector.shape_cast %235 : vector<64xf32> to vector<64x1xf32>
    %237 = vector.broadcast %236 : vector<64x1xf32> to vector<64x64xf32>
    %238 = arith.subf %234, %237 : vector<64x64xf32>
    %239 = math.exp %238 : vector<64x64xf32>
    %cst_142 = arith.constant dense<0.000000e+00> : vector<64xf32>
    %240 = vector.multi_reduction <add>, %239, %cst_142 [1] : vector<64x64xf32> to vector<64xf32>
    %241 = vector.shape_cast %240 : vector<64xf32> to vector<64x1xf32>
    %242 = tpu.reciprocal %241 {approx = true} : vector<64x1xf32> -> vector<64x1xf32>
    %243 = vector.broadcast %242 : vector<64x1xf32> to vector<64x64xf32>
    %244 = arith.mulf %239, %243 : vector<64x64xf32>
    %245 = arith.truncf %244 : vector<64x64xf32> to vector<64x64xbf16>
    %246 = arith.truncf %228 : vector<64x8xf32> to vector<64x8xbf16>
    %cst_143 = arith.constant dense<0.000000e+00> : vector<64x8xf32>
    %247 = tpu.matmul %245, %246, %cst_143 {dimension_numbers = #tpu.dot_dimension_numbers<[1], [0], [0], [1], [0, 0, 1, 1], [], []>} : vector<64x64xbf16>, vector<64x8xbf16>, vector<64x8xf32> -> vector<64x8xf32>
    %248 = arith.truncf %247 : vector<64x8xf32> to vector<64x8xbf16>
    %249 = vector.extract_strided_slice %179 {offsets = [0, 0, 0], sizes = [1, 8, 16], strides = [1, 1, 1]} : vector<2x8x16xbf16> to vector<1x8x16xbf16>
    %250 = vector.shape_cast %249 : vector<1x8x16xbf16> to vector<8x16xbf16>
    %cst_144 = arith.constant dense<0.000000e+00> : vector<64x16xf32>
    %251 = tpu.matmul %248, %250, %cst_144 {dimension_numbers = #tpu.dot_dimension_numbers<[1], [0], [0], [1], [0, 0, 1, 1], [], []>} : vector<64x8xbf16>, vector<8x16xbf16>, vector<64x16xf32> -> vector<64x16xf32>
    %252 = arith.addf %219, %251 : vector<64x16xf32>
    %253 = vector.extract_strided_slice %173 {offsets = [1, 0, 0], sizes = [1, 16, 8], strides = [1, 1, 1]} : vector<2x16x8xbf16> to vector<1x16x8xbf16>
    %254 = vector.shape_cast %253 : vector<1x16x8xbf16> to vector<16x8xbf16>
    %cst_145 = arith.constant dense<0.000000e+00> : vector<64x8xf32>
    %255 = tpu.matmul %218, %254, %cst_145 {dimension_numbers = #tpu.dot_dimension_numbers<[1], [0], [0], [1], [0, 0, 1, 1], [], []>} : vector<64x16xbf16>, vector<16x8xbf16>, vector<64x8xf32> -> vector<64x8xf32>
    %256 = vector.extract_strided_slice %175 {offsets = [1, 0, 0], sizes = [1, 16, 8], strides = [1, 1, 1]} : vector<2x16x8xbf16> to vector<1x16x8xbf16>
    %257 = vector.shape_cast %256 : vector<1x16x8xbf16> to vector<16x8xbf16>
    %cst_146 = arith.constant dense<0.000000e+00> : vector<64x8xf32>
    %258 = tpu.matmul %218, %257, %cst_146 {dimension_numbers = #tpu.dot_dimension_numbers<[1], [0], [0], [1], [0, 0, 1, 1], [], []>} : vector<64x16xbf16>, vector<16x8xbf16>, vector<64x8xf32> -> vector<64x8xf32>
    %259 = vector.extract_strided_slice %177 {offsets = [1, 0, 0], sizes = [1, 16, 8], strides = [1, 1, 1]} : vector<2x16x8xbf16> to vector<1x16x8xbf16>
    %260 = vector.shape_cast %259 : vector<1x16x8xbf16> to vector<16x8xbf16>
    %cst_147 = arith.constant dense<0.000000e+00> : vector<64x8xf32>
    %261 = tpu.matmul %218, %260, %cst_147 {dimension_numbers = #tpu.dot_dimension_numbers<[1], [0], [0], [1], [0, 0, 1, 1], [], []>} : vector<64x16xbf16>, vector<16x8xbf16>, vector<64x8xf32> -> vector<64x8xf32>
    %262 = arith.truncf %255 : vector<64x8xf32> to vector<64x8xbf16>
    %263 = arith.truncf %258 : vector<64x8xf32> to vector<64x8xbf16>
    "tpu.trace_start"() <{level = 10 : i32, message = "nd,md->nm"}> : () -> ()
    %cst_148 = arith.constant dense<0.000000e+00> : vector<64x64xf32>
    %264 = tpu.matmul %262, %263, %cst_148 {dimension_numbers = #tpu.dot_dimension_numbers<[1], [1], [0], [0], [0, 0, 1, 0], [], []>} : vector<64x8xbf16>, vector<64x8xbf16>, vector<64x64xf32> -> vector<64x64xf32>
    "tpu.trace_stop"() : () -> ()
    %265 = vector.extract_strided_slice %183 {offsets = [1, 0, 0], sizes = [1, 64, 64], strides = [1, 1, 1]} : vector<2x64x64xf32> to vector<1x64x64xf32>
    %266 = vector.shape_cast %265 : vector<1x64x64xf32> to vector<64x64xf32>
    %267 = arith.addf %264, %266 : vector<64x64xf32>
    %cst_149 = arith.constant dense<0xFF800000> : vector<64xf32>
    %268 = vector.multi_reduction <maximumf>, %267, %cst_149 [1] : vector<64x64xf32> to vector<64xf32>
    %269 = vector.shape_cast %268 : vector<64xf32> to vector<64x1xf32>
    %270 = vector.broadcast %269 : vector<64x1xf32> to vector<64x64xf32>
    %271 = arith.subf %267, %270 : vector<64x64xf32>
    %272 = math.exp %271 : vector<64x64xf32>
    %cst_150 = arith.constant dense<0.000000e+00> : vector<64xf32>
    %273 = vector.multi_reduction <add>, %272, %cst_150 [1] : vector<64x64xf32> to vector<64xf32>
    %274 = vector.shape_cast %273 : vector<64xf32> to vector<64x1xf32>
    %275 = tpu.reciprocal %274 {approx = true} : vector<64x1xf32> -> vector<64x1xf32>
    %276 = vector.broadcast %275 : vector<64x1xf32> to vector<64x64xf32>
    %277 = arith.mulf %272, %276 : vector<64x64xf32>
    %278 = arith.truncf %277 : vector<64x64xf32> to vector<64x64xbf16>
    %279 = arith.truncf %261 : vector<64x8xf32> to vector<64x8xbf16>
    %cst_151 = arith.constant dense<0.000000e+00> : vector<64x8xf32>
    %280 = tpu.matmul %278, %279, %cst_151 {dimension_numbers = #tpu.dot_dimension_numbers<[1], [0], [0], [1], [0, 0, 1, 1], [], []>} : vector<64x64xbf16>, vector<64x8xbf16>, vector<64x8xf32> -> vector<64x8xf32>
    %281 = arith.truncf %280 : vector<64x8xf32> to vector<64x8xbf16>
    %282 = vector.extract_strided_slice %179 {offsets = [1, 0, 0], sizes = [1, 8, 16], strides = [1, 1, 1]} : vector<2x8x16xbf16> to vector<1x8x16xbf16>
    %283 = vector.shape_cast %282 : vector<1x8x16xbf16> to vector<8x16xbf16>
    %cst_152 = arith.constant dense<0.000000e+00> : vector<64x16xf32>
    %284 = tpu.matmul %281, %283, %cst_152 {dimension_numbers = #tpu.dot_dimension_numbers<[1], [0], [0], [1], [0, 0, 1, 1], [], []>} : vector<64x8xbf16>, vector<8x16xbf16>, vector<64x16xf32> -> vector<64x16xf32>
    %285 = arith.addf %252, %284 : vector<64x16xf32>
    %286 = arith.addf %167, %285 : vector<64x16xf32>
    %287 = vector.broadcast %181 : vector<1x16xf32> to vector<64x16xf32>
    %288 = arith.addf %286, %287 : vector<64x16xf32>
    %cst_153 = arith.constant dense<0.000000e+00> : vector<64xf32>
    %289 = vector.multi_reduction <add>, %288, %cst_153 [1] : vector<64x16xf32> to vector<64xf32>
    %290 = vector.shape_cast %289 : vector<64xf32> to vector<64x1xf32>
    %cst_154 = arith.constant 1.600000e+01 : f32
    %291 = vector.broadcast %cst_154 : f32 to vector<64x1xf32>
    %292 = arith.divf %290, %291 : vector<64x1xf32>
    %293 = vector.broadcast %292 : vector<64x1xf32> to vector<64x16xf32>
    %294 = arith.subf %288, %293 : vector<64x16xf32>
    %295 = arith.mulf %294, %294 : vector<64x16xf32>
    %cst_155 = arith.constant dense<0.000000e+00> : vector<64xf32>
    %296 = vector.multi_reduction <add>, %295, %cst_155 [1] : vector<64x16xf32> to vector<64xf32>
    %297 = vector.shape_cast %296 : vector<64xf32> to vector<64x1xf32>
    %cst_156 = arith.constant 1.600000e+01 : f32
    %298 = vector.broadcast %cst_156 : f32 to vector<64x1xf32>
    %299 = arith.divf %297, %298 : vector<64x1xf32>
    %300 = vector.broadcast %292 : vector<64x1xf32> to vector<64x16xf32>
    %301 = arith.subf %288, %300 : vector<64x16xf32>
    %cst_157 = arith.constant 9.99999974E-6 : f32
    %302 = vector.broadcast %cst_157 : f32 to vector<64x1xf32>
    %303 = arith.addf %299, %302 : vector<64x1xf32>
    %304 = math.rsqrt %303 : vector<64x1xf32>
    %305 = vector.broadcast %304 : vector<64x1xf32> to vector<64x16xf32>
    %306 = arith.mulf %301, %305 : vector<64x16xf32>
    %307 = vector.broadcast %185 : vector<1x16xf32> to vector<64x16xf32>
    %308 = arith.mulf %306, %307 : vector<64x16xf32>
    %309 = vector.broadcast %187 : vector<1x16xf32> to vector<64x16xf32>
    %310 = arith.addf %308, %309 : vector<64x16xf32>
    %311 = arith.truncf %310 : vector<64x16xf32> to vector<64x16xbf16>
    %cst_158 = arith.constant dense<0.000000e+00> : vector<64x64xf32>
    %312 = tpu.matmul %311, %189, %cst_158 {dimension_numbers = #tpu.dot_dimension_numbers<[1], [0], [0], [1], [0, 0, 1, 1], [], []>} : vector<64x16xbf16>, vector<16x64xbf16>, vector<64x64xf32> -> vector<64x64xf32>
    %313 = vector.broadcast %191 : vector<1x64xf32> to vector<64x64xf32>
    %314 = arith.addf %312, %313 : vector<64x64xf32>
    %cst_159 = arith.constant 5.000000e-01 : f32
    %315 = vector.broadcast %cst_159 : f32 to vector<64x64xf32>
    %316 = arith.mulf %315, %314 : vector<64x64xf32>
    %cst_160 = arith.constant 0.707106769 : f32
    %317 = vector.broadcast %cst_160 : f32 to vector<64x64xf32>
    %318 = arith.mulf %314, %317 : vector<64x64xf32>
    %319 = math.erf %318 : vector<64x64xf32>
    %cst_161 = arith.constant 1.000000e+00 : f32
    %320 = vector.broadcast %cst_161 : f32 to vector<64x64xf32>
    %321 = arith.addf %320, %319 : vector<64x64xf32>
    %322 = arith.mulf %316, %321 : vector<64x64xf32>
    %323 = arith.truncf %322 : vector<64x64xf32> to vector<64x64xbf16>
    %cst_162 = arith.constant dense<0.000000e+00> : vector<64x16xf32>
    %324 = tpu.matmul %323, %193, %cst_162 {dimension_numbers = #tpu.dot_dimension_numbers<[1], [0], [0], [1], [0, 0, 1, 1], [], []>} : vector<64x64xbf16>, vector<64x16xbf16>, vector<64x16xf32> -> vector<64x16xf32>
    %325 = vector.broadcast %195 : vector<1x16xf32> to vector<64x16xf32>
    %326 = arith.addf %324, %325 : vector<64x16xf32>
    %327 = arith.addf %288, %326 : vector<64x16xf32>
    %328 = arith.truncf %327 : vector<64x16xf32> to vector<64x16xbf16>
    %cst_163 = arith.constant 0.000000e+00 : f32
    %329 = vector.broadcast %cst_163 : f32 to vector<16x32xf32>
    %c0_164 = arith.constant 0 : index
    %c0_165 = arith.constant 0 : index
    %c0_166 = arith.constant 0 : index
    %330 = vector.load %arg18[%c0_164, %c0_165, %c0_166] : memref<4x16x64xbf16, #tpu.memory_space<vmem>>, vector<1x16x64xbf16>
    %331 = vector.shape_cast %330 : vector<1x16x64xbf16> to vector<16x64xbf16>
    %cst_167 = arith.constant dense<0.000000e+00> : vector<16x16xf32>
    %332 = tpu.matmul %331, %328, %cst_167 {dimension_numbers = #tpu.dot_dimension_numbers<[1], [0], [0], [1], [0, 0, 1, 1], [], []>} : vector<16x64xbf16>, vector<64x16xbf16>, vector<16x16xf32> -> vector<16x16xf32>
    %333 = arith.truncf %332 : vector<16x16xf32> to vector<16x16xbf16>
    %c0_168 = arith.constant 0 : index
    %c0_169 = arith.constant 0 : index
    %c0_170 = arith.constant 0 : index
    %334 = vector.load %arg19[%c0_168, %c0_169, %c0_170] : memref<4x16x32xbf16, #tpu.memory_space<vmem>>, vector<1x16x32xbf16>
    %335 = vector.shape_cast %334 : vector<1x16x32xbf16> to vector<16x32xbf16>
    %cst_171 = arith.constant dense<0.000000e+00> : vector<16x32xf32>
    %336 = tpu.matmul %333, %335, %cst_171 {dimension_numbers = #tpu.dot_dimension_numbers<[1], [0], [0], [1], [0, 0, 1, 1], [], []>} : vector<16x16xbf16>, vector<16x32xbf16>, vector<16x32xf32> -> vector<16x32xf32>
    %337 = arith.addf %329, %336 : vector<16x32xf32>
    %c1_172 = arith.constant 1 : index
    %c0_173 = arith.constant 0 : index
    %c0_174 = arith.constant 0 : index
    %338 = vector.load %arg18[%c1_172, %c0_173, %c0_174] : memref<4x16x64xbf16, #tpu.memory_space<vmem>>, vector<1x16x64xbf16>
    %339 = vector.shape_cast %338 : vector<1x16x64xbf16> to vector<16x64xbf16>
    %cst_175 = arith.constant dense<0.000000e+00> : vector<16x16xf32>
    %340 = tpu.matmul %339, %328, %cst_175 {dimension_numbers = #tpu.dot_dimension_numbers<[1], [0], [0], [1], [0, 0, 1, 1], [], []>} : vector<16x64xbf16>, vector<64x16xbf16>, vector<16x16xf32> -> vector<16x16xf32>
    %341 = arith.truncf %340 : vector<16x16xf32> to vector<16x16xbf16>
    %c1_176 = arith.constant 1 : index
    %c0_177 = arith.constant 0 : index
    %c0_178 = arith.constant 0 : index
    %342 = vector.load %arg19[%c1_176, %c0_177, %c0_178] : memref<4x16x32xbf16, #tpu.memory_space<vmem>>, vector<1x16x32xbf16>
    %343 = vector.shape_cast %342 : vector<1x16x32xbf16> to vector<16x32xbf16>
    %cst_179 = arith.constant dense<0.000000e+00> : vector<16x32xf32>
    %344 = tpu.matmul %341, %343, %cst_179 {dimension_numbers = #tpu.dot_dimension_numbers<[1], [0], [0], [1], [0, 0, 1, 1], [], []>} : vector<16x16xbf16>, vector<16x32xbf16>, vector<16x32xf32> -> vector<16x32xf32>
    %345 = arith.addf %337, %344 : vector<16x32xf32>
    %c2 = arith.constant 2 : index
    %c0_180 = arith.constant 0 : index
    %c0_181 = arith.constant 0 : index
    %346 = vector.load %arg18[%c2, %c0_180, %c0_181] : memref<4x16x64xbf16, #tpu.memory_space<vmem>>, vector<1x16x64xbf16>
    %347 = vector.shape_cast %346 : vector<1x16x64xbf16> to vector<16x64xbf16>
    %cst_182 = arith.constant dense<0.000000e+00> : vector<16x16xf32>
    %348 = tpu.matmul %347, %328, %cst_182 {dimension_numbers = #tpu.dot_dimension_numbers<[1], [0], [0], [1], [0, 0, 1, 1], [], []>} : vector<16x64xbf16>, vector<64x16xbf16>, vector<16x16xf32> -> vector<16x16xf32>
    %349 = arith.truncf %348 : vector<16x16xf32> to vector<16x16xbf16>
    %c2_183 = arith.constant 2 : index
    %c0_184 = arith.constant 0 : index
    %c0_185 = arith.constant 0 : index
    %350 = vector.load %arg19[%c2_183, %c0_184, %c0_185] : memref<4x16x32xbf16, #tpu.memory_space<vmem>>, vector<1x16x32xbf16>
    %351 = vector.shape_cast %350 : vector<1x16x32xbf16> to vector<16x32xbf16>
    %cst_186 = arith.constant dense<0.000000e+00> : vector<16x32xf32>
    %352 = tpu.matmul %349, %351, %cst_186 {dimension_numbers = #tpu.dot_dimension_numbers<[1], [0], [0], [1], [0, 0, 1, 1], [], []>} : vector<16x16xbf16>, vector<16x32xbf16>, vector<16x32xf32> -> vector<16x32xf32>
    %353 = arith.addf %345, %352 : vector<16x32xf32>
    %c3 = arith.constant 3 : index
    %c0_187 = arith.constant 0 : index
    %c0_188 = arith.constant 0 : index
    %354 = vector.load %arg18[%c3, %c0_187, %c0_188] : memref<4x16x64xbf16, #tpu.memory_space<vmem>>, vector<1x16x64xbf16>
    %355 = vector.shape_cast %354 : vector<1x16x64xbf16> to vector<16x64xbf16>
    %cst_189 = arith.constant dense<0.000000e+00> : vector<16x16xf32>
    %356 = tpu.matmul %355, %328, %cst_189 {dimension_numbers = #tpu.dot_dimension_numbers<[1], [0], [0], [1], [0, 0, 1, 1], [], []>} : vector<16x64xbf16>, vector<64x16xbf16>, vector<16x16xf32> -> vector<16x16xf32>
    %357 = arith.truncf %356 : vector<16x16xf32> to vector<16x16xbf16>
    %c3_190 = arith.constant 3 : index
    %c0_191 = arith.constant 0 : index
    %c0_192 = arith.constant 0 : index
    %358 = vector.load %arg19[%c3_190, %c0_191, %c0_192] : memref<4x16x32xbf16, #tpu.memory_space<vmem>>, vector<1x16x32xbf16>
    %359 = vector.shape_cast %358 : vector<1x16x32xbf16> to vector<16x32xbf16>
    %cst_193 = arith.constant dense<0.000000e+00> : vector<16x32xf32>
    %360 = tpu.matmul %357, %359, %cst_193 {dimension_numbers = #tpu.dot_dimension_numbers<[1], [0], [0], [1], [0, 0, 1, 1], [], []>} : vector<16x16xbf16>, vector<16x32xbf16>, vector<16x32xf32> -> vector<16x32xf32>
    %361 = arith.addf %353, %360 : vector<16x32xf32>
    %c0_194 = arith.constant 0 : index
    %c0_195 = arith.constant 0 : index
    %362 = vector.load %arg20[%c0_194, %c0_195] : memref<1x32xf32, #tpu.memory_space<vmem>>, vector<1x32xf32>
    %363 = vector.broadcast %362 : vector<1x32xf32> to vector<16x32xf32>
    %364 = arith.addf %361, %363 : vector<16x32xf32>
    %c0_196 = arith.constant 0 : index
    %c0_197 = arith.constant 0 : index
    %c0_198 = arith.constant 0 : index
    %365 = vector.load %arg21[%c0_196, %c0_197, %c0_198] : memref<2x1x32xf32, #tpu.memory_space<vmem>>, vector<1x1x32xf32>
    %366 = vector.shape_cast %365 : vector<1x1x32xf32> to vector<1x32xf32>
    %c0_199 = arith.constant 0 : index
    %c0_200 = arith.constant 0 : index
    %c0_201 = arith.constant 0 : index
    %367 = vector.load %arg22[%c0_199, %c0_200, %c0_201] : memref<2x1x32xf32, #tpu.memory_space<vmem>>, vector<1x1x32xf32>
    %368 = vector.shape_cast %367 : vector<1x1x32xf32> to vector<1x32xf32>
    %c0_202 = arith.constant 0 : index
    %c0_203 = arith.constant 0 : index
    %c0_204 = arith.constant 0 : index
    %c0_205 = arith.constant 0 : index
    %369 = vector.load %arg23[%c0_202, %c0_203, %c0_204, %c0_205] : memref<2x2x32x16xbf16, #tpu.memory_space<vmem>>, vector<1x2x32x16xbf16>
    %370 = vector.shape_cast %369 : vector<1x2x32x16xbf16> to vector<2x32x16xbf16>
    %c0_206 = arith.constant 0 : index
    %c0_207 = arith.constant 0 : index
    %c0_208 = arith.constant 0 : index
    %c0_209 = arith.constant 0 : index
    %371 = vector.load %arg24[%c0_206, %c0_207, %c0_208, %c0_209] : memref<2x2x32x16xbf16, #tpu.memory_space<vmem>>, vector<1x2x32x16xbf16>
    %372 = vector.shape_cast %371 : vector<1x2x32x16xbf16> to vector<2x32x16xbf16>
    %c0_210 = arith.constant 0 : index
    %c0_211 = arith.constant 0 : index
    %c0_212 = arith.constant 0 : index
    %c0_213 = arith.constant 0 : index
    %373 = vector.load %arg25[%c0_210, %c0_211, %c0_212, %c0_213] : memref<2x2x32x16xbf16, #tpu.memory_space<vmem>>, vector<1x2x32x16xbf16>
    %374 = vector.shape_cast %373 : vector<1x2x32x16xbf16> to vector<2x32x16xbf16>
    %c0_214 = arith.constant 0 : index
    %c0_215 = arith.constant 0 : index
    %c0_216 = arith.constant 0 : index
    %c0_217 = arith.constant 0 : index
    %375 = vector.load %arg26[%c0_214, %c0_215, %c0_216, %c0_217] : memref<2x2x16x32xbf16, #tpu.memory_space<vmem>>, vector<1x2x16x32xbf16>
    %376 = vector.shape_cast %375 : vector<1x2x16x32xbf16> to vector<2x16x32xbf16>
    %c0_218 = arith.constant 0 : index
    %c0_219 = arith.constant 0 : index
    %c0_220 = arith.constant 0 : index
    %377 = vector.load %arg27[%c0_218, %c0_219, %c0_220] : memref<2x1x32xf32, #tpu.memory_space<vmem>>, vector<1x1x32xf32>
    %378 = vector.shape_cast %377 : vector<1x1x32xf32> to vector<1x32xf32>
    %c0_221 = arith.constant 0 : index
    %c0_222 = arith.constant 0 : index
    %c0_223 = arith.constant 0 : index
    %c0_224 = arith.constant 0 : index
    %379 = vector.load %arg28[%c0_221, %c0_222, %c0_223, %c0_224] : memref<2x2x16x16xf32, #tpu.memory_space<vmem>>, vector<1x2x16x16xf32>
    %380 = vector.shape_cast %379 : vector<1x2x16x16xf32> to vector<2x16x16xf32>
    %c0_225 = arith.constant 0 : index
    %c0_226 = arith.constant 0 : index
    %c0_227 = arith.constant 0 : index
    %381 = vector.load %arg29[%c0_225, %c0_226, %c0_227] : memref<2x1x32xf32, #tpu.memory_space<vmem>>, vector<1x1x32xf32>
    %382 = vector.shape_cast %381 : vector<1x1x32xf32> to vector<1x32xf32>
    %c0_228 = arith.constant 0 : index
    %c0_229 = arith.constant 0 : index
    %c0_230 = arith.constant 0 : index
    %383 = vector.load %arg30[%c0_228, %c0_229, %c0_230] : memref<2x1x32xf32, #tpu.memory_space<vmem>>, vector<1x1x32xf32>
    %384 = vector.shape_cast %383 : vector<1x1x32xf32> to vector<1x32xf32>
    %c0_231 = arith.constant 0 : index
    %c0_232 = arith.constant 0 : index
    %c0_233 = arith.constant 0 : index
    %385 = vector.load %arg31[%c0_231, %c0_232, %c0_233] : memref<2x32x128xbf16, #tpu.memory_space<vmem>>, vector<1x32x128xbf16>
    %386 = vector.shape_cast %385 : vector<1x32x128xbf16> to vector<32x128xbf16>
    %c0_234 = arith.constant 0 : index
    %c0_235 = arith.constant 0 : index
    %c0_236 = arith.constant 0 : index
    %387 = vector.load %arg32[%c0_234, %c0_235, %c0_236] : memref<2x1x128xf32, #tpu.memory_space<vmem>>, vector<1x1x128xf32>
    %388 = vector.shape_cast %387 : vector<1x1x128xf32> to vector<1x128xf32>
    %c0_237 = arith.constant 0 : index
    %c0_238 = arith.constant 0 : index
    %c0_239 = arith.constant 0 : index
    %389 = vector.load %arg33[%c0_237, %c0_238, %c0_239] : memref<2x128x32xbf16, #tpu.memory_space<vmem>>, vector<1x128x32xbf16>
    %390 = vector.shape_cast %389 : vector<1x128x32xbf16> to vector<128x32xbf16>
    %c0_240 = arith.constant 0 : index
    %c0_241 = arith.constant 0 : index
    %c0_242 = arith.constant 0 : index
    %391 = vector.load %arg34[%c0_240, %c0_241, %c0_242] : memref<2x1x32xf32, #tpu.memory_space<vmem>>, vector<1x1x32xf32>
    %392 = vector.shape_cast %391 : vector<1x1x32xf32> to vector<1x32xf32>
    %cst_243 = arith.constant dense<0.000000e+00> : vector<16xf32>
    %393 = vector.multi_reduction <add>, %364, %cst_243 [1] : vector<16x32xf32> to vector<16xf32>
    %394 = vector.shape_cast %393 : vector<16xf32> to vector<16x1xf32>
    %cst_244 = arith.constant 3.200000e+01 : f32
    %395 = vector.broadcast %cst_244 : f32 to vector<16x1xf32>
    %396 = arith.divf %394, %395 : vector<16x1xf32>
    %397 = vector.broadcast %396 : vector<16x1xf32> to vector<16x32xf32>
    %398 = arith.subf %364, %397 : vector<16x32xf32>
    %399 = arith.mulf %398, %398 : vector<16x32xf32>
    %cst_245 = arith.constant dense<0.000000e+00> : vector<16xf32>
    %400 = vector.multi_reduction <add>, %399, %cst_245 [1] : vector<16x32xf32> to vector<16xf32>
    %401 = vector.shape_cast %400 : vector<16xf32> to vector<16x1xf32>
    %cst_246 = arith.constant 3.200000e+01 : f32
    %402 = vector.broadcast %cst_246 : f32 to vector<16x1xf32>
    %403 = arith.divf %401, %402 : vector<16x1xf32>
    %404 = vector.broadcast %396 : vector<16x1xf32> to vector<16x32xf32>
    %405 = arith.subf %364, %404 : vector<16x32xf32>
    %cst_247 = arith.constant 9.99999974E-6 : f32
    %406 = vector.broadcast %cst_247 : f32 to vector<16x1xf32>
    %407 = arith.addf %403, %406 : vector<16x1xf32>
    %408 = math.rsqrt %407 : vector<16x1xf32>
    %409 = vector.broadcast %408 : vector<16x1xf32> to vector<16x32xf32>
    %410 = arith.mulf %405, %409 : vector<16x32xf32>
    %411 = vector.broadcast %366 : vector<1x32xf32> to vector<16x32xf32>
    %412 = arith.mulf %410, %411 : vector<16x32xf32>
    %413 = vector.broadcast %368 : vector<1x32xf32> to vector<16x32xf32>
    %414 = arith.addf %412, %413 : vector<16x32xf32>
    %415 = arith.truncf %414 : vector<16x32xf32> to vector<16x32xbf16>
    %cst_248 = arith.constant 0.000000e+00 : f32
    %416 = vector.broadcast %cst_248 : f32 to vector<16x32xf32>
    %417 = vector.extract_strided_slice %370 {offsets = [0, 0, 0], sizes = [1, 32, 16], strides = [1, 1, 1]} : vector<2x32x16xbf16> to vector<1x32x16xbf16>
    %418 = vector.shape_cast %417 : vector<1x32x16xbf16> to vector<32x16xbf16>
    %cst_249 = arith.constant dense<0.000000e+00> : vector<16x16xf32>
    %419 = tpu.matmul %415, %418, %cst_249 {dimension_numbers = #tpu.dot_dimension_numbers<[1], [0], [0], [1], [0, 0, 1, 1], [], []>} : vector<16x32xbf16>, vector<32x16xbf16>, vector<16x16xf32> -> vector<16x16xf32>
    %420 = vector.extract_strided_slice %372 {offsets = [0, 0, 0], sizes = [1, 32, 16], strides = [1, 1, 1]} : vector<2x32x16xbf16> to vector<1x32x16xbf16>
    %421 = vector.shape_cast %420 : vector<1x32x16xbf16> to vector<32x16xbf16>
    %cst_250 = arith.constant dense<0.000000e+00> : vector<16x16xf32>
    %422 = tpu.matmul %415, %421, %cst_250 {dimension_numbers = #tpu.dot_dimension_numbers<[1], [0], [0], [1], [0, 0, 1, 1], [], []>} : vector<16x32xbf16>, vector<32x16xbf16>, vector<16x16xf32> -> vector<16x16xf32>
    %423 = vector.extract_strided_slice %374 {offsets = [0, 0, 0], sizes = [1, 32, 16], strides = [1, 1, 1]} : vector<2x32x16xbf16> to vector<1x32x16xbf16>
    %424 = vector.shape_cast %423 : vector<1x32x16xbf16> to vector<32x16xbf16>
    %cst_251 = arith.constant dense<0.000000e+00> : vector<16x16xf32>
    %425 = tpu.matmul %415, %424, %cst_251 {dimension_numbers = #tpu.dot_dimension_numbers<[1], [0], [0], [1], [0, 0, 1, 1], [], []>} : vector<16x32xbf16>, vector<32x16xbf16>, vector<16x16xf32> -> vector<16x16xf32>
    %426 = arith.truncf %419 : vector<16x16xf32> to vector<16x16xbf16>
    %427 = arith.truncf %422 : vector<16x16xf32> to vector<16x16xbf16>
    "tpu.trace_start"() <{level = 10 : i32, message = "nd,md->nm"}> : () -> ()
    %cst_252 = arith.constant dense<0.000000e+00> : vector<16x16xf32>
    %428 = tpu.matmul %426, %427, %cst_252 {dimension_numbers = #tpu.dot_dimension_numbers<[1], [1], [0], [0], [0, 0, 1, 0], [], []>} : vector<16x16xbf16>, vector<16x16xbf16>, vector<16x16xf32> -> vector<16x16xf32>
    "tpu.trace_stop"() : () -> ()
    %429 = vector.extract_strided_slice %380 {offsets = [0, 0, 0], sizes = [1, 16, 16], strides = [1, 1, 1]} : vector<2x16x16xf32> to vector<1x16x16xf32>
    %430 = vector.shape_cast %429 : vector<1x16x16xf32> to vector<16x16xf32>
    %431 = arith.addf %428, %430 : vector<16x16xf32>
    %cst_253 = arith.constant dense<0xFF800000> : vector<16xf32>
    %432 = vector.multi_reduction <maximumf>, %431, %cst_253 [1] : vector<16x16xf32> to vector<16xf32>
    %433 = vector.shape_cast %432 : vector<16xf32> to vector<16x1xf32>
    %434 = vector.broadcast %433 : vector<16x1xf32> to vector<16x16xf32>
    %435 = arith.subf %431, %434 : vector<16x16xf32>
    %436 = math.exp %435 : vector<16x16xf32>
    %cst_254 = arith.constant dense<0.000000e+00> : vector<16xf32>
    %437 = vector.multi_reduction <add>, %436, %cst_254 [1] : vector<16x16xf32> to vector<16xf32>
    %438 = vector.shape_cast %437 : vector<16xf32> to vector<16x1xf32>
    %439 = tpu.reciprocal %438 {approx = true} : vector<16x1xf32> -> vector<16x1xf32>
    %440 = vector.broadcast %439 : vector<16x1xf32> to vector<16x16xf32>
    %441 = arith.mulf %436, %440 : vector<16x16xf32>
    %442 = arith.truncf %441 : vector<16x16xf32> to vector<16x16xbf16>
    %443 = arith.truncf %425 : vector<16x16xf32> to vector<16x16xbf16>
    %cst_255 = arith.constant dense<0.000000e+00> : vector<16x16xf32>
    %444 = tpu.matmul %442, %443, %cst_255 {dimension_numbers = #tpu.dot_dimension_numbers<[1], [0], [0], [1], [0, 0, 1, 1], [], []>} : vector<16x16xbf16>, vector<16x16xbf16>, vector<16x16xf32> -> vector<16x16xf32>
    %445 = arith.truncf %444 : vector<16x16xf32> to vector<16x16xbf16>
    %446 = vector.extract_strided_slice %376 {offsets = [0, 0, 0], sizes = [1, 16, 32], strides = [1, 1, 1]} : vector<2x16x32xbf16> to vector<1x16x32xbf16>
    %447 = vector.shape_cast %446 : vector<1x16x32xbf16> to vector<16x32xbf16>
    %cst_256 = arith.constant dense<0.000000e+00> : vector<16x32xf32>
    %448 = tpu.matmul %445, %447, %cst_256 {dimension_numbers = #tpu.dot_dimension_numbers<[1], [0], [0], [1], [0, 0, 1, 1], [], []>} : vector<16x16xbf16>, vector<16x32xbf16>, vector<16x32xf32> -> vector<16x32xf32>
    %449 = arith.addf %416, %448 : vector<16x32xf32>
    %450 = vector.extract_strided_slice %370 {offsets = [1, 0, 0], sizes = [1, 32, 16], strides = [1, 1, 1]} : vector<2x32x16xbf16> to vector<1x32x16xbf16>
    %451 = vector.shape_cast %450 : vector<1x32x16xbf16> to vector<32x16xbf16>
    %cst_257 = arith.constant dense<0.000000e+00> : vector<16x16xf32>
    %452 = tpu.matmul %415, %451, %cst_257 {dimension_numbers = #tpu.dot_dimension_numbers<[1], [0], [0], [1], [0, 0, 1, 1], [], []>} : vector<16x32xbf16>, vector<32x16xbf16>, vector<16x16xf32> -> vector<16x16xf32>
    %453 = vector.extract_strided_slice %372 {offsets = [1, 0, 0], sizes = [1, 32, 16], strides = [1, 1, 1]} : vector<2x32x16xbf16> to vector<1x32x16xbf16>
    %454 = vector.shape_cast %453 : vector<1x32x16xbf16> to vector<32x16xbf16>
    %cst_258 = arith.constant dense<0.000000e+00> : vector<16x16xf32>
    %455 = tpu.matmul %415, %454, %cst_258 {dimension_numbers = #tpu.dot_dimension_numbers<[1], [0], [0], [1], [0, 0, 1, 1], [], []>} : vector<16x32xbf16>, vector<32x16xbf16>, vector<16x16xf32> -> vector<16x16xf32>
    %456 = vector.extract_strided_slice %374 {offsets = [1, 0, 0], sizes = [1, 32, 16], strides = [1, 1, 1]} : vector<2x32x16xbf16> to vector<1x32x16xbf16>
    %457 = vector.shape_cast %456 : vector<1x32x16xbf16> to vector<32x16xbf16>
    %cst_259 = arith.constant dense<0.000000e+00> : vector<16x16xf32>
    %458 = tpu.matmul %415, %457, %cst_259 {dimension_numbers = #tpu.dot_dimension_numbers<[1], [0], [0], [1], [0, 0, 1, 1], [], []>} : vector<16x32xbf16>, vector<32x16xbf16>, vector<16x16xf32> -> vector<16x16xf32>
    %459 = arith.truncf %452 : vector<16x16xf32> to vector<16x16xbf16>
    %460 = arith.truncf %455 : vector<16x16xf32> to vector<16x16xbf16>
    "tpu.trace_start"() <{level = 10 : i32, message = "nd,md->nm"}> : () -> ()
    %cst_260 = arith.constant dense<0.000000e+00> : vector<16x16xf32>
    %461 = tpu.matmul %459, %460, %cst_260 {dimension_numbers = #tpu.dot_dimension_numbers<[1], [1], [0], [0], [0, 0, 1, 0], [], []>} : vector<16x16xbf16>, vector<16x16xbf16>, vector<16x16xf32> -> vector<16x16xf32>
    "tpu.trace_stop"() : () -> ()
    %462 = vector.extract_strided_slice %380 {offsets = [1, 0, 0], sizes = [1, 16, 16], strides = [1, 1, 1]} : vector<2x16x16xf32> to vector<1x16x16xf32>
    %463 = vector.shape_cast %462 : vector<1x16x16xf32> to vector<16x16xf32>
    %464 = arith.addf %461, %463 : vector<16x16xf32>
    %cst_261 = arith.constant dense<0xFF800000> : vector<16xf32>
    %465 = vector.multi_reduction <maximumf>, %464, %cst_261 [1] : vector<16x16xf32> to vector<16xf32>
    %466 = vector.shape_cast %465 : vector<16xf32> to vector<16x1xf32>
    %467 = vector.broadcast %466 : vector<16x1xf32> to vector<16x16xf32>
    %468 = arith.subf %464, %467 : vector<16x16xf32>
    %469 = math.exp %468 : vector<16x16xf32>
    %cst_262 = arith.constant dense<0.000000e+00> : vector<16xf32>
    %470 = vector.multi_reduction <add>, %469, %cst_262 [1] : vector<16x16xf32> to vector<16xf32>
    %471 = vector.shape_cast %470 : vector<16xf32> to vector<16x1xf32>
    %472 = tpu.reciprocal %471 {approx = true} : vector<16x1xf32> -> vector<16x1xf32>
    %473 = vector.broadcast %472 : vector<16x1xf32> to vector<16x16xf32>
    %474 = arith.mulf %469, %473 : vector<16x16xf32>
    %475 = arith.truncf %474 : vector<16x16xf32> to vector<16x16xbf16>
    %476 = arith.truncf %458 : vector<16x16xf32> to vector<16x16xbf16>
    %cst_263 = arith.constant dense<0.000000e+00> : vector<16x16xf32>
    %477 = tpu.matmul %475, %476, %cst_263 {dimension_numbers = #tpu.dot_dimension_numbers<[1], [0], [0], [1], [0, 0, 1, 1], [], []>} : vector<16x16xbf16>, vector<16x16xbf16>, vector<16x16xf32> -> vector<16x16xf32>
    %478 = arith.truncf %477 : vector<16x16xf32> to vector<16x16xbf16>
    %479 = vector.extract_strided_slice %376 {offsets = [1, 0, 0], sizes = [1, 16, 32], strides = [1, 1, 1]} : vector<2x16x32xbf16> to vector<1x16x32xbf16>
    %480 = vector.shape_cast %479 : vector<1x16x32xbf16> to vector<16x32xbf16>
    %cst_264 = arith.constant dense<0.000000e+00> : vector<16x32xf32>
    %481 = tpu.matmul %478, %480, %cst_264 {dimension_numbers = #tpu.dot_dimension_numbers<[1], [0], [0], [1], [0, 0, 1, 1], [], []>} : vector<16x16xbf16>, vector<16x32xbf16>, vector<16x32xf32> -> vector<16x32xf32>
    %482 = arith.addf %449, %481 : vector<16x32xf32>
    %483 = arith.addf %364, %482 : vector<16x32xf32>
    %484 = vector.broadcast %378 : vector<1x32xf32> to vector<16x32xf32>
    %485 = arith.addf %483, %484 : vector<16x32xf32>
    %cst_265 = arith.constant dense<0.000000e+00> : vector<16xf32>
    %486 = vector.multi_reduction <add>, %485, %cst_265 [1] : vector<16x32xf32> to vector<16xf32>
    %487 = vector.shape_cast %486 : vector<16xf32> to vector<16x1xf32>
    %cst_266 = arith.constant 3.200000e+01 : f32
    %488 = vector.broadcast %cst_266 : f32 to vector<16x1xf32>
    %489 = arith.divf %487, %488 : vector<16x1xf32>
    %490 = vector.broadcast %489 : vector<16x1xf32> to vector<16x32xf32>
    %491 = arith.subf %485, %490 : vector<16x32xf32>
    %492 = arith.mulf %491, %491 : vector<16x32xf32>
    %cst_267 = arith.constant dense<0.000000e+00> : vector<16xf32>
    %493 = vector.multi_reduction <add>, %492, %cst_267 [1] : vector<16x32xf32> to vector<16xf32>
    %494 = vector.shape_cast %493 : vector<16xf32> to vector<16x1xf32>
    %cst_268 = arith.constant 3.200000e+01 : f32
    %495 = vector.broadcast %cst_268 : f32 to vector<16x1xf32>
    %496 = arith.divf %494, %495 : vector<16x1xf32>
    %497 = vector.broadcast %489 : vector<16x1xf32> to vector<16x32xf32>
    %498 = arith.subf %485, %497 : vector<16x32xf32>
    %cst_269 = arith.constant 9.99999974E-6 : f32
    %499 = vector.broadcast %cst_269 : f32 to vector<16x1xf32>
    %500 = arith.addf %496, %499 : vector<16x1xf32>
    %501 = math.rsqrt %500 : vector<16x1xf32>
    %502 = vector.broadcast %501 : vector<16x1xf32> to vector<16x32xf32>
    %503 = arith.mulf %498, %502 : vector<16x32xf32>
    %504 = vector.broadcast %382 : vector<1x32xf32> to vector<16x32xf32>
    %505 = arith.mulf %503, %504 : vector<16x32xf32>
    %506 = vector.broadcast %384 : vector<1x32xf32> to vector<16x32xf32>
    %507 = arith.addf %505, %506 : vector<16x32xf32>
    %508 = arith.truncf %507 : vector<16x32xf32> to vector<16x32xbf16>
    %cst_270 = arith.constant dense<0.000000e+00> : vector<16x128xf32>
    %509 = tpu.matmul %508, %386, %cst_270 {dimension_numbers = #tpu.dot_dimension_numbers<[1], [0], [0], [1], [0, 0, 1, 1], [], []>} : vector<16x32xbf16>, vector<32x128xbf16>, vector<16x128xf32> -> vector<16x128xf32>
    %510 = vector.broadcast %388 : vector<1x128xf32> to vector<16x128xf32>
    %511 = arith.addf %509, %510 : vector<16x128xf32>
    %cst_271 = arith.constant 5.000000e-01 : f32
    %512 = vector.broadcast %cst_271 : f32 to vector<16x128xf32>
    %513 = arith.mulf %512, %511 : vector<16x128xf32>
    %cst_272 = arith.constant 0.707106769 : f32
    %514 = vector.broadcast %cst_272 : f32 to vector<16x128xf32>
    %515 = arith.mulf %511, %514 : vector<16x128xf32>
    %516 = math.erf %515 : vector<16x128xf32>
    %cst_273 = arith.constant 1.000000e+00 : f32
    %517 = vector.broadcast %cst_273 : f32 to vector<16x128xf32>
    %518 = arith.addf %517, %516 : vector<16x128xf32>
    %519 = arith.mulf %513, %518 : vector<16x128xf32>
    %520 = arith.truncf %519 : vector<16x128xf32> to vector<16x128xbf16>
    %cst_274 = arith.constant dense<0.000000e+00> : vector<16x32xf32>
    %521 = tpu.matmul %520, %390, %cst_274 {dimension_numbers = #tpu.dot_dimension_numbers<[1], [0], [0], [1], [0, 0, 1, 1], [], []>} : vector<16x128xbf16>, vector<128x32xbf16>, vector<16x32xf32> -> vector<16x32xf32>
    %522 = vector.broadcast %392 : vector<1x32xf32> to vector<16x32xf32>
    %523 = arith.addf %521, %522 : vector<16x32xf32>
    %524 = arith.addf %485, %523 : vector<16x32xf32>
    %c1_275 = arith.constant 1 : index
    %c0_276 = arith.constant 0 : index
    %c0_277 = arith.constant 0 : index
    %525 = vector.load %arg21[%c1_275, %c0_276, %c0_277] : memref<2x1x32xf32, #tpu.memory_space<vmem>>, vector<1x1x32xf32>
    %526 = vector.shape_cast %525 : vector<1x1x32xf32> to vector<1x32xf32>
    %c1_278 = arith.constant 1 : index
    %c0_279 = arith.constant 0 : index
    %c0_280 = arith.constant 0 : index
    %527 = vector.load %arg22[%c1_278, %c0_279, %c0_280] : memref<2x1x32xf32, #tpu.memory_space<vmem>>, vector<1x1x32xf32>
    %528 = vector.shape_cast %527 : vector<1x1x32xf32> to vector<1x32xf32>
    %c1_281 = arith.constant 1 : index
    %c0_282 = arith.constant 0 : index
    %c0_283 = arith.constant 0 : index
    %c0_284 = arith.constant 0 : index
    %529 = vector.load %arg23[%c1_281, %c0_282, %c0_283, %c0_284] : memref<2x2x32x16xbf16, #tpu.memory_space<vmem>>, vector<1x2x32x16xbf16>
    %530 = vector.shape_cast %529 : vector<1x2x32x16xbf16> to vector<2x32x16xbf16>
    %c1_285 = arith.constant 1 : index
    %c0_286 = arith.constant 0 : index
    %c0_287 = arith.constant 0 : index
    %c0_288 = arith.constant 0 : index
    %531 = vector.load %arg24[%c1_285, %c0_286, %c0_287, %c0_288] : memref<2x2x32x16xbf16, #tpu.memory_space<vmem>>, vector<1x2x32x16xbf16>
    %532 = vector.shape_cast %531 : vector<1x2x32x16xbf16> to vector<2x32x16xbf16>
    %c1_289 = arith.constant 1 : index
    %c0_290 = arith.constant 0 : index
    %c0_291 = arith.constant 0 : index
    %c0_292 = arith.constant 0 : index
    %533 = vector.load %arg25[%c1_289, %c0_290, %c0_291, %c0_292] : memref<2x2x32x16xbf16, #tpu.memory_space<vmem>>, vector<1x2x32x16xbf16>
    %534 = vector.shape_cast %533 : vector<1x2x32x16xbf16> to vector<2x32x16xbf16>
    %c1_293 = arith.constant 1 : index
    %c0_294 = arith.constant 0 : index
    %c0_295 = arith.constant 0 : index
    %c0_296 = arith.constant 0 : index
    %535 = vector.load %arg26[%c1_293, %c0_294, %c0_295, %c0_296] : memref<2x2x16x32xbf16, #tpu.memory_space<vmem>>, vector<1x2x16x32xbf16>
    %536 = vector.shape_cast %535 : vector<1x2x16x32xbf16> to vector<2x16x32xbf16>
    %c1_297 = arith.constant 1 : index
    %c0_298 = arith.constant 0 : index
    %c0_299 = arith.constant 0 : index
    %537 = vector.load %arg27[%c1_297, %c0_298, %c0_299] : memref<2x1x32xf32, #tpu.memory_space<vmem>>, vector<1x1x32xf32>
    %538 = vector.shape_cast %537 : vector<1x1x32xf32> to vector<1x32xf32>
    %c1_300 = arith.constant 1 : index
    %c0_301 = arith.constant 0 : index
    %c0_302 = arith.constant 0 : index
    %c0_303 = arith.constant 0 : index
    %539 = vector.load %arg28[%c1_300, %c0_301, %c0_302, %c0_303] : memref<2x2x16x16xf32, #tpu.memory_space<vmem>>, vector<1x2x16x16xf32>
    %540 = vector.shape_cast %539 : vector<1x2x16x16xf32> to vector<2x16x16xf32>
    %c1_304 = arith.constant 1 : index
    %c0_305 = arith.constant 0 : index
    %c0_306 = arith.constant 0 : index
    %541 = vector.load %arg29[%c1_304, %c0_305, %c0_306] : memref<2x1x32xf32, #tpu.memory_space<vmem>>, vector<1x1x32xf32>
    %542 = vector.shape_cast %541 : vector<1x1x32xf32> to vector<1x32xf32>
    %c1_307 = arith.constant 1 : index
    %c0_308 = arith.constant 0 : index
    %c0_309 = arith.constant 0 : index
    %543 = vector.load %arg30[%c1_307, %c0_308, %c0_309] : memref<2x1x32xf32, #tpu.memory_space<vmem>>, vector<1x1x32xf32>
    %544 = vector.shape_cast %543 : vector<1x1x32xf32> to vector<1x32xf32>
    %c1_310 = arith.constant 1 : index
    %c0_311 = arith.constant 0 : index
    %c0_312 = arith.constant 0 : index
    %545 = vector.load %arg31[%c1_310, %c0_311, %c0_312] : memref<2x32x128xbf16, #tpu.memory_space<vmem>>, vector<1x32x128xbf16>
    %546 = vector.shape_cast %545 : vector<1x32x128xbf16> to vector<32x128xbf16>
    %c1_313 = arith.constant 1 : index
    %c0_314 = arith.constant 0 : index
    %c0_315 = arith.constant 0 : index
    %547 = vector.load %arg32[%c1_313, %c0_314, %c0_315] : memref<2x1x128xf32, #tpu.memory_space<vmem>>, vector<1x1x128xf32>
    %548 = vector.shape_cast %547 : vector<1x1x128xf32> to vector<1x128xf32>
    %c1_316 = arith.constant 1 : index
    %c0_317 = arith.constant 0 : index
    %c0_318 = arith.constant 0 : index
    %549 = vector.load %arg33[%c1_316, %c0_317, %c0_318] : memref<2x128x32xbf16, #tpu.memory_space<vmem>>, vector<1x128x32xbf16>
    %550 = vector.shape_cast %549 : vector<1x128x32xbf16> to vector<128x32xbf16>
    %c1_319 = arith.constant 1 : index
    %c0_320 = arith.constant 0 : index
    %c0_321 = arith.constant 0 : index
    %551 = vector.load %arg34[%c1_319, %c0_320, %c0_321] : memref<2x1x32xf32, #tpu.memory_space<vmem>>, vector<1x1x32xf32>
    %552 = vector.shape_cast %551 : vector<1x1x32xf32> to vector<1x32xf32>
    %cst_322 = arith.constant dense<0.000000e+00> : vector<16xf32>
    %553 = vector.multi_reduction <add>, %524, %cst_322 [1] : vector<16x32xf32> to vector<16xf32>
    %554 = vector.shape_cast %553 : vector<16xf32> to vector<16x1xf32>
    %cst_323 = arith.constant 3.200000e+01 : f32
    %555 = vector.broadcast %cst_323 : f32 to vector<16x1xf32>
    %556 = arith.divf %554, %555 : vector<16x1xf32>
    %557 = vector.broadcast %556 : vector<16x1xf32> to vector<16x32xf32>
    %558 = arith.subf %524, %557 : vector<16x32xf32>
    %559 = arith.mulf %558, %558 : vector<16x32xf32>
    %cst_324 = arith.constant dense<0.000000e+00> : vector<16xf32>
    %560 = vector.multi_reduction <add>, %559, %cst_324 [1] : vector<16x32xf32> to vector<16xf32>
    %561 = vector.shape_cast %560 : vector<16xf32> to vector<16x1xf32>
    %cst_325 = arith.constant 3.200000e+01 : f32
    %562 = vector.broadcast %cst_325 : f32 to vector<16x1xf32>
    %563 = arith.divf %561, %562 : vector<16x1xf32>
    %564 = vector.broadcast %556 : vector<16x1xf32> to vector<16x32xf32>
    %565 = arith.subf %524, %564 : vector<16x32xf32>
    %cst_326 = arith.constant 9.99999974E-6 : f32
    %566 = vector.broadcast %cst_326 : f32 to vector<16x1xf32>
    %567 = arith.addf %563, %566 : vector<16x1xf32>
    %568 = math.rsqrt %567 : vector<16x1xf32>
    %569 = vector.broadcast %568 : vector<16x1xf32> to vector<16x32xf32>
    %570 = arith.mulf %565, %569 : vector<16x32xf32>
    %571 = vector.broadcast %526 : vector<1x32xf32> to vector<16x32xf32>
    %572 = arith.mulf %570, %571 : vector<16x32xf32>
    %573 = vector.broadcast %528 : vector<1x32xf32> to vector<16x32xf32>
    %574 = arith.addf %572, %573 : vector<16x32xf32>
    %575 = arith.truncf %574 : vector<16x32xf32> to vector<16x32xbf16>
    %cst_327 = arith.constant 0.000000e+00 : f32
    %576 = vector.broadcast %cst_327 : f32 to vector<16x32xf32>
    %577 = vector.extract_strided_slice %530 {offsets = [0, 0, 0], sizes = [1, 32, 16], strides = [1, 1, 1]} : vector<2x32x16xbf16> to vector<1x32x16xbf16>
    %578 = vector.shape_cast %577 : vector<1x32x16xbf16> to vector<32x16xbf16>
    %cst_328 = arith.constant dense<0.000000e+00> : vector<16x16xf32>
    %579 = tpu.matmul %575, %578, %cst_328 {dimension_numbers = #tpu.dot_dimension_numbers<[1], [0], [0], [1], [0, 0, 1, 1], [], []>} : vector<16x32xbf16>, vector<32x16xbf16>, vector<16x16xf32> -> vector<16x16xf32>
    %580 = vector.extract_strided_slice %532 {offsets = [0, 0, 0], sizes = [1, 32, 16], strides = [1, 1, 1]} : vector<2x32x16xbf16> to vector<1x32x16xbf16>
    %581 = vector.shape_cast %580 : vector<1x32x16xbf16> to vector<32x16xbf16>
    %cst_329 = arith.constant dense<0.000000e+00> : vector<16x16xf32>
    %582 = tpu.matmul %575, %581, %cst_329 {dimension_numbers = #tpu.dot_dimension_numbers<[1], [0], [0], [1], [0, 0, 1, 1], [], []>} : vector<16x32xbf16>, vector<32x16xbf16>, vector<16x16xf32> -> vector<16x16xf32>
    %583 = vector.extract_strided_slice %534 {offsets = [0, 0, 0], sizes = [1, 32, 16], strides = [1, 1, 1]} : vector<2x32x16xbf16> to vector<1x32x16xbf16>
    %584 = vector.shape_cast %583 : vector<1x32x16xbf16> to vector<32x16xbf16>
    %cst_330 = arith.constant dense<0.000000e+00> : vector<16x16xf32>
    %585 = tpu.matmul %575, %584, %cst_330 {dimension_numbers = #tpu.dot_dimension_numbers<[1], [0], [0], [1], [0, 0, 1, 1], [], []>} : vector<16x32xbf16>, vector<32x16xbf16>, vector<16x16xf32> -> vector<16x16xf32>
    %586 = arith.truncf %579 : vector<16x16xf32> to vector<16x16xbf16>
    %587 = arith.truncf %582 : vector<16x16xf32> to vector<16x16xbf16>
    "tpu.trace_start"() <{level = 10 : i32, message = "nd,md->nm"}> : () -> ()
    %cst_331 = arith.constant dense<0.000000e+00> : vector<16x16xf32>
    %588 = tpu.matmul %586, %587, %cst_331 {dimension_numbers = #tpu.dot_dimension_numbers<[1], [1], [0], [0], [0, 0, 1, 0], [], []>} : vector<16x16xbf16>, vector<16x16xbf16>, vector<16x16xf32> -> vector<16x16xf32>
    "tpu.trace_stop"() : () -> ()
    %589 = vector.extract_strided_slice %540 {offsets = [0, 0, 0], sizes = [1, 16, 16], strides = [1, 1, 1]} : vector<2x16x16xf32> to vector<1x16x16xf32>
    %590 = vector.shape_cast %589 : vector<1x16x16xf32> to vector<16x16xf32>
    %591 = arith.addf %588, %590 : vector<16x16xf32>
    %cst_332 = arith.constant dense<0xFF800000> : vector<16xf32>
    %592 = vector.multi_reduction <maximumf>, %591, %cst_332 [1] : vector<16x16xf32> to vector<16xf32>
    %593 = vector.shape_cast %592 : vector<16xf32> to vector<16x1xf32>
    %594 = vector.broadcast %593 : vector<16x1xf32> to vector<16x16xf32>
    %595 = arith.subf %591, %594 : vector<16x16xf32>
    %596 = math.exp %595 : vector<16x16xf32>
    %cst_333 = arith.constant dense<0.000000e+00> : vector<16xf32>
    %597 = vector.multi_reduction <add>, %596, %cst_333 [1] : vector<16x16xf32> to vector<16xf32>
    %598 = vector.shape_cast %597 : vector<16xf32> to vector<16x1xf32>
    %599 = tpu.reciprocal %598 {approx = true} : vector<16x1xf32> -> vector<16x1xf32>
    %600 = vector.broadcast %599 : vector<16x1xf32> to vector<16x16xf32>
    %601 = arith.mulf %596, %600 : vector<16x16xf32>
    %602 = arith.truncf %601 : vector<16x16xf32> to vector<16x16xbf16>
    %603 = arith.truncf %585 : vector<16x16xf32> to vector<16x16xbf16>
    %cst_334 = arith.constant dense<0.000000e+00> : vector<16x16xf32>
    %604 = tpu.matmul %602, %603, %cst_334 {dimension_numbers = #tpu.dot_dimension_numbers<[1], [0], [0], [1], [0, 0, 1, 1], [], []>} : vector<16x16xbf16>, vector<16x16xbf16>, vector<16x16xf32> -> vector<16x16xf32>
    %605 = arith.truncf %604 : vector<16x16xf32> to vector<16x16xbf16>
    %606 = vector.extract_strided_slice %536 {offsets = [0, 0, 0], sizes = [1, 16, 32], strides = [1, 1, 1]} : vector<2x16x32xbf16> to vector<1x16x32xbf16>
    %607 = vector.shape_cast %606 : vector<1x16x32xbf16> to vector<16x32xbf16>
    %cst_335 = arith.constant dense<0.000000e+00> : vector<16x32xf32>
    %608 = tpu.matmul %605, %607, %cst_335 {dimension_numbers = #tpu.dot_dimension_numbers<[1], [0], [0], [1], [0, 0, 1, 1], [], []>} : vector<16x16xbf16>, vector<16x32xbf16>, vector<16x32xf32> -> vector<16x32xf32>
    %609 = arith.addf %576, %608 : vector<16x32xf32>
    %610 = vector.extract_strided_slice %530 {offsets = [1, 0, 0], sizes = [1, 32, 16], strides = [1, 1, 1]} : vector<2x32x16xbf16> to vector<1x32x16xbf16>
    %611 = vector.shape_cast %610 : vector<1x32x16xbf16> to vector<32x16xbf16>
    %cst_336 = arith.constant dense<0.000000e+00> : vector<16x16xf32>
    %612 = tpu.matmul %575, %611, %cst_336 {dimension_numbers = #tpu.dot_dimension_numbers<[1], [0], [0], [1], [0, 0, 1, 1], [], []>} : vector<16x32xbf16>, vector<32x16xbf16>, vector<16x16xf32> -> vector<16x16xf32>
    %613 = vector.extract_strided_slice %532 {offsets = [1, 0, 0], sizes = [1, 32, 16], strides = [1, 1, 1]} : vector<2x32x16xbf16> to vector<1x32x16xbf16>
    %614 = vector.shape_cast %613 : vector<1x32x16xbf16> to vector<32x16xbf16>
    %cst_337 = arith.constant dense<0.000000e+00> : vector<16x16xf32>
    %615 = tpu.matmul %575, %614, %cst_337 {dimension_numbers = #tpu.dot_dimension_numbers<[1], [0], [0], [1], [0, 0, 1, 1], [], []>} : vector<16x32xbf16>, vector<32x16xbf16>, vector<16x16xf32> -> vector<16x16xf32>
    %616 = vector.extract_strided_slice %534 {offsets = [1, 0, 0], sizes = [1, 32, 16], strides = [1, 1, 1]} : vector<2x32x16xbf16> to vector<1x32x16xbf16>
    %617 = vector.shape_cast %616 : vector<1x32x16xbf16> to vector<32x16xbf16>
    %cst_338 = arith.constant dense<0.000000e+00> : vector<16x16xf32>
    %618 = tpu.matmul %575, %617, %cst_338 {dimension_numbers = #tpu.dot_dimension_numbers<[1], [0], [0], [1], [0, 0, 1, 1], [], []>} : vector<16x32xbf16>, vector<32x16xbf16>, vector<16x16xf32> -> vector<16x16xf32>
    %619 = arith.truncf %612 : vector<16x16xf32> to vector<16x16xbf16>
    %620 = arith.truncf %615 : vector<16x16xf32> to vector<16x16xbf16>
    "tpu.trace_start"() <{level = 10 : i32, message = "nd,md->nm"}> : () -> ()
    %cst_339 = arith.constant dense<0.000000e+00> : vector<16x16xf32>
    %621 = tpu.matmul %619, %620, %cst_339 {dimension_numbers = #tpu.dot_dimension_numbers<[1], [1], [0], [0], [0, 0, 1, 0], [], []>} : vector<16x16xbf16>, vector<16x16xbf16>, vector<16x16xf32> -> vector<16x16xf32>
    "tpu.trace_stop"() : () -> ()
    %622 = vector.extract_strided_slice %540 {offsets = [1, 0, 0], sizes = [1, 16, 16], strides = [1, 1, 1]} : vector<2x16x16xf32> to vector<1x16x16xf32>
    %623 = vector.shape_cast %622 : vector<1x16x16xf32> to vector<16x16xf32>
    %624 = arith.addf %621, %623 : vector<16x16xf32>
    %cst_340 = arith.constant dense<0xFF800000> : vector<16xf32>
    %625 = vector.multi_reduction <maximumf>, %624, %cst_340 [1] : vector<16x16xf32> to vector<16xf32>
    %626 = vector.shape_cast %625 : vector<16xf32> to vector<16x1xf32>
    %627 = vector.broadcast %626 : vector<16x1xf32> to vector<16x16xf32>
    %628 = arith.subf %624, %627 : vector<16x16xf32>
    %629 = math.exp %628 : vector<16x16xf32>
    %cst_341 = arith.constant dense<0.000000e+00> : vector<16xf32>
    %630 = vector.multi_reduction <add>, %629, %cst_341 [1] : vector<16x16xf32> to vector<16xf32>
    %631 = vector.shape_cast %630 : vector<16xf32> to vector<16x1xf32>
    %632 = tpu.reciprocal %631 {approx = true} : vector<16x1xf32> -> vector<16x1xf32>
    %633 = vector.broadcast %632 : vector<16x1xf32> to vector<16x16xf32>
    %634 = arith.mulf %629, %633 : vector<16x16xf32>
    %635 = arith.truncf %634 : vector<16x16xf32> to vector<16x16xbf16>
    %636 = arith.truncf %618 : vector<16x16xf32> to vector<16x16xbf16>
    %cst_342 = arith.constant dense<0.000000e+00> : vector<16x16xf32>
    %637 = tpu.matmul %635, %636, %cst_342 {dimension_numbers = #tpu.dot_dimension_numbers<[1], [0], [0], [1], [0, 0, 1, 1], [], []>} : vector<16x16xbf16>, vector<16x16xbf16>, vector<16x16xf32> -> vector<16x16xf32>
    %638 = arith.truncf %637 : vector<16x16xf32> to vector<16x16xbf16>
    %639 = vector.extract_strided_slice %536 {offsets = [1, 0, 0], sizes = [1, 16, 32], strides = [1, 1, 1]} : vector<2x16x32xbf16> to vector<1x16x32xbf16>
    %640 = vector.shape_cast %639 : vector<1x16x32xbf16> to vector<16x32xbf16>
    %cst_343 = arith.constant dense<0.000000e+00> : vector<16x32xf32>
    %641 = tpu.matmul %638, %640, %cst_343 {dimension_numbers = #tpu.dot_dimension_numbers<[1], [0], [0], [1], [0, 0, 1, 1], [], []>} : vector<16x16xbf16>, vector<16x32xbf16>, vector<16x32xf32> -> vector<16x32xf32>
    %642 = arith.addf %609, %641 : vector<16x32xf32>
    %643 = arith.addf %524, %642 : vector<16x32xf32>
    %644 = vector.broadcast %538 : vector<1x32xf32> to vector<16x32xf32>
    %645 = arith.addf %643, %644 : vector<16x32xf32>
    %cst_344 = arith.constant dense<0.000000e+00> : vector<16xf32>
    %646 = vector.multi_reduction <add>, %645, %cst_344 [1] : vector<16x32xf32> to vector<16xf32>
    %647 = vector.shape_cast %646 : vector<16xf32> to vector<16x1xf32>
    %cst_345 = arith.constant 3.200000e+01 : f32
    %648 = vector.broadcast %cst_345 : f32 to vector<16x1xf32>
    %649 = arith.divf %647, %648 : vector<16x1xf32>
    %650 = vector.broadcast %649 : vector<16x1xf32> to vector<16x32xf32>
    %651 = arith.subf %645, %650 : vector<16x32xf32>
    %652 = arith.mulf %651, %651 : vector<16x32xf32>
    %cst_346 = arith.constant dense<0.000000e+00> : vector<16xf32>
    %653 = vector.multi_reduction <add>, %652, %cst_346 [1] : vector<16x32xf32> to vector<16xf32>
    %654 = vector.shape_cast %653 : vector<16xf32> to vector<16x1xf32>
    %cst_347 = arith.constant 3.200000e+01 : f32
    %655 = vector.broadcast %cst_347 : f32 to vector<16x1xf32>
    %656 = arith.divf %654, %655 : vector<16x1xf32>
    %657 = vector.broadcast %649 : vector<16x1xf32> to vector<16x32xf32>
    %658 = arith.subf %645, %657 : vector<16x32xf32>
    %cst_348 = arith.constant 9.99999974E-6 : f32
    %659 = vector.broadcast %cst_348 : f32 to vector<16x1xf32>
    %660 = arith.addf %656, %659 : vector<16x1xf32>
    %661 = math.rsqrt %660 : vector<16x1xf32>
    %662 = vector.broadcast %661 : vector<16x1xf32> to vector<16x32xf32>
    %663 = arith.mulf %658, %662 : vector<16x32xf32>
    %664 = vector.broadcast %542 : vector<1x32xf32> to vector<16x32xf32>
    %665 = arith.mulf %663, %664 : vector<16x32xf32>
    %666 = vector.broadcast %544 : vector<1x32xf32> to vector<16x32xf32>
    %667 = arith.addf %665, %666 : vector<16x32xf32>
    %668 = arith.truncf %667 : vector<16x32xf32> to vector<16x32xbf16>
    %cst_349 = arith.constant dense<0.000000e+00> : vector<16x128xf32>
    %669 = tpu.matmul %668, %546, %cst_349 {dimension_numbers = #tpu.dot_dimension_numbers<[1], [0], [0], [1], [0, 0, 1, 1], [], []>} : vector<16x32xbf16>, vector<32x128xbf16>, vector<16x128xf32> -> vector<16x128xf32>
    %670 = vector.broadcast %548 : vector<1x128xf32> to vector<16x128xf32>
    %671 = arith.addf %669, %670 : vector<16x128xf32>
    %cst_350 = arith.constant 5.000000e-01 : f32
    %672 = vector.broadcast %cst_350 : f32 to vector<16x128xf32>
    %673 = arith.mulf %672, %671 : vector<16x128xf32>
    %cst_351 = arith.constant 0.707106769 : f32
    %674 = vector.broadcast %cst_351 : f32 to vector<16x128xf32>
    %675 = arith.mulf %671, %674 : vector<16x128xf32>
    %676 = math.erf %675 : vector<16x128xf32>
    %cst_352 = arith.constant 1.000000e+00 : f32
    %677 = vector.broadcast %cst_352 : f32 to vector<16x128xf32>
    %678 = arith.addf %677, %676 : vector<16x128xf32>
    %679 = arith.mulf %673, %678 : vector<16x128xf32>
    %680 = arith.truncf %679 : vector<16x128xf32> to vector<16x128xbf16>
    %cst_353 = arith.constant dense<0.000000e+00> : vector<16x32xf32>
    %681 = tpu.matmul %680, %550, %cst_353 {dimension_numbers = #tpu.dot_dimension_numbers<[1], [0], [0], [1], [0, 0, 1, 1], [], []>} : vector<16x128xbf16>, vector<128x32xbf16>, vector<16x32xf32> -> vector<16x32xf32>
    %682 = vector.broadcast %552 : vector<1x32xf32> to vector<16x32xf32>
    %683 = arith.addf %681, %682 : vector<16x32xf32>
    %684 = arith.addf %645, %683 : vector<16x32xf32>
    %cst_354 = arith.constant dense<0.000000e+00> : vector<32xf32>
    %685 = vector.multi_reduction <add>, %684, %cst_354 [0] : vector<16x32xf32> to vector<32xf32>
    %686 = vector.shape_cast %685 : vector<32xf32> to vector<1x32xf32>
    %cst_355 = arith.constant 1.600000e+01 : f32
    %687 = vector.broadcast %cst_355 : f32 to vector<1x32xf32>
    %688 = arith.divf %686, %687 : vector<1x32xf32>
    %c0_356 = arith.constant 0 : index
    %c0_357 = arith.constant 0 : index
    %689 = vector.load %arg35[%c0_356, %c0_357] : memref<1x32xf32, #tpu.memory_space<vmem>>, vector<1x32xf32>
    %c0_358 = arith.constant 0 : index
    %c0_359 = arith.constant 0 : index
    %690 = vector.load %arg36[%c0_358, %c0_359] : memref<1x32xf32, #tpu.memory_space<vmem>>, vector<1x32xf32>
    %cst_360 = arith.constant dense<0.000000e+00> : vector<1xf32>
    %691 = vector.multi_reduction <add>, %688, %cst_360 [1] : vector<1x32xf32> to vector<1xf32>
    %692 = vector.shape_cast %691 : vector<1xf32> to vector<1x1xf32>
    %cst_361 = arith.constant 3.200000e+01 : f32
    %693 = vector.broadcast %cst_361 : f32 to vector<1x1xf32>
    %694 = arith.divf %692, %693 : vector<1x1xf32>
    %695 = vector.broadcast %694 : vector<1x1xf32> to vector<1x32xf32>
    %696 = arith.subf %688, %695 : vector<1x32xf32>
    %697 = arith.mulf %696, %696 : vector<1x32xf32>
    %cst_362 = arith.constant dense<0.000000e+00> : vector<1xf32>
    %698 = vector.multi_reduction <add>, %697, %cst_362 [1] : vector<1x32xf32> to vector<1xf32>
    %699 = vector.shape_cast %698 : vector<1xf32> to vector<1x1xf32>
    %cst_363 = arith.constant 3.200000e+01 : f32
    %700 = vector.broadcast %cst_363 : f32 to vector<1x1xf32>
    %701 = arith.divf %699, %700 : vector<1x1xf32>
    %702 = vector.broadcast %694 : vector<1x1xf32> to vector<1x32xf32>
    %703 = arith.subf %688, %702 : vector<1x32xf32>
    %cst_364 = arith.constant 9.99999974E-6 : f32
    %704 = vector.broadcast %cst_364 : f32 to vector<1x1xf32>
    %705 = arith.addf %701, %704 : vector<1x1xf32>
    %706 = math.rsqrt %705 : vector<1x1xf32>
    %707 = vector.broadcast %706 : vector<1x1xf32> to vector<1x32xf32>
    %708 = arith.mulf %703, %707 : vector<1x32xf32>
    %709 = arith.mulf %708, %689 : vector<1x32xf32>
    %710 = arith.addf %709, %690 : vector<1x32xf32>
    %711 = arith.truncf %710 : vector<1x32xf32> to vector<1x32xbf16>
    %c0_365 = arith.constant 0 : index
    %c0_366 = arith.constant 0 : index
    %712 = vector.load %arg37[%c0_365, %c0_366] : memref<32x10xbf16, #tpu.memory_space<vmem>>, vector<32x10xbf16>
    %cst_367 = arith.constant dense<0.000000e+00> : vector<1x10xf32>
    %713 = tpu.matmul %711, %712, %cst_367 {dimension_numbers = #tpu.dot_dimension_numbers<[1], [0], [0], [1], [0, 0, 1, 1], [], []>} : vector<1x32xbf16>, vector<32x10xbf16>, vector<1x10xf32> -> vector<1x10xf32>
    %c0_368 = arith.constant 0 : index
    %c0_369 = arith.constant 0 : index
    %714 = vector.load %arg38[%c0_368, %c0_369] : memref<1x10xf32, #tpu.memory_space<vmem>>, vector<1x10xf32>
    %715 = arith.addf %713, %714 : vector<1x10xf32>
    %c0_370 = arith.constant 0 : index
    %c0_371 = arith.constant 0 : index
    %c0_372 = arith.constant 0 : index
    %716 = vector.load %arg39[%c0_370, %c0_371, %c0_372] : memref<1x1x10xf32, #tpu.memory_space<vmem>>, vector<1x1x10xf32>
    %717 = vector.shape_cast %716 : vector<1x1x10xf32> to vector<1x10xf32>
    %718 = vector.shape_cast %715 : vector<1x10xf32> to vector<1x1x10xf32>
    tpu.vector_store %arg39[%c0_370, %c0_371, %c0_372], %718 {strides = array<i32>} : memref<1x1x10xf32, #tpu.memory_space<vmem>>, vector<1x1x10xf32>,
    return
  }
  func.func @transform_0(%arg0: i32) -> (i32, i32, i32) {
    %c0_i32 = arith.constant 0 : i32
    %c0_i32_0 = arith.constant 0 : i32
    %c0_i32_1 = arith.constant 0 : i32
    return %arg0, %c0_i32, %c0_i32_0 : i32, i32, i32
  }
  func.func @transform_1(%arg0: i32) -> (i32, i32) {
    %c0_i32 = arith.constant 0 : i32
    %c0_i32_0 = arith.constant 0 : i32
    %c0_i32_1 = arith.constant 0 : i32
    return %c0_i32, %c0_i32_0 : i32, i32
  }
  func.func @transform_2(%arg0: i32) -> (i32, i32) {
    %c0_i32 = arith.constant 0 : i32
    %c0_i32_0 = arith.constant 0 : i32
    %c0_i32_1 = arith.constant 0 : i32
    return %c0_i32, %c0_i32_0 : i32, i32
  }
  func.func @transform_3(%arg0: i32) -> (i32, i32, i32) {
    %c0_i32 = arith.constant 0 : i32
    %c0_i32_0 = arith.constant 0 : i32
    %c0_i32_1 = arith.constant 0 : i32
    %c0_i32_2 = arith.constant 0 : i32
    return %c0_i32, %c0_i32_0, %c0_i32_1 : i32, i32, i32
  }
  func.func @transform_4(%arg0: i32) -> (i32, i32, i32) {
    %c0_i32 = arith.constant 0 : i32
    %c0_i32_0 = arith.constant 0 : i32
    %c0_i32_1 = arith.constant 0 : i32
    %c0_i32_2 = arith.constant 0 : i32
    return %c0_i32, %c0_i32_0, %c0_i32_1 : i32, i32, i32
  }
  func.func @transform_5(%arg0: i32) -> (i32, i32, i32, i32) {
    %c0_i32 = arith.constant 0 : i32
    %c0_i32_0 = arith.constant 0 : i32
    %c0_i32_1 = arith.constant 0 : i32
    %c0_i32_2 = arith.constant 0 : i32
    %c0_i32_3 = arith.constant 0 : i32
    return %c0_i32, %c0_i32_0, %c0_i32_1, %c0_i32_2 : i32, i32, i32, i32
  }
  func.func @transform_6(%arg0: i32) -> (i32, i32, i32, i32) {
    %c0_i32 = arith.constant 0 : i32
    %c0_i32_0 = arith.constant 0 : i32
    %c0_i32_1 = arith.constant 0 : i32
    %c0_i32_2 = arith.constant 0 : i32
    %c0_i32_3 = arith.constant 0 : i32
    return %c0_i32, %c0_i32_0, %c0_i32_1, %c0_i32_2 : i32, i32, i32, i32
  }
  func.func @transform_7(%arg0: i32) -> (i32, i32, i32, i32) {
    %c0_i32 = arith.constant 0 : i32
    %c0_i32_0 = arith.constant 0 : i32
    %c0_i32_1 = arith.constant 0 : i32
    %c0_i32_2 = arith.constant 0 : i32
    %c0_i32_3 = arith.constant 0 : i32
    return %c0_i32, %c0_i32_0, %c0_i32_1, %c0_i32_2 : i32, i32, i32, i32
  }
  func.func @transform_8(%arg0: i32) -> (i32, i32, i32, i32) {
    %c0_i32 = arith.constant 0 : i32
    %c0_i32_0 = arith.constant 0 : i32
    %c0_i32_1 = arith.constant 0 : i32
    %c0_i32_2 = arith.constant 0 : i32
    %c0_i32_3 = arith.constant 0 : i32
    return %c0_i32, %c0_i32_0, %c0_i32_1, %c0_i32_2 : i32, i32, i32, i32
  }
  func.func @transform_9(%arg0: i32) -> (i32, i32, i32) {
    %c0_i32 = arith.constant 0 : i32
    %c0_i32_0 = arith.constant 0 : i32
    %c0_i32_1 = arith.constant 0 : i32
    %c0_i32_2 = arith.constant 0 : i32
    return %c0_i32, %c0_i32_0, %c0_i32_1 : i32, i32, i32
  }
  func.func @transform_10(%arg0: i32) -> (i32, i32, i32, i32) {
    %c0_i32 = arith.constant 0 : i32
    %c0_i32_0 = arith.constant 0 : i32
    %c0_i32_1 = arith.constant 0 : i32
    %c0_i32_2 = arith.constant 0 : i32
    %c0_i32_3 = arith.constant 0 : i32
    return %c0_i32, %c0_i32_0, %c0_i32_1, %c0_i32_2 : i32, i32, i32, i32
  }
  func.func @transform_11(%arg0: i32) -> (i32, i32, i32) {
    %c0_i32 = arith.constant 0 : i32
    %c0_i32_0 = arith.constant 0 : i32
    %c0_i32_1 = arith.constant 0 : i32
    %c0_i32_2 = arith.constant 0 : i32
    return %c0_i32, %c0_i32_0, %c0_i32_1 : i32, i32, i32
  }
  func.func @transform_12(%arg0: i32) -> (i32, i32, i32) {
    %c0_i32 = arith.constant 0 : i32
    %c0_i32_0 = arith.constant 0 : i32
    %c0_i32_1 = arith.constant 0 : i32
    %c0_i32_2 = arith.constant 0 : i32
    return %c0_i32, %c0_i32_0, %c0_i32_1 : i32, i32, i32
  }
  func.func @transform_13(%arg0: i32) -> (i32, i32, i32) {
    %c0_i32 = arith.constant 0 : i32
    %c0_i32_0 = arith.constant 0 : i32
    %c0_i32_1 = arith.constant 0 : i32
    %c0_i32_2 = arith.constant 0 : i32
    return %c0_i32, %c0_i32_0, %c0_i32_1 : i32, i32, i32
  }
  func.func @transform_14(%arg0: i32) -> (i32, i32, i32) {
    %c0_i32 = arith.constant 0 : i32
    %c0_i32_0 = arith.constant 0 : i32
    %c0_i32_1 = arith.constant 0 : i32
    %c0_i32_2 = arith.constant 0 : i32
    return %c0_i32, %c0_i32_0, %c0_i32_1 : i32, i32, i32
  }
  func.func @transform_15(%arg0: i32) -> (i32, i32, i32) {
    %c0_i32 = arith.constant 0 : i32
    %c0_i32_0 = arith.constant 0 : i32
    %c0_i32_1 = arith.constant 0 : i32
    %c0_i32_2 = arith.constant 0 : i32
    return %c0_i32, %c0_i32_0, %c0_i32_1 : i32, i32, i32
  }
  func.func @transform_16(%arg0: i32) -> (i32, i32, i32) {
    %c0_i32 = arith.constant 0 : i32
    %c0_i32_0 = arith.constant 0 : i32
    %c0_i32_1 = arith.constant 0 : i32
    %c0_i32_2 = arith.constant 0 : i32
    return %c0_i32, %c0_i32_0, %c0_i32_1 : i32, i32, i32
  }
  func.func @transform_17(%arg0: i32) -> (i32, i32, i32) {
    %c0_i32 = arith.constant 0 : i32
    %c0_i32_0 = arith.constant 0 : i32
    %c0_i32_1 = arith.constant 0 : i32
    %c0_i32_2 = arith.constant 0 : i32
    return %c0_i32, %c0_i32_0, %c0_i32_1 : i32, i32, i32
  }
  func.func @transform_18(%arg0: i32) -> (i32, i32, i32) {
    %c0_i32 = arith.constant 0 : i32
    %c0_i32_0 = arith.constant 0 : i32
    %c0_i32_1 = arith.constant 0 : i32
    %c0_i32_2 = arith.constant 0 : i32
    return %c0_i32, %c0_i32_0, %c0_i32_1 : i32, i32, i32
  }
  func.func @transform_19(%arg0: i32) -> (i32, i32) {
    %c0_i32 = arith.constant 0 : i32
    %c0_i32_0 = arith.constant 0 : i32
    %c0_i32_1 = arith.constant 0 : i32
    return %c0_i32, %c0_i32_0 : i32, i32
  }
  func.func @transform_20(%arg0: i32) -> (i32, i32, i32) {
    %c0_i32 = arith.constant 0 : i32
    %c0_i32_0 = arith.constant 0 : i32
    %c0_i32_1 = arith.constant 0 : i32
    %c0_i32_2 = arith.constant 0 : i32
    return %c0_i32, %c0_i32_0, %c0_i32_1 : i32, i32, i32
  }
  func.func @transform_21(%arg0: i32) -> (i32, i32, i32) {
    %c0_i32 = arith.constant 0 : i32
    %c0_i32_0 = arith.constant 0 : i32
    %c0_i32_1 = arith.constant 0 : i32
    %c0_i32_2 = arith.constant 0 : i32
    return %c0_i32, %c0_i32_0, %c0_i32_1 : i32, i32, i32
  }
  func.func @transform_22(%arg0: i32) -> (i32, i32, i32, i32) {
    %c0_i32 = arith.constant 0 : i32
    %c0_i32_0 = arith.constant 0 : i32
    %c0_i32_1 = arith.constant 0 : i32
    %c0_i32_2 = arith.constant 0 : i32
    %c0_i32_3 = arith.constant 0 : i32
    return %c0_i32, %c0_i32_0, %c0_i32_1, %c0_i32_2 : i32, i32, i32, i32
  }
  func.func @transform_23(%arg0: i32) -> (i32, i32, i32, i32) {
    %c0_i32 = arith.constant 0 : i32
    %c0_i32_0 = arith.constant 0 : i32
    %c0_i32_1 = arith.constant 0 : i32
    %c0_i32_2 = arith.constant 0 : i32
    %c0_i32_3 = arith.constant 0 : i32
    return %c0_i32, %c0_i32_0, %c0_i32_1, %c0_i32_2 : i32, i32, i32, i32
  }
  func.func @transform_24(%arg0: i32) -> (i32, i32, i32, i32) {
    %c0_i32 = arith.constant 0 : i32
    %c0_i32_0 = arith.constant 0 : i32
    %c0_i32_1 = arith.constant 0 : i32
    %c0_i32_2 = arith.constant 0 : i32
    %c0_i32_3 = arith.constant 0 : i32
    return %c0_i32, %c0_i32_0, %c0_i32_1, %c0_i32_2 : i32, i32, i32, i32
  }
  func.func @transform_25(%arg0: i32) -> (i32, i32, i32, i32) {
    %c0_i32 = arith.constant 0 : i32
    %c0_i32_0 = arith.constant 0 : i32
    %c0_i32_1 = arith.constant 0 : i32
    %c0_i32_2 = arith.constant 0 : i32
    %c0_i32_3 = arith.constant 0 : i32
    return %c0_i32, %c0_i32_0, %c0_i32_1, %c0_i32_2 : i32, i32, i32, i32
  }
  func.func @transform_26(%arg0: i32) -> (i32, i32, i32) {
    %c0_i32 = arith.constant 0 : i32
    %c0_i32_0 = arith.constant 0 : i32
    %c0_i32_1 = arith.constant 0 : i32
    %c0_i32_2 = arith.constant 0 : i32
    return %c0_i32, %c0_i32_0, %c0_i32_1 : i32, i32, i32
  }
  func.func @transform_27(%arg0: i32) -> (i32, i32, i32, i32) {
    %c0_i32 = arith.constant 0 : i32
    %c0_i32_0 = arith.constant 0 : i32
    %c0_i32_1 = arith.constant 0 : i32
    %c0_i32_2 = arith.constant 0 : i32
    %c0_i32_3 = arith.constant 0 : i32
    return %c0_i32, %c0_i32_0, %c0_i32_1, %c0_i32_2 : i32, i32, i32, i32
  }
  func.func @transform_28(%arg0: i32) -> (i32, i32, i32) {
    %c0_i32 = arith.constant 0 : i32
    %c0_i32_0 = arith.constant 0 : i32
    %c0_i32_1 = arith.constant 0 : i32
    %c0_i32_2 = arith.constant 0 : i32
    return %c0_i32, %c0_i32_0, %c0_i32_1 : i32, i32, i32
  }
  func.func @transform_29(%arg0: i32) -> (i32, i32, i32) {
    %c0_i32 = arith.constant 0 : i32
    %c0_i32_0 = arith.constant 0 : i32
    %c0_i32_1 = arith.constant 0 : i32
    %c0_i32_2 = arith.constant 0 : i32
    return %c0_i32, %c0_i32_0, %c0_i32_1 : i32, i32, i32
  }
  func.func @transform_30(%arg0: i32) -> (i32, i32, i32) {
    %c0_i32 = arith.constant 0 : i32
    %c0_i32_0 = arith.constant 0 : i32
    %c0_i32_1 = arith.constant 0 : i32
    %c0_i32_2 = arith.constant 0 : i32
    return %c0_i32, %c0_i32_0, %c0_i32_1 : i32, i32, i32
  }
  func.func @transform_31(%arg0: i32) -> (i32, i32, i32) {
    %c0_i32 = arith.constant 0 : i32
    %c0_i32_0 = arith.constant 0 : i32
    %c0_i32_1 = arith.constant 0 : i32
    %c0_i32_2 = arith.constant 0 : i32
    return %c0_i32, %c0_i32_0, %c0_i32_1 : i32, i32, i32
  }
  func.func @transform_32(%arg0: i32) -> (i32, i32, i32) {
    %c0_i32 = arith.constant 0 : i32
    %c0_i32_0 = arith.constant 0 : i32
    %c0_i32_1 = arith.constant 0 : i32
    %c0_i32_2 = arith.constant 0 : i32
    return %c0_i32, %c0_i32_0, %c0_i32_1 : i32, i32, i32
  }
  func.func @transform_33(%arg0: i32) -> (i32, i32, i32) {
    %c0_i32 = arith.constant 0 : i32
    %c0_i32_0 = arith.constant 0 : i32
    %c0_i32_1 = arith.constant 0 : i32
    %c0_i32_2 = arith.constant 0 : i32
    return %c0_i32, %c0_i32_0, %c0_i32_1 : i32, i32, i32
  }
  func.func @transform_34(%arg0: i32) -> (i32, i32) {
    %c0_i32 = arith.constant 0 : i32
    %c0_i32_0 = arith.constant 0 : i32
    %c0_i32_1 = arith.constant 0 : i32
    return %c0_i32, %c0_i32_0 : i32, i32
  }
  func.func @transform_35(%arg0: i32) -> (i32, i32) {
    %c0_i32 = arith.constant 0 : i32
    %c0_i32_0 = arith.constant 0 : i32
    %c0_i32_1 = arith.constant 0 : i32
    return %c0_i32, %c0_i32_0 : i32, i32
  }
  func.func @transform_36(%arg0: i32) -> (i32, i32) {
    %c0_i32 = arith.constant 0 : i32
    %c0_i32_0 = arith.constant 0 : i32
    %c0_i32_1 = arith.constant 0 : i32
    return %c0_i32, %c0_i32_0 : i32, i32
  }
  func.func @transform_37(%arg0: i32) -> (i32, i32) {
    %c0_i32 = arith.constant 0 : i32
    %c0_i32_0 = arith.constant 0 : i32
    %c0_i32_1 = arith.constant 0 : i32
    return %c0_i32, %c0_i32_0 : i32, i32
  }
  func.func @transform_38(%arg0: i32) -> (i32, i32, i32) {
    %c0_i32 = arith.constant 0 : i32
    %c0_i32_0 = arith.constant 0 : i32
    %c0_i32_1 = arith.constant 0 : i32
    return %arg0, %c0_i32, %c0_i32_0 : i32, i32, i32
  }
}

</mosaic_0001>

<bundles_post_ra>
// kernel: swin_student_forward.1
= control target key start
LH: loop header
LB: loop body
LE: loop exit
PB: predicated region body
PF: predicated region fallthrough
CT: control target
= control target key end

     0   :  { %s9242_s6 = smov 1   ;;  %s9243_s10 = smov 2   ;;  %s10810_s0 = inlined_call_operand.smem [shape: u32[39], index: -1, kind: input, shape index: {}] }
   0x1   :  { %s9291_s5 = sld [smem:[%s10810_s0]]   ;;  %s9244_s14 = smov 3  }
   0x2   :  { %s9296_s9 = sld [smem:[%s10810_s0 + %s9242_s6]]   ;;  %s9245_s18 = smov 4  }
   0x3   :  { %s9301_s13 = sld [smem:[%s10810_s0 + %s9243_s10]]   ;;  %s9246_s22 = smov 5  }
   0x4   :  { %s9306_s17 = sld [smem:[%s10810_s0 + %s9244_s14]]   ;;  %s9247_s26 = smov 6  }
   0x5   :  { %s9311_s21 = sld [smem:[%s10810_s0 + %s9245_s18]]   ;;  %s9248_s30 = smov 7  }
   0x6   :  { %s9316_s25 = sld [smem:[%s10810_s0 + %s9246_s22]]   ;;  %s9249_s4 = smov 8  }
   0x7   :  { %10850 = sst [smem:[#allocation5_spill]] %s9291_s5  ;;  %s9250_s10 = smov 9  }
   0x8   :  { %10851 = sst [smem:[#allocation6_spill]] %s9296_s9  ;;  %s9251_s15 = smov 10  }
   0x9   :  { %10852 = sst [smem:[#allocation7_spill]] %s9301_s13  ;;  %s9252_s20 = smov 11  }
   0xa   :  { %10853 = sst [smem:[#allocation8_spill]] %s9306_s17  ;;  %s9254_s1 = smov 13  }
   0xb   :  { %10854 = sst [smem:[#allocation9_spill]] %s9311_s21  ;;  %s9255_s7 = smov 14  }
   0xc   :  { %s9321_s29 = sld [smem:[%s10810_s0 + %s9247_s26]]   ;;  %s9253_s26 = smov 12  }
   0xd   :  { %s9326_s3 = sld [smem:[%s10810_s0 + %s9248_s30]]   ;;  %s9257_s22 = smov 16  }
   0xe   :  { %s9331_s8 = sld [smem:[%s10810_s0 + %s9249_s4]]   ;;  %s9258_s28 = smov 17  }
   0xf   :  { %s9336_s14 = sld [smem:[%s10810_s0 + %s9250_s10]]  }
  0x10   :  { %s9341_s19 = sld [smem:[%s10810_s0 + %s9251_s15]]   ;;  %s9256_s15 = smov 15  }
  0x11   :  { %s9346_s24 = sld [smem:[%s10810_s0 + %s9252_s20]]  }
  0x12   :  { %s9351_s30 = sld [smem:[%s10810_s0 + %s9253_s26]]  }
  0x13   :  { %10855 = sst [smem:[#allocation10_spill]] %s9326_s3 }
  0x14   :  { %10856 = sst [smem:[#allocation11_spill]] %s9331_s8 }
  0x15   :  { %10857 = sst [smem:[#allocation12_spill]] %s9336_s14 }
  0x16   :  { %10858 = sst [smem:[#allocation13_spill]] %s9341_s19 }
  0x17   :  { %10859 = sst [smem:[#allocation14_spill]] %s9346_s24 }
  0x18   :  { %s9356_s6 = sld [smem:[%s10810_s0 + %s9254_s1]]  }
  0x19   :  { %s9361_s12 = sld [smem:[%s10810_s0 + %s9255_s7]]   ;;  %s9259_s7 = smov 18  }
  0x1a   :  { %s9366_s20 = sld [smem:[%s10810_s0 + %s9256_s15]]   ;;  %s9260_s15 = smov 19  }
  0x1b   :  { %s9371_s27 = sld [smem:[%s10810_s0 + %s9257_s22]]   ;;  %s9261_s22 = smov 20  }
  0x1c   :  { %s9376_s4 = sld [smem:[%s10810_s0 + %s9258_s28]]   ;;  %s9262_s28 = smov 21  }
  0x1e   :  { %10860 = sst [smem:[#allocation15_spill]] %s9356_s6 }
  0x1f   :  { %10861 = sst [smem:[#allocation16_spill]] %s9361_s12 }
  0x20   :  { %10862 = sst [smem:[#allocation17_spill]] %s9366_s20 }
  0x21   :  { %10863 = sst [smem:[#allocation18_spill]] %s9371_s27 }
  0x22   :  { %10864 = sst [smem:[#allocation19_spill]] %s9376_s4 }
  0x23   :  { %s9381_s12 = sld [smem:[%s10810_s0 + %s9259_s7]]   ;;  %s9263_s7 = smov 22  }
  0x24   :  { %s9386_s20 = sld [smem:[%s10810_s0 + %s9260_s15]]   ;;  %s9264_s15 = smov 23  }
  0x25   :  { %s9391_s27 = sld [smem:[%s10810_s0 + %s9261_s22]]   ;;  %s9265_s22 = smov 24  }
  0x26   :  { %s9396_s4 = sld [smem:[%s10810_s0 + %s9262_s28]]   ;;  %s9266_s28 = smov 25  }
  0x29   :  { %10865 = sst [smem:[#allocation20_spill]] %s9381_s12 }
  0x2a   :  { %10866 = sst [smem:[#allocation21_spill]] %s9386_s20 }
  0x2b   :  { %10867 = sst [smem:[#allocation22_spill]] %s9391_s27 }
  0x2c   :  { %10868 = sst [smem:[#allocation23_spill]] %s9396_s4 }
  0x2d   :  { %s9401_s12 = sld [smem:[%s10810_s0 + %s9263_s7]]   ;;  %s9267_s7 = smov 26  }
  0x2e   :  { %s9406_s20 = sld [smem:[%s10810_s0 + %s9264_s15]]   ;;  %s9268_s15 = smov 27  }
  0x2f   :  { %s9411_s27 = sld [smem:[%s10810_s0 + %s9265_s22]]   ;;  %s9269_s22 = smov 28  }
  0x30   :  { %s9416_s4 = sld [smem:[%s10810_s0 + %s9266_s28]]   ;;  %s9270_s28 = smov 29  }
  0x33   :  { %10869 = sst [smem:[#allocation24_spill]] %s9401_s12 }
  0x34   :  { %10870 = sst [smem:[#allocation25_spill]] %s9406_s20 }
  0x35   :  { %10871 = sst [smem:[#allocation26_spill]] %s9411_s27 }
  0x36   :  { %10872 = sst [smem:[#allocation27_spill]] %s9416_s4 }
  0x37   :  { %s9421_s12 = sld [smem:[%s10810_s0 + %s9267_s7]]   ;;  %s9271_s7 = smov 30  }
  0x38   :  { %s9426_s20 = sld [smem:[%s10810_s0 + %s9268_s15]]   ;;  %s9272_s15 = smov 31  }
  0x39   :  { %s9431_s27 = sld [smem:[%s10810_s0 + %s9269_s22]]   ;;  %s9273_s22 = smov 32  }
  0x3a   :  { %s9436_s4 = sld [smem:[%s10810_s0 + %s9270_s28]]   ;;  %s9274_s28 = smov 33  }
  0x3d   :  { %10873 = sst [smem:[#allocation28_spill]] %s9421_s12 }
  0x3e   :  { %10874 = sst [smem:[#allocation29_spill]] %s9426_s20 }
  0x3f   :  { %10875 = sst [smem:[#allocation30_spill]] %s9431_s27 }
  0x40   :  { %10876 = sst [smem:[#allocation31_spill]] %s9436_s4 }
  0x41   :  { %s9441_s12 = sld [smem:[%s10810_s0 + %s9271_s7]]   ;;  %s9275_s7 = smov 34  }
  0x42   :  { %s9446_s20 = sld [smem:[%s10810_s0 + %s9272_s15]]   ;;  %s9276_s15 = smov 35  }
  0x43   :  { %s9451_s27 = sld [smem:[%s10810_s0 + %s9273_s22]]   ;;  %s9277_s22 = smov 36  }
  0x44   :  { %s9456_s4 = sld [smem:[%s10810_s0 + %s9274_s28]]   ;;  %s9278_s28 = smov 37  }
  0x47   :  { %10877 = sst [smem:[#allocation32_spill]] %s9441_s12 }
  0x48   :  { %10878 = sst [smem:[#allocation33_spill]] %s9446_s20 }
  0x49   :  { %10879 = sst [smem:[#allocation34_spill]] %s9451_s27 }
  0x4a   :  { %10880 = sst [smem:[#allocation35_spill]] %s9456_s4 }
  0x4b   :  { %s9461_s12 = sld [smem:[%s10810_s0 + %s9275_s7]]   ;;  %s9279_s7 = smov 38  }
  0x4c   :  { %s9466_s20 = sld [smem:[%s10810_s0 + %s9276_s15]]  }
  0x4d   :  { %s9471_s27 = sld [smem:[%s10810_s0 + %s9277_s22]]  }
  0x4e   :  { %s9476_s4 = sld [smem:[%s10810_s0 + %s9278_s28]]  }
  0x51   :  { %10881 = sst [smem:[#allocation36_spill]] %s9461_s12 }
  0x52   :  { %s9481_s12 = sld [smem:[%s10810_s0 + %s9279_s7]]  }
  0x54   :  { %10882 = sst [smem:[#allocation37_spill]] %s9476_s4 }
  0x55   :  { %82 = vsyncpa [#allocation3], 0 }
  0x56   :  { %84 = vsyncpa [#allocation3 + $0x1], 0  ;;  %s9483_s15 = smov 0   ;;  %s9485_s16 = smov 0  }
  0x57   :  { %s9487_s18 = smov 0   ;;  %s9489_s22 = smov 0  }
  0x58 LB: > { %s10883_s24 = sld [smem:[#allocation14_spill]]  ;;  %s10884_s21 = sld [smem:[#allocation9_spill]]  ;;  %s9240_s22 = sphi %s9489_s22, %s10921_s22   ;;  %s9236_s18 = sphi %s9487_s18, %s10920_s18   ;;  %s9232_s16 = sphi %s9485_s16, %s10919_s16   ;;  %s9228_s15 = sphi %s9483_s15, %s10918_s15  }
  0x59   : > { %s10885_s19 = sld [smem:[#allocation13_spill]]  ;;  %s10886_s17 = sld [smem:[#allocation8_spill]] }
  0x5a   : > { %s10887_s14 = sld [smem:[#allocation12_spill]]  ;;  %s10888_s8 = sld [smem:[#allocation11_spill]] }
  0x5b   : > { %s10889_s6 = sld [smem:[#allocation15_spill]]  ;;  %s10890_s3 = sld [smem:[#allocation10_spill]] }
  0x5c   : > { %s9504_s0 = sadd.s32 4294967295, %s9240_s22   ;;  %s7365_s23 = sadd.s32 4294967294, %s9240_s22  }
  0x5d   : > { %s9508_s26 = sadd.s32 1, %s9240_s22   ;;  %s900_s28 = sadd.s32 1, %s9236_s18 }
  0x5e   : > { %s897_s1 = ssub.s32 %s9240_s22, %s9508_s26  ;;  %p910_p0 = scmp.ne.s32.totalorder %s9236_s18, %s9232_s16 }
  0x5f   : > { %p898_p1 = scmp.eq.s32.totalorder %s897_s1, 0  ;;  %p911_p2 = scmp.eq.s32.totalorder %s9504_s0, 1 }
  0x60   : > { %p916_p3 = scmp.ne.s32.totalorder %s9232_s16, %s9228_s15  ;;  %p917_p4 = scmp.eq.s32.totalorder %s7365_s23, 1 }
  0x61   : > { %s9519_s2 = scalar_select %p898_p1, %s9236_s18, %s900_s28  }
  0x62   : > { %p9521_p5 = por %p911_p2, %p910_p0  ;;  %p9525_p6 = por %p917_p4, %p916_p3 }
  0x63   : > { %p7368_p7 = scmp.ge.s32.totalorder %s9240_s22, 1  ;;  %p1054_p8 = scmp.lt.s32.totalorder %s9240_s22, 3 }
  0x65   : > { %p1055_p9 = pnand %p7368_p7, %p1054_p8 }
  0x66   : > { %s10893_s9 = sld [smem:[#allocation6_spill]] (!%p1055_p9)  ;;  %s10894_s5 = sld [smem:[#allocation5_spill]] (!%p1055_p9)  ;;  %vm1192_vm0 = vcmask (!%p1055_p9), 1045504   ;;  %vm1179_vm1 = vcmask (!%p1055_p9), 97280   ;;  %vm1308_vm2 = vcmask (!%p1055_p9), 130048   ;;  %vm1679_vm3 = vcmask (!%p1055_p9), 64512  }
  0x67   : > { %1058 = sbr.rel (%p1055_p9) target bundleno = 13890 (0x3642), region = 172  ;;  %p1147_p10 = scmp.lt.s32.totalorder (!%p1055_p9), %s9504_s0, 1  ;;  %vm1769_vm4 = vcmask (!%p1055_p9), 523264   ;;  %vm2446_vm5 = vcmask (!%p1055_p9), 1043456   ;;  %vm9281_vm6 = vmmov (!%p1055_p9), 0   ;;  %vm5248_vm7 = vcmask (!%p1055_p9), 261120  }
  0x68   : > { %s10895_s13 = sld [smem:[#allocation7_spill]] (!%p1055_p9)  ;;  %s10896_s1 = sld [smem:[#allocation17_spill]] (!%p1055_p9)  ;;  %vm7257_vm8 = vcmask (!%p1055_p9), 73728  }
  0x69   : > { %s10917_s4 = sld [smem:[#allocation37_spill]] (!%p1055_p9) }
  0x6c   : > { %v8815_v0 = vld [vmem:[%s10893_s9] sm:$0x3f] (!%p1055_p9)   ;;  %s10907_s9 = sld [smem:[#allocation29_spill]] (!%p1055_p9) }
  0x6d   : > { %8715 = vmatprep.subr.msk.bf16.mxu1 (!%p1055_p9), %vm1192_vm0, %v8815_v0  ;;  %v1194_v1 = vsel (!%p1055_p9), %vm1192_vm0, %v8815_v0, 0 }
  0x6e   : > { %8046 = vmatpush3.bf16.msra.mxu1 %v1194_v1  ;;  %s1148_s11 = scalar_select %p1147_p10, %s9504_s0, 1  ;;  %v7371_v14 = vld [vmem:[%s10895_s13] ss:$0 sm:$0xff] }
  0x6f   : > { %s10909_s13 = sld [smem:[#allocation28_spill]] }
  0x70   : > { %s7754_s23 = sshll.u32 %s1148_s11, 6  ;;  %s10897_s11 = sld [smem:[#allocation16_spill]] }
  0x71   : > { %s1151_s28 = scalar_lea.vmem %s10894_s5, %s7754_s23  ;;  %s10898_s23 = sld [smem:[#allocation18_spill]] }
  0x72   : > { %v1153_v2 = vld [vmem:[%s1151_s28] sm:$0xff]  ;;  %v1154_v3 = vld [vmem:[%s1151_s28 + $0x8] sm:$0xff]  ;;  %v1155_v4 = vld [vmem:[%s1151_s28 + $0x10] sm:$0xff]  ;;  %s10903_s5 = sld [smem:[#allocation25_spill]] }
  0x73   : > { %v1161_v5 = vpack.c.bf16 %v1154_v3, %v1153_v2  ;;  %v1156_v6 = vld [vmem:[%s1151_s28 + $0x18] sm:$0xff]  ;;  %v1157_v7 = vld [vmem:[%s1151_s28 + $0x20] sm:$0xff]  ;;  %v1158_v8 = vld [vmem:[%s1151_s28 + $0x28] sm:$0xff] }
  0x74   : > { %v1162_v9 = vpack.c.bf16 %v1156_v6, %v1155_v4  ;;  %v1163_v10 = vpack.c.bf16 %v1158_v8, %v1157_v7  ;;  %v1159_v11 = vld [vmem:[%s1151_s28 + $0x30] sm:$0xff]  ;;  %v1160_v12 = vld [vmem:[%s1151_s28 + $0x38] sm:$0xff]  ;;  %s10899_s28 = sld [smem:[#allocation19_spill]] }
  0x75   : > { %8047 = vmatprep.mubr.msk.bf16.mxu1 %vm1179_vm1, %v1161_v5  ;;  %v1164_v13 = vpack.c.bf16 %v1160_v12, %v1159_v11 }
  0x76   : > { %8048 = vmatmul.mubr.msk.bf16.vlgmr.msra.gmra.mrb[0].mxu1 %vm1179_vm1, %v1162_v9 }
  0x77   : > { %8051 = vmatprep.mubr.msk.bf16.mxu1 %vm1179_vm1, %v1163_v10 }
  0x7e   : > { %8052 = vmatmul.mubr.msk.bf16.gmra.mrb[4].mxu1 %vm1179_vm1, %v1164_v13 }
 0x149   : > { %v8049_v15 = vpop.f32.mrb[0].mxu1 }
 0x14a   : > { %v9536_v16 = vadd.f32 %v8049_v15, %v7371_v14  ;;  %v1230_v17 = vpop.f32.mrb[1].mxu1  ;;  %v8816_v15 = vld [vmem:[%s9316_s25] sm:$0xff]  }
 0x14b   : > { %v9538_v18 = vadd.f32 %v7371_v14, %v1230_v17  ;;  %v8050_v19 = vpop.f32.mrb[2].mxu1  ;;  %v8817_v17 = vld [vmem:[%s9321_s29] sm:$0xff]   ;;  %8055 = vmatprep.subr.bf16.mxu1 %v8816_v15 }
 0x14c   : > { %v9540_v20 = vadd.f32 %v8050_v19, %v7371_v14  ;;  %v1233_v21 = vpop.f32.mrb[3].mxu1  ;;  %v1315_v22 = vsel %vm1308_vm2, %v9536_v16, 0.0  ;;  %8065 = vmatprep.subr.bf16.mxu0 %v8817_v17  ;;  %8056 = vmatpush3.bf16.msra.mxu1 %v8816_v15  ;;  %v9619_v19 = vld [vmem:[%s10890_s3] sm:$0xff]  }
 0x14d   : > { %v9544_v23 = vadd.f32 %v7371_v14, %v1233_v21  ;;  %1316 = vadd.xlane.f32.xlu1 %v1315_v22  ;;  %v1309_v24 = vsel %vm1308_vm2, %v9538_v18, 0.0  ;;  %8066 = vmatpush3.bf16.msra.mxu0 %v8817_v17 }
 0x14e   : > { %1310 = vadd.xlane.f32.xlu0 %v1309_v24  ;;  %v1318_v25 = vsel %vm1308_vm2, %v9540_v20, 0.0  ;;  %8075 = vmatprep.subr.bf16.mxu1 %v9619_v19 }
 0x14f   : > { %v1312_v27 = vsel %vm1308_vm2, %v9544_v23, 0.0 }
 0x151   : > { %1319 = vadd.xlane.f32.xlu1 %v1318_v25  ;;  %v8053_v26 = vpop.f32.mrb[4].mxu1 }
 0x152   : > { %v1246_v28 = vpop.f32.mrb[5].mxu1  ;;  %1313 = vadd.xlane.f32.xlu0 %v1312_v27  ;;  %v9552_v29 = vadd.f32 %v8053_v26, %v7371_v14 }
 0x153   : > { %v9554_v30 = vadd.f32 %v7371_v14, %v1246_v28  ;;  %v8054_v31 = vpop.f32.mrb[6].mxu1 }
 0x154   : > { %v1249_v32 = vpop.f32.mrb[7].mxu1  ;;  %v9556_v33 = vadd.f32 %v8054_v31, %v7371_v14  ;;  %v1327_v37 = vsel %vm1308_vm2, %v9552_v29, 0.0 }
 0x155   : > { %v9558_v34 = vadd.f32 %v7371_v14, %v1249_v32  ;;  %v1321_v35 = vsel %vm1308_vm2, %v9554_v30, 0.0 }
 0x156   : > { %1322 = vadd.xlane.f32.xlu0 %v1321_v35  ;;  %v1330_v38 = vsel %vm1308_vm2, %v9556_v33, 0.0 }
 0x157   : > { %v1324_v36 = vsel %vm1308_vm2, %v9558_v34, 0.0 }
 0x158   : > { %1325 = vadd.xlane.f32.xlu1 %v1324_v36 }
 0x15a   : > { %1328 = vadd.xlane.f32.xlu0 %v1327_v37 }
 0x15c   : > { %1331 = vadd.xlane.f32.xlu1 %v1330_v38 }
 0x1da   : > { %v1317_v39 = vpop.xlane.xlu1 %1316 }
 0x1db   : > { %v1336_v40 = vmul.f32 0.0625, %v1317_v39  ;;  %v1311_v41 = vpop.xlane.xlu0 %1310 }
 0x1dc   : > { %v1334_v42 = vmul.f32 0.0625, %v1311_v41 }
 0x1dd   : > { %v9569_v43 = vsub.f32 %v9536_v16, %v1336_v40 }
 0x1de   : > { %v9572_v44 = vsub.f32 %v9538_v18, %v1334_v42  ;;  %v1320_v45 = vpop.xlane.xlu1 %1319 }
 0x1df   : > { %v1337_v46 = vmul.f32 0.0625, %v1320_v45  ;;  %v1314_v47 = vpop.xlane.xlu0 %1313  ;;  %v1352_v53 = vmul.f32 %v9569_v43, %v9569_v43 }
 0x1e0   : > { %v1335_v48 = vmul.f32 0.0625, %v1314_v47  ;;  %v1350_v49 = vmul.f32 %v9572_v44, %v9572_v44 }
 0x1e1   : > { %v9577_v50 = vsub.f32 %v9540_v20, %v1337_v46  ;;  %v1364_v61 = vsel %vm1308_vm2, %v1352_v53, 0.0 }
 0x1e2   : > { %v9580_v51 = vsub.f32 %v9544_v23, %v1335_v48  ;;  %v1358_v52 = vsel %vm1308_vm2, %v1350_v49, 0.0 }
 0x1e3   : > { %1359 = vadd.xlane.f32.xlu0 %v1358_v52  ;;  %v1323_v54 = vpop.xlane.xlu0 %1322  ;;  %v1353_v58 = vmul.f32 %v9577_v50, %v9577_v50 }
 0x1e4   : > { %v1338_v55 = vmul.f32 0.0625, %v1323_v54  ;;  %v1351_v56 = vmul.f32 %v9580_v51, %v9580_v51  ;;  %v7377_v54 = vld [vmem:[%s10886_s17] ss:$0 sm:$0xff] }
 0x1e5   : > { %v1326_v57 = vpop.xlane.xlu1 %1325  ;;  %v1367_v4 = vsel %vm1308_vm2, %v1353_v58, 0.0 }
 0x1e6   : > { %v9590_v59 = vsub.f32 %v9554_v30, %v1338_v55  ;;  %v1339_v60 = vmul.f32 0.0625, %v1326_v57  ;;  %v1361_v62 = vsel %vm1308_vm2, %v1351_v56, 0.0 }
 0x1e7   : > { %1365 = vadd.xlane.f32.xlu0 %v1364_v61  ;;  %1362 = vadd.xlane.f32.xlu1 %v1361_v62  ;;  %v1329_v63 = vpop.xlane.xlu0 %1328  ;;  %v7378_v62 = vld [vmem:[%s10884_s21] ss:$0 sm:$0xff] }
 0x1e8   : > { %v9595_v0 = vsub.f32 %v9558_v34, %v1339_v60  ;;  %v1340_v1 = vmul.f32 0.0625, %v1329_v63  ;;  %v1354_v2 = vmul.f32 %v9590_v59, %v9590_v59 }
 0x1e9   : > { %v1332_v3 = vpop.xlane.xlu1 %1331 }
 0x1ea   : > { %v9601_v5 = vsub.f32 %v9552_v29, %v1340_v1  ;;  %v1341_v6 = vmul.f32 0.0625, %v1332_v3  ;;  %v1370_v7 = vsel %vm1308_vm2, %v1354_v2, 0.0  ;;  %v1355_v8 = vmul.f32 %v9595_v0, %v9595_v0 }
 0x1eb   : > { %1368 = vadd.xlane.f32.xlu1 %v1367_v4  ;;  %1371 = vadd.xlane.f32.xlu0 %v1370_v7 }
 0x1ec   : > { %v9607_v9 = vsub.f32 %v9556_v33, %v1341_v6  ;;  %v1356_v10 = vmul.f32 %v9601_v5, %v9601_v5  ;;  %v1373_v11 = vsel %vm1308_vm2, %v1355_v8, 0.0 }
 0x1ee   : > { %v1376_v12 = vsel %vm1308_vm2, %v1356_v10, 0.0  ;;  %v1357_v13 = vmul.f32 %v9607_v9, %v9607_v9 }
 0x1ef   : > { %1374 = vadd.xlane.f32.xlu1 %v1373_v11  ;;  %1377 = vadd.xlane.f32.xlu0 %v1376_v12 }
 0x1f0   : > { %v1379_v14 = vsel %vm1308_vm2, %v1357_v13, 0.0 }
 0x1f3   : > { %1380 = vadd.xlane.f32.xlu1 %v1379_v14 }
 0x270   : > { %v1360_v21 = vpop.xlane.xlu0 %1359 }
 0x271   : > { %v1382_v22 = vmul.f32 0.0625, %v1360_v21 }
 0x273   : > { %v1390_v24 = vadd.f32 1e-05, %v1382_v22 }
 0x274   : > { %v1363_v25 = vpop.xlane.xlu1 %1362  ;;  %v1366_v26 = vpop.xlane.xlu0 %1365 }
 0x275   : > { %8896 = vrsqrt.f32 %v1390_v24  ;;  %v1383_v27 = vmul.f32 0.0625, %v1363_v25  ;;  %v1384_v28 = vmul.f32 0.0625, %v1366_v26 }
 0x277   : > { %v1391_v31 = vadd.f32 1e-05, %v1383_v27  ;;  %v1392_v32 = vadd.f32 1e-05, %v1384_v28 }
 0x278   : > { %v1369_v35 = vpop.xlane.xlu1 %1368  ;;  %v1372_v36 = vpop.xlane.xlu0 %1371 }
 0x279   : > { %8898 = vrsqrt.f32 %v1391_v31  ;;  %v1385_v37 = vmul.f32 0.0625, %v1369_v35  ;;  %v1386_v38 = vmul.f32 0.0625, %v1372_v36 }
 0x27a   : > { %8900 = vrsqrt.f32 %v1392_v32 }
 0x27b   : > { %v1393_v39 = vadd.f32 1e-05, %v1385_v37  ;;  %v1394_v40 = vadd.f32 1e-05, %v1386_v38 }
 0x27c   : > { %v1375_v41 = vpop.xlane.xlu1 %1374  ;;  %v1378_v42 = vpop.xlane.xlu0 %1377 }
 0x27d   : > { %8902 = vrsqrt.f32 %v1393_v39  ;;  %v1387_v45 = vmul.f32 0.0625, %v1375_v41  ;;  %v1388_v46 = vmul.f32 0.0625, %v1378_v42 }
 0x27e   : > { %8904 = vrsqrt.f32 %v1394_v40 }
 0x27f   : > { %v8897_v47 = vpop.eup %8896  ;;  %v1395_v48 = vadd.f32 1e-05, %v1387_v45  ;;  %v1396_v49 = vadd.f32 1e-05, %v1388_v46 }
 0x280   : > { %v1406_v52 = vmul.f32 %v8897_v47, %v9572_v44  ;;  %v1381_v53 = vpop.xlane.xlu1 %1380 }
 0x281   : > { %8906 = vrsqrt.f32 %v1395_v48  ;;  %v1389_v55 = vmul.f32 0.0625, %v1381_v53 }
 0x282   : > { %8908 = vrsqrt.f32 %v1396_v49  ;;  %v1420_v60 = vmul.f32 %v7377_v54, %v1406_v52 }
 0x283   : > { %v8899_v56 = vpop.eup %8898  ;;  %v1397_v57 = vadd.f32 1e-05, %v1389_v55 }
 0x284   : > { %v8901_v58 = vpop.eup %8900  ;;  %v1407_v61 = vmul.f32 %v8899_v56, %v9580_v51  ;;  %v1434_v4 = vadd.f32 %v7378_v62, %v1420_v60 }
 0x285   : > { %v1408_v63 = vmul.f32 %v8901_v58, %v9569_v43  ;;  %8910 = vrsqrt.f32 %v1397_v57 }
 0x286   : > { %v1421_v1 = vmul.f32 %v7377_v54, %v1407_v61 }
 0x287   : > { %v8903_v2 = vpop.eup %8902  ;;  %v1422_v6 = vmul.f32 %v7377_v54, %v1408_v63 }
 0x288   : > { %v8905_v3 = vpop.eup %8904  ;;  %v1435_v44 = vadd.f32 %v7378_v62, %v1421_v1  ;;  %v1409_v7 = vmul.f32 %v8903_v2, %v9577_v50 }
 0x289   : > { %v1410_v8 = vmul.f32 %v8905_v3, %v9590_v59  ;;  %v1436_v14 = vadd.f32 %v7378_v62, %v1422_v6 }
 0x28a   : > { %v1423_v10 = vmul.f32 %v7377_v54, %v1409_v7  ;;  %v9629_v11 = vpack.c.bf16 %v1435_v44, %v1434_v4 }
 0x28b   : > { %v8907_v12 = vpop.eup %8906  ;;  %v1424_v13 = vmul.f32 %v7377_v54, %v1410_v8 }
 0x28c   : > { %v8909_v51 = vpop.eup %8908  ;;  %v1437_v15 = vadd.f32 %v7378_v62, %v1423_v10  ;;  %v1411_v43 = vmul.f32 %v8907_v12, %v9595_v0  ;;  %8057 = vmatprep.mubr.msk.bf16.mxu1 %vm1308_vm2, %v9629_v11  ;;  %8067 = vmatprep.mubr.msk.bf16.mxu0 %vm1308_vm2, %v9629_v11 }
 0x28d   : > { %v1412_v50 = vmul.f32 %v8909_v51, %v9601_v5  ;;  %v1438_v22 = vadd.f32 %v7378_v62, %v1424_v13 }
 0x28e   : > { %v1425_v17 = vmul.f32 %v7377_v54, %v1411_v43  ;;  %v9637_v59 = vpack.c.bf16 %v1437_v15, %v1436_v14  ;;  %v8819_v14 = vld [vmem:[%s9321_s29 + $0x8] sm:$0xff]   ;;  %v1278_v43 = vld [vmem:[%s10885_s19] sm:$0xff] }
 0x28f   : > { %v8911_v21 = vpop.eup %8910  ;;  %v1426_v25 = vmul.f32 %v7377_v54, %v1412_v50 }
 0x290   : > { %v1439_v24 = vadd.f32 %v7378_v62, %v1425_v17  ;;  %v1413_v26 = vmul.f32 %v8911_v21, %v9607_v9  ;;  %8058 = vmatmul.mubr.msk.bf16.vlgmr.msra.gmra.mrb[8].mxu1 %vm1308_vm2, %v9637_v59  ;;  %8068 = vmatmul.mubr.msk.bf16.vlgmr.msra.gmra.mrb[0].mxu0 %vm1308_vm2, %v9637_v59  ;;  %v1280_v17 = vld [vmem:[%s10885_s19 + $0x10] sm:$0xff] }
 0x291   : > { %8076 = vmatpush3.bf16.msra.mxu1 %v9619_v19  ;;  %v1440_v5 = vadd.f32 %v7378_v62, %v1426_v25 }
 0x292   : > { %v1427_v0 = vmul.f32 %v7377_v54, %v1413_v26  ;;  %v9645_v27 = vpack.c.bf16 %v1439_v24, %v1438_v22  ;;  %v1279_v22 = vld [vmem:[%s10885_s19 + $0x8] sm:$0xff]  ;;  %v1281_v26 = vld [vmem:[%s10885_s19 + $0x18] sm:$0xff] }
 0x294   : > { %v1441_v28 = vadd.f32 %v7378_v62, %v1427_v0  ;;  %8061 = vmatprep.mubr.msk.bf16.mxu1 %vm1308_vm2, %v9645_v27  ;;  %8071 = vmatprep.mubr.msk.bf16.mxu0 %vm1308_vm2, %v9645_v27 }
 0x296   : > { %v9651_v9 = vpack.c.bf16 %v1441_v28, %v1440_v5 }
 0x298   : > { %8062 = vmatmul.mubr.msk.bf16.gmra.mrb[12].mxu1 %vm1308_vm2, %v9651_v9  ;;  %8072 = vmatmul.mubr.msk.bf16.gmra.mrb[4].mxu0 %vm1308_vm2, %v9651_v9 }
 0x299   : > { %8077 = vmatprep.mubr.msk.bf16.mxu1 %vm1308_vm2, %v9629_v11 }
 0x2a0   : > { %8078 = vmatmul.mubr.msk.bf16.vlgmr.msra.gmra.mrb[16].mxu1 %vm1308_vm2, %v9637_v59 }
 0x2a1   : > { %8081 = vmatprep.mubr.msk.bf16.mxu1 %vm1308_vm2, %v9645_v27 }
 0x2a8   : > { %8082 = vmatmul.mubr.msk.bf16.gmra.mrb[20].mxu1 %vm1308_vm2, %v9651_v9 }
 0x363   : > { %v8059_v19 = vpop.f32.mrb[8].mxu1  ;;  %v8069_v31 = vpop.f32.mrb[0].mxu0 }
 0x364   : > { %v1498_v32 = vpop.f32.mrb[9].mxu1  ;;  %v1569_v35 = vpop.f32.mrb[1].mxu0 }
 0x365   : > { %v8060_v36 = vpop.f32.mrb[10].mxu1  ;;  %v8070_v37 = vpop.f32.mrb[2].mxu0 }
 0x366   : > { %v1672_v38 = vpack.c.bf16 %v8060_v36, %v8059_v19  ;;  %v1676_v39 = vpack.c.bf16 %v8070_v37, %v8069_v31  ;;  %v1501_v40 = vpop.f32.mrb[11].mxu1  ;;  %v1572_v41 = vpop.f32.mrb[3].mxu0 }
 0x367   : > { %v1671_v42 = vpack.c.bf16 %v1501_v40, %v1498_v32  ;;  %v1675_v45 = vpack.c.bf16 %v1572_v41, %v1569_v35  ;;  %v1282_v35 = vld [vmem:[%s10885_s19 + $0x20] sm:$0xff]  ;;  %v1283_v40 = vld [vmem:[%s10885_s19 + $0x28] sm:$0xff] }
 0x368   : > { %v1696_v62 = vsel %vm1679_vm3, %v1676_v39, 0 }
 0x369   : > { %v1693_v46 = vsel %vm1679_vm3, %v1675_v45, 0  ;;  %8716 = vmatprep.subr.msk.bf16.mxu0 %vm1679_vm3, %v1675_v45  ;;  %8093 = vmatprep.mubr.msk.bf16.mxu0 %vm1679_vm3, %v1671_v42 }
 0x36a   : > { %8086 = vmatpush3.bf16.xpose.msra.mxu0 %v1693_v46  ;;  %v1285_v46 = vld [vmem:[%s10885_s19 + $0x38] sm:$0xff] }
 0x36b   : > { %v8063_v47 = vpop.f32.mrb[12].mxu1  ;;  %v8073_v48 = vpop.f32.mrb[4].mxu0  ;;  %8717 = vmatprep.subr.msk.bf16.mxu0 %vm1679_vm3, %v1676_v39 }
 0x36c   : > { %v1514_v49 = vpop.f32.mrb[13].mxu1  ;;  %v1585_v52 = vpop.f32.mrb[5].mxu0 }
 0x36d   : > { %v8064_v53 = vpop.f32.mrb[14].mxu1  ;;  %v8074_v54 = vpop.f32.mrb[6].mxu0 }
 0x36e   : > { %v1674_v55 = vpack.c.bf16 %v8064_v53, %v8063_v47  ;;  %v1678_v56 = vpack.c.bf16 %v8074_v54, %v8073_v48  ;;  %v1517_v57 = vpop.f32.mrb[15].mxu1  ;;  %v1588_v58 = vpop.f32.mrb[7].mxu0 }
 0x36f   : > { %v1673_v60 = vpack.c.bf16 %v1517_v57, %v1514_v49  ;;  %v1677_v61 = vpack.c.bf16 %v1588_v58, %v1585_v52 }
 0x370   : > { %v1702_v15 = vsel %vm1679_vm3, %v1678_v56, 0 }
 0x371   : > { %v1699_v6 = vsel %vm1679_vm3, %v1677_v61, 0 }
 0x372   : > { %8088 = vmatpush3.bf16.xpose.msra.mxu0 %v1696_v62 }
 0x373   : > { %v8079_v63 = vpop.f32.mrb[16].mxu1  ;;  %8718 = vmatprep.subr.msk.bf16.mxu0 %vm1679_vm3, %v1677_v61 }
 0x374   : > { %v1640_v1 = vpop.f32.mrb[17].mxu1 }
 0x375   : > { %v8080_v2 = vpop.f32.mrb[18].mxu1 }
 0x376   : > { %v1863_v3 = vpack.c.bf16 %v8080_v2, %v8079_v63  ;;  %v1643_v4 = vpop.f32.mrb[19].mxu1 }
 0x377   : > { %v1862_v44 = vpack.c.bf16 %v1643_v4, %v1640_v1 }
 0x379   : > { %8101 = vmatprep.subr.bf16.mxu1 %v1862_v44 }
 0x37a   : > { %8090 = vmatpush3.bf16.xpose.msra.mxu0 %v1699_v6  ;;  %8102 = vmatpush3.bf16.msra.mxu1 %v1862_v44 }
 0x37b   : > { %v8083_v7 = vpop.f32.mrb[20].mxu1  ;;  %8719 = vmatprep.subr.msk.bf16.mxu0 %vm1679_vm3, %v1678_v56  ;;  %8103 = vmatprep.subr.bf16.mxu1 %v1863_v3 }
 0x37c   : > { %v1656_v8 = vpop.f32.mrb[21].mxu1 }
 0x37d   : > { %v8084_v10 = vpop.f32.mrb[22].mxu1 }
 0x37e   : > { %v1865_v12 = vpack.c.bf16 %v8084_v10, %v8083_v7  ;;  %v1659_v13 = vpop.f32.mrb[23].mxu1  ;;  %8104 = vmatpush3.bf16.msra.mxu1 %v1863_v3 }
 0x37f   : > { %v1864_v51 = vpack.c.bf16 %v1659_v13, %v1656_v8 }
 0x381   : > { %8105 = vmatprep.subr.bf16.mxu1 %v1864_v51 }
 0x382   : > { %8092 = vmatpush3.bf16.xpose.msra.mxu0 %v1702_v15  ;;  %8106 = vmatpush3.bf16.msra.mxu1 %v1864_v51 }
 0x383   : > { %8107 = vmatprep.subr.bf16.mxu1 %v1865_v12  ;;  %8127 = vmatprep.subr.bf16.mxu0 %v8819_v14 }
 0x386   : > { %8108 = vmatpush3.bf16.msra.mxu1 %v1865_v12 }
 0x389   : > { %8094 = vmatmul.mubr.msk.bf16.vlgmr.msra.gmra.mrb[8].mxu0 %vm1679_vm3, %v1672_v38  ;;  %v1284_v38 = vld [vmem:[%s10885_s19 + $0x30] sm:$0xff] }
 0x38a   : > { %8097 = vmatprep.mubr.msk.bf16.mxu0 %vm1679_vm3, %v1673_v60  ;;  %8128 = vmatpush3.bf16.msra.mxu0 %v8819_v14 }
 0x391   : > { %8098 = vmatmul.mubr.msk.bf16.gmra.mrb[12].mxu0 %vm1679_vm3, %v1674_v55 }
 0x392   : > { %8129 = vmatprep.mubr.msk.bf16.mxu0 %vm1308_vm2, %v9629_v11 }
 0x399   : > { %8130 = vmatmul.mubr.msk.bf16.vlgmr.msra.gmra.mrb[16].mxu0 %vm1308_vm2, %v9637_v59 }
 0x39a   : > { %8133 = vmatprep.mubr.msk.bf16.mxu0 %vm1308_vm2, %v9645_v27 }
 0x3a1   : > { %8134 = vmatmul.mubr.msk.bf16.gmra.mrb[20].mxu0 %vm1308_vm2, %v9651_v9 }
 0x45c   : > { %v8095_v50 = vpop.f32.mrb[8].mxu0 }
 0x45d   : > { %v1738_v21 = vpop.f32.mrb[9].mxu0  ;;  %v9690_v5 = vadd.f32 %v8095_v50, %v1280_v17 }
 0x45e   : > { %v1739_v24 = vadd.f32 %v1738_v21, %v1278_v43  ;;  %v8096_v25 = vpop.f32.mrb[10].mxu0 }
 0x45f   : > { %v1741_v0 = vpop.f32.mrb[11].mxu0  ;;  %v9693_v31 = vadd.f32 %v8096_v25, %v1281_v26  ;;  %v1776_v37 = vsel %vm1769_vm4, %v9690_v5, -inf }
 0x460   : > { %v1742_v28 = vadd.f32 %v1741_v0, %v1279_v22  ;;  %v1770_v19 = vsel %vm1769_vm4, %v1739_v24, -inf }
 0x461   : > { %1771 = vmax.xlane.f32.xlu0 %v1770_v19  ;;  %v1779_v45 = vsel %vm1769_vm4, %v9693_v31, -inf }
 0x462   : > { %v1773_v32 = vsel %vm1769_vm4, %v1742_v28, -inf }
 0x463   : > { %1774 = vmax.xlane.f32.xlu1 %v1773_v32 }
 0x464   : > { %v8099_v36 = vpop.f32.mrb[12].mxu0 }
 0x465   : > { %1777 = vmax.xlane.f32.xlu0 %v1776_v37  ;;  %v1754_v39 = vpop.f32.mrb[13].mxu0  ;;  %v9704_v48 = vadd.f32 %v8099_v36, %v1284_v38 }
 0x466   : > { %v1755_v41 = vadd.f32 %v1754_v39, %v1282_v35  ;;  %v8100_v42 = vpop.f32.mrb[14].mxu0 }
 0x467   : > { %1780 = vmax.xlane.f32.xlu1 %v1779_v45  ;;  %v1757_v47 = vpop.f32.mrb[15].mxu0  ;;  %v9707_v53 = vadd.f32 %v8100_v42, %v1285_v46  ;;  %v1788_v56 = vsel %vm1769_vm4, %v9704_v48, -inf }
 0x468   : > { %v1758_v49 = vadd.f32 %v1757_v47, %v1283_v40  ;;  %v1782_v52 = vsel %vm1769_vm4, %v1755_v41, -inf }
 0x469   : > { %1783 = vmax.xlane.f32.xlu0 %v1782_v52  ;;  %v1791_v60 = vsel %vm1769_vm4, %v9707_v53, -inf }
 0x46a   : > { %v1785_v54 = vsel %vm1769_vm4, %v1758_v49, -inf }
 0x46b   : > { %1786 = vmax.xlane.f32.xlu1 %v1785_v54 }
 0x46c   : > { %v8131_v55 = vpop.f32.mrb[16].mxu0 }
 0x46d   : > { %v2058_v57 = vpop.f32.mrb[17].mxu0  ;;  %1789 = vmax.xlane.f32.xlu0 %v1788_v56 }
 0x46e   : > { %v8132_v58 = vpop.f32.mrb[18].mxu0 }
 0x46f   : > { %v2165_v61 = vpack.c.bf16 %v8132_v58, %v8131_v55  ;;  %v2061_v62 = vpop.f32.mrb[19].mxu0  ;;  %1792 = vmax.xlane.f32.xlu1 %v1791_v60 }
 0x470   : > { %v2164_v63 = vpack.c.bf16 %v2061_v62, %v2058_v57  ;;  %v8820_v62 = vld [vmem:[%s9316_s25 + $0x8] sm:$0xff]  }
 0x471   : > { %v2184_v8 = vsel %vm1679_vm3, %v2165_v61, 0  ;;  %8117 = vmatprep.subr.bf16.mxu1 %v8820_v62 }
 0x472   : > { %v2181_v1 = vsel %vm1679_vm3, %v2164_v63, 0  ;;  %8720 = vmatprep.subr.msk.bf16.mxu0 %vm1679_vm3, %v2164_v63 }
 0x473   : > { %8148 = vmatpush3.bf16.xpose.msra.mxu0 %v2181_v1 }
 0x474   : > { %v8135_v2 = vpop.f32.mrb[20].mxu0  ;;  %8721 = vmatprep.subr.msk.bf16.mxu0 %vm1679_vm3, %v2165_v61 }
 0x475   : > { %v2074_v3 = vpop.f32.mrb[21].mxu0 }
 0x476   : > { %v8136_v4 = vpop.f32.mrb[22].mxu0 }
 0x477   : > { %v2167_v44 = vpack.c.bf16 %v8136_v4, %v8135_v2  ;;  %v2077_v6 = vpop.f32.mrb[23].mxu0 }
 0x478   : > { %v2166_v7 = vpack.c.bf16 %v2077_v6, %v2074_v3 }
 0x479   : > { %v2190_v12 = vsel %vm1679_vm3, %v2167_v44, 0 }
 0x47a   : > { %v2187_v10 = vsel %vm1679_vm3, %v2166_v7, 0 }
 0x47b   : > { %8150 = vmatpush3.bf16.xpose.msra.mxu0 %v2184_v8 }
 0x47c   : > { %8722 = vmatprep.subr.msk.bf16.mxu0 %vm1679_vm3, %v2166_v7 }
 0x483   : > { %8152 = vmatpush3.bf16.xpose.msra.mxu0 %v2187_v10 }
 0x484   : > { %8723 = vmatprep.subr.msk.bf16.mxu0 %vm1679_vm3, %v2167_v44 }
 0x48b   : > { %8154 = vmatpush3.bf16.xpose.msra.mxu0 %v2190_v12 }
 0x4ee   : > { %v1772_v13 = vpop.xlane.xlu0 %1771 }
 0x4ef   : > { %v1794_v51 = vsub.f32 %v1739_v24, %v1772_v13 }
 0x4f0   : > { %v1775_v14 = vpop.xlane.xlu1 %1774 }
 0x4f1   : > { %v1802_v15 = vmul.f32 1.442695, %v1794_v51  ;;  %v1795_v43 = vsub.f32 %v1742_v28, %v1775_v14 }
 0x4f2   : > { %v1778_v50 = vpop.xlane.xlu0 %1777 }
 0x4f3   : > { %8912 = vpow2.f32 %v1802_v15  ;;  %v1804_v17 = vmul.f32 1.442695, %v1795_v43  ;;  %v1796_v21 = vsub.f32 %v9690_v5, %v1778_v50 }
 0x4f4   : > { %v1781_v22 = vpop.xlane.xlu1 %1780 }
 0x4f5   : > { %8914 = vpow2.f32 %v1804_v17  ;;  %v1806_v25 = vmul.f32 1.442695, %v1796_v21  ;;  %v1797_v26 = vsub.f32 %v9693_v31, %v1781_v22  ;;  %v8821_v22 = vld [vmem:[%s10890_s3 + $0x8] sm:$0xff]  }
 0x4f6   : > { %v1784_v0 = vpop.xlane.xlu0 %1783 }
 0x4f7   : > { %8916 = vpow2.f32 %v1806_v25  ;;  %v1808_v19 = vmul.f32 1.442695, %v1797_v26  ;;  %v1798_v32 = vsub.f32 %v1755_v41, %v1784_v0 }
 0x4f8   : > { %v1787_v35 = vpop.xlane.xlu1 %1786 }
 0x4f9   : > { %8918 = vpow2.f32 %v1808_v19  ;;  %v1810_v24 = vmul.f32 1.442695, %v1798_v32  ;;  %v1799_v36 = vsub.f32 %v1758_v49, %v1787_v35 }
 0x4fa   : > { %v1790_v37 = vpop.xlane.xlu0 %1789 }
 0x4fb   : > { %8920 = vpow2.f32 %v1810_v24  ;;  %v1812_v28 = vmul.f32 1.442695, %v1799_v36  ;;  %v1800_v38 = vsub.f32 %v9704_v48, %v1790_v37 }
 0x4fc   : > { %v1793_v39 = vpop.xlane.xlu1 %1792 }
 0x4fd   : > { %v8913_v5 = vpop.eup %8912  ;;  %8922 = vpow2.f32 %v1812_v28  ;;  %v1814_v40 = vmul.f32 1.442695, %v1800_v38  ;;  %v1801_v42 = vsub.f32 %v9707_v53, %v1793_v39 }
 0x4fe   : > { %v1818_v31 = vsel %vm1769_vm4, %v8913_v5, 0.0 }
 0x4ff   : > { %v8915_v45 = vpop.eup %8914  ;;  %8924 = vpow2.f32 %v1814_v40  ;;  %v1816_v41 = vmul.f32 1.442695, %v1801_v42  ;;  %1819 = vadd.xlane.f32.xlu0 %v1818_v31 }
 0x500   : > { %v1821_v46 = vsel %vm1769_vm4, %v8915_v45, 0.0 }
 0x501   : > { %v8917_v47 = vpop.eup %8916  ;;  %8926 = vpow2.f32 %v1816_v41  ;;  %1822 = vadd.xlane.f32.xlu1 %v1821_v46 }
 0x502   : > { %v1824_v49 = vsel %vm1769_vm4, %v8917_v47, 0.0 }
 0x503   : > { %v8919_v48 = vpop.eup %8918  ;;  %1825 = vadd.xlane.f32.xlu0 %v1824_v49 }
 0x504   : > { %v1827_v52 = vsel %vm1769_vm4, %v8919_v48, 0.0 }
 0x505   : > { %v8921_v54 = vpop.eup %8920  ;;  %1828 = vadd.xlane.f32.xlu1 %v1827_v52 }
 0x506   : > { %v1830_v53 = vsel %vm1769_vm4, %v8921_v54, 0.0 }
 0x507   : > { %v8923_v55 = vpop.eup %8922  ;;  %1831 = vadd.xlane.f32.xlu0 %v1830_v53 }
 0x508   : > { %v1833_v56 = vsel %vm1769_vm4, %v8923_v55, 0.0 }
 0x509   : > { %v8925_v57 = vpop.eup %8924  ;;  %1834 = vadd.xlane.f32.xlu1 %v1833_v56 }
 0x50a   : > { %v1836_v58 = vsel %vm1769_vm4, %v8925_v57, 0.0 }
 0x50b   : > { %v8927_v60 = vpop.eup %8926  ;;  %1837 = vadd.xlane.f32.xlu0 %v1836_v58 }
 0x50c   : > { %v1839_v61 = vsel %vm1769_vm4, %v8927_v60, 0.0 }
 0x50d   : > { %1840 = vadd.xlane.f32.xlu1 %v1839_v61 }
 0x58c   : > { %v1820_v63 = vpop.xlane.xlu0 %1819 }
 0x58d   : > { %8928 = vrcp.f32 %v1820_v63 }
 0x58e   : > { %v1823_v1 = vpop.xlane.xlu1 %1822 }
 0x58f   : > { %8930 = vrcp.f32 %v1823_v1 }
 0x590   : > { %v1826_v2 = vpop.xlane.xlu0 %1825 }
 0x591   : > { %8932 = vrcp.f32 %v1826_v2 }
 0x592   : > { %v1829_v3 = vpop.xlane.xlu1 %1828 }
 0x593   : > { %8934 = vrcp.f32 %v1829_v3 }
 0x594   : > { %v1832_v4 = vpop.xlane.xlu0 %1831 }
 0x595   : > { %8936 = vrcp.f32 %v1832_v4 }
 0x596   : > { %v1835_v44 = vpop.xlane.xlu1 %1834 }
 0x597   : > { %v8929_v6 = vpop.eup %8928  ;;  %8938 = vrcp.f32 %v1835_v44 }
 0x598   : > { %v1838_v7 = vpop.xlane.xlu0 %1837  ;;  %v1850_v12 = vmul.f32 %v8929_v6, %v8913_v5 }
 0x599   : > { %v8931_v8 = vpop.eup %8930  ;;  %8940 = vrcp.f32 %v1838_v7 }
 0x59a   : > { %v1841_v10 = vpop.xlane.xlu1 %1840  ;;  %v1851_v13 = vmul.f32 %v8931_v8, %v8915_v45 }
 0x59b   : > { %v8933_v51 = vpop.eup %8932  ;;  %8942 = vrcp.f32 %v1841_v10  ;;  %v1286_v10 = vld [vmem:[%s10885_s19 + $0x40] sm:$0xff] }
 0x59c   : > { %v1858_v14 = vpack.c.bf16 %v1851_v13, %v1850_v12  ;;  %v1852_v43 = vmul.f32 %v8933_v51, %v8917_v47  ;;  %v1288_v13 = vld [vmem:[%s10885_s19 + $0x50] sm:$0xff] }
 0x59d   : > { %v8935_v15 = vpop.eup %8934 }
 0x59e   : > { %v1853_v50 = vmul.f32 %v8935_v15, %v8919_v48  ;;  %8109 = vmatprep.mubr.msk.bf16.mxu1 %vm1769_vm4, %v1858_v14  ;;  %v1287_v14 = vld [vmem:[%s10885_s19 + $0x48] sm:$0xff] }
 0x59f   : > { %v8937_v17 = vpop.eup %8936 }
 0x5a0   : > { %v1859_v21 = vpack.c.bf16 %v1853_v50, %v1852_v43  ;;  %v1854_v26 = vmul.f32 %v8937_v17, %v8921_v54  ;;  %v1289_v50 = vld [vmem:[%s10885_s19 + $0x58] sm:$0xff] }
 0x5a1   : > { %v8939_v25 = vpop.eup %8938 }
 0x5a2   : > { %8110 = vmatmul.mubr.msk.bf16.vlgmr.msra.gmra.mrb[24].mxu1 %vm1769_vm4, %v1859_v21  ;;  %v1855_v0 = vmul.f32 %v8939_v25, %v8923_v55 }
 0x5a3   : > { %v8941_v19 = vpop.eup %8940  ;;  %8118 = vmatpush3.bf16.msra.mxu1 %v8820_v62 }
 0x5a4   : > { %v1860_v32 = vpack.c.bf16 %v1855_v0, %v1854_v26  ;;  %8137 = vmatprep.subr.bf16.mxu1 %v8821_v22  ;;  %v1856_v24 = vmul.f32 %v8941_v19, %v8925_v57  ;;  %v1290_v19 = vld [vmem:[%s10885_s19 + $0x60] sm:$0xff] }
 0x5a5   : > { %v8943_v35 = vpop.eup %8942 }
 0x5a6   : > { %8113 = vmatprep.mubr.msk.bf16.mxu1 %vm1769_vm4, %v1860_v32  ;;  %v1857_v36 = vmul.f32 %v8943_v35, %v8927_v60 }
 0x5a8   : > { %v1861_v37 = vpack.c.bf16 %v1857_v36, %v1856_v24  ;;  %v1292_v24 = vld [vmem:[%s10885_s19 + $0x70] sm:$0xff] }
 0x5aa   : > { %8114 = vmatmul.mubr.msk.bf16.gmra.mrb[28].mxu1 %vm1769_vm4, %v1861_v37  ;;  %v1291_v37 = vld [vmem:[%s10885_s19 + $0x68] sm:$0xff] }
 0x5ab   : > { %8119 = vmatprep.mubr.msk.bf16.mxu1 %vm1308_vm2, %v9629_v11 }
 0x5b2   : > { %8120 = vmatmul.mubr.msk.bf16.vlgmr.msra.gmra.mrb[32].mxu1 %vm1308_vm2, %v9637_v59 }
 0x5b3   : > { %8123 = vmatprep.mubr.msk.bf16.mxu1 %vm1308_vm2, %v9645_v27  ;;  %8138 = vmatpush3.bf16.msra.mxu1 %v8821_v22 }
 0x5ba   : > { %8124 = vmatmul.mubr.msk.bf16.gmra.mrb[36].mxu1 %vm1308_vm2, %v9651_v9 }
 0x5bb   : > { %8139 = vmatprep.mubr.msk.bf16.mxu1 %vm1308_vm2, %v9629_v11 }
 0x5c2   : > { %8140 = vmatmul.mubr.msk.bf16.vlgmr.msra.gmra.mrb[40].mxu1 %vm1308_vm2, %v9637_v59 }
 0x5c3   : > { %8143 = vmatprep.mubr.msk.bf16.mxu1 %vm1308_vm2, %v9645_v27 }
 0x5ca   : > { %8144 = vmatmul.mubr.msk.bf16.gmra.mrb[44].mxu1 %vm1308_vm2, %v9651_v9 }
 0x675   : > { %v9756_v28 = vpop.f32.mrb[24].mxu1 }
 0x676   : > { %v9758_v38 = vpop.f32.mrb[25].mxu1 }
 0x677   : > { %v9760_v39 = vpop.f32.mrb[26].mxu1 }
 0x678   : > { %v1944_v5 = vpack.c.bf16 %v9760_v39, %v9756_v28  ;;  %v9764_v40 = vpop.f32.mrb[27].mxu1 }
 0x679   : > { %v1943_v11 = vpack.c.bf16 %v9764_v40, %v9758_v38 }
 0x67d   : > { %v9768_v59 = vpop.f32.mrb[28].mxu1 }
 0x67e   : > { %v9770_v27 = vpop.f32.mrb[29].mxu1 }
 0x67f   : > { %v9772_v42 = vpop.f32.mrb[30].mxu1 }
 0x680   : > { %v1946_v9 = vpack.c.bf16 %v9772_v42, %v9768_v59  ;;  %v9776_v31 = vpop.f32.mrb[31].mxu1 }
 0x681   : > { %v1945_v45 = vpack.c.bf16 %v9776_v31, %v9770_v27 }
 0x685   : > { %v8121_v41 = vpop.f32.mrb[32].mxu1 }
 0x686   : > { %v1987_v46 = vpop.f32.mrb[33].mxu1 }
 0x687   : > { %v8122_v47 = vpop.f32.mrb[34].mxu1 }
 0x688   : > { %v2161_v49 = vpack.c.bf16 %v8122_v47, %v8121_v41  ;;  %v1990_v48 = vpop.f32.mrb[35].mxu1 }
 0x689   : > { %v2160_v52 = vpack.c.bf16 %v1990_v48, %v1987_v46 }
 0x68b   : > { %8155 = vmatprep.mubr.msk.bf16.mxu0 %vm1679_vm3, %v2160_v52 }
 0x68c   : > { %8156 = vmatmul.mubr.msk.bf16.vlgmr.msra.gmra.mrb[24].mxu0 %vm1679_vm3, %v2161_v49  ;;  %v1293_v49 = vld [vmem:[%s10885_s19 + $0x78] sm:$0xff] }
 0x68d   : > { %v8125_v54 = vpop.f32.mrb[36].mxu1 }
 0x68e   : > { %v2003_v53 = vpop.f32.mrb[37].mxu1 }
 0x68f   : > { %v8126_v55 = vpop.f32.mrb[38].mxu1 }
 0x690   : > { %v2163_v56 = vpack.c.bf16 %v8126_v55, %v8125_v54  ;;  %v2006_v57 = vpop.f32.mrb[39].mxu1 }
 0x691   : > { %v2162_v58 = vpack.c.bf16 %v2006_v57, %v2003_v53 }
 0x693   : > { %8159 = vmatprep.mubr.msk.bf16.mxu0 %vm1679_vm3, %v2162_v58 }
 0x694   : > { %8160 = vmatmul.mubr.msk.bf16.gmra.mrb[28].mxu0 %vm1679_vm3, %v2163_v56 }
 0x695   : > { %v8141_v60 = vpop.f32.mrb[40].mxu1 }
 0x696   : > { %v2129_v61 = vpop.f32.mrb[41].mxu1 }
 0x697   : > { %v8142_v62 = vpop.f32.mrb[42].mxu1 }
 0x698   : > { %v2350_v63 = vpack.c.bf16 %v8142_v62, %v8141_v60  ;;  %v2132_v1 = vpop.f32.mrb[43].mxu1 }
 0x699   : > { %v2349_v2 = vpack.c.bf16 %v2132_v1, %v2129_v61 }
 0x69b   : > { %8163 = vmatprep.subr.bf16.mxu1 %v2349_v2 }
 0x69c   : > { %8164 = vmatpush3.bf16.msra.mxu1 %v2349_v2 }
 0x69d   : > { %v8145_v3 = vpop.f32.mrb[44].mxu1  ;;  %8165 = vmatprep.subr.bf16.mxu1 %v2350_v63 }
 0x69e   : > { %v2145_v4 = vpop.f32.mrb[45].mxu1 }
 0x69f   : > { %v8146_v44 = vpop.f32.mrb[46].mxu1 }
 0x6a0   : > { %v2352_v6 = vpack.c.bf16 %v8146_v44, %v8145_v3  ;;  %v2148_v7 = vpop.f32.mrb[47].mxu1  ;;  %8166 = vmatpush3.bf16.msra.mxu1 %v2350_v63 }
 0x6a1   : > { %v2351_v8 = vpack.c.bf16 %v2148_v7, %v2145_v4 }
 0x6a3   : > { %8167 = vmatprep.subr.bf16.mxu1 %v2351_v8 }
 0x6a4   : > { %8168 = vmatpush3.bf16.msra.mxu1 %v2351_v8 }
 0x6a5   : > { %8169 = vmatprep.subr.bf16.mxu1 %v2352_v6 }
 0x6a8   : > { %8170 = vmatpush3.bf16.msra.mxu1 %v2352_v6 }
 0x75f   : > { %v8157_v12 = vpop.f32.mrb[24].mxu0 }
 0x760   : > { %v2226_v51 = vpop.f32.mrb[25].mxu0  ;;  %v2235_v21 = vadd.f32 %v8157_v12, %v1288_v13 }
 0x761   : > { %v2227_v15 = vadd.f32 %v2226_v51, %v1286_v10  ;;  %v8158_v43 = vpop.f32.mrb[26].mxu0 }
 0x762   : > { %v2229_v17 = vpop.f32.mrb[27].mxu0  ;;  %v2238_v26 = vadd.f32 %v8158_v43, %v1289_v50  ;;  %v2263_v35 = vsel %vm1769_vm4, %v2235_v21, -inf }
 0x763   : > { %v2230_v22 = vadd.f32 %v2229_v17, %v1287_v14  ;;  %v2257_v25 = vsel %vm1769_vm4, %v2227_v15, -inf }
 0x764   : > { %2258 = vmax.xlane.f32.xlu0 %v2257_v25  ;;  %v2266_v47 = vsel %vm1769_vm4, %v2238_v26, -inf }
 0x765   : > { %v2260_v0 = vsel %vm1769_vm4, %v2230_v22, -inf }
 0x766   : > { %2261 = vmax.xlane.f32.xlu1 %v2260_v0 }
 0x767   : > { %v8161_v32 = vpop.f32.mrb[28].mxu0 }
 0x768   : > { %2264 = vmax.xlane.f32.xlu0 %v2263_v35  ;;  %v2242_v36 = vpop.f32.mrb[29].mxu0  ;;  %v2251_v52 = vadd.f32 %v8161_v32, %v1292_v24 }
 0x769   : > { %v2243_v41 = vadd.f32 %v2242_v36, %v1290_v19  ;;  %v8162_v46 = vpop.f32.mrb[30].mxu0 }
 0x76a   : > { %2267 = vmax.xlane.f32.xlu1 %v2266_v47  ;;  %v2245_v48 = vpop.f32.mrb[31].mxu0  ;;  %v2254_v55 = vadd.f32 %v8162_v46, %v1293_v49  ;;  %v2275_v57 = vsel %vm1769_vm4, %v2251_v52, -inf }
 0x76b   : > { %v2246_v54 = vadd.f32 %v2245_v48, %v1291_v37  ;;  %v2269_v53 = vsel %vm1769_vm4, %v2243_v41, -inf }
 0x76c   : > { %2270 = vmax.xlane.f32.xlu0 %v2269_v53  ;;  %v2278_v58 = vsel %vm1769_vm4, %v2254_v55, -inf }
 0x76d   : > { %v2272_v56 = vsel %vm1769_vm4, %v2246_v54, -inf }
 0x76e   : > { %2273 = vmax.xlane.f32.xlu1 %v2272_v56 }
 0x770   : > { %2276 = vmax.xlane.f32.xlu0 %v2275_v57 }
 0x772   : > { %2279 = vmax.xlane.f32.xlu1 %v2278_v58 }
 0x7f1   : > { %v2259_v60 = vpop.xlane.xlu0 %2258 }
 0x7f2   : > { %v2281_v61 = vsub.f32 %v2227_v15, %v2259_v60 }
 0x7f3   : > { %v2262_v62 = vpop.xlane.xlu1 %2261 }
 0x7f4   : > { %v2289_v63 = vmul.f32 1.442695, %v2281_v61  ;;  %v2282_v1 = vsub.f32 %v2230_v22, %v2262_v62 }
 0x7f5   : > { %v2265_v2 = vpop.xlane.xlu0 %2264 }
 0x7f6   : > { %8944 = vpow2.f32 %v2289_v63  ;;  %v2291_v3 = vmul.f32 1.442695, %v2282_v1  ;;  %v2283_v4 = vsub.f32 %v2235_v21, %v2265_v2 }
 0x7f7   : > { %v2268_v44 = vpop.xlane.xlu1 %2267 }
 0x7f8   : > { %8946 = vpow2.f32 %v2291_v3  ;;  %v2293_v6 = vmul.f32 1.442695, %v2283_v4  ;;  %v2284_v7 = vsub.f32 %v2238_v26, %v2268_v44 }
 0x7f9   : > { %v2271_v8 = vpop.xlane.xlu0 %2270 }
 0x7fa   : > { %8948 = vpow2.f32 %v2293_v6  ;;  %v2295_v10 = vmul.f32 1.442695, %v2284_v7  ;;  %v2285_v12 = vsub.f32 %v2243_v41, %v2271_v8 }
 0x7fb   : > { %v2274_v13 = vpop.xlane.xlu1 %2273 }
 0x7fc   : > { %8950 = vpow2.f32 %v2295_v10  ;;  %v2297_v51 = vmul.f32 1.442695, %v2285_v12  ;;  %v2286_v14 = vsub.f32 %v2246_v54, %v2274_v13 }
 0x7fd   : > { %v2277_v15 = vpop.xlane.xlu0 %2276 }
 0x7fe   : > { %8952 = vpow2.f32 %v2297_v51  ;;  %v2299_v43 = vmul.f32 1.442695, %v2286_v14  ;;  %v2287_v50 = vsub.f32 %v2251_v52, %v2277_v15 }
 0x7ff   : > { %v2280_v17 = vpop.xlane.xlu1 %2279 }
 0x800   : > { %v8945_v22 = vpop.eup %8944  ;;  %8954 = vpow2.f32 %v2299_v43  ;;  %v2301_v21 = vmul.f32 1.442695, %v2287_v50  ;;  %v2288_v25 = vsub.f32 %v2254_v55, %v2280_v17  ;;  %v1276_v55 = vld [vmem:[%s10888_s8 + $0x4] sm:$0xf] }
 0x801   : > { %v2305_v0 = vsel %vm1769_vm4, %v8945_v22, 0.0  ;;  %8724 = vmatprep.subr.msk.bf16.mxu1 %vm2446_vm5, %v1276_v55  ;;  %v2448_v14 = vsel %vm2446_vm5, %v1276_v55, 0 }
 0x802   : > { %v8947_v26 = vpop.eup %8946  ;;  %8956 = vpow2.f32 %v2301_v21  ;;  %v2303_v19 = vmul.f32 1.442695, %v2288_v25  ;;  %2306 = vadd.xlane.f32.xlu0 %v2305_v0 }
 0x803   : > { %v2308_v32 = vsel %vm1769_vm4, %v8947_v26, 0.0 }
 0x804   : > { %v8949_v35 = vpop.eup %8948  ;;  %8958 = vpow2.f32 %v2303_v19  ;;  %2309 = vadd.xlane.f32.xlu1 %v2308_v32  ;;  %v1275_v19 = vld [vmem:[%s10888_s8] sm:$0xf] }
 0x805   : > { %v2311_v24 = vsel %vm1769_vm4, %v8949_v35, 0.0 }
 0x806   : > { %v8951_v36 = vpop.eup %8950  ;;  %2312 = vadd.xlane.f32.xlu0 %v2311_v24 }
 0x807   : > { %v2314_v37 = vsel %vm1769_vm4, %v8951_v36, 0.0 }
 0x808   : > { %v8953_v41 = vpop.eup %8952  ;;  %2315 = vadd.xlane.f32.xlu1 %v2314_v37 }
 0x809   : > { %v2317_v46 = vsel %vm1769_vm4, %v8953_v41, 0.0 }
 0x80a   : > { %v8955_v47 = vpop.eup %8954  ;;  %2318 = vadd.xlane.f32.xlu0 %v2317_v46  ;;  %v2528_v46 = vsel %vm2446_vm5, %v1275_v19, 0 }
 0x80b   : > { %v2320_v49 = vsel %vm1769_vm4, %v8955_v47, 0.0 }
 0x80c   : > { %v8957_v48 = vpop.eup %8956  ;;  %2321 = vadd.xlane.f32.xlu1 %v2320_v49 }
 0x80d   : > { %v2323_v52 = vsel %vm1769_vm4, %v8957_v48, 0.0 }
 0x80e   : > { %v8959_v54 = vpop.eup %8958  ;;  %2324 = vadd.xlane.f32.xlu0 %v2323_v52 }
 0x80f   : > { %v2326_v53 = vsel %vm1769_vm4, %v8959_v54, 0.0 }
 0x810   : > { %2327 = vadd.xlane.f32.xlu1 %v2326_v53 }
 0x88f   : > { %v2307_v56 = vpop.xlane.xlu0 %2306 }
 0x890   : > { %8960 = vrcp.f32 %v2307_v56  ;;  %v7433_v56 = vld [vmem:[%s10887_s14] ss:$0 sm:$0xff] }
 0x891   : > { %v2310_v57 = vpop.xlane.xlu1 %2309 }
 0x892   : > { %8962 = vrcp.f32 %v2310_v57 }
 0x893   : > { %v2313_v58 = vpop.xlane.xlu0 %2312 }
 0x894   : > { %8964 = vrcp.f32 %v2313_v58 }
 0x895   : > { %v2316_v60 = vpop.xlane.xlu1 %2315 }
 0x896   : > { %8966 = vrcp.f32 %v2316_v60 }
 0x897   : > { %v2319_v61 = vpop.xlane.xlu0 %2318 }
 0x898   : > { %8968 = vrcp.f32 %v2319_v61 }
 0x899   : > { %v2322_v62 = vpop.xlane.xlu1 %2321 }
 0x89a   : > { %v8961_v63 = vpop.eup %8960  ;;  %8970 = vrcp.f32 %v2322_v62 }
 0x89b   : > { %v2325_v1 = vpop.xlane.xlu0 %2324  ;;  %v2337_v4 = vmul.f32 %v8961_v63, %v8945_v22 }
 0x89c   : > { %v8963_v2 = vpop.eup %8962  ;;  %8972 = vrcp.f32 %v2325_v1 }
 0x89d   : > { %v2328_v3 = vpop.xlane.xlu1 %2327  ;;  %v2338_v44 = vmul.f32 %v8963_v2, %v8947_v26 }
 0x89e   : > { %v8965_v6 = vpop.eup %8964  ;;  %8974 = vrcp.f32 %v2328_v3 }
 0x89f   : > { %v2345_v7 = vpack.c.bf16 %v2338_v44, %v2337_v4  ;;  %v2339_v10 = vmul.f32 %v8965_v6, %v8949_v35 }
 0x8a0   : > { %v8967_v8 = vpop.eup %8966 }
 0x8a1   : > { %v2340_v12 = vmul.f32 %v8967_v8, %v8951_v36  ;;  %8171 = vmatprep.mubr.msk.bf16.mxu1 %vm1769_vm4, %v2345_v7 }
 0x8a2   : > { %v8969_v13 = vpop.eup %8968 }
 0x8a3   : > { %v2346_v51 = vpack.c.bf16 %v2340_v12, %v2339_v10  ;;  %v2341_v43 = vmul.f32 %v8969_v13, %v8953_v41 }
 0x8a4   : > { %v8971_v15 = vpop.eup %8970 }
 0x8a5   : > { %8172 = vmatmul.mubr.msk.bf16.vlgmr.msra.gmra.mrb[48].mxu1 %vm1769_vm4, %v2346_v51  ;;  %v2342_v50 = vmul.f32 %v8971_v15, %v8955_v47 }
 0x8a6   : > { %v8973_v17 = vpop.eup %8972  ;;  %8180 = vmatpush3.bf16.msra.mxu1 %v2448_v14 }
 0x8a7   : > { %v2347_v22 = vpack.c.bf16 %v2342_v50, %v2341_v43  ;;  %v2343_v25 = vmul.f32 %v8973_v17, %v8957_v48  ;;  %8725 = vmatprep.subr.msk.bf16.mxu1 %vm2446_vm5, %v1275_v19 }
 0x8a8   : > { %v8975_v21 = vpop.eup %8974 }
 0x8a9   : > { %8175 = vmatprep.mubr.msk.bf16.mxu1 %vm1769_vm4, %v2347_v22  ;;  %v2344_v0 = vmul.f32 %v8975_v21, %v8959_v54 }
 0x8ab   : > { %v2348_v26 = vpack.c.bf16 %v2344_v0, %v2343_v25 }
 0x8ad   : > { %8176 = vmatmul.mubr.msk.bf16.gmra.mrb[52].mxu1 %vm1769_vm4, %v2348_v26 }
 0x978   : > { %v8173_v32 = vpop.f32.mrb[48].mxu1 }
 0x979   : > { %v2399_v35 = vpop.f32.mrb[49].mxu1 }
 0x97a   : > { %v8174_v24 = vpop.f32.mrb[50].mxu1 }
 0x97b   : > { %v2431_v36 = vpack.c.bf16 %v8174_v24, %v8173_v32  ;;  %v2402_v37 = vpop.f32.mrb[51].mxu1 }
 0x97c   : > { %v2430_v41 = vpack.c.bf16 %v2402_v37, %v2399_v35 }
 0x97e   : > { %8181 = vmatprep.mubr.msk.bf16.mxu1 %vm1679_vm3, %v2430_v41 }
 0x97f   : > { %8182 = vmatmul.mubr.msk.bf16.vlgmr.msra.gmra.mrb[56].mxu1 %vm1679_vm3, %v2431_v36 }
 0x980   : > { %v8177_v47 = vpop.f32.mrb[52].mxu1  ;;  %8190 = vmatpush3.bf16.msra.mxu1 %v2528_v46 }
 0x981   : > { %v2415_v49 = vpop.f32.mrb[53].mxu1 }
 0x982   : > { %v8178_v48 = vpop.f32.mrb[54].mxu1 }
 0x983   : > { %v2433_v52 = vpack.c.bf16 %v8178_v48, %v8177_v47  ;;  %v2418_v54 = vpop.f32.mrb[55].mxu1 }
 0x984   : > { %v2432_v53 = vpack.c.bf16 %v2418_v54, %v2415_v49 }
 0x986   : > { %8185 = vmatprep.mubr.msk.bf16.mxu1 %vm1679_vm3, %v2432_v53 }
 0x987   : > { %8186 = vmatmul.mubr.msk.bf16.gmra.mrb[60].mxu1 %vm1679_vm3, %v2433_v52 }
 0x988   : > { %8191 = vmatprep.mubr.msk.bf16.mxu1 %vm1679_vm3, %v1943_v11 }
 0x98f   : > { %8192 = vmatmul.mubr.msk.bf16.vlgmr.msra.gmra.mrb[56].mxu1 %vm1679_vm3, %v1944_v5 }
 0x990   : > { %8195 = vmatprep.mubr.msk.bf16.mxu1 %vm1679_vm3, %v1945_v45 }
 0x997   : > { %8196 = vmatmul.mubr.msk.bf16.gmra.mrb[60].mxu1 %vm1679_vm3, %v1946_v9 }
 0xa62   : > { %v8193_v55 = vpop.f32.mrb[56].mxu1 }
 0xa63   : > { %v2564_v38 = vpop.f32.mrb[57].mxu1  ;;  %v2597_v40 = vadd.f32 %v8193_v55, %v9536_v16 }
 0xa64   : > { %v2595_v11 = vadd.f32 %v2564_v38, %v9538_v18  ;;  %v8194_v28 = vpop.f32.mrb[58].mxu1 }
 0xa65   : > { %v2567_v39 = vpop.f32.mrb[59].mxu1  ;;  %v2598_v27 = vadd.f32 %v8194_v28, %v9540_v20  ;;  %v9845_v45 = vadd.f32 %v7433_v56, %v2597_v40 }
 0xa66   : > { %v9841_v5 = vadd.f32 %v7433_v56, %v2595_v11  ;;  %v2596_v31 = vadd.f32 %v2567_v39, %v9544_v23 }
 0xa67   : > { %v9851_v9 = vadd.f32 %v7433_v56, %v2598_v27  ;;  %v2623_v60 = vsel %vm1308_vm2, %v9845_v45, 0.0 }
 0xa68   : > { %v9847_v59 = vadd.f32 %v7433_v56, %v2596_v31  ;;  %v2617_v42 = vsel %vm1308_vm2, %v9841_v5, 0.0 }
 0xa69   : > { %2618 = vadd.xlane.f32.xlu0 %v2617_v42  ;;  %v2626_v2 = vsel %vm1308_vm2, %v9851_v9, 0.0  ;;  %v8822_v42 = vld [vmem:[%s10889_s6] sm:$0xff]  }
 0xa6a   : > { %v8197_v16 = vpop.f32.mrb[60].mxu1  ;;  %v2620_v18 = vsel %vm1308_vm2, %v9847_v59, 0.0  ;;  %8199 = vmatprep.subr.bf16.mxu0 %v8822_v42 }
 0xa6b   : > { %2621 = vadd.xlane.f32.xlu1 %v2620_v18  ;;  %v2580_v57 = vpop.f32.mrb[61].mxu1  ;;  %v2601_v20 = vadd.f32 %v8197_v16, %v9552_v29  ;;  %8200 = vmatpush3.bf16.msra.mxu0 %v8822_v42 }
 0xa6c   : > { %v2599_v23 = vadd.f32 %v2580_v57, %v9554_v30  ;;  %v8198_v58 = vpop.f32.mrb[62].mxu1 }
 0xa6d   : > { %2624 = vadd.xlane.f32.xlu0 %v2623_v60  ;;  %v2583_v61 = vpop.f32.mrb[63].mxu1  ;;  %v2602_v63 = vadd.f32 %v8198_v58, %v9556_v33  ;;  %v9865_v3 = vadd.f32 %v7433_v56, %v2601_v20 }
 0xa6e   : > { %v9859_v62 = vadd.f32 %v7433_v56, %v2599_v23  ;;  %v2600_v1 = vadd.f32 %v2583_v61, %v9558_v34 }
 0xa6f   : > { %2627 = vadd.xlane.f32.xlu1 %v2626_v2  ;;  %v9871_v4 = vadd.f32 %v7433_v56, %v2602_v63  ;;  %v2635_v33 = vsel %vm1308_vm2, %v9865_v3, 0.0 }
 0xa70   : > { %v9867_v29 = vadd.f32 %v7433_v56, %v2600_v1  ;;  %v2629_v30 = vsel %vm1308_vm2, %v9859_v62, 0.0 }
 0xa71   : > { %2630 = vadd.xlane.f32.xlu0 %v2629_v30  ;;  %v2638_v34 = vsel %vm1308_vm2, %v9871_v4, 0.0 }
 0xa72   : > { %v2632_v44 = vsel %vm1308_vm2, %v9867_v29, 0.0 }
 0xa73   : > { %2633 = vadd.xlane.f32.xlu1 %v2632_v44 }
 0xa75   : > { %2636 = vadd.xlane.f32.xlu0 %v2635_v33 }
 0xa77   : > { %2639 = vadd.xlane.f32.xlu1 %v2638_v34 }
 0xaf6   : > { %v2619_v6 = vpop.xlane.xlu0 %2618 }
 0xaf7   : > { %v2641_v7 = vmul.f32 0.0625, %v2619_v6 }
 0xaf8   : > { %v2622_v8 = vpop.xlane.xlu1 %2621 }
 0xaf9   : > { %v9880_v10 = vsub.f32 %v9841_v5, %v2641_v7  ;;  %v2642_v12 = vmul.f32 0.0625, %v2622_v8 }
 0xafa   : > { %v2625_v13 = vpop.xlane.xlu0 %2624 }
 0xafb   : > { %v9883_v51 = vsub.f32 %v9847_v59, %v2642_v12  ;;  %v2643_v14 = vmul.f32 0.0625, %v2625_v13  ;;  %v2657_v15 = vmul.f32 %v9880_v10, %v9880_v10 }
 0xafc   : > { %v2628_v43 = vpop.xlane.xlu1 %2627 }
 0xafd   : > { %v9888_v50 = vsub.f32 %v9845_v45, %v2643_v14  ;;  %v2644_v17 = vmul.f32 0.0625, %v2628_v43  ;;  %v2665_v22 = vsel %vm1308_vm2, %v2657_v15, 0.0  ;;  %v2658_v21 = vmul.f32 %v9883_v51, %v9883_v51  ;;  %v7434_v43 = vld [vmem:[%s10883_s24] ss:$0 sm:$0xff] }
 0xafe   : > { %2666 = vadd.xlane.f32.xlu0 %v2665_v22  ;;  %v2631_v25 = vpop.xlane.xlu0 %2630 }
 0xaff   : > { %v9894_v0 = vsub.f32 %v9851_v9, %v2644_v17  ;;  %v2645_v26 = vmul.f32 0.0625, %v2631_v25  ;;  %v2668_v19 = vsel %vm1308_vm2, %v2658_v21, 0.0  ;;  %v2659_v32 = vmul.f32 %v9888_v50, %v9888_v50 }
 0xb00   : > { %2669 = vadd.xlane.f32.xlu1 %v2668_v19  ;;  %v2634_v35 = vpop.xlane.xlu1 %2633 }
 0xb01   : > { %v9900_v24 = vsub.f32 %v9859_v62, %v2645_v26  ;;  %v2646_v36 = vmul.f32 0.0625, %v2634_v35  ;;  %v2671_v37 = vsel %vm1308_vm2, %v2659_v32, 0.0  ;;  %v2660_v41 = vmul.f32 %v9894_v0, %v9894_v0 }
 0xb02   : > { %2672 = vadd.xlane.f32.xlu0 %v2671_v37  ;;  %v2637_v46 = vpop.xlane.xlu0 %2636 }
 0xb03   : > { %v9906_v47 = vsub.f32 %v9867_v29, %v2646_v36  ;;  %v2647_v49 = vmul.f32 0.0625, %v2637_v46  ;;  %v2674_v48 = vsel %vm1308_vm2, %v2660_v41, 0.0  ;;  %v2661_v52 = vmul.f32 %v9900_v24, %v9900_v24  ;;  %v7435_v36 = vld [vmem:[%s9351_s30] ss:$0 sm:$0xff] }
 0xb04   : > { %2675 = vadd.xlane.f32.xlu1 %v2674_v48  ;;  %v2640_v54 = vpop.xlane.xlu1 %2639 }
 0xb05   : > { %v9912_v53 = vsub.f32 %v9865_v3, %v2647_v49  ;;  %v2648_v55 = vmul.f32 0.0625, %v2640_v54  ;;  %v2677_v56 = vsel %vm1308_vm2, %v2661_v52, 0.0  ;;  %v2662_v38 = vmul.f32 %v9906_v47, %v9906_v47 }
 0xb06   : > { %2678 = vadd.xlane.f32.xlu0 %v2677_v56 }
 0xb07   : > { %v9918_v40 = vsub.f32 %v9871_v4, %v2648_v55  ;;  %v2680_v11 = vsel %vm1308_vm2, %v2662_v38, 0.0  ;;  %v2663_v28 = vmul.f32 %v9912_v53, %v9912_v53 }
 0xb08   : > { %2681 = vadd.xlane.f32.xlu1 %v2680_v11 }
 0xb09   : > { %v2683_v39 = vsel %vm1308_vm2, %v2663_v28, 0.0  ;;  %v2664_v27 = vmul.f32 %v9918_v40, %v9918_v40 }
 0xb0a   : > { %2684 = vadd.xlane.f32.xlu0 %v2683_v39 }
 0xb0b   : > { %v2686_v31 = vsel %vm1308_vm2, %v2664_v27, 0.0 }
 0xb0c   : > { %2687 = vadd.xlane.f32.xlu1 %v2686_v31 }
 0xb8b   : > { %v2667_v16 = vpop.xlane.xlu0 %2666 }
 0xb8c   : > { %v2689_v18 = vmul.f32 0.0625, %v2667_v16 }
 0xb8d   : > { %v2670_v57 = vpop.xlane.xlu1 %2669 }
 0xb8e   : > { %v2697_v20 = vadd.f32 1e-05, %v2689_v18  ;;  %v2690_v23 = vmul.f32 0.0625, %v2670_v57 }
 0xb8f   : > { %v2673_v58 = vpop.xlane.xlu0 %2672 }
 0xb90   : > { %8976 = vrsqrt.f32 %v2697_v20  ;;  %v2698_v60 = vadd.f32 1e-05, %v2690_v23  ;;  %v2691_v61 = vmul.f32 0.0625, %v2673_v58 }
 0xb91   : > { %v2676_v63 = vpop.xlane.xlu1 %2675 }
 0xb92   : > { %8978 = vrsqrt.f32 %v2698_v60  ;;  %v2699_v1 = vadd.f32 1e-05, %v2691_v61  ;;  %v2692_v2 = vmul.f32 0.0625, %v2676_v63  ;;  %v8824_v63 = vld [vmem:[%s10896_s1 + $0x8] sm:$0xff]  }
 0xb93   : > { %v2679_v30 = vpop.xlane.xlu0 %2678 }
 0xb94   : > { %8980 = vrsqrt.f32 %v2699_v1  ;;  %v2700_v44 = vadd.f32 1e-05, %v2692_v2  ;;  %v2693_v33 = vmul.f32 0.0625, %v2679_v30  ;;  %v8825_v1 = vld [vmem:[%s10896_s1 + $0x10] sm:$0xff]   ;;  %v7436_v2 = vld [vmem:[%s10897_s11] ss:$0 sm:$0xff] }
 0xb95   : > { %v2682_v34 = vpop.xlane.xlu1 %2681 }
 0xb96   : > { %8982 = vrsqrt.f32 %v2700_v44  ;;  %v2701_v6 = vadd.f32 1e-05, %v2693_v33  ;;  %v2694_v7 = vmul.f32 0.0625, %v2682_v34 }
 0xb97   : > { %v2685_v8 = vpop.xlane.xlu0 %2684 }
 0xb98   : > { %8984 = vrsqrt.f32 %v2701_v6  ;;  %v2702_v12 = vadd.f32 1e-05, %v2694_v7  ;;  %v2695_v13 = vmul.f32 0.0625, %v2685_v8 }
 0xb99   : > { %v2688_v14 = vpop.xlane.xlu1 %2687 }
 0xb9a   : > { %v8977_v15 = vpop.eup %8976  ;;  %8986 = vrsqrt.f32 %v2702_v12  ;;  %v2703_v17 = vadd.f32 1e-05, %v2695_v13  ;;  %v2696_v22 = vmul.f32 0.0625, %v2688_v14 }
 0xb9b   : > { %v2713_v21 = vmul.f32 %v8977_v15, %v9880_v10 }
 0xb9c   : > { %v8979_v25 = vpop.eup %8978  ;;  %8988 = vrsqrt.f32 %v2703_v17  ;;  %v2704_v26 = vadd.f32 1e-05, %v2696_v22 }
 0xb9d   : > { %v2714_v19 = vmul.f32 %v8979_v25, %v9883_v51  ;;  %v2727_v32 = vmul.f32 %v7434_v43, %v2713_v21 }
 0xb9e   : > { %v8981_v35 = vpop.eup %8980  ;;  %8990 = vrsqrt.f32 %v2704_v26 }
 0xb9f   : > { %v2715_v37 = vmul.f32 %v8981_v35, %v9888_v50  ;;  %v2728_v41 = vmul.f32 %v7434_v43, %v2714_v19  ;;  %v2741_v52 = vadd.f32 %v7435_v36, %v2727_v32 }
 0xba0   : > { %v8983_v46 = vpop.eup %8982 }
 0xba1   : > { %v2729_v49 = vmul.f32 %v7434_v43, %v2715_v37  ;;  %v2716_v48 = vmul.f32 %v8983_v46, %v9894_v0  ;;  %v2742_v54 = vadd.f32 %v7435_v36, %v2728_v41 }
 0xba2   : > { %v8985_v55 = vpop.eup %8984 }
 0xba3   : > { %v2730_v10 = vmul.f32 %v7434_v43, %v2716_v48  ;;  %v2749_v56 = vpack.c.bf16 %v2742_v54, %v2741_v52  ;;  %v2717_v38 = vmul.f32 %v8985_v55, %v9900_v24  ;;  %v2743_v51 = vadd.f32 %v7435_v36, %v2729_v49 }
 0xba4   : > { %v8987_v11 = vpop.eup %8986 }
 0xba5   : > { %v2744_v28 = vadd.f32 %v7435_v36, %v2730_v10  ;;  %8201 = vmatprep.mubr.msk.bf16.mxu0 %vm1308_vm2, %v2749_v56  ;;  %v2718_v39 = vmul.f32 %v8987_v11, %v9906_v47  ;;  %v2731_v50 = vmul.f32 %v7434_v43, %v2717_v38 }
 0xba6   : > { %v8989_v27 = vpop.eup %8988 }
 0xba7   : > { %v2750_v31 = vpack.c.bf16 %v2744_v28, %v2743_v51  ;;  %v2732_v42 = vmul.f32 %v7434_v43, %v2718_v39  ;;  %v2719_v0 = vmul.f32 %v8989_v27, %v9912_v53  ;;  %v2745_v18 = vadd.f32 %v7435_v36, %v2731_v50  ;;  %v8823_v53 = vld [vmem:[%s10896_s1] sm:$0xff]  }
 0xba8   : > { %v8991_v16 = vpop.eup %8990  ;;  %8209 = vmatprep.subr.bf16.mxu0 %v8823_v53 }
 0xba9   : > { %8202 = vmatmul.mubr.msk.bf16.vlgmr.msra.gmra.mrb[32].mxu0 %vm1308_vm2, %v2750_v31  ;;  %v2746_v24 = vadd.f32 %v7435_v36, %v2732_v42  ;;  %v2720_v57 = vmul.f32 %v8991_v16, %v9918_v40  ;;  %v2733_v20 = vmul.f32 %v7434_v43, %v2719_v0  ;;  %v8826_v40 = vld [vmem:[%s10896_s1 + $0x18] sm:$0xff]  }
 0xbaa   : > { %8210 = vmatpush3.bf16.msra.mxu0 %v8823_v53 }
 0xbab   : > { %v2751_v23 = vpack.c.bf16 %v2746_v24, %v2745_v18  ;;  %v2734_v47 = vmul.f32 %v7434_v43, %v2720_v57  ;;  %v2747_v58 = vadd.f32 %v7435_v36, %v2733_v20  ;;  %8211 = vmatprep.subr.bf16.mxu0 %v8824_v63 }
 0xbad   : > { %8205 = vmatprep.mubr.msk.bf16.mxu0 %vm1308_vm2, %v2751_v23  ;;  %v2748_v60 = vadd.f32 %v7435_v36, %v2734_v47 }
 0xbae   : > { %8212 = vmatpush3.bf16.msra.mxu0 %v8824_v63 }
 0xbaf   : > { %v2752_v61 = vpack.c.bf16 %v2748_v60, %v2747_v58  ;;  %8213 = vmatprep.subr.bf16.mxu0 %v8825_v1 }
 0xbb1   : > { %8206 = vmatmul.mubr.msk.bf16.gmra.mrb[36].mxu0 %vm1308_vm2, %v2752_v61 }
 0xbb2   : > { %8214 = vmatpush3.bf16.msra.mxu0 %v8825_v1 }
 0xbb3   : > { %8215 = vmatprep.subr.bf16.mxu0 %v8826_v40 }
 0xbb6   : > { %8216 = vmatpush3.bf16.msra.mxu0 %v8826_v40 }
 0xc7c   : > { %v8203_v30 = vpop.f32.mrb[32].mxu0 }
 0xc7d   : > { %v2820_v44 = vadd.f32 %v8203_v30, %v7436_v2  ;;  %v2811_v33 = vpop.f32.mrb[33].mxu0 }
 0xc7e   : > { %v2812_v34 = vadd.f32 %v7436_v2, %v2811_v33  ;;  %v8204_v6 = vpop.f32.mrb[34].mxu0 }
 0xc7f   : > { %v2852_v7 = vmul.f32 0.70710677, %v2820_v44  ;;  %v2823_v8 = vadd.f32 %v8204_v6, %v7436_v2  ;;  %v2814_v12 = vpop.f32.mrb[35].mxu0  ;;  %v2844_v56 = vmul.f32 0.5, %v2820_v44  ;;  %v7442_v6 = vld [vmem:[%s10898_s23] ss:$0 sm:$0xff] }
 0xc80   : > { %v2850_v13 = vmul.f32 0.70710677, %v2812_v34  ;;  %v2815_v14 = vadd.f32 %v7436_v2, %v2814_v12  ;;  %v2842_v51 = vmul.f32 0.5, %v2812_v34 }
 0xc81   : > { %8992 = verf.f32 %v2852_v7  ;;  %v2853_v15 = vmul.f32 0.70710677, %v2823_v8  ;;  %v2845_v38 = vmul.f32 0.5, %v2823_v8 }
 0xc82   : > { %8994 = verf.f32 %v2850_v13  ;;  %v2851_v43 = vmul.f32 0.70710677, %v2815_v14  ;;  %v2843_v28 = vmul.f32 0.5, %v2815_v14 }
 0xc83   : > { %8996 = verf.f32 %v2853_v15 }
 0xc84   : > { %8998 = verf.f32 %v2851_v43  ;;  %v8207_v17 = vpop.f32.mrb[36].mxu0 }
 0xc85   : > { %v2836_v22 = vadd.f32 %v8207_v17, %v7436_v2  ;;  %v2827_v21 = vpop.f32.mrb[37].mxu0 }
 0xc86   : > { %v2828_v25 = vadd.f32 %v7436_v2, %v2827_v21  ;;  %v8208_v26 = vpop.f32.mrb[38].mxu0 }
 0xc87   : > { %v2856_v19 = vmul.f32 0.70710677, %v2836_v22  ;;  %v2839_v32 = vadd.f32 %v8208_v26, %v7436_v2  ;;  %v2830_v35 = vpop.f32.mrb[39].mxu0  ;;  %v2848_v58 = vmul.f32 0.5, %v2836_v22 }
 0xc88   : > { %v2854_v36 = vmul.f32 0.70710677, %v2828_v25  ;;  %v2831_v37 = vadd.f32 %v7436_v2, %v2830_v35  ;;  %v2846_v53 = vmul.f32 0.5, %v2828_v25 }
 0xc89   : > { %9000 = verf.f32 %v2856_v19  ;;  %v2857_v41 = vmul.f32 0.70710677, %v2839_v32  ;;  %v2849_v60 = vmul.f32 0.5, %v2839_v32 }
 0xc8a   : > { %9002 = verf.f32 %v2854_v36  ;;  %v2855_v46 = vmul.f32 0.70710677, %v2831_v37  ;;  %v2847_v63 = vmul.f32 0.5, %v2831_v37 }
 0xc8b   : > { %v8993_v49 = vpop.eup %8992  ;;  %9004 = verf.f32 %v2857_v41 }
 0xc8c   : > { %v8995_v48 = vpop.eup %8994  ;;  %v2868_v52 = vadd.f32 1.0, %v8993_v49  ;;  %9006 = verf.f32 %v2855_v46 }
 0xc8d   : > { %v8997_v54 = vpop.eup %8996  ;;  %v2866_v55 = vadd.f32 1.0, %v8995_v48 }
 0xc8e   : > { %v8999_v10 = vpop.eup %8998  ;;  %v2869_v11 = vadd.f32 1.0, %v8997_v54  ;;  %v2876_v50 = vmul.f32 %v2868_v52, %v2844_v56 }
 0xc8f   : > { %v2867_v39 = vadd.f32 1.0, %v8999_v10  ;;  %v2874_v31 = vmul.f32 %v2866_v55, %v2842_v51 }
 0xc90   : > { %v2877_v27 = vmul.f32 %v2869_v11, %v2845_v38 }
 0xc91   : > { %v2875_v42 = vmul.f32 %v2867_v39, %v2843_v28 }
 0xc92   : > { %v2883_v0 = vpack.c.bf16 %v2877_v27, %v2876_v50 }
 0xc93   : > { %v9001_v16 = vpop.eup %9000  ;;  %v2882_v18 = vpack.c.bf16 %v2875_v42, %v2874_v31 }
 0xc94   : > { %v9003_v24 = vpop.eup %9002  ;;  %v2872_v57 = vadd.f32 1.0, %v9001_v16 }
 0xc95   : > { %v9005_v20 = vpop.eup %9004  ;;  %v2870_v23 = vadd.f32 1.0, %v9003_v24  ;;  %8217 = vmatprep.mubr.msk.bf16.mxu0 %vm1769_vm4, %v2882_v18 }
 0xc96   : > { %v9007_v47 = vpop.eup %9006  ;;  %v2873_v61 = vadd.f32 1.0, %v9005_v20  ;;  %8218 = vmatmul.mubr.msk.bf16.vlgmr.msra.gmra.mrb[40].mxu0 %vm1769_vm4, %v2883_v0  ;;  %v2880_v40 = vmul.f32 %v2872_v57, %v2848_v58 }
 0xc97   : > { %v2871_v1 = vadd.f32 1.0, %v9007_v47  ;;  %v2878_v30 = vmul.f32 %v2870_v23, %v2846_v53 }
 0xc98   : > { %v2881_v2 = vmul.f32 %v2873_v61, %v2849_v60 }
 0xc99   : > { %v2879_v44 = vmul.f32 %v2871_v1, %v2847_v63 }
 0xc9a   : > { %v2885_v33 = vpack.c.bf16 %v2881_v2, %v2880_v40 }
 0xc9b   : > { %v2884_v34 = vpack.c.bf16 %v2879_v44, %v2878_v30 }
 0xc9d   : > { %8221 = vmatprep.mubr.msk.bf16.mxu0 %vm1769_vm4, %v2884_v34 }
 0xc9e   : > { %8222 = vmatmul.mubr.msk.bf16.gmra.mrb[44].mxu0 %vm1769_vm4, %v2885_v33 }
 0xd69   : > { %v8219_v7 = vpop.f32.mrb[40].mxu0 }
 0xd6a   : > { %v2962_v8 = vpop.f32.mrb[41].mxu0  ;;  %v2971_v12 = vadd.f32 %v8219_v7, %v7442_v6 }
 0xd6b   : > { %v2963_v13 = vadd.f32 %v7442_v6, %v2962_v8  ;;  %v8220_v14 = vpop.f32.mrb[42].mxu0 }
 0xd6c   : > { %v2965_v15 = vpop.f32.mrb[43].mxu0  ;;  %v2974_v17 = vadd.f32 %v8220_v14, %v7442_v6  ;;  %v9956_v21 = vadd.f32 %v2971_v12, %v9845_v45 }
 0xd6d   : > { %v9953_v43 = vadd.f32 %v2963_v13, %v9841_v5  ;;  %v2966_v22 = vadd.f32 %v7442_v6, %v2965_v15 }
 0xd6e   : > { %v9964_v19 = vadd.f32 %v2974_v17, %v9851_v9 }
 0xd6f   : > { %v9959_v25 = vadd.f32 %v2966_v22, %v9847_v59  ;;  %v3062_v26 = vsel %vm1308_vm2, %v9953_v43, 0.0  ;;  %v3068_v59 = vsel %vm1308_vm2, %v9956_v21, 0.0 }
 0xd70   : > { %3063 = vadd.xlane.f32.xlu0 %v3062_v26  ;;  %v3071_v48 = vsel %vm1308_vm2, %v9964_v19, 0.0  ;;  %v8827_v26 = vld [vmem:[%s9321_s29 + $0x10] sm:$0xff]  }
 0xd71   : > { %v8223_v32 = vpop.f32.mrb[44].mxu0  ;;  %v3065_v5 = vsel %vm1308_vm2, %v9959_v25, 0.0  ;;  %8235 = vmatprep.subr.bf16.mxu0 %v8827_v26 }
 0xd72   : > { %3066 = vadd.xlane.f32.xlu1 %v3065_v5  ;;  %v2978_v35 = vpop.f32.mrb[45].mxu0  ;;  %v2987_v36 = vadd.f32 %v8223_v32, %v7442_v6  ;;  %v8828_v32 = vld [vmem:[%s9316_s25 + $0x10] sm:$0xff]   ;;  %8236 = vmatpush3.bf16.msra.mxu0 %v8827_v26 }
 0xd73   : > { %v2979_v37 = vadd.f32 %v7442_v6, %v2978_v35  ;;  %v8224_v45 = vpop.f32.mrb[46].mxu0  ;;  %8225 = vmatprep.subr.bf16.mxu1 %v8828_v32  ;;  %v10043_v5 = vld [vmem:[%s10890_s3 + $0x10] sm:$0xff]  }
 0xd74   : > { %3069 = vadd.xlane.f32.xlu0 %v3068_v59  ;;  %v2981_v41 = vpop.f32.mrb[47].mxu0  ;;  %v2990_v49 = vadd.f32 %v8224_v45, %v7442_v6  ;;  %v9976_v52 = vadd.f32 %v2987_v36, %v9865_v3  ;;  %8226 = vmatpush3.bf16.msra.mxu1 %v8828_v32 }
 0xd75   : > { %v9971_v46 = vadd.f32 %v2979_v37, %v9859_v62  ;;  %v2982_v9 = vadd.f32 %v7442_v6, %v2981_v41  ;;  %8245 = vmatprep.subr.bf16.mxu1 %v10043_v5 }
 0xd76   : > { %3072 = vadd.xlane.f32.xlu1 %v3071_v48  ;;  %v9984_v10 = vadd.f32 %v2990_v49, %v9871_v4  ;;  %v3080_v56 = vsel %vm1308_vm2, %v9976_v52, 0.0 }
 0xd77   : > { %v9979_v54 = vadd.f32 %v2982_v9, %v9867_v29  ;;  %v3074_v55 = vsel %vm1308_vm2, %v9971_v46, 0.0 }
 0xd78   : > { %3075 = vadd.xlane.f32.xlu0 %v3074_v55  ;;  %v3083_v3 = vsel %vm1308_vm2, %v9984_v10, 0.0 }
 0xd79   : > { %v3077_v62 = vsel %vm1308_vm2, %v9979_v54, 0.0 }
 0xd7a   : > { %3078 = vadd.xlane.f32.xlu1 %v3077_v62 }
 0xd7c   : > { %3081 = vadd.xlane.f32.xlu0 %v3080_v56 }
 0xd7e   : > { %3084 = vadd.xlane.f32.xlu1 %v3083_v3 }
 0xdfd   : > { %v3064_v29 = vpop.xlane.xlu0 %3063 }
 0xdfe   : > { %v3086_v38 = vmul.f32 0.0625, %v3064_v29 }
 0xdff   : > { %v3067_v11 = vpop.xlane.xlu1 %3066 }
 0xe00   : > { %v9993_v51 = vsub.f32 %v9953_v43, %v3086_v38  ;;  %v3087_v4 = vmul.f32 0.0625, %v3067_v11 }
 0xe01   : > { %v3070_v28 = vpop.xlane.xlu0 %3069 }
 0xe02   : > { %v9996_v39 = vsub.f32 %v9959_v25, %v3087_v4  ;;  %v3088_v50 = vmul.f32 0.0625, %v3070_v28  ;;  %v3102_v27 = vmul.f32 %v9993_v51, %v9993_v51 }
 0xe03   : > { %v3073_v31 = vpop.xlane.xlu1 %3072 }
 0xe04   : > { %v10001_v42 = vsub.f32 %v9956_v21, %v3088_v50  ;;  %v3089_v0 = vmul.f32 0.0625, %v3073_v31  ;;  %v3110_v16 = vsel %vm1308_vm2, %v3102_v27, 0.0  ;;  %v3103_v18 = vmul.f32 %v9996_v39, %v9996_v39 }
 0xe05   : > { %3111 = vadd.xlane.f32.xlu0 %v3110_v16  ;;  %v3076_v24 = vpop.xlane.xlu0 %3075  ;;  %v7498_v16 = vld [vmem:[%s10886_s17 + $0x1] ss:$0 sm:$0xff]  ;;  %s10911_s17 = sld [smem:[#allocation34_spill]] }
 0xe06   : > { %v10007_v57 = vsub.f32 %v9964_v19, %v3089_v0  ;;  %v3090_v20 = vmul.f32 0.0625, %v3076_v24  ;;  %v3113_v23 = vsel %vm1308_vm2, %v3103_v18, 0.0  ;;  %v3104_v47 = vmul.f32 %v10001_v42, %v10001_v42 }
 0xe07   : > { %3114 = vadd.xlane.f32.xlu1 %v3113_v23  ;;  %v3079_v58 = vpop.xlane.xlu1 %3078 }
 0xe08   : > { %v10013_v60 = vsub.f32 %v9971_v46, %v3090_v20  ;;  %v3091_v61 = vmul.f32 0.0625, %v3079_v58  ;;  %v3116_v53 = vsel %vm1308_vm2, %v3104_v47, 0.0  ;;  %v3105_v63 = vmul.f32 %v10007_v57, %v10007_v57 }
 0xe09   : > { %3117 = vadd.xlane.f32.xlu0 %v3116_v53  ;;  %v3082_v1 = vpop.xlane.xlu0 %3081 }
 0xe0a   : > { %v10019_v40 = vsub.f32 %v9979_v54, %v3091_v61  ;;  %v3092_v2 = vmul.f32 0.0625, %v3082_v1  ;;  %v3119_v30 = vsel %vm1308_vm2, %v3105_v63, 0.0  ;;  %v3106_v44 = vmul.f32 %v10013_v60, %v10013_v60  ;;  %v7499_v63 = vld [vmem:[%s10884_s21 + $0x1] ss:$0 sm:$0xff]  ;;  %s10913_s21 = sld [smem:[#allocation31_spill]] }
 0xe0b   : > { %3120 = vadd.xlane.f32.xlu1 %v3119_v30  ;;  %v3085_v33 = vpop.xlane.xlu1 %3084 }
 0xe0c   : > { %v10025_v34 = vsub.f32 %v9976_v52, %v3092_v2  ;;  %v3093_v6 = vmul.f32 0.0625, %v3085_v33  ;;  %v3122_v7 = vsel %vm1308_vm2, %v3106_v44, 0.0  ;;  %v3107_v8 = vmul.f32 %v10019_v40, %v10019_v40 }
 0xe0d   : > { %3123 = vadd.xlane.f32.xlu0 %v3122_v7 }
 0xe0e   : > { %v10031_v12 = vsub.f32 %v9984_v10, %v3093_v6  ;;  %v3125_v13 = vsel %vm1308_vm2, %v3107_v8, 0.0  ;;  %v3108_v14 = vmul.f32 %v10025_v34, %v10025_v34 }
 0xe0f   : > { %3126 = vadd.xlane.f32.xlu1 %v3125_v13 }
 0xe10   : > { %v3128_v15 = vsel %vm1308_vm2, %v3108_v14, 0.0  ;;  %v3109_v17 = vmul.f32 %v10031_v12, %v10031_v12 }
 0xe11   : > { %3129 = vadd.xlane.f32.xlu0 %v3128_v15 }
 0xe12   : > { %v3131_v22 = vsel %vm1308_vm2, %v3109_v17, 0.0 }
 0xe13   : > { %3132 = vadd.xlane.f32.xlu1 %v3131_v22 }
 0xe92   : > { %v3112_v35 = vpop.xlane.xlu0 %3111 }
 0xe93   : > { %v3134_v36 = vmul.f32 0.0625, %v3112_v35 }
 0xe94   : > { %v3115_v37 = vpop.xlane.xlu1 %3114 }
 0xe95   : > { %v3142_v45 = vadd.f32 1e-05, %v3134_v36  ;;  %v3135_v59 = vmul.f32 0.0625, %v3115_v37 }
 0xe96   : > { %v3118_v41 = vpop.xlane.xlu0 %3117 }
 0xe97   : > { %9008 = vrsqrt.f32 %v3142_v45  ;;  %v3143_v49 = vadd.f32 1e-05, %v3135_v59  ;;  %v3136_v9 = vmul.f32 0.0625, %v3118_v41 }
 0xe98   : > { %v3121_v48 = vpop.xlane.xlu1 %3120 }
 0xe99   : > { %9010 = vrsqrt.f32 %v3143_v49  ;;  %v3144_v55 = vadd.f32 1e-05, %v3136_v9  ;;  %v3137_v62 = vmul.f32 0.0625, %v3121_v48 }
 0xe9a   : > { %v3124_v56 = vpop.xlane.xlu0 %3123 }
 0xe9b   : > { %9012 = vrsqrt.f32 %v3144_v55  ;;  %v3145_v3 = vadd.f32 1e-05, %v3137_v62  ;;  %v3138_v29 = vmul.f32 0.0625, %v3124_v56 }
 0xe9c   : > { %v3127_v38 = vpop.xlane.xlu1 %3126 }
 0xe9d   : > { %9014 = vrsqrt.f32 %v3145_v3  ;;  %v3146_v11 = vadd.f32 1e-05, %v3138_v29  ;;  %v3139_v4 = vmul.f32 0.0625, %v3127_v38 }
 0xe9e   : > { %v3130_v28 = vpop.xlane.xlu0 %3129 }
 0xe9f   : > { %9016 = vrsqrt.f32 %v3146_v11  ;;  %v3147_v50 = vadd.f32 1e-05, %v3139_v4  ;;  %v3140_v27 = vmul.f32 0.0625, %v3130_v28 }
 0xea0   : > { %v3133_v31 = vpop.xlane.xlu1 %3132 }
 0xea1   : > { %v9009_v0 = vpop.eup %9008  ;;  %9018 = vrsqrt.f32 %v3147_v50  ;;  %v3148_v18 = vadd.f32 1e-05, %v3140_v27  ;;  %v3141_v24 = vmul.f32 0.0625, %v3133_v31 }
 0xea2   : > { %v3158_v20 = vmul.f32 %v9009_v0, %v9993_v51 }
 0xea3   : > { %v9011_v23 = vpop.eup %9010  ;;  %9020 = vrsqrt.f32 %v3148_v18  ;;  %v3149_v47 = vadd.f32 1e-05, %v3141_v24 }
 0xea4   : > { %v3172_v58 = vmul.f32 %v7498_v16, %v3158_v20  ;;  %v3159_v61 = vmul.f32 %v9011_v23, %v9996_v39 }
 0xea5   : > { %v9013_v53 = vpop.eup %9012  ;;  %9022 = vrsqrt.f32 %v3149_v47 }
 0xea6   : > { %v3173_v1 = vmul.f32 %v7498_v16, %v3159_v61  ;;  %v3160_v2 = vmul.f32 %v9013_v53, %v10001_v42  ;;  %v3186_v44 = vadd.f32 %v7499_v63, %v3172_v58 }
 0xea7   : > { %v9015_v30 = vpop.eup %9014 }
 0xea8   : > { %v3187_v33 = vadd.f32 %v7499_v63, %v3173_v1  ;;  %v3174_v6 = vmul.f32 %v7498_v16, %v3160_v2  ;;  %v3161_v7 = vmul.f32 %v9015_v30, %v10007_v57 }
 0xea9   : > { %v9017_v8 = vpop.eup %9016 }
 0xeaa   : > { %v3175_v51 = vmul.f32 %v7498_v16, %v3161_v7  ;;  %v3162_v13 = vmul.f32 %v9017_v8, %v10013_v60  ;;  %v10053_v14 = vpack.c.bf16 %v3187_v33, %v3186_v44  ;;  %v3188_v39 = vadd.f32 %v7499_v63, %v3174_v6 }
 0xeab   : > { %v9019_v15 = vpop.eup %9018 }
 0xeac   : > { %v3189_v17 = vadd.f32 %v7499_v63, %v3175_v51  ;;  %v3176_v22 = vmul.f32 %v7498_v16, %v3162_v13  ;;  %v3163_v26 = vmul.f32 %v9019_v15, %v10019_v40  ;;  %8227 = vmatprep.mubr.msk.bf16.mxu1 %vm1308_vm2, %v10053_v14  ;;  %8237 = vmatprep.mubr.msk.bf16.mxu0 %vm1308_vm2, %v10053_v14 }
 0xead   : > { %v9021_v42 = vpop.eup %9020 }
 0xeae   : > { %v3177_v57 = vmul.f32 %v7498_v16, %v3163_v26  ;;  %v3164_v32 = vmul.f32 %v9021_v42, %v10025_v34  ;;  %v10061_v35 = vpack.c.bf16 %v3189_v17, %v3188_v39  ;;  %v3190_v36 = vadd.f32 %v7499_v63, %v3176_v22  ;;  %v8830_v22 = vld [vmem:[%s9321_s29 + $0x18] sm:$0xff]   ;;  %v7468_v42 = vld [vmem:[%s10885_s19 + $0x80] sm:$0xff] }
 0xeaf   : > { %v9023_v60 = vpop.eup %9022 }
 0xeb0   : > { %v3191_v37 = vadd.f32 %v7499_v63, %v3177_v57  ;;  %v3178_v45 = vmul.f32 %v7498_v16, %v3164_v32  ;;  %v3165_v59 = vmul.f32 %v9023_v60, %v10031_v12  ;;  %8228 = vmatmul.mubr.msk.bf16.vlgmr.msra.gmra.mrb[64].mxu1 %vm1308_vm2, %v10061_v35  ;;  %8238 = vmatmul.mubr.msk.bf16.vlgmr.msra.gmra.mrb[48].mxu0 %vm1308_vm2, %v10061_v35  ;;  %v7470_v32 = vld [vmem:[%s10885_s19 + $0x90] sm:$0xff] }
 0xeb1   : > { %8246 = vmatpush3.bf16.msra.mxu1 %v10043_v5 }
 0xeb2   : > { %v3179_v40 = vmul.f32 %v7498_v16, %v3165_v59  ;;  %v10069_v41 = vpack.c.bf16 %v3191_v37, %v3190_v36  ;;  %v3192_v34 = vadd.f32 %v7499_v63, %v3178_v45  ;;  %v7469_v36 = vld [vmem:[%s10885_s19 + $0x88] sm:$0xff]  ;;  %v7471_v59 = vld [vmem:[%s10885_s19 + $0x98] sm:$0xff] }
 0xeb4   : > { %v3193_v49 = vadd.f32 %v7499_v63, %v3179_v40  ;;  %8231 = vmatprep.mubr.msk.bf16.mxu1 %vm1308_vm2, %v10069_v41  ;;  %8241 = vmatprep.mubr.msk.bf16.mxu0 %vm1308_vm2, %v10069_v41 }
 0xeb6   : > { %v10075_v12 = vpack.c.bf16 %v3193_v49, %v3192_v34 }
 0xeb8   : > { %8232 = vmatmul.mubr.msk.bf16.gmra.mrb[68].mxu1 %vm1308_vm2, %v10075_v12  ;;  %8242 = vmatmul.mubr.msk.bf16.gmra.mrb[52].mxu0 %vm1308_vm2, %v10075_v12 }
 0xeb9   : > { %8247 = vmatprep.mubr.msk.bf16.mxu1 %vm1308_vm2, %v10053_v14 }
 0xec0   : > { %8248 = vmatmul.mubr.msk.bf16.vlgmr.msra.gmra.mrb[72].mxu1 %vm1308_vm2, %v10061_v35 }
 0xec1   : > { %8251 = vmatprep.mubr.msk.bf16.mxu1 %vm1308_vm2, %v10069_v41 }
 0xec8   : > { %8252 = vmatmul.mubr.msk.bf16.gmra.mrb[76].mxu1 %vm1308_vm2, %v10075_v12 }
 0xf83   : > { %v8229_v5 = vpop.f32.mrb[64].mxu1  ;;  %v8239_v9 = vpop.f32.mrb[48].mxu0 }
 0xf84   : > { %v3250_v48 = vpop.f32.mrb[65].mxu1  ;;  %v3321_v55 = vpop.f32.mrb[49].mxu0 }
 0xf85   : > { %v8230_v62 = vpop.f32.mrb[66].mxu1  ;;  %v8240_v56 = vpop.f32.mrb[50].mxu0 }
 0xf86   : > { %v3424_v3 = vpack.c.bf16 %v8230_v62, %v8229_v5  ;;  %v3428_v29 = vpack.c.bf16 %v8240_v56, %v8239_v9  ;;  %v3253_v38 = vpop.f32.mrb[67].mxu1  ;;  %v3324_v11 = vpop.f32.mrb[51].mxu0 }
 0xf87   : > { %v3423_v4 = vpack.c.bf16 %v3253_v38, %v3250_v48  ;;  %v3427_v28 = vpack.c.bf16 %v3324_v11, %v3321_v55  ;;  %v7472_v55 = vld [vmem:[%s10885_s19 + $0xa0] sm:$0xff]  ;;  %v7473_v38 = vld [vmem:[%s10885_s19 + $0xa8] sm:$0xff] }
 0xf88   : > { %v3447_v63 = vsel %vm1679_vm3, %v3428_v29, 0 }
 0xf89   : > { %v3444_v50 = vsel %vm1679_vm3, %v3427_v28, 0  ;;  %8726 = vmatprep.subr.msk.bf16.mxu0 %vm1679_vm3, %v3427_v28  ;;  %8263 = vmatprep.mubr.msk.bf16.mxu0 %vm1679_vm3, %v3423_v4 }
 0xf8a   : > { %8256 = vmatpush3.bf16.xpose.msra.mxu0 %v3444_v50  ;;  %v7475_v50 = vld [vmem:[%s10885_s19 + $0xb8] sm:$0xff] }
 0xf8b   : > { %v8233_v27 = vpop.f32.mrb[68].mxu1  ;;  %v8243_v31 = vpop.f32.mrb[52].mxu0  ;;  %8727 = vmatprep.subr.msk.bf16.mxu0 %vm1679_vm3, %v3428_v29 }
 0xf8c   : > { %v3266_v0 = vpop.f32.mrb[69].mxu1  ;;  %v3337_v16 = vpop.f32.mrb[53].mxu0 }
 0xf8d   : > { %v8234_v18 = vpop.f32.mrb[70].mxu1  ;;  %v8244_v24 = vpop.f32.mrb[54].mxu0 }
 0xf8e   : > { %v3426_v20 = vpack.c.bf16 %v8234_v18, %v8233_v27  ;;  %v3430_v23 = vpack.c.bf16 %v8244_v24, %v8243_v31  ;;  %v3269_v47 = vpop.f32.mrb[71].mxu1  ;;  %v3340_v58 = vpop.f32.mrb[55].mxu0 }
 0xf8f   : > { %v3425_v61 = vpack.c.bf16 %v3269_v47, %v3266_v0  ;;  %v3429_v53 = vpack.c.bf16 %v3340_v58, %v3337_v16 }
 0xf90   : > { %v3453_v26 = vsel %vm1679_vm3, %v3430_v23, 0 }
 0xf91   : > { %v3450_v7 = vsel %vm1679_vm3, %v3429_v53, 0 }
 0xf92   : > { %8258 = vmatpush3.bf16.xpose.msra.mxu0 %v3447_v63 }
 0xf93   : > { %v8249_v1 = vpop.f32.mrb[72].mxu1  ;;  %8728 = vmatprep.subr.msk.bf16.mxu0 %vm1679_vm3, %v3429_v53 }
 0xf94   : > { %v3392_v2 = vpop.f32.mrb[73].mxu1 }
 0xf95   : > { %v8250_v30 = vpop.f32.mrb[74].mxu1 }
 0xf96   : > { %v3613_v44 = vpack.c.bf16 %v8250_v30, %v8249_v1  ;;  %v3395_v33 = vpop.f32.mrb[75].mxu1 }
 0xf97   : > { %v3612_v6 = vpack.c.bf16 %v3395_v33, %v3392_v2 }
 0xf99   : > { %8271 = vmatprep.subr.bf16.mxu1 %v3612_v6 }
 0xf9a   : > { %8260 = vmatpush3.bf16.xpose.msra.mxu0 %v3450_v7  ;;  %8272 = vmatpush3.bf16.msra.mxu1 %v3612_v6 }
 0xf9b   : > { %v8253_v8 = vpop.f32.mrb[76].mxu1  ;;  %8729 = vmatprep.subr.msk.bf16.mxu0 %vm1679_vm3, %v3430_v23  ;;  %8273 = vmatprep.subr.bf16.mxu1 %v3613_v44 }
 0xf9c   : > { %v3408_v51 = vpop.f32.mrb[77].mxu1 }
 0xf9d   : > { %v8254_v13 = vpop.f32.mrb[78].mxu1 }
 0xf9e   : > { %v3615_v15 = vpack.c.bf16 %v8254_v13, %v8253_v8  ;;  %v3411_v39 = vpop.f32.mrb[79].mxu1  ;;  %8274 = vmatpush3.bf16.msra.mxu1 %v3613_v44 }
 0xf9f   : > { %v3614_v17 = vpack.c.bf16 %v3411_v39, %v3408_v51 }
 0xfa1   : > { %8275 = vmatprep.subr.bf16.mxu1 %v3614_v17 }
 0xfa2   : > { %8262 = vmatpush3.bf16.xpose.msra.mxu0 %v3453_v26  ;;  %8276 = vmatpush3.bf16.msra.mxu1 %v3614_v17 }
 0xfa3   : > { %8277 = vmatprep.subr.bf16.mxu1 %v3615_v15  ;;  %8297 = vmatprep.subr.bf16.mxu0 %v8830_v22 }
 0xfa6   : > { %8278 = vmatpush3.bf16.msra.mxu1 %v3615_v15 }
 0xfa9   : > { %8264 = vmatmul.mubr.msk.bf16.vlgmr.msra.gmra.mrb[56].mxu0 %vm1679_vm3, %v3424_v3  ;;  %v7474_v3 = vld [vmem:[%s10885_s19 + $0xb0] sm:$0xff] }
 0xfaa   : > { %8267 = vmatprep.mubr.msk.bf16.mxu0 %vm1679_vm3, %v3425_v61  ;;  %8298 = vmatpush3.bf16.msra.mxu0 %v8830_v22 }
 0xfb1   : > { %8268 = vmatmul.mubr.msk.bf16.gmra.mrb[60].mxu0 %vm1679_vm3, %v3426_v20 }
 0xfb2   : > { %8299 = vmatprep.mubr.msk.bf16.mxu0 %vm1308_vm2, %v10053_v14 }
 0xfb9   : > { %8300 = vmatmul.mubr.msk.bf16.vlgmr.msra.gmra.mrb[64].mxu0 %vm1308_vm2, %v10061_v35 }
 0xfba   : > { %8303 = vmatprep.mubr.msk.bf16.mxu0 %vm1308_vm2, %v10069_v41 }
 0xfc1   : > { %8304 = vmatmul.mubr.msk.bf16.gmra.mrb[68].mxu0 %vm1308_vm2, %v10075_v12 }
0x107c   : > { %v8265_v57 = vpop.f32.mrb[56].mxu0 }
0x107d   : > { %v3489_v60 = vpop.f32.mrb[57].mxu0  ;;  %v10114_v34 = vadd.f32 %v8265_v57, %v7470_v32 }
0x107e   : > { %v3490_v37 = vadd.f32 %v7468_v42, %v3489_v60  ;;  %v8266_v45 = vpop.f32.mrb[58].mxu0 }
0x107f   : > { %v3492_v40 = vpop.f32.mrb[59].mxu0  ;;  %v10117_v9 = vadd.f32 %v8266_v45, %v7471_v59  ;;  %v3526_v56 = vsel %vm1769_vm4, %v10114_v34, -inf }
0x1080   : > { %v3493_v49 = vadd.f32 %v7469_v36, %v3492_v40  ;;  %v3520_v5 = vsel %vm1769_vm4, %v3490_v37, -inf }
0x1081   : > { %3521 = vmax.xlane.f32.xlu0 %v3520_v5  ;;  %v3529_v28 = vsel %vm1769_vm4, %v10117_v9, -inf }
0x1082   : > { %v3523_v48 = vsel %vm1769_vm4, %v3493_v49, -inf }
0x1083   : > { %3524 = vmax.xlane.f32.xlu1 %v3523_v48 }
0x1084   : > { %v8269_v62 = vpop.f32.mrb[60].mxu0 }
0x1085   : > { %3527 = vmax.xlane.f32.xlu0 %v3526_v56  ;;  %v3505_v29 = vpop.f32.mrb[61].mxu0  ;;  %v10128_v31 = vadd.f32 %v8269_v62, %v7474_v3 }
0x1086   : > { %v3506_v11 = vadd.f32 %v7472_v55, %v3505_v29  ;;  %v8270_v4 = vpop.f32.mrb[62].mxu0 }
0x1087   : > { %3530 = vmax.xlane.f32.xlu1 %v3529_v28  ;;  %v3508_v27 = vpop.f32.mrb[63].mxu0  ;;  %v10131_v18 = vadd.f32 %v8270_v4, %v7475_v50  ;;  %v3538_v23 = vsel %vm1769_vm4, %v10128_v31, -inf }
0x1088   : > { %v3509_v0 = vadd.f32 %v7473_v38, %v3508_v27  ;;  %v3532_v16 = vsel %vm1769_vm4, %v3506_v11, -inf }
0x1089   : > { %3533 = vmax.xlane.f32.xlu0 %v3532_v16  ;;  %v3541_v61 = vsel %vm1769_vm4, %v10131_v18, -inf }
0x108a   : > { %v3535_v24 = vsel %vm1769_vm4, %v3509_v0, -inf }
0x108b   : > { %3536 = vmax.xlane.f32.xlu1 %v3535_v24 }
0x108c   : > { %v8301_v20 = vpop.f32.mrb[64].mxu0 }
0x108d   : > { %v3808_v47 = vpop.f32.mrb[65].mxu0  ;;  %3539 = vmax.xlane.f32.xlu0 %v3538_v23 }
0x108e   : > { %v8302_v58 = vpop.f32.mrb[66].mxu0 }
0x108f   : > { %v3915_v53 = vpack.c.bf16 %v8302_v58, %v8301_v20  ;;  %v3811_v63 = vpop.f32.mrb[67].mxu0  ;;  %3542 = vmax.xlane.f32.xlu1 %v3541_v61 }
0x1090   : > { %v3914_v1 = vpack.c.bf16 %v3811_v63, %v3808_v47  ;;  %v8831_v63 = vld [vmem:[%s9316_s25 + $0x18] sm:$0xff]  }
0x1091   : > { %v3934_v51 = vsel %vm1679_vm3, %v3915_v53, 0  ;;  %8287 = vmatprep.subr.bf16.mxu1 %v8831_v63 }
0x1092   : > { %v3931_v2 = vsel %vm1679_vm3, %v3914_v1, 0  ;;  %8730 = vmatprep.subr.msk.bf16.mxu0 %vm1679_vm3, %v3914_v1 }
0x1093   : > { %8318 = vmatpush3.bf16.xpose.msra.mxu0 %v3931_v2 }
0x1094   : > { %v8305_v30 = vpop.f32.mrb[68].mxu0  ;;  %8731 = vmatprep.subr.msk.bf16.mxu0 %vm1679_vm3, %v3915_v53 }
0x1095   : > { %v3824_v44 = vpop.f32.mrb[69].mxu0 }
0x1096   : > { %v8306_v33 = vpop.f32.mrb[70].mxu0 }
0x1097   : > { %v3917_v6 = vpack.c.bf16 %v8306_v33, %v8305_v30  ;;  %v3827_v7 = vpop.f32.mrb[71].mxu0 }
0x1098   : > { %v3916_v8 = vpack.c.bf16 %v3827_v7, %v3824_v44 }
0x1099   : > { %v3940_v15 = vsel %vm1679_vm3, %v3917_v6, 0 }
0x109a   : > { %v3937_v13 = vsel %vm1679_vm3, %v3916_v8, 0 }
0x109b   : > { %8320 = vmatpush3.bf16.xpose.msra.mxu0 %v3934_v51 }
0x109c   : > { %8732 = vmatprep.subr.msk.bf16.mxu0 %vm1679_vm3, %v3916_v8 }
0x10a3   : > { %8322 = vmatpush3.bf16.xpose.msra.mxu0 %v3937_v13 }
0x10a4   : > { %8733 = vmatprep.subr.msk.bf16.mxu0 %vm1679_vm3, %v3917_v6 }
0x10ab   : > { %8324 = vmatpush3.bf16.xpose.msra.mxu0 %v3940_v15 }
0x110e   : > { %v3522_v39 = vpop.xlane.xlu0 %3521 }
0x110f   : > { %v3544_v17 = vsub.f32 %v3490_v37, %v3522_v39 }
0x1110   : > { %v3525_v22 = vpop.xlane.xlu1 %3524 }
0x1111   : > { %v3552_v26 = vmul.f32 1.442695, %v3544_v17  ;;  %v3545_v42 = vsub.f32 %v3493_v49, %v3525_v22 }
0x1112   : > { %v3528_v57 = vpop.xlane.xlu0 %3527 }
0x1113   : > { %9024 = vpow2.f32 %v3552_v26  ;;  %v3554_v32 = vmul.f32 1.442695, %v3545_v42  ;;  %v3546_v60 = vsub.f32 %v10114_v34, %v3528_v57 }
0x1114   : > { %v3531_v36 = vpop.xlane.xlu1 %3530 }
0x1115   : > { %9026 = vpow2.f32 %v3554_v32  ;;  %v3556_v45 = vmul.f32 1.442695, %v3546_v60  ;;  %v3547_v59 = vsub.f32 %v10117_v9, %v3531_v36  ;;  %v8832_v36 = vld [vmem:[%s10890_s3 + $0x18] sm:$0xff]   ;;  %s10901_s3 = sld [smem:[#allocation21_spill]] }
0x1116   : > { %v3534_v40 = vpop.xlane.xlu0 %3533 }
0x1117   : > { %9028 = vpow2.f32 %v3556_v45  ;;  %v3558_v5 = vmul.f32 1.442695, %v3547_v59  ;;  %v3548_v48 = vsub.f32 %v3506_v11, %v3534_v40 }
0x1118   : > { %v3537_v55 = vpop.xlane.xlu1 %3536 }
0x1119   : > { %9030 = vpow2.f32 %v3558_v5  ;;  %v3560_v37 = vmul.f32 1.442695, %v3548_v48  ;;  %v3549_v62 = vsub.f32 %v3509_v0, %v3537_v55 }
0x111a   : > { %v3540_v56 = vpop.xlane.xlu0 %3539 }
0x111b   : > { %9032 = vpow2.f32 %v3560_v37  ;;  %v3562_v49 = vmul.f32 1.442695, %v3549_v62  ;;  %v3550_v3 = vsub.f32 %v10128_v31, %v3540_v56 }
0x111c   : > { %v3543_v29 = vpop.xlane.xlu1 %3542 }
0x111d   : > { %v9025_v34 = vpop.eup %9024  ;;  %9034 = vpow2.f32 %v3562_v49  ;;  %v3564_v38 = vmul.f32 1.442695, %v3550_v3  ;;  %v3551_v4 = vsub.f32 %v10131_v18, %v3543_v29 }
0x111e   : > { %v3568_v9 = vsel %vm1769_vm4, %v9025_v34, 0.0 }
0x111f   : > { %v9027_v28 = vpop.eup %9026  ;;  %9036 = vpow2.f32 %v3564_v38  ;;  %v3566_v11 = vmul.f32 1.442695, %v3551_v4  ;;  %3569 = vadd.xlane.f32.xlu0 %v3568_v9 }
0x1120   : > { %v3571_v50 = vsel %vm1769_vm4, %v9027_v28, 0.0 }
0x1121   : > { %v9029_v27 = vpop.eup %9028  ;;  %9038 = vpow2.f32 %v3566_v11  ;;  %3572 = vadd.xlane.f32.xlu1 %v3571_v50 }
0x1122   : > { %v3574_v0 = vsel %vm1769_vm4, %v9029_v27, 0.0 }
0x1123   : > { %v9031_v31 = vpop.eup %9030  ;;  %3575 = vadd.xlane.f32.xlu0 %v3574_v0 }
0x1124   : > { %v3577_v16 = vsel %vm1769_vm4, %v9031_v31, 0.0 }
0x1125   : > { %v9033_v24 = vpop.eup %9032  ;;  %3578 = vadd.xlane.f32.xlu1 %v3577_v16 }
0x1126   : > { %v3580_v18 = vsel %vm1769_vm4, %v9033_v24, 0.0 }
0x1127   : > { %v9035_v20 = vpop.eup %9034  ;;  %3581 = vadd.xlane.f32.xlu0 %v3580_v18 }
0x1128   : > { %v3583_v23 = vsel %vm1769_vm4, %v9035_v20, 0.0 }
0x1129   : > { %v9037_v47 = vpop.eup %9036  ;;  %3584 = vadd.xlane.f32.xlu1 %v3583_v23 }
0x112a   : > { %v3586_v58 = vsel %vm1769_vm4, %v9037_v47, 0.0 }
0x112b   : > { %v9039_v61 = vpop.eup %9038  ;;  %3587 = vadd.xlane.f32.xlu0 %v3586_v58 }
0x112c   : > { %v3589_v53 = vsel %vm1769_vm4, %v9039_v61, 0.0 }
0x112d   : > { %3590 = vadd.xlane.f32.xlu1 %v3589_v53 }
0x11ac   : > { %v3570_v1 = vpop.xlane.xlu0 %3569 }
0x11ad   : > { %9040 = vrcp.f32 %v3570_v1 }
0x11ae   : > { %v3573_v2 = vpop.xlane.xlu1 %3572 }
0x11af   : > { %9042 = vrcp.f32 %v3573_v2 }
0x11b0   : > { %v3576_v30 = vpop.xlane.xlu0 %3575 }
0x11b1   : > { %9044 = vrcp.f32 %v3576_v30 }
0x11b2   : > { %v3579_v44 = vpop.xlane.xlu1 %3578 }
0x11b3   : > { %9046 = vrcp.f32 %v3579_v44 }
0x11b4   : > { %v3582_v33 = vpop.xlane.xlu0 %3581 }
0x11b5   : > { %9048 = vrcp.f32 %v3582_v33 }
0x11b6   : > { %v3585_v6 = vpop.xlane.xlu1 %3584 }
0x11b7   : > { %v9041_v7 = vpop.eup %9040  ;;  %9050 = vrcp.f32 %v3585_v6 }
0x11b8   : > { %v3588_v8 = vpop.xlane.xlu0 %3587  ;;  %v3600_v15 = vmul.f32 %v9041_v7, %v9025_v34 }
0x11b9   : > { %v9043_v51 = vpop.eup %9042  ;;  %9052 = vrcp.f32 %v3588_v8 }
0x11ba   : > { %v3591_v13 = vpop.xlane.xlu1 %3590  ;;  %v3601_v39 = vmul.f32 %v9043_v51, %v9027_v28 }
0x11bb   : > { %v9045_v17 = vpop.eup %9044  ;;  %9054 = vrcp.f32 %v3591_v13  ;;  %v7476_v13 = vld [vmem:[%s10885_s19 + $0xc0] sm:$0xff] }
0x11bc   : > { %v3608_v22 = vpack.c.bf16 %v3601_v39, %v3600_v15  ;;  %v3602_v42 = vmul.f32 %v9045_v17, %v9029_v27  ;;  %v7478_v39 = vld [vmem:[%s10885_s19 + $0xd0] sm:$0xff] }
0x11bd   : > { %v9047_v26 = vpop.eup %9046 }
0x11be   : > { %v3603_v57 = vmul.f32 %v9047_v26, %v9031_v31  ;;  %8279 = vmatprep.mubr.msk.bf16.mxu1 %vm1769_vm4, %v3608_v22  ;;  %v7477_v22 = vld [vmem:[%s10885_s19 + $0xc8] sm:$0xff] }
0x11bf   : > { %v9049_v32 = vpop.eup %9048 }
0x11c0   : > { %v3609_v60 = vpack.c.bf16 %v3603_v57, %v3602_v42  ;;  %v3604_v59 = vmul.f32 %v9049_v32, %v9033_v24  ;;  %v7479_v57 = vld [vmem:[%s10885_s19 + $0xd8] sm:$0xff] }
0x11c1   : > { %v9051_v45 = vpop.eup %9050 }
0x11c2   : > { %8280 = vmatmul.mubr.msk.bf16.vlgmr.msra.gmra.mrb[80].mxu1 %vm1769_vm4, %v3609_v60  ;;  %v3605_v40 = vmul.f32 %v9051_v45, %v9035_v20 }
0x11c3   : > { %v9053_v5 = vpop.eup %9052  ;;  %8288 = vmatpush3.bf16.msra.mxu1 %v8831_v63 }
0x11c4   : > { %v3610_v48 = vpack.c.bf16 %v3605_v40, %v3604_v59  ;;  %8307 = vmatprep.subr.bf16.mxu1 %v8832_v36  ;;  %v3606_v37 = vmul.f32 %v9053_v5, %v9037_v47  ;;  %v7480_v5 = vld [vmem:[%s10885_s19 + $0xe0] sm:$0xff] }
0x11c5   : > { %v9055_v55 = vpop.eup %9054 }
0x11c6   : > { %8283 = vmatprep.mubr.msk.bf16.mxu1 %vm1769_vm4, %v3610_v48  ;;  %v3607_v62 = vmul.f32 %v9055_v55, %v9039_v61 }
0x11c8   : > { %v3611_v56 = vpack.c.bf16 %v3607_v62, %v3606_v37  ;;  %v7482_v37 = vld [vmem:[%s10885_s19 + $0xf0] sm:$0xff] }
0x11ca   : > { %8284 = vmatmul.mubr.msk.bf16.gmra.mrb[84].mxu1 %vm1769_vm4, %v3611_v56  ;;  %v7481_v56 = vld [vmem:[%s10885_s19 + $0xe8] sm:$0xff] }
0x11cb   : > { %8289 = vmatprep.mubr.msk.bf16.mxu1 %vm1308_vm2, %v10053_v14 }
0x11d2   : > { %8290 = vmatmul.mubr.msk.bf16.vlgmr.msra.gmra.mrb[88].mxu1 %vm1308_vm2, %v10061_v35 }
0x11d3   : > { %8293 = vmatprep.mubr.msk.bf16.mxu1 %vm1308_vm2, %v10069_v41  ;;  %8308 = vmatpush3.bf16.msra.mxu1 %v8832_v36 }
0x11da   : > { %8294 = vmatmul.mubr.msk.bf16.gmra.mrb[92].mxu1 %vm1308_vm2, %v10075_v12 }
0x11db   : > { %8309 = vmatprep.mubr.msk.bf16.mxu1 %vm1308_vm2, %v10053_v14 }
0x11e2   : > { %8310 = vmatmul.mubr.msk.bf16.vlgmr.msra.gmra.mrb[96].mxu1 %vm1308_vm2, %v10061_v35 }
0x11e3   : > { %8313 = vmatprep.mubr.msk.bf16.mxu1 %vm1308_vm2, %v10069_v41 }
0x11ea   : > { %8314 = vmatmul.mubr.msk.bf16.gmra.mrb[100].mxu1 %vm1308_vm2, %v10075_v12 }
0x1295   : > { %v10180_v49 = vpop.f32.mrb[80].mxu1 }
0x1296   : > { %v10182_v3 = vpop.f32.mrb[81].mxu1 }
0x1297   : > { %v10184_v29 = vpop.f32.mrb[82].mxu1 }
0x1298   : > { %v3694_v34 = vpack.c.bf16 %v10184_v29, %v10180_v49  ;;  %v10188_v38 = vpop.f32.mrb[83].mxu1 }
0x1299   : > { %v3693_v14 = vpack.c.bf16 %v10188_v38, %v10182_v3 }
0x129d   : > { %v10192_v35 = vpop.f32.mrb[84].mxu1 }
0x129e   : > { %v10194_v41 = vpop.f32.mrb[85].mxu1 }
0x129f   : > { %v10196_v4 = vpop.f32.mrb[86].mxu1 }
0x12a0   : > { %v3696_v12 = vpack.c.bf16 %v10196_v4, %v10192_v35  ;;  %v10200_v9 = vpop.f32.mrb[87].mxu1 }
0x12a1   : > { %v3695_v28 = vpack.c.bf16 %v10200_v9, %v10194_v41 }
0x12a5   : > { %v8291_v11 = vpop.f32.mrb[88].mxu1 }
0x12a6   : > { %v3737_v50 = vpop.f32.mrb[89].mxu1 }
0x12a7   : > { %v8292_v27 = vpop.f32.mrb[90].mxu1 }
0x12a8   : > { %v3911_v0 = vpack.c.bf16 %v8292_v27, %v8291_v11  ;;  %v3740_v31 = vpop.f32.mrb[91].mxu1 }
0x12a9   : > { %v3910_v16 = vpack.c.bf16 %v3740_v31, %v3737_v50 }
0x12ab   : > { %8325 = vmatprep.mubr.msk.bf16.mxu0 %vm1679_vm3, %v3910_v16 }
0x12ac   : > { %8326 = vmatmul.mubr.msk.bf16.vlgmr.msra.gmra.mrb[72].mxu0 %vm1679_vm3, %v3911_v0  ;;  %v7483_v0 = vld [vmem:[%s10885_s19 + $0xf8] sm:$0xff]  ;;  %s10912_s19 = sld [smem:[#allocation30_spill]] }
0x12ad   : > { %v8295_v24 = vpop.f32.mrb[92].mxu1 }
0x12ae   : > { %v3753_v18 = vpop.f32.mrb[93].mxu1 }
0x12af   : > { %v8296_v20 = vpop.f32.mrb[94].mxu1 }
0x12b0   : > { %v3913_v23 = vpack.c.bf16 %v8296_v20, %v8295_v24  ;;  %v3756_v47 = vpop.f32.mrb[95].mxu1 }
0x12b1   : > { %v3912_v58 = vpack.c.bf16 %v3756_v47, %v3753_v18 }
0x12b3   : > { %8329 = vmatprep.mubr.msk.bf16.mxu0 %vm1679_vm3, %v3912_v58 }
0x12b4   : > { %8330 = vmatmul.mubr.msk.bf16.gmra.mrb[76].mxu0 %vm1679_vm3, %v3913_v23 }
0x12b5   : > { %v8311_v61 = vpop.f32.mrb[96].mxu1 }
0x12b6   : > { %v3879_v53 = vpop.f32.mrb[97].mxu1 }
0x12b7   : > { %v8312_v63 = vpop.f32.mrb[98].mxu1 }
0x12b8   : > { %v4100_v1 = vpack.c.bf16 %v8312_v63, %v8311_v61  ;;  %v3882_v2 = vpop.f32.mrb[99].mxu1 }
0x12b9   : > { %v4099_v30 = vpack.c.bf16 %v3882_v2, %v3879_v53 }
0x12bb   : > { %8333 = vmatprep.subr.bf16.mxu1 %v4099_v30 }
0x12bc   : > { %8334 = vmatpush3.bf16.msra.mxu1 %v4099_v30 }
0x12bd   : > { %v8315_v44 = vpop.f32.mrb[100].mxu1  ;;  %8335 = vmatprep.subr.bf16.mxu1 %v4100_v1 }
0x12be   : > { %v3895_v33 = vpop.f32.mrb[101].mxu1 }
0x12bf   : > { %v8316_v6 = vpop.f32.mrb[102].mxu1 }
0x12c0   : > { %v4102_v7 = vpack.c.bf16 %v8316_v6, %v8315_v44  ;;  %v3898_v8 = vpop.f32.mrb[103].mxu1  ;;  %8336 = vmatpush3.bf16.msra.mxu1 %v4100_v1 }
0x12c1   : > { %v4101_v51 = vpack.c.bf16 %v3898_v8, %v3895_v33 }
0x12c3   : > { %8337 = vmatprep.subr.bf16.mxu1 %v4101_v51 }
0x12c4   : > { %8338 = vmatpush3.bf16.msra.mxu1 %v4101_v51 }
0x12c5   : > { %8339 = vmatprep.subr.bf16.mxu1 %v4102_v7 }
0x12c8   : > { %8340 = vmatpush3.bf16.msra.mxu1 %v4102_v7 }
0x137f   : > { %v8327_v15 = vpop.f32.mrb[72].mxu0 }
0x1380   : > { %v3976_v17 = vpop.f32.mrb[73].mxu0  ;;  %v3985_v60 = vadd.f32 %v8327_v15, %v7478_v39 }
0x1381   : > { %v3977_v26 = vadd.f32 %v7476_v13, %v3976_v17  ;;  %v8328_v42 = vpop.f32.mrb[74].mxu0 }
0x1382   : > { %v3979_v32 = vpop.f32.mrb[75].mxu0  ;;  %v3988_v59 = vadd.f32 %v8328_v42, %v7479_v57  ;;  %v4013_v55 = vsel %vm1769_vm4, %v3985_v60, -inf }
0x1383   : > { %v3980_v36 = vadd.f32 %v7477_v22, %v3979_v32  ;;  %v4007_v45 = vsel %vm1769_vm4, %v3977_v26, -inf }
0x1384   : > { %4008 = vmax.xlane.f32.xlu0 %v4007_v45  ;;  %v4016_v27 = vsel %vm1769_vm4, %v3988_v59, -inf }
0x1385   : > { %v4010_v40 = vsel %vm1769_vm4, %v3980_v36, -inf }
0x1386   : > { %4011 = vmax.xlane.f32.xlu1 %v4010_v40 }
0x1387   : > { %v8331_v48 = vpop.f32.mrb[76].mxu0 }
0x1388   : > { %4014 = vmax.xlane.f32.xlu0 %v4013_v55  ;;  %v3992_v62 = vpop.f32.mrb[77].mxu0  ;;  %v4001_v16 = vadd.f32 %v8331_v48, %v7482_v37 }
0x1389   : > { %v3993_v11 = vadd.f32 %v7480_v5, %v3992_v62  ;;  %v8332_v50 = vpop.f32.mrb[78].mxu0 }
0x138a   : > { %4017 = vmax.xlane.f32.xlu1 %v4016_v27  ;;  %v3995_v31 = vpop.f32.mrb[79].mxu0  ;;  %v4004_v20 = vadd.f32 %v8332_v50, %v7483_v0  ;;  %v4025_v47 = vsel %vm1769_vm4, %v4001_v16, -inf }
0x138b   : > { %v3996_v24 = vadd.f32 %v7481_v56, %v3995_v31  ;;  %v4019_v18 = vsel %vm1769_vm4, %v3993_v11, -inf }
0x138c   : > { %4020 = vmax.xlane.f32.xlu0 %v4019_v18  ;;  %v4028_v58 = vsel %vm1769_vm4, %v4004_v20, -inf }
0x138d   : > { %v4022_v23 = vsel %vm1769_vm4, %v3996_v24, -inf }
0x138e   : > { %4023 = vmax.xlane.f32.xlu1 %v4022_v23 }
0x1390   : > { %4026 = vmax.xlane.f32.xlu0 %v4025_v47 }
0x1392   : > { %4029 = vmax.xlane.f32.xlu1 %v4028_v58 }
0x1411   : > { %v4009_v61 = vpop.xlane.xlu0 %4008 }
0x1412   : > { %v4031_v53 = vsub.f32 %v3977_v26, %v4009_v61 }
0x1413   : > { %v4012_v63 = vpop.xlane.xlu1 %4011 }
0x1414   : > { %v4039_v1 = vmul.f32 1.442695, %v4031_v53  ;;  %v4032_v2 = vsub.f32 %v3980_v36, %v4012_v63 }
0x1415   : > { %v4015_v30 = vpop.xlane.xlu0 %4014 }
0x1416   : > { %9056 = vpow2.f32 %v4039_v1  ;;  %v4041_v44 = vmul.f32 1.442695, %v4032_v2  ;;  %v4033_v33 = vsub.f32 %v3985_v60, %v4015_v30 }
0x1417   : > { %v4018_v6 = vpop.xlane.xlu1 %4017 }
0x1418   : > { %9058 = vpow2.f32 %v4041_v44  ;;  %v4043_v7 = vmul.f32 1.442695, %v4033_v33  ;;  %v4034_v8 = vsub.f32 %v3988_v59, %v4018_v6 }
0x1419   : > { %v4021_v51 = vpop.xlane.xlu0 %4020 }
0x141a   : > { %9060 = vpow2.f32 %v4043_v7  ;;  %v4045_v13 = vmul.f32 1.442695, %v4034_v8  ;;  %v4035_v15 = vsub.f32 %v3993_v11, %v4021_v51 }
0x141b   : > { %v4024_v39 = vpop.xlane.xlu1 %4023 }
0x141c   : > { %9062 = vpow2.f32 %v4045_v13  ;;  %v4047_v17 = vmul.f32 1.442695, %v4035_v15  ;;  %v4036_v22 = vsub.f32 %v3996_v24, %v4024_v39 }
0x141d   : > { %v4027_v26 = vpop.xlane.xlu0 %4026 }
0x141e   : > { %9064 = vpow2.f32 %v4047_v17  ;;  %v4049_v42 = vmul.f32 1.442695, %v4036_v22  ;;  %v4037_v57 = vsub.f32 %v4001_v16, %v4027_v26 }
0x141f   : > { %v4030_v32 = vpop.xlane.xlu1 %4029 }
0x1420   : > { %v9057_v36 = vpop.eup %9056  ;;  %9066 = vpow2.f32 %v4049_v42  ;;  %v4051_v60 = vmul.f32 1.442695, %v4037_v57  ;;  %v4038_v45 = vsub.f32 %v4004_v20, %v4030_v32  ;;  %v7466_v20 = vld [vmem:[%s10888_s8 + $0xc] sm:$0xf] }
0x1421   : > { %v4055_v40 = vsel %vm1769_vm4, %v9057_v36, 0.0  ;;  %8734 = vmatprep.subr.msk.bf16.mxu1 %vm2446_vm5, %v7466_v20  ;;  %v4197_v22 = vsel %vm2446_vm5, %v7466_v20, 0 }
0x1422   : > { %v9059_v59 = vpop.eup %9058  ;;  %9068 = vpow2.f32 %v4051_v60  ;;  %v4053_v5 = vmul.f32 1.442695, %v4038_v45  ;;  %4056 = vadd.xlane.f32.xlu0 %v4055_v40 }
0x1423   : > { %v4058_v48 = vsel %vm1769_vm4, %v9059_v59, 0.0 }
0x1424   : > { %v9061_v55 = vpop.eup %9060  ;;  %9070 = vpow2.f32 %v4053_v5  ;;  %4059 = vadd.xlane.f32.xlu1 %v4058_v48  ;;  %v7465_v5 = vld [vmem:[%s10888_s8 + $0x8] sm:$0xf]  ;;  %s10906_s8 = sld [smem:[#allocation26_spill]] }
0x1425   : > { %v4061_v37 = vsel %vm1769_vm4, %v9061_v55, 0.0 }
0x1426   : > { %v9063_v62 = vpop.eup %9062  ;;  %4062 = vadd.xlane.f32.xlu0 %v4061_v37 }
0x1427   : > { %v4064_v56 = vsel %vm1769_vm4, %v9063_v62, 0.0 }
0x1428   : > { %v9065_v11 = vpop.eup %9064  ;;  %4065 = vadd.xlane.f32.xlu1 %v4064_v56 }
0x1429   : > { %v4067_v50 = vsel %vm1769_vm4, %v9065_v11, 0.0 }
0x142a   : > { %v9067_v27 = vpop.eup %9066  ;;  %4068 = vadd.xlane.f32.xlu0 %v4067_v50  ;;  %v4277_v50 = vsel %vm2446_vm5, %v7465_v5, 0 }
0x142b   : > { %v4070_v0 = vsel %vm1769_vm4, %v9067_v27, 0.0 }
0x142c   : > { %v9069_v31 = vpop.eup %9068  ;;  %4071 = vadd.xlane.f32.xlu1 %v4070_v0 }
0x142d   : > { %v4073_v16 = vsel %vm1769_vm4, %v9069_v31, 0.0 }
0x142e   : > { %v9071_v24 = vpop.eup %9070  ;;  %4074 = vadd.xlane.f32.xlu0 %v4073_v16 }
0x142f   : > { %v4076_v18 = vsel %vm1769_vm4, %v9071_v24, 0.0 }
0x1430   : > { %4077 = vadd.xlane.f32.xlu1 %v4076_v18 }
0x14af   : > { %v4057_v23 = vpop.xlane.xlu0 %4056 }
0x14b0   : > { %9072 = vrcp.f32 %v4057_v23  ;;  %v7554_v23 = vld [vmem:[%s10887_s14 + $0x1] ss:$0 sm:$0xff]  ;;  %s10910_s14 = sld [smem:[#allocation32_spill]] }
0x14b1   : > { %v4060_v47 = vpop.xlane.xlu1 %4059 }
0x14b2   : > { %9074 = vrcp.f32 %v4060_v47 }
0x14b3   : > { %v4063_v58 = vpop.xlane.xlu0 %4062 }
0x14b4   : > { %9076 = vrcp.f32 %v4063_v58 }
0x14b5   : > { %v4066_v61 = vpop.xlane.xlu1 %4065 }
0x14b6   : > { %9078 = vrcp.f32 %v4066_v61 }
0x14b7   : > { %v4069_v53 = vpop.xlane.xlu0 %4068 }
0x14b8   : > { %9080 = vrcp.f32 %v4069_v53 }
0x14b9   : > { %v4072_v63 = vpop.xlane.xlu1 %4071 }
0x14ba   : > { %v9073_v1 = vpop.eup %9072  ;;  %9082 = vrcp.f32 %v4072_v63 }
0x14bb   : > { %v4075_v2 = vpop.xlane.xlu0 %4074  ;;  %v4087_v33 = vmul.f32 %v9073_v1, %v9057_v36 }
0x14bc   : > { %v9075_v30 = vpop.eup %9074  ;;  %9084 = vrcp.f32 %v4075_v2 }
0x14bd   : > { %v4078_v44 = vpop.xlane.xlu1 %4077  ;;  %v4088_v6 = vmul.f32 %v9075_v30, %v9059_v59 }
0x14be   : > { %v9077_v7 = vpop.eup %9076  ;;  %9086 = vrcp.f32 %v4078_v44 }
0x14bf   : > { %v4095_v8 = vpack.c.bf16 %v4088_v6, %v4087_v33  ;;  %v4089_v13 = vmul.f32 %v9077_v7, %v9061_v55 }
0x14c0   : > { %v9079_v51 = vpop.eup %9078 }
0x14c1   : > { %v4090_v15 = vmul.f32 %v9079_v51, %v9063_v62  ;;  %8341 = vmatprep.mubr.msk.bf16.mxu1 %vm1769_vm4, %v4095_v8 }
0x14c2   : > { %v9081_v39 = vpop.eup %9080 }
0x14c3   : > { %v4096_v17 = vpack.c.bf16 %v4090_v15, %v4089_v13  ;;  %v4091_v42 = vmul.f32 %v9081_v39, %v9065_v11 }
0x14c4   : > { %v9083_v26 = vpop.eup %9082 }
0x14c5   : > { %8342 = vmatmul.mubr.msk.bf16.vlgmr.msra.gmra.mrb[104].mxu1 %vm1769_vm4, %v4096_v17  ;;  %v4092_v57 = vmul.f32 %v9083_v26, %v9067_v27 }
0x14c6   : > { %v9085_v32 = vpop.eup %9084  ;;  %8350 = vmatpush3.bf16.msra.mxu1 %v4197_v22 }
0x14c7   : > { %v4097_v36 = vpack.c.bf16 %v4092_v57, %v4091_v42  ;;  %v4093_v45 = vmul.f32 %v9085_v32, %v9069_v31  ;;  %8735 = vmatprep.subr.msk.bf16.mxu1 %vm2446_vm5, %v7465_v5 }
0x14c8   : > { %v9087_v60 = vpop.eup %9086 }
0x14c9   : > { %8345 = vmatprep.mubr.msk.bf16.mxu1 %vm1769_vm4, %v4097_v36  ;;  %v4094_v40 = vmul.f32 %v9087_v60, %v9071_v24 }
0x14cb   : > { %v4098_v59 = vpack.c.bf16 %v4094_v40, %v4093_v45 }
0x14cd   : > { %8346 = vmatmul.mubr.msk.bf16.gmra.mrb[108].mxu1 %vm1769_vm4, %v4098_v59 }
0x1598   : > { %v8343_v48 = vpop.f32.mrb[104].mxu1 }
0x1599   : > { %v4149_v55 = vpop.f32.mrb[105].mxu1 }
0x159a   : > { %v8344_v37 = vpop.f32.mrb[106].mxu1 }
0x159b   : > { %v4181_v62 = vpack.c.bf16 %v8344_v37, %v8343_v48  ;;  %v4152_v56 = vpop.f32.mrb[107].mxu1 }
0x159c   : > { %v4180_v11 = vpack.c.bf16 %v4152_v56, %v4149_v55 }
0x159e   : > { %8351 = vmatprep.mubr.msk.bf16.mxu1 %vm1679_vm3, %v4180_v11 }
0x159f   : > { %8352 = vmatmul.mubr.msk.bf16.vlgmr.msra.gmra.mrb[112].mxu1 %vm1679_vm3, %v4181_v62 }
0x15a0   : > { %v8347_v27 = vpop.f32.mrb[108].mxu1  ;;  %8360 = vmatpush3.bf16.msra.mxu1 %v4277_v50 }
0x15a1   : > { %v4165_v0 = vpop.f32.mrb[109].mxu1 }
0x15a2   : > { %v8348_v31 = vpop.f32.mrb[110].mxu1 }
0x15a3   : > { %v4183_v16 = vpack.c.bf16 %v8348_v31, %v8347_v27  ;;  %v4168_v24 = vpop.f32.mrb[111].mxu1 }
0x15a4   : > { %v4182_v18 = vpack.c.bf16 %v4168_v24, %v4165_v0 }
0x15a6   : > { %8355 = vmatprep.mubr.msk.bf16.mxu1 %vm1679_vm3, %v4182_v18 }
0x15a7   : > { %8356 = vmatmul.mubr.msk.bf16.gmra.mrb[116].mxu1 %vm1679_vm3, %v4183_v16 }
0x15a8   : > { %8361 = vmatprep.mubr.msk.bf16.mxu1 %vm1679_vm3, %v3693_v14 }
0x15af   : > { %8362 = vmatmul.mubr.msk.bf16.vlgmr.msra.gmra.mrb[112].mxu1 %vm1679_vm3, %v3694_v34 }
0x15b0   : > { %8365 = vmatprep.mubr.msk.bf16.mxu1 %vm1679_vm3, %v3695_v28 }
0x15b7   : > { %8366 = vmatmul.mubr.msk.bf16.gmra.mrb[116].mxu1 %vm1679_vm3, %v3696_v12 }
0x1682   : > { %v8363_v20 = vpop.f32.mrb[112].mxu1 }
0x1683   : > { %v4313_v3 = vpop.f32.mrb[113].mxu1  ;;  %v4346_v38 = vadd.f32 %v8363_v20, %v9956_v21 }
0x1684   : > { %v4344_v14 = vadd.f32 %v4313_v3, %v9953_v43  ;;  %v8364_v49 = vpop.f32.mrb[114].mxu1 }
0x1685   : > { %v4316_v29 = vpop.f32.mrb[115].mxu1  ;;  %v4347_v41 = vadd.f32 %v8364_v49, %v9964_v19  ;;  %v10269_v28 = vadd.f32 %v7554_v23, %v4346_v38 }
0x1686   : > { %v10265_v34 = vadd.f32 %v7554_v23, %v4344_v14  ;;  %v4345_v9 = vadd.f32 %v4316_v29, %v9959_v25 }
0x1687   : > { %v10275_v12 = vadd.f32 %v7554_v23, %v4347_v41  ;;  %v4372_v61 = vsel %vm1308_vm2, %v10269_v28, 0.0 }
0x1688   : > { %v10271_v35 = vadd.f32 %v7554_v23, %v4345_v9  ;;  %v4366_v4 = vsel %vm1308_vm2, %v10265_v34, 0.0 }
0x1689   : > { %4367 = vadd.xlane.f32.xlu0 %v4366_v4  ;;  %v4375_v30 = vsel %vm1308_vm2, %v10275_v12, 0.0  ;;  %v8833_v4 = vld [vmem:[%s10889_s6 + $0x8] sm:$0xff]   ;;  %s10905_s6 = sld [smem:[#allocation23_spill]] }
0x168a   : > { %v8367_v21 = vpop.f32.mrb[116].mxu1  ;;  %v4369_v43 = vsel %vm1308_vm2, %v10271_v35, 0.0  ;;  %8369 = vmatprep.subr.bf16.mxu0 %v8833_v4 }
0x168b   : > { %4370 = vadd.xlane.f32.xlu1 %v4369_v43  ;;  %v4329_v47 = vpop.f32.mrb[117].mxu1  ;;  %v4350_v19 = vadd.f32 %v8367_v21, %v9976_v52  ;;  %8370 = vmatpush3.bf16.msra.mxu0 %v8833_v4 }
0x168c   : > { %v4348_v25 = vadd.f32 %v4329_v47, %v9971_v46  ;;  %v8368_v58 = vpop.f32.mrb[118].mxu1 }
0x168d   : > { %4373 = vadd.xlane.f32.xlu0 %v4372_v61  ;;  %v4332_v53 = vpop.f32.mrb[119].mxu1  ;;  %v4351_v1 = vadd.f32 %v8368_v58, %v9984_v10  ;;  %v10289_v44 = vadd.f32 %v7554_v23, %v4350_v19 }
0x168e   : > { %v10283_v63 = vadd.f32 %v7554_v23, %v4348_v25  ;;  %v4349_v2 = vadd.f32 %v4332_v53, %v9979_v54 }
0x168f   : > { %4376 = vadd.xlane.f32.xlu1 %v4375_v30  ;;  %v10295_v33 = vadd.f32 %v7554_v23, %v4351_v1  ;;  %v4384_v54 = vsel %vm1308_vm2, %v10289_v44, 0.0 }
0x1690   : > { %v10291_v52 = vadd.f32 %v7554_v23, %v4349_v2  ;;  %v4378_v46 = vsel %vm1308_vm2, %v10283_v63, 0.0 }
0x1691   : > { %4379 = vadd.xlane.f32.xlu0 %v4378_v46  ;;  %v4387_v10 = vsel %vm1308_vm2, %v10295_v33, 0.0 }
0x1692   : > { %v4381_v6 = vsel %vm1308_vm2, %v10291_v52, 0.0 }
0x1693   : > { %4382 = vadd.xlane.f32.xlu1 %v4381_v6 }
0x1695   : > { %4385 = vadd.xlane.f32.xlu0 %v4384_v54 }
0x1697   : > { %4388 = vadd.xlane.f32.xlu1 %v4387_v10 }
0x1716   : > { %v4368_v7 = vpop.xlane.xlu0 %4367 }
0x1717   : > { %v4390_v8 = vmul.f32 0.0625, %v4368_v7 }
0x1718   : > { %v4371_v51 = vpop.xlane.xlu1 %4370 }
0x1719   : > { %v10304_v13 = vsub.f32 %v10265_v34, %v4390_v8  ;;  %v4391_v15 = vmul.f32 0.0625, %v4371_v51 }
0x171a   : > { %v4374_v39 = vpop.xlane.xlu0 %4373 }
0x171b   : > { %v10307_v17 = vsub.f32 %v10271_v35, %v4391_v15  ;;  %v4392_v22 = vmul.f32 0.0625, %v4374_v39  ;;  %v4406_v26 = vmul.f32 %v10304_v13, %v10304_v13 }
0x171c   : > { %v4377_v42 = vpop.xlane.xlu1 %4376 }
0x171d   : > { %v10312_v57 = vsub.f32 %v10269_v28, %v4392_v22  ;;  %v4393_v32 = vmul.f32 0.0625, %v4377_v42  ;;  %v4414_v36 = vsel %vm1308_vm2, %v4406_v26, 0.0  ;;  %v4407_v60 = vmul.f32 %v10307_v17, %v10307_v17  ;;  %v7555_v42 = vld [vmem:[%s10883_s24 + $0x1] ss:$0 sm:$0xff]  ;;  %s10915_s24 = sld [smem:[#allocation35_spill]] }
0x171e   : > { %4415 = vadd.xlane.f32.xlu0 %v4414_v36  ;;  %v4380_v45 = vpop.xlane.xlu0 %4379 }
0x171f   : > { %v10318_v40 = vsub.f32 %v10275_v12, %v4393_v32  ;;  %v4394_v59 = vmul.f32 0.0625, %v4380_v45  ;;  %v4417_v5 = vsel %vm1308_vm2, %v4407_v60, 0.0  ;;  %v4408_v48 = vmul.f32 %v10312_v57, %v10312_v57 }
0x1720   : > { %4418 = vadd.xlane.f32.xlu1 %v4417_v5  ;;  %v4383_v55 = vpop.xlane.xlu1 %4382 }
0x1721   : > { %v10324_v37 = vsub.f32 %v10283_v63, %v4394_v59  ;;  %v4395_v62 = vmul.f32 0.0625, %v4383_v55  ;;  %v4420_v56 = vsel %vm1308_vm2, %v4408_v48, 0.0  ;;  %v4409_v11 = vmul.f32 %v10318_v40, %v10318_v40 }
0x1722   : > { %4421 = vadd.xlane.f32.xlu0 %v4420_v56  ;;  %v4386_v50 = vpop.xlane.xlu0 %4385 }
0x1723   : > { %v10330_v27 = vsub.f32 %v10291_v52, %v4395_v62  ;;  %v4396_v0 = vmul.f32 0.0625, %v4386_v50  ;;  %v4423_v31 = vsel %vm1308_vm2, %v4409_v11, 0.0  ;;  %v4410_v16 = vmul.f32 %v10324_v37, %v10324_v37  ;;  %v7556_v62 = vld [vmem:[%s9351_s30 + $0x1] ss:$0 sm:$0xff] }
0x1724   : > { %4424 = vadd.xlane.f32.xlu1 %v4423_v31  ;;  %v4389_v24 = vpop.xlane.xlu1 %4388 }
0x1725   : > { %v10336_v18 = vsub.f32 %v10289_v44, %v4396_v0  ;;  %v4397_v20 = vmul.f32 0.0625, %v4389_v24  ;;  %v4426_v23 = vsel %vm1308_vm2, %v4410_v16, 0.0  ;;  %v4411_v3 = vmul.f32 %v10330_v27, %v10330_v27 }
0x1726   : > { %4427 = vadd.xlane.f32.xlu0 %v4426_v23 }
0x1727   : > { %v10342_v38 = vsub.f32 %v10295_v33, %v4397_v20  ;;  %v4429_v14 = vsel %vm1308_vm2, %v4411_v3, 0.0  ;;  %v4412_v49 = vmul.f32 %v10336_v18, %v10336_v18 }
0x1728   : > { %4430 = vadd.xlane.f32.xlu1 %v4429_v14 }
0x1729   : > { %v4432_v29 = vsel %vm1308_vm2, %v4412_v49, 0.0  ;;  %v4413_v41 = vmul.f32 %v10342_v38, %v10342_v38 }
0x172a   : > { %4433 = vadd.xlane.f32.xlu0 %v4432_v29 }
0x172b   : > { %v4435_v9 = vsel %vm1308_vm2, %v4413_v41, 0.0 }
0x172c   : > { %4436 = vadd.xlane.f32.xlu1 %v4435_v9 }
0x17ab   : > { %v4416_v21 = vpop.xlane.xlu0 %4415 }
0x17ac   : > { %v4438_v43 = vmul.f32 0.0625, %v4416_v21 }
0x17ad   : > { %v4419_v47 = vpop.xlane.xlu1 %4418 }
0x17ae   : > { %v4446_v19 = vadd.f32 1e-05, %v4438_v43  ;;  %v4439_v25 = vmul.f32 0.0625, %v4419_v47 }
0x17af   : > { %v4422_v58 = vpop.xlane.xlu0 %4421 }
0x17b0   : > { %9088 = vrsqrt.f32 %v4446_v19  ;;  %v4447_v61 = vadd.f32 1e-05, %v4439_v25  ;;  %v4440_v53 = vmul.f32 0.0625, %v4422_v58 }
0x17b1   : > { %v4425_v1 = vpop.xlane.xlu1 %4424 }
0x17b2   : > { %9090 = vrsqrt.f32 %v4447_v61  ;;  %v4448_v2 = vadd.f32 1e-05, %v4440_v53  ;;  %v4441_v30 = vmul.f32 0.0625, %v4425_v1  ;;  %v8834_v53 = vld [vmem:[%s10896_s1 + $0x20] sm:$0xff]   ;;  %v8836_v1 = vld [vmem:[%s10896_s1 + $0x30] sm:$0xff]  }
0x17b3   : > { %v4428_v46 = vpop.xlane.xlu0 %4427  ;;  %8379 = vmatprep.subr.bf16.mxu0 %v8834_v53 }
0x17b4   : > { %9092 = vrsqrt.f32 %v4448_v2  ;;  %v4449_v6 = vadd.f32 1e-05, %v4441_v30  ;;  %v4442_v54 = vmul.f32 0.0625, %v4428_v46  ;;  %v8837_v2 = vld [vmem:[%s10896_s1 + $0x38] sm:$0xff]   ;;  %v7557_v30 = vld [vmem:[%s10897_s11 + $0x1] ss:$0 sm:$0xff] }
0x17b5   : > { %v4431_v10 = vpop.xlane.xlu1 %4430  ;;  %s10908_s11 = sld [smem:[#allocation27_spill]] }
0x17b6   : > { %9094 = vrsqrt.f32 %v4449_v6  ;;  %v4450_v7 = vadd.f32 1e-05, %v4442_v54  ;;  %v4443_v8 = vmul.f32 0.0625, %v4431_v10 }
0x17b7   : > { %v4434_v51 = vpop.xlane.xlu0 %4433 }
0x17b8   : > { %9096 = vrsqrt.f32 %v4450_v7  ;;  %v4451_v15 = vadd.f32 1e-05, %v4443_v8  ;;  %v4444_v39 = vmul.f32 0.0625, %v4434_v51 }
0x17b9   : > { %v4437_v22 = vpop.xlane.xlu1 %4436 }
0x17ba   : > { %v9089_v26 = vpop.eup %9088  ;;  %9098 = vrsqrt.f32 %v4451_v15  ;;  %v4452_v32 = vadd.f32 1e-05, %v4444_v39  ;;  %v4445_v36 = vmul.f32 0.0625, %v4437_v22 }
0x17bb   : > { %v4462_v60 = vmul.f32 %v9089_v26, %v10304_v13 }
0x17bc   : > { %v9091_v45 = vpop.eup %9090  ;;  %9100 = vrsqrt.f32 %v4452_v32  ;;  %v4453_v59 = vadd.f32 1e-05, %v4445_v36 }
0x17bd   : > { %v4463_v5 = vmul.f32 %v9091_v45, %v10307_v17  ;;  %v4476_v48 = vmul.f32 %v7555_v42, %v4462_v60 }
0x17be   : > { %v9093_v55 = vpop.eup %9092  ;;  %9102 = vrsqrt.f32 %v4453_v59 }
0x17bf   : > { %v4464_v56 = vmul.f32 %v9093_v55, %v10312_v57  ;;  %v4477_v11 = vmul.f32 %v7555_v42, %v4463_v5  ;;  %v4490_v16 = vadd.f32 %v7556_v62, %v4476_v48 }
0x17c0   : > { %v9095_v50 = vpop.eup %9094 }
0x17c1   : > { %v4478_v0 = vmul.f32 %v7555_v42, %v4464_v56  ;;  %v4465_v31 = vmul.f32 %v9095_v50, %v10318_v40  ;;  %v4491_v24 = vadd.f32 %v7556_v62, %v4477_v11 }
0x17c2   : > { %v9097_v20 = vpop.eup %9096 }
0x17c3   : > { %v4479_v13 = vmul.f32 %v7555_v42, %v4465_v31  ;;  %v4466_v23 = vmul.f32 %v9097_v20, %v10324_v37  ;;  %v4498_v3 = vpack.c.bf16 %v4491_v24, %v4490_v16  ;;  %v4492_v17 = vadd.f32 %v7556_v62, %v4478_v0 }
0x17c4   : > { %v9099_v14 = vpop.eup %9098 }
0x17c5   : > { %v4493_v49 = vadd.f32 %v7556_v62, %v4479_v13  ;;  %v4467_v29 = vmul.f32 %v9099_v14, %v10330_v27  ;;  %8371 = vmatprep.mubr.msk.bf16.mxu0 %vm1308_vm2, %v4498_v3  ;;  %v4480_v57 = vmul.f32 %v7555_v42, %v4466_v23 }
0x17c6   : > { %v9101_v41 = vpop.eup %9100 }
0x17c7   : > { %v4468_v9 = vmul.f32 %v9101_v41, %v10336_v18  ;;  %v4499_v40 = vpack.c.bf16 %v4493_v49, %v4492_v17  ;;  %v4481_v4 = vmul.f32 %v7555_v42, %v4467_v29  ;;  %v4494_v37 = vadd.f32 %v7556_v62, %v4480_v57 }
0x17c8   : > { %v9103_v21 = vpop.eup %9102 }
0x17c9   : > { %v4469_v43 = vmul.f32 %v9103_v21, %v10342_v38  ;;  %8372 = vmatmul.mubr.msk.bf16.vlgmr.msra.gmra.mrb[80].mxu0 %vm1308_vm2, %v4499_v40  ;;  %v4495_v47 = vadd.f32 %v7556_v62, %v4481_v4  ;;  %v4482_v19 = vmul.f32 %v7555_v42, %v4468_v9  ;;  %v8835_v38 = vld [vmem:[%s10896_s1 + $0x28] sm:$0xff]   ;;  %s10900_s1 = sld [smem:[#allocation20_spill]] }
0x17ca   : > { %8380 = vmatpush3.bf16.msra.mxu0 %v8834_v53 }
0x17cb   : > { %v4500_v27 = vpack.c.bf16 %v4495_v47, %v4494_v37  ;;  %v4483_v25 = vmul.f32 %v7555_v42, %v4469_v43  ;;  %v4496_v58 = vadd.f32 %v7556_v62, %v4482_v19  ;;  %8381 = vmatprep.subr.bf16.mxu0 %v8835_v38 }
0x17cd   : > { %8375 = vmatprep.mubr.msk.bf16.mxu0 %vm1308_vm2, %v4500_v27  ;;  %v4497_v18 = vadd.f32 %v7556_v62, %v4483_v25 }
0x17ce   : > { %8382 = vmatpush3.bf16.msra.mxu0 %v8835_v38 }
0x17cf   : > { %v4501_v61 = vpack.c.bf16 %v4497_v18, %v4496_v58  ;;  %8383 = vmatprep.subr.bf16.mxu0 %v8836_v1 }
0x17d1   : > { %8376 = vmatmul.mubr.msk.bf16.gmra.mrb[84].mxu0 %vm1308_vm2, %v4501_v61 }
0x17d2   : > { %8384 = vmatpush3.bf16.msra.mxu0 %v8836_v1 }
0x17d3   : > { %8385 = vmatprep.subr.bf16.mxu0 %v8837_v2 }
0x17d6   : > { %8386 = vmatpush3.bf16.msra.mxu0 %v8837_v2 }
0x189c   : > { %v8373_v46 = vpop.f32.mrb[80].mxu0 }
0x189d   : > { %v4569_v6 = vadd.f32 %v8373_v46, %v7557_v30  ;;  %v4560_v54 = vpop.f32.mrb[81].mxu0 }
0x189e   : > { %v4561_v10 = vadd.f32 %v7557_v30, %v4560_v54  ;;  %v8374_v7 = vpop.f32.mrb[82].mxu0 }
0x189f   : > { %v4601_v8 = vmul.f32 0.70710677, %v4569_v6  ;;  %v4572_v51 = vadd.f32 %v8374_v7, %v7557_v30  ;;  %v4563_v15 = vpop.f32.mrb[83].mxu0  ;;  %v4593_v23 = vmul.f32 0.5, %v4569_v6  ;;  %v9280_v7 = vmov 0.0  }
0x18a0   : > { %v4599_v39 = vmul.f32 0.70710677, %v4561_v10  ;;  %v4564_v22 = vadd.f32 %v7557_v30, %v4563_v15  ;;  %v4591_v17 = vmul.f32 0.5, %v4561_v10  ;;  %8395 = vmatprep.subr.bf16.mxu1 %v9280_v7  ;;  %8407 = vmatprep.subr.bf16.mxu0 %v9280_v7 }
0x18a1   : > { %9104 = verf.f32 %v4601_v8  ;;  %v4602_v26 = vmul.f32 0.70710677, %v4572_v51  ;;  %v4594_v3 = vmul.f32 0.5, %v4572_v51  ;;  %8403 = vmatprep.mubr.msk.bf16.mxu1 %vm9281_vm6, %v9280_v7  ;;  %v7563_v8 = vld [vmem:[%s10898_s23 + $0x1] ss:$0 sm:$0xff]  ;;  %s10914_s23 = sld [smem:[#allocation33_spill]] }
0x18a2   : > { %9106 = verf.f32 %v4599_v39  ;;  %v4600_v42 = vmul.f32 0.70710677, %v4564_v22  ;;  %v4592_v49 = vmul.f32 0.5, %v4564_v22 }
0x18a3   : > { %9108 = verf.f32 %v4602_v26 }
0x18a4   : > { %9110 = verf.f32 %v4600_v42  ;;  %v8377_v32 = vpop.f32.mrb[84].mxu0 }
0x18a5   : > { %v4585_v36 = vadd.f32 %v8377_v32, %v7557_v30  ;;  %v4576_v60 = vpop.f32.mrb[85].mxu0 }
0x18a6   : > { %v4577_v45 = vadd.f32 %v7557_v30, %v4576_v60  ;;  %v8378_v59 = vpop.f32.mrb[86].mxu0 }
0x18a7   : > { %v4605_v5 = vmul.f32 0.70710677, %v4585_v36  ;;  %v4588_v48 = vadd.f32 %v8378_v59, %v7557_v30  ;;  %v4579_v55 = vpop.f32.mrb[87].mxu0  ;;  %v4597_v58 = vmul.f32 0.5, %v4585_v36 }
0x18a8   : > { %v4603_v62 = vmul.f32 0.70710677, %v4577_v45  ;;  %v4580_v56 = vadd.f32 %v7557_v30, %v4579_v55  ;;  %v4595_v53 = vmul.f32 0.5, %v4577_v45 }
0x18a9   : > { %9112 = verf.f32 %v4605_v5  ;;  %v4606_v11 = vmul.f32 0.70710677, %v4588_v48  ;;  %v4598_v18 = vmul.f32 0.5, %v4588_v48 }
0x18aa   : > { %9114 = verf.f32 %v4603_v62  ;;  %v4604_v50 = vmul.f32 0.70710677, %v4580_v56  ;;  %v4596_v38 = vmul.f32 0.5, %v4580_v56 }
0x18ab   : > { %v9105_v0 = vpop.eup %9104  ;;  %9116 = verf.f32 %v4606_v11 }
0x18ac   : > { %v9107_v31 = vpop.eup %9106  ;;  %v4617_v16 = vadd.f32 1.0, %v9105_v0  ;;  %9118 = verf.f32 %v4604_v50 }
0x18ad   : > { %v9109_v24 = vpop.eup %9108  ;;  %v4615_v20 = vadd.f32 1.0, %v9107_v31 }
0x18ae   : > { %v9111_v13 = vpop.eup %9110  ;;  %v4618_v14 = vadd.f32 1.0, %v9109_v24  ;;  %v4625_v57 = vmul.f32 %v4617_v16, %v4593_v23 }
0x18af   : > { %v4616_v29 = vadd.f32 1.0, %v9111_v13  ;;  %v4623_v9 = vmul.f32 %v4615_v20, %v4591_v17 }
0x18b0   : > { %v4626_v41 = vmul.f32 %v4618_v14, %v4594_v3 }
0x18b1   : > { %v4624_v40 = vmul.f32 %v4616_v29, %v4592_v49  ;;  %v8842_v29 = vld [vmem:[%s10900_s1] sm:$0xff]  }
0x18b2   : > { %v4632_v4 = vpack.c.bf16 %v4626_v41, %v4625_v57 }
0x18b3   : > { %v9113_v21 = vpop.eup %9112  ;;  %v4631_v43 = vpack.c.bf16 %v4624_v40, %v4623_v9 }
0x18b4   : > { %v9115_v37 = vpop.eup %9114  ;;  %v4621_v47 = vadd.f32 1.0, %v9113_v21  ;;  %v8843_v21 = vld [vmem:[%s10900_s1 + $0x10] sm:$0xff]  }
0x18b5   : > { %v9117_v19 = vpop.eup %9116  ;;  %v4619_v27 = vadd.f32 1.0, %v9115_v37  ;;  %8387 = vmatprep.mubr.msk.bf16.mxu0 %vm1769_vm4, %v4631_v43 }
0x18b6   : > { %v9119_v25 = vpop.eup %9118  ;;  %v4622_v61 = vadd.f32 1.0, %v9117_v19  ;;  %8388 = vmatmul.mubr.msk.bf16.vlgmr.msra.gmra.mrb[88].mxu0 %vm1769_vm4, %v4632_v4  ;;  %v4629_v2 = vmul.f32 %v4621_v47, %v4597_v58  ;;  %v8845_v58 = vld [vmem:[%s10900_s1 + $0x18] sm:$0xff]  }
0x18b7   : > { %v4620_v1 = vadd.f32 1.0, %v9119_v25  ;;  %v4627_v46 = vmul.f32 %v4619_v27, %v4595_v53  ;;  %v8844_v25 = vld [vmem:[%s10899_s28 + $0x18] sm:$0xff]  }
0x18b8   : > { %v4630_v30 = vmul.f32 %v4622_v61, %v4598_v18 }
0x18b9   : > { %v4628_v6 = vmul.f32 %v4620_v1, %v4596_v38 }
0x18ba   : > { %v4634_v54 = vpack.c.bf16 %v4630_v30, %v4629_v2 }
0x18bb   : > { %v4633_v10 = vpack.c.bf16 %v4628_v6, %v4627_v46 }
0x18bd   : > { %8391 = vmatprep.mubr.msk.bf16.mxu0 %vm1769_vm4, %v4633_v10 }
0x18be   : > { %8392 = vmatmul.mubr.msk.bf16.gmra.mrb[92].mxu0 %vm1769_vm4, %v4634_v54 }
0x18bf   : > { %8415 = vmatprep.mubr.msk.bf16.mxu0 %vm9281_vm6, %v9280_v7 }
0x1989   : > { %v8389_v51 = vpop.f32.mrb[88].mxu0 }
0x198a   : > { %v4720_v15 = vadd.f32 %v8389_v51, %v7563_v8  ;;  %v4711_v39 = vpop.f32.mrb[89].mxu0 }
0x198b   : > { %v4712_v22 = vadd.f32 %v7563_v8, %v4711_v39  ;;  %v8390_v26 = vpop.f32.mrb[90].mxu0 }
0x198c   : > { %v4723_v42 = vadd.f32 %v8390_v26, %v7563_v8  ;;  %v4714_v32 = vpop.f32.mrb[91].mxu0  ;;  %v4744_v60 = vadd.f32 %v4720_v15, %v10269_v28 }
0x198d   : > { %v4715_v36 = vadd.f32 %v7563_v8, %v4714_v32  ;;  %v4742_v59 = vadd.f32 %v4712_v22, %v10265_v34 }
0x198e   : > { %v4745_v45 = vadd.f32 %v4723_v42, %v10275_v12 }
0x198f   : > { %v4743_v5 = vadd.f32 %v4715_v36, %v10271_v35 }
0x1990   : > { %v10386_v48 = vpack.c.bf16 %v4745_v45, %v4744_v60 }
0x1991   : > { %v10388_v55 = vpack.c.bf16 %v4743_v5, %v4742_v59  ;;  %v8393_v62 = vpop.f32.mrb[92].mxu0  ;;  %v7600_v59 = vld [vmem:[%s10901_s3] ss:$0 sm:$0xff]  ;;  %s10904_s3 = sld [smem:[#allocation22_spill]] }
0x1992   : > { %v4736_v56 = vadd.f32 %v8393_v62, %v7563_v8  ;;  %v4727_v11 = vpop.f32.mrb[93].mxu0 }
0x1993   : > { %v4728_v50 = vadd.f32 %v7563_v8, %v4727_v11  ;;  %v8394_v0 = vpop.f32.mrb[94].mxu0  ;;  %8396 = vmatpush3.bf16.msra.mxu1 %v10388_v55  ;;  %8408 = vmatpush3.bf16.msra.mxu0 %v10388_v55 }
0x1994   : > { %v4739_v28 = vadd.f32 %v8394_v0, %v7563_v8  ;;  %v4730_v31 = vpop.f32.mrb[95].mxu0  ;;  %8397 = vmatprep.subr.bf16.mxu1 %v9280_v7  ;;  %8409 = vmatprep.subr.bf16.mxu0 %v9280_v7  ;;  %v4748_v35 = vadd.f32 %v4736_v56, %v10289_v44  ;;  %v8839_v44 = vld [vmem:[%s10899_s28] sm:$0xff]  }
0x1995   : > { %v4731_v34 = vadd.f32 %v7563_v8, %v4730_v31  ;;  %v4746_v16 = vadd.f32 %v4728_v50, %v10283_v63  ;;  %v8838_v63 = vld [vmem:[%s10899_s28 + $0x8] sm:$0xff]  }
0x1996   : > { %v4749_v12 = vadd.f32 %v4739_v28, %v10295_v33  ;;  %v8840_v33 = vld [vmem:[%s10899_s28 + $0x10] sm:$0xff]  }
0x1997   : > { %v4747_v24 = vadd.f32 %v4731_v34, %v10291_v52  ;;  %8398 = vmatpush3.bf16.msra.mxu1 %v10386_v48  ;;  %8410 = vmatpush3.bf16.msra.mxu0 %v10386_v48  ;;  %v8841_v52 = vld [vmem:[%s10900_s1 + $0x8] sm:$0xff]   ;;  %s10902_s1 = sld [smem:[#allocation24_spill]] }
0x1998   : > { %v10400_v20 = vpack.c.bf16 %v4749_v12, %v4748_v35  ;;  %8399 = vmatprep.subr.bf16.mxu1 %v9280_v7  ;;  %8411 = vmatprep.subr.bf16.mxu0 %v9280_v7 }
0x1999   : > { %v4752_v13 = vpack.c.bf16 %v4747_v24, %v4746_v16 }
0x199b   : > { %8400 = vmatpush3.bf16.msra.mxu1 %v4752_v13  ;;  %8412 = vmatpush3.bf16.msra.mxu0 %v4752_v13 }
0x199c   : > { %8401 = vmatprep.subr.bf16.mxu1 %v9280_v7  ;;  %8413 = vmatprep.subr.bf16.mxu0 %v9280_v7 }
0x199f   : > { %8402 = vmatpush3.bf16.msra.mxu1 %v10400_v20  ;;  %8414 = vmatpush3.bf16.msra.mxu0 %v10400_v20 }
0x19a0   : > { %8431 = vmatprep.subr.bf16.mxu0 %v9280_v7  ;;  %8419 = vmatprep.subr.bf16.mxu1 %v9280_v7 }
0x19a2   : > { %8416 = vmatmul.mubr.msk.bf16.vlgmr.msra.gmra.mrb[96].mxu0 %vm1769_vm4, %v8838_v63  ;;  %8404 = vmatmul.mubr.msk.bf16.vlgmr.msra.gmra.mrb[120].mxu1 %vm1769_vm4, %v8839_v44 }
0x19a3   : > { %8432 = vmatpush3.bf16.msra.mxu0 %v10388_v55  ;;  %8439 = vmatprep.mubr.msk.bf16.mxu0 %vm9281_vm6, %v9280_v7 }
0x19a4   : > { %8433 = vmatprep.subr.bf16.mxu0 %v9280_v7  ;;  %8420 = vmatpush3.bf16.msra.mxu1 %v8841_v52  ;;  %v8846_v52 = vld [vmem:[%s10902_s1] sm:$0xff]  }
0x19a5   : > { %8421 = vmatprep.mubr.msk.bf16.mxu1 %vm9281_vm6, %v9280_v7  ;;  %8425 = vmatprep.subr.bf16.mxu1 %v9280_v7 }
0x19a7   : > { %8434 = vmatpush3.bf16.msra.mxu0 %v10386_v48 }
0x19a8   : > { %8435 = vmatprep.subr.bf16.mxu0 %v9280_v7 }
0x19ab   : > { %8436 = vmatpush3.bf16.msra.mxu0 %v4752_v13 }
0x19ac   : > { %8437 = vmatprep.subr.bf16.mxu0 %v9280_v7 }
0x19af   : > { %8438 = vmatpush3.bf16.msra.mxu0 %v10400_v20 }
0x19b0   : > { %8461 = vmatprep.subr.bf16.mxu0 %v9280_v7 }
0x19b2   : > { %8440 = vmatmul.mubr.msk.bf16.vlgmr.msra.gmra.mrb[100].mxu0 %vm1769_vm4, %v8840_v33  ;;  %v8847_v33 = vld [vmem:[%s10903_s5] sm:$0xff]  }
0x19b3   : > { %8463 = vmatprep.mubr.msk.bf16.mxu0 %vm9281_vm6, %v9280_v7  ;;  %8462 = vmatpush3.bf16.msra.mxu0 %v8845_v58  ;;  %v8850_v58 = vld [vmem:[%s10906_s8] sm:$0xff]  }
0x19b4   : > { %8467 = vmatprep.subr.bf16.mxu0 %v9280_v7 }
0x1a75   : > { %v4853_v23 = vpop.f32.mrb[96].mxu0  ;;  %v4798_v3 = vpop.f32.mrb[120].mxu1 }
0x1a76   : > { %v8417_v14 = vpop.f32.mrb[97].mxu0  ;;  %v8405_v17 = vpop.f32.mrb[121].mxu1 }
0x1a77   : > { %v4856_v49 = vpop.f32.mrb[98].mxu0  ;;  %v4801_v57 = vpop.f32.mrb[122].mxu1 }
0x1a78   : > { %v4860_v41 = vpack.c.bf16 %v4856_v49, %v4853_v23  ;;  %v8418_v9 = vpop.f32.mrb[99].mxu0  ;;  %v4805_v40 = vpack.c.bf16 %v4801_v57, %v4798_v3  ;;  %v8406_v4 = vpop.f32.mrb[123].mxu1  ;;  %v8848_v23 = vld [vmem:[%s10902_s1 + $0x8] sm:$0xff]  }
0x1a79   : > { %v8849_v3 = vld [vmem:[%s10903_s5 + $0x8] sm:$0xff]  }
0x1a7a   : > { %8422 = vmatmul.mubr.msk.bf16.vlgmr.msra.gmra.mrb[124].mxu1 %vm1308_vm2, %v4860_v41 }
0x1a7b   : > { %8426 = vmatpush3.bf16.msra.mxu1 %v8842_v29  ;;  %8427 = vmatprep.mubr.msk.bf16.mxu1 %vm9281_vm6, %v9280_v7 }
0x1a7c   : > { %8443 = vmatprep.subr.bf16.mxu1 %v9280_v7 }
0x1a82   : > { %8428 = vmatmul.mubr.msk.bf16.vlgmr.msra.gmra.mrb[128].mxu1 %vm1308_vm2, %v4805_v40  ;;  %v7601_v40 = vld [vmem:[%s10904_s3] ss:$0 sm:$0xff] }
0x1a83   : > { %8444 = vmatpush3.bf16.msra.mxu1 %v8843_v21  ;;  %8445 = vmatprep.mubr.msk.bf16.mxu1 %vm9281_vm6, %v9280_v7 }
0x1a84   : > { %8449 = vmatprep.subr.bf16.mxu1 %v9280_v7 }
0x1a85   : > { %v5009_v43 = vpop.f32.mrb[100].mxu0 }
0x1a86   : > { %v8441_v37 = vpop.f32.mrb[101].mxu0 }
0x1a87   : > { %v5012_v47 = vpop.f32.mrb[102].mxu0 }
0x1a88   : > { %v5016_v19 = vpack.c.bf16 %v5012_v47, %v5009_v43  ;;  %v8442_v27 = vpop.f32.mrb[103].mxu0  ;;  %v7602_v47 = vld [vmem:[%s10905_s6] ss:$0 sm:$0xff] }
0x1a8a   : > { %8446 = vmatmul.mubr.msk.bf16.vlgmr.msra.gmra.mrb[132].mxu1 %vm1308_vm2, %v5016_v19 }
0x1a8b   : > { %8450 = vmatpush3.bf16.msra.mxu1 %v10388_v55  ;;  %8457 = vmatprep.mubr.msk.bf16.mxu1 %vm9281_vm6, %v9280_v7 }
0x1a8c   : > { %8451 = vmatprep.subr.bf16.mxu1 %v9280_v7 }
0x1a8f   : > { %8452 = vmatpush3.bf16.msra.mxu1 %v10386_v48 }
0x1a90   : > { %8453 = vmatprep.subr.bf16.mxu1 %v9280_v7 }
0x1a93   : > { %8454 = vmatpush3.bf16.msra.mxu1 %v4752_v13 }
0x1a94   : > { %8455 = vmatprep.subr.bf16.mxu1 %v9280_v7 }
0x1a97   : > { %8456 = vmatpush3.bf16.msra.mxu1 %v10400_v20 }
0x1a98   : > { %8475 = vmatprep.subr.bf16.mxu1 %v9280_v7 }
0x1a9a   : > { %8458 = vmatmul.mubr.msk.bf16.vlgmr.msra.gmra.mrb[136].mxu1 %vm1769_vm4, %v8844_v25 }
0x1a9b   : > { %8479 = vmatprep.mubr.msk.bf16.mxu1 %vm9281_vm6, %v9280_v7  ;;  %8476 = vmatpush3.bf16.msra.mxu1 %v8847_v33 }
0x1a9c   : > { %8477 = vmatprep.subr.bf16.mxu1 %v9280_v7 }
0x1a9f   : > { %8478 = vmatpush3.bf16.msra.mxu1 %v8849_v3 }
0x1aa0   : > { %8491 = vmatprep.subr.bf16.mxu1 %v9280_v7 }
0x1b4d   : > { %v4907_v18 = vpop.f32.mrb[124].mxu1 }
0x1b4e   : > { %v8423_v61 = vpop.f32.mrb[125].mxu1 }
0x1b4f   : > { %v4910_v53 = vpop.f32.mrb[126].mxu1  ;;  %v8851_v61 = vld [vmem:[%s10906_s8 + $0x8] sm:$0xff]  }
0x1b50   : > { %v8424_v38 = vpop.f32.mrb[127].mxu1 }
0x1b55   : > { %v4957_v1 = vpop.f32.mrb[128].mxu1 }
0x1b56   : > { %v4958_v2 = vadd.f32 %v4957_v1, %v4907_v18  ;;  %v8429_v30 = vpop.f32.mrb[129].mxu1 }
0x1b57   : > { %v4960_v46 = vpop.f32.mrb[130].mxu1 }
0x1b58   : > { %v4961_v6 = vadd.f32 %v4960_v46, %v4910_v53  ;;  %v8430_v54 = vpop.f32.mrb[131].mxu1 }
0x1b5d   : > { %v5063_v10 = vpop.f32.mrb[132].mxu1 }
0x1b5e   : > { %v5070_v8 = vadd.f32 %v5063_v10, %v4958_v2  ;;  %v8447_v51 = vpop.f32.mrb[133].mxu1 }
0x1b5f   : > { %v5066_v15 = vpop.f32.mrb[134].mxu1 }
0x1b60   : > { %v5071_v39 = vadd.f32 %v5066_v15, %v4961_v6  ;;  %v8448_v22 = vpop.f32.mrb[135].mxu1 }
0x1b6d   : > { %v5117_v26 = vpop.f32.mrb[136].mxu1 }
0x1b6e   : > { %v8459_v42 = vpop.f32.mrb[137].mxu1 }
0x1b6f   : > { %v5120_v32 = vpop.f32.mrb[138].mxu1 }
0x1b70   : > { %v5124_v36 = vpack.c.bf16 %v5120_v32, %v5117_v26  ;;  %v8460_v60 = vpop.f32.mrb[139].mxu1  ;;  %v8852_v26 = vld [vmem:[%s10902_s1 + $0x10] sm:$0xff]  }
0x1b71   : > { %v8854_v60 = vld [vmem:[%s10906_s8 + $0x10] sm:$0xff]  }
0x1b72   : > { %8464 = vmatmul.mubr.msk.bf16.vlgmr.msra.gmra.mrb[104].mxu0 %vm1308_vm2, %v5124_v36  ;;  %v8853_v36 = vld [vmem:[%s10902_s1 + $0x18] sm:$0xff]  }
0x1b73   : > { %8471 = vmatprep.mubr.msk.bf16.mxu0 %vm9281_vm6, %v9280_v7  ;;  %8468 = vmatpush3.bf16.msra.mxu0 %v8846_v52 }
0x1b74   : > { %8469 = vmatprep.subr.bf16.mxu0 %v9280_v7 }
0x1b77   : > { %8470 = vmatpush3.bf16.msra.mxu0 %v8848_v23 }
0x1b78   : > { %8483 = vmatprep.subr.bf16.mxu0 %v9280_v7 }
0x1c45   : > { %v5171_v45 = vpop.f32.mrb[104].mxu0 }
0x1c46   : > { %v5178_v5 = vadd.f32 %v5171_v45, %v5070_v8  ;;  %v8465_v48 = vpop.f32.mrb[105].mxu0  ;;  %v8855_v45 = vld [vmem:[%s10906_s8 + $0x18] sm:$0xff]  }
0x1c47   : > { %v5174_v55 = vpop.f32.mrb[106].mxu0  ;;  %v5221_v48 = vld [vmem:[%s10907_s9 + $0x8] sm:$0xff] }
0x1c48   : > { %v10461_v62 = vadd.f32 %v7600_v59, %v5178_v5  ;;  %v5179_v56 = vadd.f32 %v5174_v55, %v5071_v39  ;;  %v8466_v11 = vpop.f32.mrb[107].mxu0 }
0x1c4a   : > { %v10463_v50 = vadd.f32 %v7600_v59, %v5179_v56  ;;  %v5249_v0 = vsel %vm5248_vm7, %v10461_v62, 0.0  ;;  %v5220_v59 = vld [vmem:[%s10907_s9] sm:$0xff] }
0x1c4b   : > { %5250 = vadd.xlane.f32.xlu0 %v5249_v0 }
0x1c4c   : > { %v5252_v28 = vsel %vm5248_vm7, %v10463_v50, 0.0 }
0x1c4d   : > { %5253 = vadd.xlane.f32.xlu1 %v5252_v28 }
0x1cd8   : > { %v5251_v31 = vpop.xlane.xlu0 %5250 }
0x1cd9   : > { %v5256_v34 = vmul.f32 0.03125, %v5251_v31 }
0x1cda   : > { %v5254_v35 = vpop.xlane.xlu1 %5253 }
0x1cdb   : > { %v5258_v12 = vsub.f32 %v10461_v62, %v5256_v34  ;;  %v5257_v16 = vmul.f32 0.03125, %v5254_v35 }
0x1cdd   : > { %v5259_v24 = vsub.f32 %v10463_v50, %v5257_v16  ;;  %v5260_v20 = vmul.f32 %v5258_v12, %v5258_v12 }
0x1cdf   : > { %v5262_v13 = vsel %vm5248_vm7, %v5260_v20, 0.0  ;;  %v5261_v63 = vmul.f32 %v5259_v24, %v5259_v24 }
0x1ce0   : > { %5263 = vadd.xlane.f32.xlu0 %v5262_v13 }
0x1ce1   : > { %v5265_v44 = vsel %vm5248_vm7, %v5261_v63, 0.0 }
0x1ce2   : > { %5266 = vadd.xlane.f32.xlu1 %v5265_v44 }
0x1d6d   : > { %v5264_v14 = vpop.xlane.xlu0 %5263 }
0x1d6e   : > { %v5268_v17 = vmul.f32 0.03125, %v5264_v14 }
0x1d6f   : > { %v5267_v49 = vpop.xlane.xlu1 %5266 }
0x1d70   : > { %v5270_v29 = vadd.f32 1e-05, %v5268_v17  ;;  %v5269_v57 = vmul.f32 0.03125, %v5267_v49 }
0x1d72   : > { %9120 = vrsqrt.f32 %v5270_v29  ;;  %v5271_v41 = vadd.f32 1e-05, %v5269_v57 }
0x1d74   : > { %9122 = vrsqrt.f32 %v5271_v41 }
0x1d7c   : > { %v9121_v9 = vpop.eup %9120 }
0x1d7d   : > { %v5274_v4 = vmul.f32 %v9121_v9, %v5258_v12 }
0x1d7e   : > { %v9123_v21 = vpop.eup %9122 }
0x1d7f   : > { %v5282_v43 = vmul.f32 %v7601_v40, %v5274_v4  ;;  %v5275_v37 = vmul.f32 %v9123_v21, %v5259_v24 }
0x1d81   : > { %v5283_v19 = vmul.f32 %v7601_v40, %v5275_v37  ;;  %v5290_v27 = vadd.f32 %v7602_v47, %v5282_v43 }
0x1d83   : > { %v5291_v25 = vadd.f32 %v7602_v47, %v5283_v19 }
0x1d85   : > { %v10484_v18 = vpack.c.bf16 %v5291_v25, %v5290_v27  ;;  %v8856_v27 = vld [vmem:[%s10903_s5 + $0x10] sm:$0xff]  }
0x1d87   : > { %8472 = vmatmul.mubr.msk.bf16.vlgmr.msra.gmra.mrb[108].mxu0 %vm5248_vm7, %v10484_v18  ;;  %8480 = vmatmul.mubr.msk.bf16.vlgmr.msra.gmra.mrb[140].mxu1 %vm5248_vm7, %v10484_v18 }
0x1d88   : > { %8484 = vmatpush3.bf16.msra.mxu0 %v8850_v58  ;;  %8487 = vmatprep.mubr.msk.bf16.mxu0 %vm9281_vm6, %v9280_v7  ;;  %v8857_v58 = vld [vmem:[%s10903_s5 + $0x18] sm:$0xff]  }
0x1d89   : > { %8485 = vmatprep.subr.bf16.mxu0 %v9280_v7  ;;  %8493 = vmatprep.mubr.msk.bf16.mxu1 %vm9281_vm6, %v9280_v7 }
0x1d8c   : > { %8486 = vmatpush3.bf16.msra.mxu0 %v8851_v61 }
0x1d8d   : > { %8497 = vmatprep.subr.bf16.mxu0 %v9280_v7 }
0x1d8f   : > { %8488 = vmatmul.mubr.msk.bf16.vlgmr.msra.gmra.mrb[112].mxu0 %vm5248_vm7, %v10484_v18 }
0x1d90   : > { %8499 = vmatprep.mubr.msk.bf16.mxu0 %vm9281_vm6, %v9280_v7 }
0x1e5a   : > { %v5342_v53 = vpop.f32.mrb[108].mxu0  ;;  %v5395_v38 = vpop.f32.mrb[140].mxu1 }
0x1e5b   : > { %v8473_v1 = vpop.f32.mrb[109].mxu0  ;;  %v8481_v2 = vpop.f32.mrb[141].mxu1 }
0x1e5c   : > { %v5345_v30 = vpop.f32.mrb[110].mxu0  ;;  %v5398_v46 = vpop.f32.mrb[142].mxu1 }
0x1e5d   : > { %v5455_v6 = vpack.c.bf16 %v5345_v30, %v5342_v53  ;;  %v5456_v54 = vpack.c.bf16 %v5398_v46, %v5395_v38  ;;  %v8474_v10 = vpop.f32.mrb[111].mxu0  ;;  %v8482_v8 = vpop.f32.mrb[143].mxu1 }
0x1e5f   : > { %v5461_v51 = vsel %vm1308_vm2, %v5456_v54, 0 }
0x1e60   : > { %8492 = vmatpush3.bf16.xpose.msra.mxu1 %v5461_v51 }
0x1e61   : > { %8503 = vmatprep.subr.bf16.mxu1 %v9280_v7 }
0x1e62   : > { %v5448_v15 = vpop.f32.mrb[112].mxu0 }
0x1e63   : > { %v8489_v39 = vpop.f32.mrb[113].mxu0 }
0x1e64   : > { %v5451_v22 = vpop.f32.mrb[114].mxu0 }
0x1e65   : > { %v5527_v42 = vpack.c.bf16 %v5451_v22, %v5448_v15  ;;  %v8490_v32 = vpop.f32.mrb[115].mxu0  ;;  %v5223_v15 = vld [vmem:[%s10907_s9 + $0x18] sm:$0xff] }
0x1e67   : > { %8494 = vmatmul.mubr.msk.bf16.vlgmr.msra.gmra.mrb[144].mxu1 %vm1308_vm2, %v5455_v6  ;;  %8498 = vmatpush3.bf16.msra.mxu0 %v5527_v42 }
0x1e68   : > { %8504 = vmatpush3.bf16.msra.mxu1 %v8852_v26  ;;  %8507 = vmatprep.mubr.msk.bf16.mxu1 %vm9281_vm6, %v9280_v7 }
0x1e69   : > { %8505 = vmatprep.subr.bf16.mxu1 %v9280_v7  ;;  %8511 = vmatprep.subr.bf16.mxu0 %v9280_v7 }
0x1e6c   : > { %8506 = vmatpush3.bf16.msra.mxu1 %v8853_v36 }
0x1e6d   : > { %8519 = vmatprep.subr.bf16.mxu1 %v9280_v7 }
0x1e6f   : > { %8508 = vmatmul.mubr.msk.bf16.vlgmr.msra.gmra.mrb[148].mxu1 %vm5248_vm7, %v10484_v18 }
0x1e70   : > { %8520 = vmatpush3.bf16.msra.mxu1 %v8854_v60  ;;  %8523 = vmatprep.mubr.msk.bf16.mxu1 %vm9281_vm6, %v9280_v7 }
0x1e71   : > { %8521 = vmatprep.subr.bf16.mxu1 %v9280_v7 }
0x1e74   : > { %8522 = vmatpush3.bf16.msra.mxu1 %v8855_v45 }
0x1e75   : > { %8533 = vmatprep.subr.bf16.mxu1 %v9280_v7 }
0x1e77   : > { %8524 = vmatmul.mubr.msk.bf16.vlgmr.msra.gmra.mrb[152].mxu1 %vm5248_vm7, %v10484_v18 }
0x1e78   : > { %8535 = vmatprep.mubr.msk.bf16.mxu1 %vm9281_vm6, %v9280_v7 }
0x1f3a   : > { %v5497_v5 = vpop.f32.mrb[144].mxu1 }
0x1f3b   : > { %v5498_v55 = vadd.f32 %v5497_v5, %v5220_v59  ;;  %v8495_v56 = vpop.f32.mrb[145].mxu1 }
0x1f3c   : > { %v5500_v11 = vpop.f32.mrb[146].mxu1 }
0x1f3d   : > { %v5501_v0 = vadd.f32 %v5500_v11, %v5221_v48  ;;  %v8496_v28 = vpop.f32.mrb[147].mxu1  ;;  %v5504_v31 = vsel %vm1308_vm2, %v5498_v55, -inf }
0x1f3e   : > { %5505 = vmax.xlane.f32.xlu0 %v5504_v31 }
0x1f3f   : > { %v5507_v34 = vsel %vm1308_vm2, %v5501_v0, -inf }
0x1f40   : > { %5508 = vmax.xlane.f32.xlu1 %v5507_v34  ;;  %v8859_v34 = vld [vmem:[%s10908_s11 + $0x8] sm:$0xff]  }
0x1f42   : > { %v5619_v35 = vpop.f32.mrb[148].mxu1 }
0x1f43   : > { %v8509_v12 = vpop.f32.mrb[149].mxu1 }
0x1f44   : > { %v5622_v16 = vpop.f32.mrb[150].mxu1 }
0x1f45   : > { %v5732_v24 = vpack.c.bf16 %v5622_v16, %v5619_v35  ;;  %v8510_v20 = vpop.f32.mrb[151].mxu1 }
0x1f4a   : > { %v5725_v13 = vpop.f32.mrb[152].mxu1 }
0x1f4b   : > { %v8525_v63 = vpop.f32.mrb[153].mxu1 }
0x1f4c   : > { %v5728_v44 = vpop.f32.mrb[154].mxu1  ;;  %v8858_v63 = vld [vmem:[%s10908_s11] sm:$0xff]  }
0x1f4d   : > { %v5804_v52 = vpack.c.bf16 %v5728_v44, %v5725_v13  ;;  %v8526_v33 = vpop.f32.mrb[155].mxu1 }
0x1f4f   : > { %8534 = vmatpush3.bf16.msra.mxu1 %v5804_v52 }
0x1f50   : > { %8545 = vmatprep.subr.bf16.mxu1 %v9280_v7 }
0x1fcb   : > { %v5506_v23 = vpop.xlane.xlu0 %5505 }
0x1fcc   : > { %v5510_v3 = vsub.f32 %v5498_v55, %v5506_v23 }
0x1fcd   : > { %v5509_v14 = vpop.xlane.xlu1 %5508 }
0x1fce   : > { %v5512_v17 = vmul.f32 1.442695, %v5510_v3  ;;  %v5511_v49 = vsub.f32 %v5501_v0, %v5509_v14 }
0x1fd0   : > { %9124 = vpow2.f32 %v5512_v17  ;;  %v5514_v29 = vmul.f32 1.442695, %v5511_v49 }
0x1fd2   : > { %9126 = vpow2.f32 %v5514_v29 }
0x1fda   : > { %v9125_v57 = vpop.eup %9124 }
0x1fdb   : > { %v5516_v41 = vsel %vm1308_vm2, %v9125_v57, 0.0 }
0x1fdc   : > { %v9127_v9 = vpop.eup %9126  ;;  %5517 = vadd.xlane.f32.xlu0 %v5516_v41 }
0x1fdd   : > { %v5519_v40 = vsel %vm1308_vm2, %v9127_v9, 0.0 }
0x1fde   : > { %5520 = vadd.xlane.f32.xlu1 %v5519_v40 }
0x2069   : > { %v5518_v4 = vpop.xlane.xlu0 %5517 }
0x206a   : > { %9128 = vrcp.f32 %v5518_v4  ;;  %v7629_v4 = vld [vmem:[%s10909_s13] ss:$0 sm:$0xff] }
0x206b   : > { %v5521_v21 = vpop.xlane.xlu1 %5520 }
0x206c   : > { %9130 = vrcp.f32 %v5521_v21 }
0x2074   : > { %v9129_v43 = vpop.eup %9128 }
0x2075   : > { %v5524_v47 = vmul.f32 %v9129_v43, %v9125_v57 }
0x2076   : > { %v9131_v37 = vpop.eup %9130 }
0x2077   : > { %v5525_v19 = vmul.f32 %v9131_v37, %v9127_v9 }
0x2079   : > { %v5526_v25 = vpack.c.bf16 %v5525_v19, %v5524_v47 }
0x207b   : > { %8500 = vmatmul.mubr.msk.bf16.vlgmr.msra.gmra.mrb[116].mxu0 %vm1308_vm2, %v5526_v25 }
0x207c   : > { %8512 = vmatpush3.bf16.msra.mxu0 %v8856_v27  ;;  %8515 = vmatprep.mubr.msk.bf16.mxu0 %vm9281_vm6, %v9280_v7 }
0x207d   : > { %8513 = vmatprep.subr.bf16.mxu0 %v9280_v7 }
0x2080   : > { %8514 = vmatpush3.bf16.msra.mxu0 %v8857_v58 }
0x2081   : > { %8527 = vmatprep.subr.bf16.mxu0 %v9280_v7 }
0x2083   : > { %8516 = vmatmul.mubr.msk.bf16.vlgmr.msra.gmra.mrb[120].mxu0 %vm5248_vm7, %v10484_v18  ;;  %v5222_v18 = vld [vmem:[%s10907_s9 + $0x10] sm:$0xff] }
0x2084   : > { %8529 = vmatprep.mubr.msk.bf16.mxu0 %vm9281_vm6, %v9280_v7 }
0x214e   : > { %v5565_v61 = vpop.f32.mrb[116].mxu0 }
0x214f   : > { %v8501_v53 = vpop.f32.mrb[117].mxu0 }
0x2150   : > { %v5568_v38 = vpop.f32.mrb[118].mxu0 }
0x2151   : > { %v5572_v1 = vpack.c.bf16 %v5568_v38, %v5565_v61  ;;  %v8502_v2 = vpop.f32.mrb[119].mxu0 }
0x2156   : > { %v5672_v30 = vpop.f32.mrb[120].mxu0 }
0x2157   : > { %v8517_v46 = vpop.f32.mrb[121].mxu0 }
0x2158   : > { %v5675_v6 = vpop.f32.mrb[122].mxu0 }
0x2159   : > { %v5733_v54 = vpack.c.bf16 %v5675_v6, %v5672_v30  ;;  %v8518_v10 = vpop.f32.mrb[123].mxu0 }
0x215a   : > { %v8860_v10 = vld [vmem:[%s10910_s14] sm:$0xff]  }
0x215b   : > { %v5738_v8 = vsel %vm1308_vm2, %v5733_v54, 0 }
0x215c   : > { %8528 = vmatpush3.bf16.xpose.msra.mxu0 %v5738_v8  ;;  %v8861_v8 = vld [vmem:[%s10910_s14 + $0x8] sm:$0xff]  }
0x215d   : > { %8539 = vmatprep.subr.bf16.mxu0 %v9280_v7 }
0x2163   : > { %8530 = vmatmul.mubr.msk.bf16.vlgmr.msra.gmra.mrb[124].mxu0 %vm1308_vm2, %v5732_v24 }
0x2164   : > { %8541 = vmatprep.mubr.msk.bf16.mxu0 %vm9281_vm6, %v9280_v7  ;;  %8540 = vmatpush3.bf16.msra.mxu0 %v8859_v34  ;;  %v8865_v34 = vld [vmem:[%s10911_s17 + $0x18] sm:$0xff]  }
0x2165   : > { %8551 = vmatprep.subr.bf16.mxu0 %v9280_v7 }
0x2236   : > { %v5774_v51 = vpop.f32.mrb[124].mxu0 }
0x2237   : > { %v5775_v39 = vadd.f32 %v5774_v51, %v5222_v18  ;;  %v8531_v22 = vpop.f32.mrb[125].mxu0  ;;  %v8862_v18 = vld [vmem:[%s10911_s17] sm:$0xff]   ;;  %v8863_v51 = vld [vmem:[%s10911_s17 + $0x8] sm:$0xff]  }
0x2238   : > { %v5777_v26 = vpop.f32.mrb[126].mxu0 }
0x2239   : > { %v5778_v42 = vadd.f32 %v5777_v26, %v5223_v15  ;;  %v8532_v32 = vpop.f32.mrb[127].mxu0  ;;  %v5781_v36 = vsel %vm1308_vm2, %v5775_v39, -inf }
0x223a   : > { %5782 = vmax.xlane.f32.xlu0 %v5781_v36 }
0x223b   : > { %v5784_v60 = vsel %vm1308_vm2, %v5778_v42, -inf }
0x223c   : > { %5785 = vmax.xlane.f32.xlu1 %v5784_v60  ;;  %v7630_v60 = vld [vmem:[%s10912_s19] ss:$0 sm:$0xff] }
0x22c7   : > { %v5783_v45 = vpop.xlane.xlu0 %5782 }
0x22c8   : > { %v5787_v59 = vsub.f32 %v5775_v39, %v5783_v45 }
0x22c9   : > { %v5786_v5 = vpop.xlane.xlu1 %5785 }
0x22ca   : > { %v5789_v48 = vmul.f32 1.442695, %v5787_v59  ;;  %v5788_v55 = vsub.f32 %v5778_v42, %v5786_v5 }
0x22cc   : > { %9132 = vpow2.f32 %v5789_v48  ;;  %v5791_v56 = vmul.f32 1.442695, %v5788_v55  ;;  %v7631_v55 = vld [vmem:[%s10913_s21] ss:$0 sm:$0xff] }
0x22ce   : > { %9134 = vpow2.f32 %v5791_v56 }
0x22d6   : > { %v9133_v11 = vpop.eup %9132 }
0x22d7   : > { %v5793_v0 = vsel %vm1308_vm2, %v9133_v11, 0.0 }
0x22d8   : > { %v9135_v28 = vpop.eup %9134  ;;  %5794 = vadd.xlane.f32.xlu0 %v5793_v0 }
0x22d9   : > { %v5796_v31 = vsel %vm1308_vm2, %v9135_v28, 0.0 }
0x22da   : > { %5797 = vadd.xlane.f32.xlu1 %v5796_v31  ;;  %v8864_v31 = vld [vmem:[%s10911_s17 + $0x10] sm:$0xff]  }
0x2365   : > { %v5795_v35 = vpop.xlane.xlu0 %5794 }
0x2366   : > { %9136 = vrcp.f32 %v5795_v35  ;;  %v8866_v35 = vld [vmem:[%s10911_s17 + $0x20] sm:$0xff]  }
0x2367   : > { %v5798_v12 = vpop.xlane.xlu1 %5797 }
0x2368   : > { %9138 = vrcp.f32 %v5798_v12  ;;  %v8867_v12 = vld [vmem:[%s10911_s17 + $0x28] sm:$0xff]  }
0x2370   : > { %v9137_v16 = vpop.eup %9136 }
0x2371   : > { %v5801_v20 = vmul.f32 %v9137_v16, %v9133_v11  ;;  %v8868_v16 = vld [vmem:[%s10911_s17 + $0x30] sm:$0xff]  }
0x2372   : > { %v9139_v24 = vpop.eup %9138 }
0x2373   : > { %v5802_v13 = vmul.f32 %v9139_v24, %v9135_v28  ;;  %v8869_v24 = vld [vmem:[%s10911_s17 + $0x38] sm:$0xff]  }
0x2375   : > { %v5803_v44 = vpack.c.bf16 %v5802_v13, %v5801_v20  ;;  %v7632_v20 = vld [vmem:[%s10914_s23] ss:$0 sm:$0xff] }
0x2377   : > { %8536 = vmatmul.mubr.msk.bf16.vlgmr.msra.gmra.mrb[156].mxu1 %vm1308_vm2, %v5803_v44 }
0x2378   : > { %8546 = vmatpush3.bf16.msra.mxu1 %v8858_v63  ;;  %8547 = vmatprep.mubr.msk.bf16.mxu1 %vm9281_vm6, %v9280_v7 }
0x2379   : > { %8559 = vmatprep.subr.bf16.mxu1 %v9280_v7 }
0x237f   : > { %8548 = vmatmul.mubr.msk.bf16.vlgmr.msra.gmra.mrb[160].mxu1 %vm1308_vm2, %v5572_v1 }
0x2380   : > { %8575 = vmatprep.mubr.msk.bf16.mxu1 %vm9281_vm6, %v9280_v7  ;;  %8560 = vmatpush3.bf16.msra.mxu1 %v8862_v18 }
0x2381   : > { %8561 = vmatprep.subr.bf16.mxu1 %v9280_v7 }
0x2384   : > { %8562 = vmatpush3.bf16.msra.mxu1 %v8863_v51  ;;  %v8870_v51 = vld [vmem:[%s10902_s1 + $0x20] sm:$0xff]  }
0x2385   : > { %8563 = vmatprep.subr.bf16.mxu1 %v9280_v7 }
0x2388   : > { %8564 = vmatpush3.bf16.msra.mxu1 %v8864_v31  ;;  %v8872_v31 = vld [vmem:[%s10903_s5 + $0x20] sm:$0xff]  }
0x2389   : > { %8565 = vmatprep.subr.bf16.mxu1 %v9280_v7 }
0x238c   : > { %8566 = vmatpush3.bf16.msra.mxu1 %v8865_v34 }
0x238d   : > { %8567 = vmatprep.subr.bf16.mxu1 %v9280_v7 }
0x2390   : > { %8568 = vmatpush3.bf16.msra.mxu1 %v8866_v35  ;;  %v8873_v35 = vld [vmem:[%s10903_s5 + $0x28] sm:$0xff]  }
0x2391   : > { %8569 = vmatprep.subr.bf16.mxu1 %v9280_v7 }
0x2394   : > { %8570 = vmatpush3.bf16.msra.mxu1 %v8867_v12  ;;  %v8874_v12 = vld [vmem:[%s10906_s8 + $0x20] sm:$0xff]  }
0x2395   : > { %8571 = vmatprep.subr.bf16.mxu1 %v9280_v7 }
0x2398   : > { %8572 = vmatpush3.bf16.msra.mxu1 %v8868_v16  ;;  %v8875_v16 = vld [vmem:[%s10906_s8 + $0x28] sm:$0xff]  }
0x2399   : > { %8573 = vmatprep.subr.bf16.mxu1 %v9280_v7 }
0x239c   : > { %8574 = vmatpush3.bf16.msra.mxu1 %v8869_v24 }
0x239d   : > { %8609 = vmatprep.subr.bf16.mxu1 %v9280_v7 }
0x244a   : > { %v5842_v52 = vpop.f32.mrb[156].mxu1 }
0x244b   : > { %v8537_v33 = vpop.f32.mrb[157].mxu1 }
0x244c   : > { %v5845_v23 = vpop.f32.mrb[158].mxu1 }
0x244d   : > { %v5849_v3 = vpack.c.bf16 %v5845_v23, %v5842_v52  ;;  %v8538_v14 = vpop.f32.mrb[159].mxu1 }
0x244f   : > { %8542 = vmatmul.mubr.msk.bf16.vlgmr.msra.gmra.mrb[128].mxu0 %vm1308_vm2, %v5849_v3 }
0x2450   : > { %8555 = vmatprep.mubr.msk.bf16.mxu0 %vm9281_vm6, %v9280_v7  ;;  %8552 = vmatpush3.bf16.msra.mxu0 %v8860_v10 }
0x2451   : > { %8553 = vmatprep.subr.bf16.mxu0 %v9280_v7 }
0x2452   : > { %v5943_v17 = vpop.f32.mrb[160].mxu1 }
0x2453   : > { %v8549_v49 = vpop.f32.mrb[161].mxu1 }
0x2454   : > { %v5946_v29 = vpop.f32.mrb[162].mxu1  ;;  %8554 = vmatpush3.bf16.msra.mxu0 %v8861_v8 }
0x2455   : > { %v8550_v57 = vpop.f32.mrb[163].mxu1  ;;  %8579 = vmatprep.subr.bf16.mxu0 %v9280_v7 }
0x2522   : > { %v5893_v41 = vpop.f32.mrb[128].mxu0 }
0x2523   : > { %v5944_v9 = vadd.f32 %v5943_v17, %v5893_v41  ;;  %v8543_v40 = vpop.f32.mrb[129].mxu0 }
0x2524   : > { %v5896_v21 = vpop.f32.mrb[130].mxu0 }
0x2525   : > { %v5950_v43 = vadd.f32 %v5944_v9, %v10461_v62  ;;  %v5947_v37 = vadd.f32 %v5946_v29, %v5896_v21  ;;  %v8544_v47 = vpop.f32.mrb[131].mxu0 }
0x2527   : > { %v10567_v19 = vadd.f32 %v7629_v4, %v5950_v43  ;;  %v5951_v27 = vadd.f32 %v5947_v37, %v10463_v50  ;;  %v7636_v43 = vld [vmem:[%s10915_s24] ss:$0 sm:$0xff] }
0x2529   : > { %v10570_v25 = vadd.f32 %v7629_v4, %v5951_v27  ;;  %v5960_v58 = vsel %vm5248_vm7, %v10567_v19, 0.0 }
0x252a   : > { %5961 = vadd.xlane.f32.xlu0 %v5960_v58 }
0x252b   : > { %v5963_v61 = vsel %vm5248_vm7, %v10570_v25, 0.0 }
0x252c   : > { %5964 = vadd.xlane.f32.xlu1 %v5963_v61 }
0x25b7   : > { %v5962_v53 = vpop.xlane.xlu0 %5961 }
0x25b8   : > { %v5966_v62 = vmul.f32 0.03125, %v5962_v53 }
0x25b9   : > { %v5965_v38 = vpop.xlane.xlu1 %5964 }
0x25ba   : > { %v5968_v1 = vsub.f32 %v10567_v19, %v5966_v62  ;;  %v5967_v2 = vmul.f32 0.03125, %v5965_v38 }
0x25bc   : > { %v5969_v50 = vsub.f32 %v10570_v25, %v5967_v2  ;;  %v5970_v30 = vmul.f32 %v5968_v1, %v5968_v1 }
0x25be   : > { %v5972_v46 = vsel %vm5248_vm7, %v5970_v30, 0.0  ;;  %v5971_v6 = vmul.f32 %v5969_v50, %v5969_v50 }
0x25bf   : > { %5973 = vadd.xlane.f32.xlu0 %v5972_v46 }
0x25c0   : > { %v5975_v54 = vsel %vm5248_vm7, %v5971_v6, 0.0 }
0x25c1   : > { %5976 = vadd.xlane.f32.xlu1 %v5975_v54 }
0x264c   : > { %v5974_v15 = vpop.xlane.xlu0 %5973 }
0x264d   : > { %v5978_v39 = vmul.f32 0.03125, %v5974_v15  ;;  %v8871_v15 = vld [vmem:[%s10902_s1 + $0x28] sm:$0xff]  }
0x264e   : > { %v5977_v22 = vpop.xlane.xlu1 %5976 }
0x264f   : > { %v5980_v26 = vadd.f32 1e-05, %v5978_v39  ;;  %v5979_v42 = vmul.f32 0.03125, %v5977_v22 }
0x2651   : > { %9140 = vrsqrt.f32 %v5980_v26  ;;  %v5981_v32 = vadd.f32 1e-05, %v5979_v42 }
0x2653   : > { %9142 = vrsqrt.f32 %v5981_v32 }
0x265b   : > { %v9141_v36 = vpop.eup %9140 }
0x265c   : > { %v5984_v45 = vmul.f32 %v9141_v36, %v5968_v1 }
0x265d   : > { %v9143_v59 = vpop.eup %9142 }
0x265e   : > { %v5992_v5 = vmul.f32 %v7630_v60, %v5984_v45  ;;  %v5985_v48 = vmul.f32 %v9143_v59, %v5969_v50  ;;  %v7704_v45 = vld [vmem:[%s10904_s3 + $0x1] ss:$0 sm:$0xff]  ;;  %s1145_s3 = sand.u32 1, %s9232_s16  }
0x2660   : > { %v5993_v56 = vmul.f32 %v7630_v60, %v5985_v48  ;;  %v6000_v11 = vadd.f32 %v7631_v55, %v5992_v5 }
0x2662   : > { %v6001_v0 = vadd.f32 %v7631_v55, %v5993_v56  ;;  %v7705_v56 = vld [vmem:[%s10905_s6 + $0x1] ss:$0 sm:$0xff]  ;;  %s1146_s6 = scalar_lea.vmem [#allocation2], %s1145_s3 }
0x2664   : > { %v6002_v28 = vpack.c.bf16 %v6001_v0, %v6000_v11 }
0x2666   : > { %8556 = vmatmul.mubr.msk.bf16.vlgmr.msra.gmra.mrb[132].mxu0 %vm5248_vm7, %v6002_v28 }
0x2667   : > { %8583 = vmatprep.mubr.msk.bf16.mxu0 %vm9281_vm6, %v9280_v7  ;;  %8580 = vmatpush3.bf16.msra.mxu0 %v8870_v51 }
0x2668   : > { %8581 = vmatprep.subr.bf16.mxu0 %v9280_v7 }
0x266b   : > { %8582 = vmatpush3.bf16.msra.mxu0 %v8871_v15 }
0x266c   : > { %8587 = vmatprep.subr.bf16.mxu0 %v9280_v7 }
0x2739   : > { %v6058_v13 = vpop.f32.mrb[132].mxu0 }
0x273a   : > { %v6059_v63 = vadd.f32 %v7632_v20, %v6058_v13  ;;  %v8557_v44 = vpop.f32.mrb[133].mxu0 }
0x273b   : > { %v6061_v52 = vpop.f32.mrb[134].mxu0 }
0x273c   : > { %v6067_v33 = vmul.f32 0.70710677, %v6059_v63  ;;  %v6062_v23 = vadd.f32 %v7632_v20, %v6061_v52  ;;  %v8558_v3 = vpop.f32.mrb[135].mxu0  ;;  %v6065_v57 = vmul.f32 0.5, %v6059_v63 }
0x273e   : > { %9144 = verf.f32 %v6067_v33  ;;  %v6068_v14 = vmul.f32 0.70710677, %v6062_v23  ;;  %v6066_v41 = vmul.f32 0.5, %v6062_v23 }
0x2740   : > { %9146 = verf.f32 %v6068_v14 }
0x2748   : > { %v9145_v17 = vpop.eup %9144 }
0x2749   : > { %v6071_v49 = vadd.f32 1.0, %v9145_v17 }
0x274a   : > { %v9147_v29 = vpop.eup %9146 }
0x274b   : > { %v6072_v9 = vadd.f32 1.0, %v9147_v29  ;;  %v6073_v40 = vmul.f32 %v6071_v49, %v6065_v57 }
0x274d   : > { %v6074_v4 = vmul.f32 %v6072_v9, %v6066_v41  ;;  %v8876_v41 = vld [vmem:[%s10902_s1 + $0x30] sm:$0xff]  }
0x274f   : > { %v6075_v21 = vpack.c.bf16 %v6074_v4, %v6073_v40  ;;  %v8877_v4 = vld [vmem:[%s10902_s1 + $0x38] sm:$0xff]   ;;  %s10916_s1 = sld [smem:[#allocation36_spill]] }
0x2751   : > { %8576 = vmatmul.mubr.bf16.vlgmr.msra.gmra.mrb[164].mxu1 %v6075_v21  ;;  %v8878_v21 = vld [vmem:[%s10906_s8 + $0x30] sm:$0xff]  }
0x2752   : > { %8611 = vmatprep.mubr.msk.bf16.mxu1 %vm9281_vm6, %v9280_v7 }
0x2824   : > { %v6164_v37 = vpop.f32.mrb[164].mxu1 }
0x2825   : > { %v6165_v47 = vadd.f32 %v7636_v43, %v6164_v37  ;;  %v8577_v27 = vpop.f32.mrb[165].mxu1  ;;  %v7676_v37 = vld [vmem:[%s10907_s9 + $0x20] sm:$0xff] }
0x2826   : > { %v6167_v58 = vpop.f32.mrb[166].mxu1  ;;  %v7677_v27 = vld [vmem:[%s10907_s9 + $0x28] sm:$0xff] }
0x2827   : > { %v10610_v61 = vadd.f32 %v6165_v47, %v10567_v19  ;;  %v6168_v53 = vadd.f32 %v7636_v43, %v6167_v58  ;;  %v8578_v62 = vpop.f32.mrb[167].mxu1  ;;  %v8879_v43 = vld [vmem:[%s10906_s8 + $0x38] sm:$0xff]   ;;  %s7272_s8 = sshll.u32 %s1146_s6, 4  ;;  %s10774_s8 = int_to_ptr.vmem [resolvable:$true] %s7272_s8 }
0x2829   : > { %v10613_v38 = vadd.f32 %v6168_v53, %v10570_v25  ;;  %v6246_v1 = vsel %vm5248_vm7, %v10610_v61, 0.0 }
0x282a   : > { %6247 = vadd.xlane.f32.xlu0 %v6246_v1 }
0x282b   : > { %v6249_v2 = vsel %vm5248_vm7, %v10613_v38, 0.0 }
0x282c   : > { %6250 = vadd.xlane.f32.xlu1 %v6249_v2 }
0x28b7   : > { %v6248_v50 = vpop.xlane.xlu0 %6247 }
0x28b8   : > { %v6252_v30 = vmul.f32 0.03125, %v6248_v50 }
0x28b9   : > { %v6251_v46 = vpop.xlane.xlu1 %6250 }
0x28ba   : > { %v6254_v19 = vsub.f32 %v10610_v61, %v6252_v30  ;;  %v6253_v6 = vmul.f32 0.03125, %v6251_v46 }
0x28bc   : > { %v6255_v54 = vsub.f32 %v10613_v38, %v6253_v6  ;;  %v6256_v25 = vmul.f32 %v6254_v19, %v6254_v19 }
0x28be   : > { %v6258_v10 = vsel %vm5248_vm7, %v6256_v25, 0.0  ;;  %v6257_v8 = vmul.f32 %v6255_v54, %v6255_v54 }
0x28bf   : > { %6259 = vadd.xlane.f32.xlu0 %v6258_v10 }
0x28c0   : > { %v6261_v18 = vsel %vm5248_vm7, %v6257_v8, 0.0 }
0x28c1   : > { %6262 = vadd.xlane.f32.xlu1 %v6261_v18 }
0x294c   : > { %v6260_v39 = vpop.xlane.xlu0 %6259 }
0x294d   : > { %v6264_v22 = vmul.f32 0.03125, %v6260_v39 }
0x294e   : > { %v6263_v26 = vpop.xlane.xlu1 %6262 }
0x294f   : > { %v6266_v42 = vadd.f32 1e-05, %v6264_v22  ;;  %v6265_v32 = vmul.f32 0.03125, %v6263_v26 }
0x2951   : > { %9148 = vrsqrt.f32 %v6266_v42  ;;  %v6267_v36 = vadd.f32 1e-05, %v6265_v32 }
0x2953   : > { %9150 = vrsqrt.f32 %v6267_v36 }
0x295b   : > { %v9149_v60 = vpop.eup %9148 }
0x295c   : > { %v6270_v59 = vmul.f32 %v9149_v60, %v6254_v19 }
0x295d   : > { %v9151_v5 = vpop.eup %9150 }
0x295e   : > { %v6278_v48 = vmul.f32 %v7704_v45, %v6270_v59  ;;  %v6271_v55 = vmul.f32 %v9151_v5, %v6255_v54 }
0x2960   : > { %v6279_v11 = vmul.f32 %v7704_v45, %v6271_v55  ;;  %v6286_v0 = vadd.f32 %v7705_v56, %v6278_v48 }
0x2962   : > { %v6287_v28 = vadd.f32 %v7705_v56, %v6279_v11 }
0x2964   : > { %v10630_v34 = vpack.c.bf16 %v6287_v28, %v6286_v0 }
0x2966   : > { %8584 = vmatmul.mubr.msk.bf16.vlgmr.msra.gmra.mrb[136].mxu0 %vm5248_vm7, %v10630_v34 }
0x2967   : > { %8588 = vmatpush3.bf16.msra.mxu0 %v8872_v31  ;;  %8591 = vmatprep.mubr.msk.bf16.mxu0 %vm9281_vm6, %v9280_v7  ;;  %v8880_v31 = vld [vmem:[%s10903_s5 + $0x30] sm:$0xff]  }
0x2968   : > { %8589 = vmatprep.subr.bf16.mxu0 %v9280_v7 }
0x296b   : > { %8590 = vmatpush3.bf16.msra.mxu0 %v8873_v35 }
0x296c   : > { %8595 = vmatprep.subr.bf16.mxu0 %v9280_v7 }
0x296e   : > { %8592 = vmatmul.mubr.msk.bf16.vlgmr.msra.gmra.mrb[140].mxu0 %vm5248_vm7, %v10630_v34 }
0x296f   : > { %8596 = vmatpush3.bf16.msra.mxu0 %v8874_v12  ;;  %8599 = vmatprep.mubr.msk.bf16.mxu0 %vm9281_vm6, %v9280_v7  ;;  %v8881_v12 = vld [vmem:[%s10903_s5 + $0x38] sm:$0xff]   ;;  %s7751_s5 = sshll.u32 %s9504_s0, 4  ;;  %s9282_s0 = smov [#allocation2]  }
0x2970   : > { %8597 = vmatprep.subr.bf16.mxu0 %v9280_v7 }
0x2973   : > { %8598 = vmatpush3.bf16.msra.mxu0 %v8875_v16 }
0x2974   : > { %8603 = vmatprep.subr.bf16.mxu0 %v9280_v7 }
0x2976   : > { %8600 = vmatmul.mubr.msk.bf16.vlgmr.msra.gmra.mrb[144].mxu0 %vm5248_vm7, %v10630_v34 }
0x2977   : > { %8605 = vmatprep.mubr.msk.bf16.mxu0 %vm9281_vm6, %v9280_v7 }
0x2a39   : > { %v6338_v24 = vpop.f32.mrb[136].mxu0 }
0x2a3a   : > { %v8585_v20 = vpop.f32.mrb[137].mxu0 }
0x2a3b   : > { %v6341_v13 = vpop.f32.mrb[138].mxu0 }
0x2a3c   : > { %v6451_v63 = vpack.c.bf16 %v6341_v13, %v6338_v24  ;;  %v8586_v44 = vpop.f32.mrb[139].mxu0 }
0x2a41   : > { %v6391_v52 = vpop.f32.mrb[140].mxu0 }
0x2a42   : > { %v8593_v33 = vpop.f32.mrb[141].mxu0 }
0x2a43   : > { %v6394_v23 = vpop.f32.mrb[142].mxu0 }
0x2a44   : > { %v6452_v3 = vpack.c.bf16 %v6394_v23, %v6391_v52  ;;  %v8594_v14 = vpop.f32.mrb[143].mxu0 }
0x2a46   : > { %v6457_v17 = vsel %vm1308_vm2, %v6452_v3, 0 }
0x2a47   : > { %8604 = vmatpush3.bf16.xpose.msra.mxu0 %v6457_v17 }
0x2a48   : > { %8615 = vmatprep.subr.bf16.mxu0 %v9280_v7 }
0x2a49   : > { %v6444_v49 = vpop.f32.mrb[144].mxu0 }
0x2a4a   : > { %v8601_v29 = vpop.f32.mrb[145].mxu0 }
0x2a4b   : > { %v6447_v57 = vpop.f32.mrb[146].mxu0 }
0x2a4c   : > { %v6523_v9 = vpack.c.bf16 %v6447_v57, %v6444_v49  ;;  %v8602_v40 = vpop.f32.mrb[147].mxu0  ;;  %v7679_v49 = vld [vmem:[%s10907_s9 + $0x38] sm:$0xff] }
0x2a4e   : > { %8606 = vmatmul.mubr.msk.bf16.vlgmr.msra.gmra.mrb[148].mxu0 %vm1308_vm2, %v6451_v63  ;;  %8610 = vmatpush3.bf16.msra.mxu1 %v6523_v9 }
0x2a4f   : > { %8616 = vmatpush3.bf16.msra.mxu0 %v8876_v41  ;;  %8619 = vmatprep.mubr.msk.bf16.mxu0 %vm9281_vm6, %v9280_v7 }
0x2a50   : > { %8617 = vmatprep.subr.bf16.mxu0 %v9280_v7  ;;  %8623 = vmatprep.subr.bf16.mxu1 %v9280_v7 }
0x2a53   : > { %8618 = vmatpush3.bf16.msra.mxu0 %v8877_v4 }
0x2a54   : > { %8631 = vmatprep.subr.bf16.mxu0 %v9280_v7 }
0x2a56   : > { %8620 = vmatmul.mubr.msk.bf16.vlgmr.msra.gmra.mrb[152].mxu0 %vm5248_vm7, %v10630_v34 }
0x2a57   : > { %8632 = vmatpush3.bf16.msra.mxu0 %v8878_v21  ;;  %8635 = vmatprep.mubr.msk.bf16.mxu0 %vm9281_vm6, %v9280_v7 }
0x2a58   : > { %8633 = vmatprep.subr.bf16.mxu0 %v9280_v7 }
0x2a5b   : > { %8634 = vmatpush3.bf16.msra.mxu0 %v8879_v43 }
0x2a5c   : > { %8645 = vmatprep.subr.bf16.mxu0 %v9280_v7 }
0x2a5e   : > { %8636 = vmatmul.mubr.msk.bf16.vlgmr.msra.gmra.mrb[156].mxu0 %vm5248_vm7, %v10630_v34 }
0x2a5f   : > { %8647 = vmatprep.mubr.msk.bf16.mxu0 %vm9281_vm6, %v9280_v7 }
0x2b21   : > { %v6493_v47 = vpop.f32.mrb[148].mxu0 }
0x2b22   : > { %v6494_v58 = vadd.f32 %v7676_v37, %v6493_v47  ;;  %v8607_v53 = vpop.f32.mrb[149].mxu0 }
0x2b23   : > { %v6496_v62 = vpop.f32.mrb[150].mxu0 }
0x2b24   : > { %v6497_v1 = vadd.f32 %v7677_v27, %v6496_v62  ;;  %v8608_v2 = vpop.f32.mrb[151].mxu0  ;;  %v6500_v50 = vsel %vm1308_vm2, %v6494_v58, -inf }
0x2b25   : > { %6501 = vmax.xlane.f32.xlu0 %v6500_v50 }
0x2b26   : > { %v6503_v30 = vsel %vm1308_vm2, %v6497_v1, -inf }
0x2b27   : > { %6504 = vmax.xlane.f32.xlu1 %v6503_v30  ;;  %v8883_v30 = vld [vmem:[%s10908_s11 + $0x18] sm:$0xff]  }
0x2b29   : > { %v6615_v46 = vpop.f32.mrb[152].mxu0 }
0x2b2a   : > { %v8621_v19 = vpop.f32.mrb[153].mxu0 }
0x2b2b   : > { %v6618_v6 = vpop.f32.mrb[154].mxu0 }
0x2b2c   : > { %v6728_v54 = vpack.c.bf16 %v6618_v6, %v6615_v46  ;;  %v8622_v25 = vpop.f32.mrb[155].mxu0 }
0x2b31   : > { %v6721_v10 = vpop.f32.mrb[156].mxu0 }
0x2b32   : > { %v8637_v8 = vpop.f32.mrb[157].mxu0 }
0x2b33   : > { %v6724_v18 = vpop.f32.mrb[158].mxu0  ;;  %v8882_v8 = vld [vmem:[%s10908_s11 + $0x10] sm:$0xff]   ;;  %s9182_s11 = sshll.u32 %s9282_s0, 4  ;;  %s9183_s11 = int_to_ptr.vmem [resolvable:$false] %s9182_s11 }
0x2b34   : > { %v6800_v51 = vpack.c.bf16 %v6724_v18, %v6721_v10  ;;  %v8638_v15 = vpop.f32.mrb[159].mxu0  ;;  %p9185_p0 = scmp.lt.s32.totalorder %s10774_s8, %s9183_s11 }
0x2b36   : > { %8646 = vmatpush3.bf16.msra.mxu0 %v6800_v51 }
0x2b37   : > { %8657 = vmatprep.subr.bf16.mxu0 %v9280_v7 }
0x2bb2   : > { %v6502_v39 = vpop.xlane.xlu0 %6501 }
0x2bb3   : > { %v6506_v22 = vsub.f32 %v6494_v58, %v6502_v39 }
0x2bb4   : > { %v6505_v26 = vpop.xlane.xlu1 %6504 }
0x2bb5   : > { %v6508_v42 = vmul.f32 1.442695, %v6506_v22  ;;  %v6507_v32 = vsub.f32 %v6497_v1, %v6505_v26 }
0x2bb7   : > { %9152 = vpow2.f32 %v6508_v42  ;;  %v6510_v36 = vmul.f32 1.442695, %v6507_v32 }
0x2bb9   : > { %9154 = vpow2.f32 %v6510_v36 }
0x2bc1   : > { %v9153_v60 = vpop.eup %9152 }
0x2bc2   : > { %v6512_v45 = vsel %vm1308_vm2, %v9153_v60, 0.0 }
0x2bc3   : > { %v9155_v59 = vpop.eup %9154  ;;  %6513 = vadd.xlane.f32.xlu0 %v6512_v45 }
0x2bc4   : > { %v6515_v5 = vsel %vm1308_vm2, %v9155_v59, 0.0 }
0x2bc5   : > { %6516 = vadd.xlane.f32.xlu1 %v6515_v5 }
0x2c50   : > { %v6514_v48 = vpop.xlane.xlu0 %6513 }
0x2c51   : > { %9156 = vrcp.f32 %v6514_v48  ;;  %v7732_v48 = vld [vmem:[%s10909_s13 + $0x1] ss:$0 sm:$0xff]  ;;  %s9184_s13 = scalar_lea.vmem %s9183_s11, 32 }
0x2c52   : > { %v6517_v55 = vpop.xlane.xlu1 %6516 }
0x2c53   : > { %9158 = vrcp.f32 %v6517_v55 }
0x2c5b   : > { %v9157_v56 = vpop.eup %9156 }
0x2c5c   : > { %v6520_v0 = vmul.f32 %v9157_v56, %v9153_v60 }
0x2c5d   : > { %v9159_v11 = vpop.eup %9158 }
0x2c5e   : > { %v6521_v28 = vmul.f32 %v9159_v11, %v9155_v59 }
0x2c60   : > { %v6522_v35 = vpack.c.bf16 %v6521_v28, %v6520_v0 }
0x2c62   : > { %8612 = vmatmul.mubr.msk.bf16.vlgmr.msra.gmra.mrb[168].mxu1 %vm1308_vm2, %v6522_v35 }
0x2c63   : > { %8624 = vmatpush3.bf16.msra.mxu1 %v8880_v31  ;;  %8627 = vmatprep.mubr.msk.bf16.mxu1 %vm9281_vm6, %v9280_v7 }
0x2c64   : > { %8625 = vmatprep.subr.bf16.mxu1 %v9280_v7 }
0x2c67   : > { %8626 = vmatpush3.bf16.msra.mxu1 %v8881_v12 }
0x2c68   : > { %8639 = vmatprep.subr.bf16.mxu1 %v9280_v7 }
0x2c6a   : > { %8628 = vmatmul.mubr.msk.bf16.vlgmr.msra.gmra.mrb[172].mxu1 %vm5248_vm7, %v10630_v34  ;;  %v7678_v34 = vld [vmem:[%s10907_s9 + $0x30] sm:$0xff]  ;;  %s10772_s9 = scalar_lea.hbm %s9481_s12, %s7751_s5 }
0x2c6b   : > { %8641 = vmatprep.mubr.msk.bf16.mxu1 %vm9281_vm6, %v9280_v7 }
0x2d35   : > { %v6561_v16 = vpop.f32.mrb[168].mxu1 }
0x2d36   : > { %v8613_v24 = vpop.f32.mrb[169].mxu1 }
0x2d37   : > { %v6564_v20 = vpop.f32.mrb[170].mxu1 }
0x2d38   : > { %v6568_v13 = vpack.c.bf16 %v6564_v20, %v6561_v16  ;;  %v8614_v63 = vpop.f32.mrb[171].mxu1 }
0x2d3d   : > { %v6668_v44 = vpop.f32.mrb[172].mxu1 }
0x2d3e   : > { %v8629_v52 = vpop.f32.mrb[173].mxu1 }
0x2d3f   : > { %v6671_v33 = vpop.f32.mrb[174].mxu1 }
0x2d40   : > { %v6729_v23 = vpack.c.bf16 %v6671_v33, %v6668_v44  ;;  %v8630_v3 = vpop.f32.mrb[175].mxu1 }
0x2d41   : > { %v8884_v3 = vld [vmem:[%s10910_s14 + $0x10] sm:$0xff]  }
0x2d42   : > { %v6734_v14 = vsel %vm1308_vm2, %v6729_v23, 0 }
0x2d43   : > { %8640 = vmatpush3.bf16.xpose.msra.mxu1 %v6734_v14  ;;  %v8885_v14 = vld [vmem:[%s10910_s14 + $0x18] sm:$0xff]  }
0x2d44   : > { %8651 = vmatprep.subr.bf16.mxu1 %v9280_v7 }
0x2d4a   : > { %8642 = vmatmul.mubr.msk.bf16.vlgmr.msra.gmra.mrb[176].mxu1 %vm1308_vm2, %v6728_v54 }
0x2d4b   : > { %8653 = vmatprep.mubr.msk.bf16.mxu1 %vm9281_vm6, %v9280_v7  ;;  %8652 = vmatpush3.bf16.msra.mxu1 %v8883_v30  ;;  %v8889_v30 = vld [vmem:[%s10911_s17 + $0x58] sm:$0xff]  }
0x2d4c   : > { %8663 = vmatprep.subr.bf16.mxu1 %v9280_v7 }
0x2e1d   : > { %v6770_v17 = vpop.f32.mrb[176].mxu1 }
0x2e1e   : > { %v6771_v29 = vadd.f32 %v7678_v34, %v6770_v17  ;;  %v8643_v57 = vpop.f32.mrb[177].mxu1  ;;  %v8886_v34 = vld [vmem:[%s10911_s17 + $0x40] sm:$0xff]   ;;  %v8887_v17 = vld [vmem:[%s10911_s17 + $0x48] sm:$0xff]  }
0x2e1f   : > { %v6773_v41 = vpop.f32.mrb[178].mxu1 }
0x2e20   : > { %v6774_v9 = vadd.f32 %v7679_v49, %v6773_v41  ;;  %v8644_v40 = vpop.f32.mrb[179].mxu1  ;;  %v6777_v4 = vsel %vm1308_vm2, %v6771_v29, -inf }
0x2e21   : > { %6778 = vmax.xlane.f32.xlu0 %v6777_v4 }
0x2e22   : > { %v6780_v21 = vsel %vm1308_vm2, %v6774_v9, -inf }
0x2e23   : > { %6781 = vmax.xlane.f32.xlu1 %v6780_v21  ;;  %v7733_v21 = vld [vmem:[%s10912_s19 + $0x1] ss:$0 sm:$0xff] }
0x2eae   : > { %v6779_v43 = vpop.xlane.xlu0 %6778 }
0x2eaf   : > { %v6783_v37 = vsub.f32 %v6771_v29, %v6779_v43 }
0x2eb0   : > { %v6782_v47 = vpop.xlane.xlu1 %6781 }
0x2eb1   : > { %v6785_v27 = vmul.f32 1.442695, %v6783_v37  ;;  %v6784_v58 = vsub.f32 %v6774_v9, %v6782_v47 }
0x2eb3   : > { %9160 = vpow2.f32 %v6785_v27  ;;  %v6787_v53 = vmul.f32 1.442695, %v6784_v58  ;;  %v7734_v58 = vld [vmem:[%s10913_s21 + $0x1] ss:$0 sm:$0xff] }
0x2eb5   : > { %9162 = vpow2.f32 %v6787_v53 }
0x2ebd   : > { %v9161_v62 = vpop.eup %9160 }
0x2ebe   : > { %v6789_v1 = vsel %vm1308_vm2, %v9161_v62, 0.0 }
0x2ebf   : > { %v9163_v2 = vpop.eup %9162  ;;  %6790 = vadd.xlane.f32.xlu0 %v6789_v1 }
0x2ec0   : > { %v6792_v50 = vsel %vm1308_vm2, %v9163_v2, 0.0 }
0x2ec1   : > { %6793 = vadd.xlane.f32.xlu1 %v6792_v50  ;;  %v8888_v50 = vld [vmem:[%s10911_s17 + $0x50] sm:$0xff]  }
0x2f4c   : > { %v6791_v46 = vpop.xlane.xlu0 %6790 }
0x2f4d   : > { %9164 = vrcp.f32 %v6791_v46  ;;  %v8890_v46 = vld [vmem:[%s10911_s17 + $0x60] sm:$0xff]  }
0x2f4e   : > { %v6794_v19 = vpop.xlane.xlu1 %6793 }
0x2f4f   : > { %9166 = vrcp.f32 %v6794_v19  ;;  %v8891_v19 = vld [vmem:[%s10911_s17 + $0x68] sm:$0xff]  }
0x2f57   : > { %v9165_v6 = vpop.eup %9164 }
0x2f58   : > { %v6797_v25 = vmul.f32 %v9165_v6, %v9161_v62  ;;  %v8892_v6 = vld [vmem:[%s10911_s17 + $0x70] sm:$0xff]  }
0x2f59   : > { %v9167_v54 = vpop.eup %9166 }
0x2f5a   : > { %v6798_v10 = vmul.f32 %v9167_v54, %v9163_v2  ;;  %v8893_v54 = vld [vmem:[%s10911_s17 + $0x78] sm:$0xff]  }
0x2f5c   : > { %v6799_v18 = vpack.c.bf16 %v6798_v10, %v6797_v25  ;;  %v7735_v25 = vld [vmem:[%s10914_s23 + $0x1] ss:$0 sm:$0xff] }
0x2f5e   : > { %8648 = vmatmul.mubr.msk.bf16.vlgmr.msra.gmra.mrb[160].mxu0 %vm1308_vm2, %v6799_v18 }
0x2f5f   : > { %8658 = vmatpush3.bf16.msra.mxu0 %v8882_v8  ;;  %8659 = vmatprep.mubr.msk.bf16.mxu0 %vm9281_vm6, %v9280_v7 }
0x2f60   : > { %8671 = vmatprep.subr.bf16.mxu0 %v9280_v7 }
0x2f66   : > { %8660 = vmatmul.mubr.msk.bf16.vlgmr.msra.gmra.mrb[164].mxu0 %vm1308_vm2, %v6568_v13 }
0x2f67   : > { %8687 = vmatprep.mubr.msk.bf16.mxu0 %vm9281_vm6, %v9280_v7  ;;  %8672 = vmatpush3.bf16.msra.mxu0 %v8886_v34 }
0x2f68   : > { %8673 = vmatprep.subr.bf16.mxu0 %v9280_v7 }
0x2f6b   : > { %8674 = vmatpush3.bf16.msra.mxu0 %v8887_v17 }
0x2f6c   : > { %8675 = vmatprep.subr.bf16.mxu0 %v9280_v7 }
0x2f6f   : > { %8676 = vmatpush3.bf16.msra.mxu0 %v8888_v50 }
0x2f70   : > { %8677 = vmatprep.subr.bf16.mxu0 %v9280_v7 }
0x2f73   : > { %8678 = vmatpush3.bf16.msra.mxu0 %v8889_v30 }
0x2f74   : > { %8679 = vmatprep.subr.bf16.mxu0 %v9280_v7 }
0x2f77   : > { %8680 = vmatpush3.bf16.msra.mxu0 %v8890_v46 }
0x2f78   : > { %8681 = vmatprep.subr.bf16.mxu0 %v9280_v7 }
0x2f7b   : > { %8682 = vmatpush3.bf16.msra.mxu0 %v8891_v19 }
0x2f7c   : > { %8683 = vmatprep.subr.bf16.mxu0 %v9280_v7 }
0x2f7f   : > { %8684 = vmatpush3.bf16.msra.mxu0 %v8892_v6 }
0x2f80   : > { %8685 = vmatprep.subr.bf16.mxu0 %v9280_v7 }
0x2f83   : > { %8686 = vmatpush3.bf16.msra.mxu0 %v8893_v54 }
0x3031   : > { %v6838_v51 = vpop.f32.mrb[160].mxu0 }
0x3032   : > { %v8649_v15 = vpop.f32.mrb[161].mxu0 }
0x3033   : > { %v6841_v39 = vpop.f32.mrb[162].mxu0 }
0x3034   : > { %v6845_v22 = vpack.c.bf16 %v6841_v39, %v6838_v51  ;;  %v8650_v26 = vpop.f32.mrb[163].mxu0 }
0x3036   : > { %8654 = vmatmul.mubr.msk.bf16.vlgmr.msra.gmra.mrb[180].mxu1 %vm1308_vm2, %v6845_v22 }
0x3037   : > { %8667 = vmatprep.mubr.msk.bf16.mxu1 %vm9281_vm6, %v9280_v7  ;;  %8664 = vmatpush3.bf16.msra.mxu1 %v8884_v3 }
0x3038   : > { %8665 = vmatprep.subr.bf16.mxu1 %v9280_v7 }
0x3039   : > { %v6939_v42 = vpop.f32.mrb[164].mxu0 }
0x303a   : > { %v8661_v32 = vpop.f32.mrb[165].mxu0 }
0x303b   : > { %v6942_v36 = vpop.f32.mrb[166].mxu0  ;;  %8666 = vmatpush3.bf16.msra.mxu1 %v8885_v14 }
0x303c   : > { %v8662_v60 = vpop.f32.mrb[167].mxu0  ;;  %8691 = vmatprep.subr.bf16.mxu1 %v9280_v7 }
0x3109   : > { %v6889_v45 = vpop.f32.mrb[180].mxu1 }
0x310a   : > { %v6940_v59 = vadd.f32 %v6939_v42, %v6889_v45  ;;  %v8655_v5 = vpop.f32.mrb[181].mxu1 }
0x310b   : > { %v6892_v55 = vpop.f32.mrb[182].mxu1 }
0x310c   : > { %v6946_v56 = vadd.f32 %v6940_v59, %v10610_v61  ;;  %v6943_v11 = vadd.f32 %v6942_v36, %v6892_v55  ;;  %v8656_v0 = vpop.f32.mrb[183].mxu1 }
0x310e   : > { %v10717_v28 = vadd.f32 %v7732_v48, %v6946_v56  ;;  %v6947_v31 = vadd.f32 %v6943_v11, %v10613_v38  ;;  %v7739_v56 = vld [vmem:[%s10915_s24 + $0x1] ss:$0 sm:$0xff] }
0x3110   : > { %v10720_v35 = vadd.f32 %v7732_v48, %v6947_v31  ;;  %v6956_v12 = vsel %vm5248_vm7, %v10717_v28, 0.0 }
0x3111   : > { %6957 = vadd.xlane.f32.xlu0 %v6956_v12 }
0x3112   : > { %v6959_v16 = vsel %vm5248_vm7, %v10720_v35, 0.0 }
0x3113   : > { %6960 = vadd.xlane.f32.xlu1 %v6959_v16 }
0x319e   : > { %v6958_v24 = vpop.xlane.xlu0 %6957 }
0x319f   : > { %v6962_v61 = vmul.f32 0.03125, %v6958_v24 }
0x31a0   : > { %v6961_v20 = vpop.xlane.xlu1 %6960 }
0x31a1   : > { %v6964_v13 = vsub.f32 %v10717_v28, %v6962_v61  ;;  %v6963_v63 = vmul.f32 0.03125, %v6961_v20 }
0x31a3   : > { %v6965_v38 = vsub.f32 %v10720_v35, %v6963_v63  ;;  %v6966_v44 = vmul.f32 %v6964_v13, %v6964_v13 }
0x31a5   : > { %v6968_v52 = vsel %vm5248_vm7, %v6966_v44, 0.0  ;;  %v6967_v33 = vmul.f32 %v6965_v38, %v6965_v38 }
0x31a6   : > { %6969 = vadd.xlane.f32.xlu0 %v6968_v52 }
0x31a7   : > { %v6971_v23 = vsel %vm5248_vm7, %v6967_v33, 0.0 }
0x31a8   : > { %6972 = vadd.xlane.f32.xlu1 %v6971_v23 }
0x3233   : > { %v6970_v49 = vpop.xlane.xlu0 %6969 }
0x3234   : > { %v6974_v29 = vmul.f32 0.03125, %v6970_v49 }
0x3235   : > { %v6973_v57 = vpop.xlane.xlu1 %6972 }
0x3236   : > { %v6976_v41 = vadd.f32 1e-05, %v6974_v29  ;;  %v6975_v9 = vmul.f32 0.03125, %v6973_v57 }
0x3238   : > { %9168 = vrsqrt.f32 %v6976_v41  ;;  %v6977_v40 = vadd.f32 1e-05, %v6975_v9  ;;  %v8894_v41 = vld [vmem:[%s9471_s27] sm:$0xff]   ;;  %v8895_v9 = vld [vmem:[%s9471_s27 + $0x8] sm:$0xff]  }
0x323a   : > { %9170 = vrsqrt.f32 %v6977_v40 }
0x3242   : > { %v9169_v4 = vpop.eup %9168 }
0x3243   : > { %v6980_v43 = vmul.f32 %v9169_v4, %v6964_v13 }
0x3244   : > { %v9171_v37 = vpop.eup %9170 }
0x3245   : > { %v6988_v47 = vmul.f32 %v7733_v21, %v6980_v43  ;;  %v6981_v27 = vmul.f32 %v9171_v37, %v6965_v38  ;;  %v7179_v37 = vld [vmem:[%s10916_s1] sm:$0x1]  ;;  %s7260_s1 = scalar_lea.sflag [#allocation3], %s1145_s3 }
0x3247   : > { %v6989_v53 = vmul.f32 %v7733_v21, %v6981_v27  ;;  %v6996_v62 = vadd.f32 %v7734_v58, %v6988_v47  ;;  %v7180_v27 = vld [vmem:[%s9466_s20] sm:$0x1] }
0x3249   : > { %v6997_v1 = vadd.f32 %v7734_v58, %v6989_v53 }
0x324b   : > { %v6998_v2 = vpack.c.bf16 %v6997_v1, %v6996_v62 }
0x324d   : > { %8668 = vmatmul.mubr.msk.bf16.vlgmr.msra.gmra.mrb[184].mxu1 %vm5248_vm7, %v6998_v2 }
0x324e   : > { %8695 = vmatprep.mubr.msk.bf16.mxu1 %vm9281_vm6, %v9280_v7  ;;  %8692 = vmatpush3.bf16.msra.mxu1 %v8894_v41 }
0x324f   : > { %8693 = vmatprep.subr.bf16.mxu1 %v9280_v7  ;;  %v7201_v7 = vld [vmem:[%s10917_s4] sm:$0x1]  ;;  %s9178_s4 = scalar_lea.vmem %s10774_s8, 16 }
0x3250   : > { %p9179_p11 = scmp.ne.s32.totalorder %s10774_s8, %s9178_s4  ;;  %p9186_p1 = scmp.lt.s32.totalorder %s9184_s13, %s9178_s4 }
0x3252   : > { %8694 = vmatpush3.bf16.msra.mxu1 %v8895_v9  ;;  %p9180_p12 = pnand %p9179_p11, %p9521_p5  ;;  %p9187_p2 = por %p9186_p1, %p9185_p0 }
0x3254   : > { %p9181_p13 = pneg %p9180_p12 }
0x3256   : > { %p9188_p3 = pnand %p9187_p2, %p9181_p13 }
0x3320   : > { %v7054_v10 = vpop.f32.mrb[184].mxu1 }
0x3321   : > { %v7055_v8 = vadd.f32 %v7735_v25, %v7054_v10  ;;  %v8669_v18 = vpop.f32.mrb[185].mxu1 }
0x3322   : > { %v7057_v51 = vpop.f32.mrb[186].mxu1 }
0x3323   : > { %v7063_v15 = vmul.f32 0.70710677, %v7055_v8  ;;  %v7058_v39 = vadd.f32 %v7735_v25, %v7057_v51  ;;  %v8670_v22 = vpop.f32.mrb[187].mxu1  ;;  %v7061_v60 = vmul.f32 0.5, %v7055_v8 }
0x3325   : > { %9172 = verf.f32 %v7063_v15  ;;  %v7064_v26 = vmul.f32 0.70710677, %v7058_v39  ;;  %v7062_v45 = vmul.f32 0.5, %v7058_v39 }
0x3327   : > { %9174 = verf.f32 %v7064_v26 }
0x332f   : > { %v9173_v42 = vpop.eup %9172 }
0x3330   : > { %v7067_v32 = vadd.f32 1.0, %v9173_v42 }
0x3331   : > { %v9175_v36 = vpop.eup %9174 }
0x3332   : > { %v7068_v59 = vadd.f32 1.0, %v9175_v36  ;;  %v7069_v5 = vmul.f32 %v7067_v32, %v7061_v60 }
0x3334   : > { %v7070_v48 = vmul.f32 %v7068_v59, %v7062_v45 }
0x3336   : > { %v7071_v55 = vpack.c.bf16 %v7070_v48, %v7069_v5 }
0x3338   : > { %8688 = vmatmul.mubr.bf16.vlgmr.msra.gmra.mrb[168].mxu0 %v7071_v55 }
0x340b   : > { %v7160_v11 = vpop.f32.mrb[168].mxu0 }
0x340c   : > { %v7161_v0 = vadd.f32 %v7739_v56, %v7160_v11  ;;  %v8689_v31 = vpop.f32.mrb[169].mxu0 }
0x340d   : > { %v7163_v12 = vpop.f32.mrb[170].mxu0 }
0x340e   : > { %v7167_v16 = vadd.f32 %v7161_v0, %v10717_v28  ;;  %v7164_v24 = vadd.f32 %v7739_v56, %v7163_v12  ;;  %v8690_v61 = vpop.f32.mrb[171].mxu0 }
0x3410   : > { %v7168_v20 = vadd.f32 %v7164_v24, %v10720_v35  ;;  %v7169_v13 = vsel %vm5248_vm7, %v7167_v16, 0.0 }
0x3412   : > { %v7170_v63 = vsel %vm5248_vm7, %v7168_v20, 0.0 }
0x3413   : > { %v7171_v38 = vadd.f32 %v7170_v63, %v7169_v13 }
0x3415   : > { %v7172_v44 = vrot.slane %v7171_v38, 4 }
0x3417   : > { %v7173_v52 = vadd.f32 %v7172_v44, %v7171_v38 }
0x3419   : > { %v7174_v33 = vrot.slane %v7173_v52, 2 }
0x341b   : > { %v7175_v23 = vadd.f32 %v7174_v33, %v7173_v52 }
0x341d   : > { %v7176_v3 = vrot.slane %v7175_v23, 1 }
0x341f   : > { %v7177_v14 = vadd.f32 %v7176_v3, %v7175_v23 }
0x3421   : > { %v7178_v34 = vmul.f32 0.0625, %v7177_v14 }
0x3423   : > { %v7181_v28 = vsel %vm5248_vm7, %v7178_v34, 0.0 }
0x3424   : > { %7182 = vadd.xlane.f32.xlu0 %v7181_v28 }
0x34b1   : > { %v7183_v17 = vpop.xlane.xlu0 %7182 }
0x34b2   : > { %v7184_v35 = vmul.f32 0.03125, %v7183_v17 }
0x34b4   : > { %v7185_v49 = vsub.f32 %v7178_v34, %v7184_v35 }
0x34b6   : > { %v7186_v29 = vmul.f32 %v7185_v49, %v7185_v49 }
0x34b8   : > { %v7187_v57 = vsel %vm5248_vm7, %v7186_v29, 0.0 }
0x34b9   : > { %7188 = vadd.xlane.f32.xlu1 %v7187_v57 }
0x3546   : > { %v7189_v40 = vpop.xlane.xlu1 %7188 }
0x3547   : > { %v7190_v4 = vmul.f32 0.03125, %v7189_v40 }
0x3549   : > { %v7191_v21 = vadd.f32 1e-05, %v7190_v4 }
0x354b   : > { %9176 = vrsqrt.f32 %v7191_v21 }
0x3555   : > { %v9177_v43 = vpop.eup %9176 }
0x3556   : > { %v7193_v47 = vmul.f32 %v9177_v43, %v7185_v49 }
0x3558   : > { %v7194_v58 = vmul.f32 %v7193_v47, %v7179_v37 }
0x355a   : > { %v7195_v53 = vadd.f32 %v7194_v58, %v7180_v27 }
0x355c   : > { %v7196_v62 = vpack.c.bf16 %v7195_v53, %v7195_v53 }
0x355e   : > { %8696 = vmatmul.mubr.msk.bf16.vlgmr.msra.gmra.mrb[188].mxu1 %vm5248_vm7, %v7196_v62 }
0x3631   : > { %v7251_v1 = vpop.f32.mrb[188].mxu1 }
0x3632   : > { %v7252_v2 = vadd.f32 %v7251_v1, %v7201_v7  ;;  %v8697_v50 = vpop.f32.mrb[189].mxu1 }
0x3633   : > { %v7254_v30 = vpop.f32.mrb[190].mxu1 }
0x3634   : > { %v8698_v46 = vpop.f32.mrb[191].mxu1  ;;  %7258 = vst.msk [vmem:[%s1146_s6] sm:$0x1] %vm7257_vm8, %v7252_v2 }
0x3635   : > { %9191 = shalt.err (!%p9188_p3)
}
0x3636   : > { %s9192_s5 = scalar_lea.hbm %s10772_s9, 16  ;;  %s9196_s6 = scalar_lea.hbm %s9481_s12, 32 }
0x3637   : > { %p9193_p4 = scmp.ne.s32.totalorder %s10772_s9, %s9192_s5  ;;  %p9197_p9 = scmp.lt.u32.totalorder %s10772_s9, %s9481_s12 }
0x3638   : > { %p9198_p10 = scmp.lt.u32.totalorder %s9196_s6, %s9192_s5  ;;  %p9200_p12 = scmp.lt.u32.totalorder %s9192_s5, %s10772_s9 }
0x3639   : > { %p9194_p7 = pnand %p9193_p4, %p9521_p5 }
0x363a   : > { %p9199_p11 = por %p9198_p10, %p9197_p9 }
0x363b   : > { %p9195_p8 = pneg %p9194_p7 }
0x363c   : > { %p9201_p0 = por %p9200_p12, %p9199_p11 }
0x363e   : > { %p9202_p13 = pnand %p9201_p0, %p9195_p8 }
0x3640   : > { %9205 = shalt.err (!%p9202_p13)
}
0x3641   : > { %8736 = dma.vmem_to_hbm [thread:$0]  (%p9521_p5), %s10774_s8, 16, %s10772_s9, %s7260_s1  }
0x3642 PF: > { %p8742_p1 = scmp.ge.s32.totalorder %s9240_s22, 2  ;;  %s7284_s13 = sand.u32 1, %s9228_s15  }
0x3643   : > { %s7285_s4 = scalar_lea.sflag [#allocation3], %s7284_s13 }
0x3644   : > { %p8739_p2 = pnand %p8742_p1, %p9525_p6 }
0x3646   : > { %9223 = dma.done.wait (!%p8739_p2), %s7285_s4, 16  }
0x3647   : > { %9225 = vsyncadd (!%p8739_p2), %s7285_s4, 4294967280  ;;  %p87_p3 = scmp.ge.s32.totalorder %s9508_s26, 4   ;;  %s10918_s15 = smov %s9232_s16 }
0x3648   : > { %s10919_s16 = smov %s9236_s18  ;;  %s10920_s18 = smov %s9519_s2 }
0x3649   : > { %s10921_s22 = smov %s9508_s26  ;;  %89 = sbr.rel (!%p87_p3) target bundleno = 88 (0x58), region = 279 }
0x3650   :  { %7289 = vsyncpa [#allocation3], 1 }
0x3651   :  { %7291 = vsyncpa [#allocation3 + $0x1], 1 }

</bundles_post_ra>
